<compile_context>
chip_gen: v7x
topology: tpu7x:2x2x1
jax: 0.10.0
libtpu: 0.0.40
codegen_flags: <defaults>
</compile_context>

<pallas_src>
import functools

import numpy as np
import jax
import jax.numpy as jnp
from jax.experimental import pallas as pl
from jax.experimental.pallas import tpu as pltpu

DIMS = [169, 1024, 1024, 1024]
CLASSES = 5
OUT_PAD = 128  # lane-dense padded class dimension


def _round_up(n, m):
    return ((n + m - 1) // m) * m


def _pad2(a, shape):
    pad_r = shape[0] - a.shape[0]
    pad_c = shape[1] - a.shape[1]
    if pad_r == 0 and pad_c == 0:
        return a
    return jnp.pad(a, ((0, pad_r), (0, pad_c)))


def _make_kernel(use_masks):
    def kernel(*refs):
        if use_masks:
            (x_ref, w1_ref, w2_ref, w3_ref, wl_ref,
             m0_ref, m1_ref, m2_ref, out_ref) = refs
            mask_refs = (m0_ref, m1_ref, m2_ref)
        else:
            x_ref, w1_ref, w2_ref, w3_ref, wl_ref, out_ref = refs
            mask_refs = None

        def relu_mask(h_f32, idx):
            # ReLU (+ optional dropout mask) fused as one select, then cast to
            # bf16 for the next MXU pass.
            if mask_refs is None:
                return jnp.maximum(h_f32, 0.0).astype(jnp.bfloat16)
            m = mask_refs[idx][...].astype(jnp.float32)
            return jnp.where(h_f32 > 0.0, h_f32 * m, 0.0).astype(jnp.bfloat16)

        # fc1
        h = jnp.dot(x_ref[...], w1_ref[...], preferred_element_type=jnp.float32)
        h = relu_mask(h, 0)
        # fc2
        h = jnp.dot(h, w2_ref[...], preferred_element_type=jnp.float32)
        h = relu_mask(h, 1)
        # fc3
        h = jnp.dot(h, w3_ref[...], preferred_element_type=jnp.float32)
        h = relu_mask(h, 2)
        # fc_last (lane-padded to 128 columns; padded columns are zero weights)
        logits = jnp.dot(h, wl_ref[...], preferred_element_type=jnp.float32)
        valid = jax.lax.broadcasted_iota(jnp.int32, logits.shape, 1) < CLASSES
        logits = jnp.where(valid, logits, -1e30)
        # softmax over the class dimension
        mx = jnp.max(logits, axis=1, keepdims=True)
        e = jnp.exp(logits - mx)
        s = jnp.sum(e, axis=1, keepdims=True)
        out_ref[...] = e * pl.reciprocal(s, approx=True)

    return kernel


@functools.partial(jax.jit, static_argnames=("tm",))
def _net_fc_forward_impl(x, w1, w2, w3, wl, do_masks, tm):
    """All arrays pre-padded / pre-cast. do_masks is a tuple (possibly empty)."""
    use_masks = len(do_masks) > 0
    B_pad, K_pad = x.shape

    weight_spec = lambda shape: pl.BlockSpec(shape, lambda i: (0, 0))
    batch_spec = lambda feat: pl.BlockSpec((tm, feat), lambda i: (i, 0))

    args = [x, w1, w2, w3, wl]
    in_specs = [
        batch_spec(K_pad),
        weight_spec((K_pad, DIMS[1])),
        weight_spec((DIMS[1], DIMS[2])),
        weight_spec((DIMS[2], DIMS[3])),
        weight_spec((DIMS[3], OUT_PAD)),
    ]
    if use_masks:
        for d, m in enumerate(do_masks):
            args.append(m)
            in_specs.append(batch_spec(DIMS[d + 1]))

    out = pl.pallas_call(
        _make_kernel(use_masks),
        out_shape=jax.ShapeDtypeStruct((B_pad, OUT_PAD), jnp.float32),
        grid=(B_pad // tm,),
        in_specs=in_specs,
        out_specs=pl.BlockSpec((tm, OUT_PAD), lambda i: (i, 0)),
        compiler_params=pltpu.CompilerParams(
            dimension_semantics=("parallel",),   # megacore on v7x
            vmem_limit_bytes=32 << 20,
        ),
    )(*args)
    return out


def net_fc_forward(x, params, do_masks=None, *, tm=None):
    """Forward pass matching NetFC1x1024DOcust.forward.

    x:        (B, 169) float
    params:   dict with 'w1','w2','w3','w_last' stored as (in, out)
              (transpose of PyTorch's (out, in) nn.Linear weight)
    do_masks: None or list of 3 masks, each (B, 1024)
    """
    B, K = x.shape
    assert K == DIMS[0]
    if tm is None:
        # 256-row tiles for large batch (256-deep MXU on v6e/v7x); for tiny
        # batches just round up to the sublane multiple.
        tm = 256 if B >= 256 else max(8, _round_up(B, 8))
    B_pad = _round_up(B, tm)
    K_pad = _round_up(K, 128)  # 169 -> 256, lane-aligned

    bf = jnp.bfloat16
    x_p = _pad2(x.astype(bf), (B_pad, K_pad))
    w1 = _pad2(params["w1"].astype(bf), (K_pad, DIMS[1]))
    w2 = params["w2"].astype(bf)
    w3 = params["w3"].astype(bf)
    wl = _pad2(params["w_last"].astype(bf), (DIMS[3], OUT_PAD))

    if do_masks is None:
        masks = ()
    else:
        masks = tuple(
            _pad2(m.astype(bf), (B_pad, DIMS[d + 1]))
            for d, m in enumerate(do_masks)
        )

    out = _net_fc_forward_impl(x_p, w1, w2, w3, wl, masks, tm)
    return out[:B, :CLASSES]


def init_params(key):
    """Init mirroring torch.nn.init.uniform_(-sqrt(6/nin), +sqrt(6/nin)).

    PyTorch weights are (out, in); we store the transpose (in, out).
    """
    params = {}
    keys = jax.random.split(key, len(DIMS))  # 3 hidden layers + fc_last
    for d in range(len(DIMS) - 1):
        nin, nout = DIMS[d], DIMS[d + 1]
        limit = np.sqrt(6.0 / nin)
        params[f"w{d + 1}"] = jax.random.uniform(
            keys[d], (nin, nout), jnp.float32, minval=-limit, maxval=limit)
    nin = DIMS[-1]
    limit = np.sqrt(6.0 / nin)
    params["w_last"] = jax.random.uniform(
        keys[-1], (nin, CLASSES), jnp.float32, minval=-limit, maxval=limit)
    return params


def _reference_forward(x, params, do_masks):
    """Pure-JAX reference mirroring the kernel's bf16-weight / f32-accum math."""
    bf, f32 = jnp.bfloat16, jnp.float32

    def dot(a, wname):
        return jnp.dot(a.astype(bf), params[wname].astype(bf),
                       preferred_element_type=f32)

    h = jnp.maximum(dot(x, "w1"), 0.0)
    if do_masks is not None:
        h = h * do_masks[0].astype(bf).astype(f32)
    h = jnp.maximum(dot(h, "w2"), 0.0)
    if do_masks is not None:
        h = h * do_masks[1].astype(bf).astype(f32)
    h = jnp.maximum(dot(h, "w3"), 0.0)
    if do_masks is not None:
        h = h * do_masks[2].astype(bf).astype(f32)
    logits = dot(h, "w_last")
    return jax.nn.softmax(logits, axis=1)


if __name__ == "__main__":
    key = jax.random.PRNGKey(0)
    k_params, k_x, k_m = jax.random.split(key, 3)

    B = 8
    params = init_params(k_params)
    x = jax.random.normal(k_x, (B, DIMS[0]), jnp.float32)

    # Binary dropout-style masks (one per hidden layer), deterministic.
    # TODO(synk): if the caller expects nn.Dropout semantics, the 1/(1-p)
    # scaling must be folded into these masks externally (same as the PyTorch
    # module, which just multiplies by the provided masks).
    mkeys = jax.random.split(k_m, 3)
    do_masks = [
        (jax.random.uniform(mkeys[i], (B, DIMS[i + 1])) > 0.1).astype(jnp.float32)
        for i in range(3)
    ]

    out = jax.block_until_ready(net_fc_forward(x, params, do_masks))
    ref = _reference_forward(x, params, do_masks)
    np.testing.assert_allclose(np.asarray(out), np.asarray(ref),
                               rtol=1e-2, atol=1e-3)

    # Also exercise the do_masks=None branch (no mask DMA at all).
    out_nomask = jax.block_until_ready(net_fc_forward(x, params, None))
    ref_nomask = _reference_forward(x, params, None)
    np.testing.assert_allclose(np.asarray(out_nomask), np.asarray(ref_nomask),
                               rtol=1e-2, atol=1e-3)

    print("KERNEL_OK")
</pallas_src>

<mosaic_0001>
module attributes {stable_mosaic.version = 11 : i64} {
  func.func @kernel(%arg0: i32, %arg1: memref<8x256xbf16, #tpu.memory_space<vmem>>, %arg2: memref<256x1024xbf16, #tpu.memory_space<vmem>>, %arg3: memref<1024x1024xbf16, #tpu.memory_space<vmem>>, %arg4: memref<1024x1024xbf16, #tpu.memory_space<vmem>>, %arg5: memref<1024x128xbf16, #tpu.memory_space<vmem>>, %arg6: memref<8x1024xbf16, #tpu.memory_space<vmem>>, %arg7: memref<8x1024xbf16, #tpu.memory_space<vmem>>, %arg8: memref<8x1024xbf16, #tpu.memory_space<vmem>>, %arg9: memref<8x128xf32, #tpu.memory_space<vmem>>) attributes {dimension_semantics = [#tpu.dimension_semantics<parallel>], iteration_bounds = array<i64: 1>, scalar_prefetch = 0 : i64, scratch_operands = 0 : i64, tpu.core_type = #tpu.core_type<tc>, window_params = [{transform_indices = @transform_0, window_bounds = array<i64: 8, 256>}, {pipeline_mode = #tpu.pipeline_mode<synchronous>, transform_indices = @transform_1, window_bounds = array<i64: 256, 1024>}, {pipeline_mode = #tpu.pipeline_mode<synchronous>, transform_indices = @transform_2, window_bounds = array<i64: 1024, 1024>}, {pipeline_mode = #tpu.pipeline_mode<synchronous>, transform_indices = @transform_3, window_bounds = array<i64: 1024, 1024>}, {pipeline_mode = #tpu.pipeline_mode<synchronous>, transform_indices = @transform_4, window_bounds = array<i64: 1024, 128>}, {transform_indices = @transform_5, window_bounds = array<i64: 8, 1024>}, {transform_indices = @transform_6, window_bounds = array<i64: 8, 1024>}, {transform_indices = @transform_7, window_bounds = array<i64: 8, 1024>}, {transform_indices = @transform_8, window_bounds = array<i64: 8, 128>}]} {
    %c0 = arith.constant 0 : index
    %c0_0 = arith.constant 0 : index
    %0 = vector.load %arg1[%c0, %c0_0] : memref<8x256xbf16, #tpu.memory_space<vmem>>, vector<8x256xbf16>
    %c0_1 = arith.constant 0 : index
    %c0_2 = arith.constant 0 : index
    %1 = vector.load %arg2[%c0_1, %c0_2] : memref<256x1024xbf16, #tpu.memory_space<vmem>>, vector<256x1024xbf16>
    %cst = arith.constant dense<0.000000e+00> : vector<8x1024xf32>
    %2 = tpu.matmul %0, %1, %cst {dimension_numbers = #tpu.dot_dimension_numbers<[1], [0], [0], [1], [0, 0, 1, 1], [], []>} : vector<8x256xbf16>, vector<256x1024xbf16>, vector<8x1024xf32> -> vector<8x1024xf32>
    %c0_3 = arith.constant 0 : index
    %c0_4 = arith.constant 0 : index
    %3 = vector.load %arg6[%c0_3, %c0_4] : memref<8x1024xbf16, #tpu.memory_space<vmem>>, vector<8x1024xbf16>
    %4 = arith.extf %3 : vector<8x1024xbf16> to vector<8x1024xf32>
    %cst_5 = arith.constant 0.000000e+00 : f32
    %5 = vector.broadcast %cst_5 : f32 to vector<8x1024xf32>
    %6 = arith.cmpf ogt, %2, %5 : vector<8x1024xf32>
    %7 = arith.mulf %2, %4 : vector<8x1024xf32>
    %cst_6 = arith.constant 0.000000e+00 : f32
    %8 = vector.broadcast %cst_6 : f32 to vector<8x1024xf32>
    %9 = arith.select %6, %7, %8 : vector<8x1024xi1>, vector<8x1024xf32>
    %10 = arith.truncf %9 : vector<8x1024xf32> to vector<8x1024xbf16>
    %c0_7 = arith.constant 0 : index
    %c0_8 = arith.constant 0 : index
    %11 = vector.load %arg3[%c0_7, %c0_8] : memref<1024x1024xbf16, #tpu.memory_space<vmem>>, vector<1024x1024xbf16>
    %cst_9 = arith.constant dense<0.000000e+00> : vector<8x1024xf32>
    %12 = tpu.matmul %10, %11, %cst_9 {dimension_numbers = #tpu.dot_dimension_numbers<[1], [0], [0], [1], [0, 0, 1, 1], [], []>} : vector<8x1024xbf16>, vector<1024x1024xbf16>, vector<8x1024xf32> -> vector<8x1024xf32>
    %c0_10 = arith.constant 0 : index
    %c0_11 = arith.constant 0 : index
    %13 = vector.load %arg7[%c0_10, %c0_11] : memref<8x1024xbf16, #tpu.memory_space<vmem>>, vector<8x1024xbf16>
    %14 = arith.extf %13 : vector<8x1024xbf16> to vector<8x1024xf32>
    %cst_12 = arith.constant 0.000000e+00 : f32
    %15 = vector.broadcast %cst_12 : f32 to vector<8x1024xf32>
    %16 = arith.cmpf ogt, %12, %15 : vector<8x1024xf32>
    %17 = arith.mulf %12, %14 : vector<8x1024xf32>
    %cst_13 = arith.constant 0.000000e+00 : f32
    %18 = vector.broadcast %cst_13 : f32 to vector<8x1024xf32>
    %19 = arith.select %16, %17, %18 : vector<8x1024xi1>, vector<8x1024xf32>
    %20 = arith.truncf %19 : vector<8x1024xf32> to vector<8x1024xbf16>
    %c0_14 = arith.constant 0 : index
    %c0_15 = arith.constant 0 : index
    %21 = vector.load %arg4[%c0_14, %c0_15] : memref<1024x1024xbf16, #tpu.memory_space<vmem>>, vector<1024x1024xbf16>
    %cst_16 = arith.constant dense<0.000000e+00> : vector<8x1024xf32>
    %22 = tpu.matmul %20, %21, %cst_16 {dimension_numbers = #tpu.dot_dimension_numbers<[1], [0], [0], [1], [0, 0, 1, 1], [], []>} : vector<8x1024xbf16>, vector<1024x1024xbf16>, vector<8x1024xf32> -> vector<8x1024xf32>
    %c0_17 = arith.constant 0 : index
    %c0_18 = arith.constant 0 : index
    %23 = vector.load %arg8[%c0_17, %c0_18] : memref<8x1024xbf16, #tpu.memory_space<vmem>>, vector<8x1024xbf16>
    %24 = arith.extf %23 : vector<8x1024xbf16> to vector<8x1024xf32>
    %cst_19 = arith.constant 0.000000e+00 : f32
    %25 = vector.broadcast %cst_19 : f32 to vector<8x1024xf32>
    %26 = arith.cmpf ogt, %22, %25 : vector<8x1024xf32>
    %27 = arith.mulf %22, %24 : vector<8x1024xf32>
    %cst_20 = arith.constant 0.000000e+00 : f32
    %28 = vector.broadcast %cst_20 : f32 to vector<8x1024xf32>
    %29 = arith.select %26, %27, %28 : vector<8x1024xi1>, vector<8x1024xf32>
    %30 = arith.truncf %29 : vector<8x1024xf32> to vector<8x1024xbf16>
    %c0_21 = arith.constant 0 : index
    %c0_22 = arith.constant 0 : index
    %31 = vector.load %arg5[%c0_21, %c0_22] : memref<1024x128xbf16, #tpu.memory_space<vmem>>, vector<1024x128xbf16>
    %cst_23 = arith.constant dense<0.000000e+00> : vector<8x128xf32>
    %32 = tpu.matmul %30, %31, %cst_23 {dimension_numbers = #tpu.dot_dimension_numbers<[1], [0], [0], [1], [0, 0, 1, 1], [], []>} : vector<8x1024xbf16>, vector<1024x128xbf16>, vector<8x128xf32> -> vector<8x128xf32>
    %33 = tpu.iota {dimensions = array<i32: 1>} : vector<8x128xi32>
    %c5_i32 = arith.constant 5 : i32
    %34 = vector.broadcast %c5_i32 : i32 to vector<8x128xi32>
    %35 = arith.cmpi slt, %33, %34 : vector<8x128xi32>
    %cst_24 = arith.constant -1.000000e+30 : f32
    %36 = vector.broadcast %cst_24 : f32 to vector<8x128xf32>
    %37 = arith.select %35, %32, %36 : vector<8x128xi1>, vector<8x128xf32>
    %cst_25 = arith.constant dense<0xFF800000> : vector<8xf32>
    %38 = vector.multi_reduction <maximumf>, %37, %cst_25 [1] : vector<8x128xf32> to vector<8xf32>
    %39 = vector.shape_cast %38 : vector<8xf32> to vector<8x1xf32>
    %40 = vector.broadcast %39 : vector<8x1xf32> to vector<8x128xf32>
    %41 = arith.subf %37, %40 : vector<8x128xf32>
    %42 = math.exp %41 : vector<8x128xf32>
    %cst_26 = arith.constant dense<0.000000e+00> : vector<8xf32>
    %43 = vector.multi_reduction <add>, %42, %cst_26 [1] : vector<8x128xf32> to vector<8xf32>
    %44 = vector.shape_cast %43 : vector<8xf32> to vector<8x1xf32>
    %45 = tpu.reciprocal %44 {approx = true} : vector<8x1xf32> -> vector<8x1xf32>
    %46 = vector.broadcast %45 : vector<8x1xf32> to vector<8x128xf32>
    %47 = arith.mulf %42, %46 : vector<8x128xf32>
    %c0_27 = arith.constant 0 : index
    %c0_28 = arith.constant 0 : index
    %48 = vector.load %arg9[%c0_27, %c0_28] : memref<8x128xf32, #tpu.memory_space<vmem>>, vector<8x128xf32>
    tpu.vector_store %arg9[%c0_27, %c0_28], %47 {strides = array<i32>} : memref<8x128xf32, #tpu.memory_space<vmem>>, vector<8x128xf32>,
    return
  }
  func.func @transform_0(%arg0: i32) -> (i32, i32) {
    %c0_i32 = arith.constant 0 : i32
    %c0_i32_0 = arith.constant 0 : i32
    return %arg0, %c0_i32 : i32, i32
  }
  func.func @transform_1(%arg0: i32) -> (i32, i32) {
    %c0_i32 = arith.constant 0 : i32
    %c0_i32_0 = arith.constant 0 : i32
    %c0_i32_1 = arith.constant 0 : i32
    return %c0_i32, %c0_i32_0 : i32, i32
  }
  func.func @transform_2(%arg0: i32) -> (i32, i32) {
    %c0_i32 = arith.constant 0 : i32
    %c0_i32_0 = arith.constant 0 : i32
    %c0_i32_1 = arith.constant 0 : i32
    return %c0_i32, %c0_i32_0 : i32, i32
  }
  func.func @transform_3(%arg0: i32) -> (i32, i32) {
    %c0_i32 = arith.constant 0 : i32
    %c0_i32_0 = arith.constant 0 : i32
    %c0_i32_1 = arith.constant 0 : i32
    return %c0_i32, %c0_i32_0 : i32, i32
  }
  func.func @transform_4(%arg0: i32) -> (i32, i32) {
    %c0_i32 = arith.constant 0 : i32
    %c0_i32_0 = arith.constant 0 : i32
    %c0_i32_1 = arith.constant 0 : i32
    return %c0_i32, %c0_i32_0 : i32, i32
  }
  func.func @transform_5(%arg0: i32) -> (i32, i32) {
    %c0_i32 = arith.constant 0 : i32
    %c0_i32_0 = arith.constant 0 : i32
    return %arg0, %c0_i32 : i32, i32
  }
  func.func @transform_6(%arg0: i32) -> (i32, i32) {
    %c0_i32 = arith.constant 0 : i32
    %c0_i32_0 = arith.constant 0 : i32
    return %arg0, %c0_i32 : i32, i32
  }
  func.func @transform_7(%arg0: i32) -> (i32, i32) {
    %c0_i32 = arith.constant 0 : i32
    %c0_i32_0 = arith.constant 0 : i32
    return %arg0, %c0_i32 : i32, i32
  }
  func.func @transform_8(%arg0: i32) -> (i32, i32) {
    %c0_i32 = arith.constant 0 : i32
    %c0_i32_0 = arith.constant 0 : i32
    return %arg0, %c0_i32 : i32, i32
  }
}

</mosaic_0001>

<bundles_post_ra>
// kernel: _net_fc_forward_impl.1
= control target key start
LH: loop header
LB: loop body
LE: loop exit
PB: predicated region body
PF: predicated region fallthrough
CT: control target
= control target key end

     0   :  { %13 = vsyncpa [#allocation3], 0  ;;  %s11867_s0 = inlined_call_operand.hbm [shape: bf16[8,256], index: 0, kind: input, shape index: {}]   ;;  %s11868_s1 = inlined_call_operand.hbm [shape: bf16[256,1024], index: 1, kind: input, shape index: {}]   ;;  %s11869_s2 = inlined_call_operand.hbm [shape: bf16[1024,1024], index: 2, kind: input, shape index: {}]   ;;  %s11870_s3 = inlined_call_operand.hbm [shape: bf16[1024,1024], index: 3, kind: input, shape index: {}]   ;;  %s11871_s4 = inlined_call_operand.hbm [shape: bf16[1024,128], index: 4, kind: input, shape index: {}]   ;;  %s11872_s5 = inlined_call_operand.hbm [shape: bf16[8,1024], index: 5, kind: input, shape index: {}]   ;;  %s11873_s6 = inlined_call_operand.hbm [shape: bf16[8,1024], index: 6, kind: input, shape index: {}]   ;;  %s11874_s7 = inlined_call_operand.hbm [shape: bf16[8,1024], index: 7, kind: input, shape index: {}]   ;;  %s11875_s8 = inlined_call_operand.hbm [shape: f32[8,128], index: 8, kind: output, shape index: {}]  }
   0x1   :  { %14 = vsyncpa [#allocation6], 0 }
   0x2   :  { %15 = vsyncpa [#allocation9], 0 }
   0x3   :  { %16 = vsyncpa [#allocation12], 0 }
   0x4   :  { %17 = vsyncpa [#allocation15], 0 }
   0x5   :  { %18 = vsyncpa [#allocation4], 0  ;;  %s11276_s27 = smov [#allocation5]   ;;  %s11066_s9 = scalar_lea.hbm %s11868_s1, 16384 }
   0x6   :  { %s34_s28 = sshll.u32 %s11276_s27, 4  ;;  %p11067_p0 = scmp.ne.s32.totalorder %s11868_s1, %s11066_s9  ;;  %s35_s28 = int_to_ptr.vmem [resolvable:$true] %s34_s28 }
   0x7   :  { %p11070_p1 = scmp.lt.u32.totalorder %s11066_s9, %s11868_s1 }
   0x9   :  { %p11072_p2 = pnand %p11070_p1, %p11067_p0 }
   0xb   :  { %11075 = shalt.err (!%p11072_p2)
}
   0xc   :  { %s11076_s14 = scalar_lea.vmem %s35_s28, 16384  ;;  %p11081_p4 = scmp.lt.s32.totalorder %s35_s28, %s35_s28 }
   0xd   :  { %p11077_p3 = scmp.ne.s32.totalorder %s35_s28, %s11076_s14  ;;  %p11082_p5 = scmp.lt.s32.totalorder %s11076_s14, %s11076_s14 }
   0xf   :  { %p11083_p6 = por %p11082_p5, %p11081_p4 }
  0x11   :  { %p11084_p7 = pnand %p11083_p6, %p11077_p3 }
  0x13   :  { %11087 = shalt.err (!%p11084_p7)
}
  0x14   :  { %s11277_s15 = smov 512   ;;  %s11278_s16 = smov 32  }
  0x15   :  { %40 = dma.hbm_to_vmem [thread:$0]  %s11868_s1, 16384, %s35_s28, [#allocation6], %s11277_s15, %s11277_s15, %s11278_s16  }
  0x16   :  { %s11279_s19 = smov [#allocation8]   ;;  %s11280_s21 = smov [#allocation11]  }
  0x17   :  { %s58_s20 = sshll.u32 %s11279_s19, 4  ;;  %s83_s22 = sshll.u32 %s11280_s21, 4  ;;  %s59_s20 = int_to_ptr.vmem [resolvable:$true] %s58_s20  ;;  %s84_s22 = int_to_ptr.vmem [resolvable:$true] %s83_s22 }
  0x18   :  { %s11088_s25 = scalar_lea.hbm %s11870_s3, 65536 }
  0x19   :  { %p11089_p8 = scmp.ne.s32.totalorder %s11870_s3, %s11088_s25  ;;  %p11092_p9 = scmp.lt.u32.totalorder %s11088_s25, %s11870_s3 }
  0x1b   :  { %p11094_p10 = pnand %p11092_p9, %p11089_p8 }
  0x1d   :  { %11097 = shalt.err (!%p11094_p10)
}
  0x1e   :  { %s11098_s1 = scalar_lea.vmem %s59_s20, 65536  ;;  %p11103_p12 = scmp.lt.s32.totalorder %s59_s20, %s59_s20 }
  0x1f   :  { %p11099_p11 = scmp.ne.s32.totalorder %s59_s20, %s11098_s1  ;;  %p11104_p13 = scmp.lt.s32.totalorder %s11098_s1, %s11098_s1 }
  0x21   :  { %p11105_p0 = por %p11104_p13, %p11103_p12 }
  0x23   :  { %p11106_p1 = pnand %p11105_p0, %p11099_p11 }
  0x25   :  { %11109 = shalt.err (!%p11106_p1)
}
  0x26   :  { %64 = dma.hbm_to_vmem [thread:$0]  %s11870_s3, 65536, %s59_s20, [#allocation9], %s11277_s15, %s11277_s15, %s11278_s16  }
  0x27   :  { %s11110_s12 = scalar_lea.hbm %s11872_s5, 512 }
  0x28   :  { %p11111_p2 = scmp.ne.s32.totalorder %s11872_s5, %s11110_s12  ;;  %p11114_p3 = scmp.lt.u32.totalorder %s11110_s12, %s11872_s5 }
  0x2a   :  { %p11116_p4 = pnand %p11114_p3, %p11111_p2 }
  0x2c   :  { %11119 = shalt.err (!%p11116_p4)
}
  0x2d   :  { %s11120_s19 = scalar_lea.vmem %s84_s22, 512  ;;  %p11125_p6 = scmp.lt.s32.totalorder %s84_s22, %s84_s22 }
  0x2e   :  { %p11121_p5 = scmp.ne.s32.totalorder %s84_s22, %s11120_s19  ;;  %p11126_p7 = scmp.lt.s32.totalorder %s11120_s19, %s11120_s19 }
  0x30   :  { %p11127_p8 = por %p11126_p7, %p11125_p6 }
  0x32   :  { %p11128_p9 = pnand %p11127_p8, %p11121_p5 }
  0x34   :  { %11131 = shalt.err (!%p11128_p9)
}
  0x35   :  { %86 = dma.hbm_to_vmem [thread:$0]  %s11872_s5, 512, %s84_s22, [#allocation12]  }
  0x36   :  { %s11281_s21 = smov [#allocation2]   ;;  %s11282_s24 = smov [#allocation7]  }
  0x37   :  { %s25_s23 = sshll.u32 %s11281_s21, 4  ;;  %s46_s25 = sshll.u32 %s11282_s24, 4  ;;  %s26_s23 = int_to_ptr.vmem [resolvable:$true] %s25_s23  ;;  %s47_s25 = int_to_ptr.vmem [resolvable:$true] %s46_s25 }
  0x38   :  { %s11132_s29 = scalar_lea.hbm %s11867_s0, 128 }
  0x39   :  { %p11133_p10 = scmp.ne.s32.totalorder %s11867_s0, %s11132_s29  ;;  %p11136_p11 = scmp.lt.u32.totalorder %s11132_s29, %s11867_s0 }
  0x3b   :  { %p11138_p12 = pnand %p11136_p11, %p11133_p10 }
  0x3d   :  { %11141 = shalt.err (!%p11138_p12)
}
  0x3e   :  { %s11142_s5 = scalar_lea.vmem %s26_s23, 128  ;;  %p11147_p0 = scmp.lt.s32.totalorder %s26_s23, %s26_s23 }
  0x3f   :  { %p11143_p13 = scmp.ne.s32.totalorder %s26_s23, %s11142_s5  ;;  %p11148_p1 = scmp.lt.s32.totalorder %s11142_s5, %s11142_s5 }
  0x41   :  { %p11149_p2 = por %p11148_p1, %p11147_p0 }
  0x43   :  { %p11150_p3 = pnand %p11149_p2, %p11143_p13 }
  0x45   :  { %11153 = shalt.err (!%p11150_p3)
}
  0x46   :  { %28 = dma.hbm_to_vmem [thread:$0]  %s11867_s0, 128, %s26_s23, [#allocation3]  }
  0x47   :  { %s11154_s13 = scalar_lea.hbm %s11869_s2, 65536 }
  0x48   :  { %p11155_p4 = scmp.ne.s32.totalorder %s11869_s2, %s11154_s13  ;;  %p11158_p5 = scmp.lt.u32.totalorder %s11154_s13, %s11869_s2 }
  0x4a   :  { %p11160_p6 = pnand %p11158_p5, %p11155_p4 }
  0x4c   :  { %11163 = shalt.err (!%p11160_p6)
}
  0x4d   :  { %s11164_s3 = scalar_lea.vmem %s47_s25, 65536  ;;  %p11169_p8 = scmp.lt.s32.totalorder %s47_s25, %s47_s25 }
  0x4e   :  { %p11165_p7 = scmp.ne.s32.totalorder %s47_s25, %s11164_s3  ;;  %p11170_p9 = scmp.lt.s32.totalorder %s11164_s3, %s11164_s3 }
  0x50   :  { %p11171_p10 = por %p11170_p9, %p11169_p8 }
  0x52   :  { %p11172_p11 = pnand %p11171_p10, %p11165_p7 }
  0x54   :  { %11175 = shalt.err (!%p11172_p11)
}
  0x55   :  { %52 = dma.hbm_to_vmem [thread:$0]  %s11869_s2, 65536, %s47_s25, [#allocation6], %s11277_s15, %s11277_s15, %s11278_s16  }
  0x56   :  { %s11283_s21 = smov [#allocation10]   ;;  %s11176_s27 = scalar_lea.hbm %s11871_s4, 8192 }
  0x57   :  { %s70_s23 = sshll.u32 %s11283_s21, 4  ;;  %p11177_p12 = scmp.ne.s32.totalorder %s11871_s4, %s11176_s27  ;;  %s71_s23 = int_to_ptr.vmem [resolvable:$true] %s70_s23 }
  0x58   :  { %p11180_p13 = scmp.lt.u32.totalorder %s11176_s27, %s11871_s4 }
  0x5a   :  { %p11182_p0 = pnand %p11180_p13, %p11177_p12 }
  0x5c   :  { %11185 = shalt.err (!%p11182_p0)
}
  0x5d   :  { %s11186_s9 = scalar_lea.vmem %s71_s23, 8192  ;;  %p11191_p2 = scmp.lt.s32.totalorder %s71_s23, %s71_s23 }
  0x5e   :  { %p11187_p1 = scmp.ne.s32.totalorder %s71_s23, %s11186_s9  ;;  %p11192_p3 = scmp.lt.s32.totalorder %s11186_s9, %s11186_s9 }
  0x60   :  { %p11193_p4 = por %p11192_p3, %p11191_p2 }
  0x62   :  { %p11194_p5 = pnand %p11193_p4, %p11187_p1 }
  0x64   :  { %11197 = shalt.err (!%p11194_p5)
}
  0x65   :  { %s11284_s2 = smov 64   ;;  %s11285_s15 = smov 4  }
  0x66   :  { %76 = dma.hbm_to_vmem [thread:$0]  %s11871_s4, 8192, %s71_s23, [#allocation9], %s11284_s2, %s11284_s2, %s11285_s15  }
  0x67   :  { %s11286_s5 = smov [#allocation13]   ;;  %s11287_s10 = smov [#allocation14]  }
  0x68   :  { %s93_s22 = sshll.u32 %s11286_s5, 4  ;;  %s103_s11 = sshll.u32 %s11287_s10, 4  ;;  %s94_s22 = int_to_ptr.vmem [resolvable:$true] %s93_s22  ;;  %s104_s11 = int_to_ptr.vmem [resolvable:$true] %s103_s11 }
  0x69   :  { %s11198_s14 = scalar_lea.hbm %s11873_s6, 512 }
  0x6a   :  { %p11199_p6 = scmp.ne.s32.totalorder %s11873_s6, %s11198_s14  ;;  %p11202_p7 = scmp.lt.u32.totalorder %s11198_s14, %s11873_s6 }
  0x6c   :  { %p11204_p8 = pnand %p11202_p7, %p11199_p6 }
  0x6e   :  { %11207 = shalt.err (!%p11204_p8)
}
  0x6f   :  { %s11208_s4 = scalar_lea.vmem %s94_s22, 512  ;;  %p11213_p10 = scmp.lt.s32.totalorder %s94_s22, %s94_s22 }
  0x70   :  { %p11209_p9 = scmp.ne.s32.totalorder %s94_s22, %s11208_s4  ;;  %p11214_p11 = scmp.lt.s32.totalorder %s11208_s4, %s11208_s4 }
  0x72   :  { %p11215_p12 = por %p11214_p11, %p11213_p10 }
  0x74   :  { %p11216_p13 = pnand %p11215_p12, %p11209_p9 }
  0x76   :  { %11219 = shalt.err (!%p11216_p13)
}
  0x77   :  { %96 = dma.hbm_to_vmem [thread:$0]  %s11873_s6, 512, %s94_s22, [#allocation12]  }
  0x78   :  { %s11220_s24 = scalar_lea.hbm %s11874_s7, 512 }
  0x79   :  { %p11221_p0 = scmp.ne.s32.totalorder %s11874_s7, %s11220_s24  ;;  %p11224_p1 = scmp.lt.u32.totalorder %s11220_s24, %s11874_s7 }
  0x7b   :  { %p11226_p2 = pnand %p11224_p1, %p11221_p0 }
  0x7d   :  { %11229 = shalt.err (!%p11226_p2)
}
  0x7e   :  { %s11230_s1 = scalar_lea.vmem %s104_s11, 512  ;;  %p11235_p4 = scmp.lt.s32.totalorder %s104_s11, %s104_s11 }
  0x7f   :  { %p11231_p3 = scmp.ne.s32.totalorder %s104_s11, %s11230_s1  ;;  %p11236_p5 = scmp.lt.s32.totalorder %s11230_s1, %s11230_s1 }
  0x81   :  { %p11237_p6 = por %p11236_p5, %p11235_p4 }
  0x83   :  { %p11238_p7 = pnand %p11237_p6, %p11231_p3 }
  0x85   :  { %11241 = shalt.err (!%p11238_p7)
}
  0x86   :  { %106 = dma.hbm_to_vmem [thread:$0]  %s11874_s7, 512, %s104_s11, [#allocation15]  }
  0x87   :  { %11264 = dma.done.wait [#allocation3], 128  }
  0x88   :  { %11265 = vsyncadd [#allocation3], 4294967168 }
  0x89   :  { %11266 = dma.done.wait [#allocation6], 81920  }
  0x8a   :  { %11267 = vsyncadd [#allocation6], 4294885376 }
  0x8b   :  { %11268 = dma.done.wait [#allocation9], 73728  }
  0x8c   :  { %11269 = vsyncadd [#allocation9], 4294893568 }
  0x8d   :  { %11270 = dma.done.wait [#allocation12], 1024  }
  0x8e   :  { %11271 = vsyncadd [#allocation12], 4294966272 }
  0x8f   :  { %11272 = dma.done.wait [#allocation15], 512  }
  0x90   :  { %11273 = vsyncadd [#allocation15], 4294966784  ;;  %v133_v0 = vld [vmem:[#allocation5] sm:$0xff]  ;;  %v134_v17 = vld [vmem:[#allocation5 + $0x8] sm:$0xff]  ;;  %s11288_s7 = smov [#allocation16]  }
  0x91   :  { %v137_v1 = vld [vmem:[#allocation5 + $0x20] sm:$0xff]  ;;  %v138_v18 = vld [vmem:[#allocation5 + $0x28] sm:$0xff]  ;;  %v11439_v19 = vld [vmem:[#allocation2] sm:$0xff]  ;;  %s9352_s9 = sshll.u32 %s11288_s7, 4  ;;  %s9353_s9 = int_to_ptr.vmem [resolvable:$true] %s9352_s9 }
  0x92   :  { %v141_v2 = vld [vmem:[#allocation5 + $0x40] sm:$0xff]  ;;  %v9368_v3 = vcombine.high %v133_v0, %v137_v1  ;;  %v9367_v4 = vcombine.low %v133_v0, %v137_v1  ;;  %v142_v20 = vld [vmem:[#allocation5 + $0x48] sm:$0xff]  ;;  %v9370_v22 = vcombine.high %v134_v17, %v138_v18  ;;  %v9369_v23 = vcombine.low %v134_v17, %v138_v18  ;;  %s11242_s2 = scalar_lea.vmem %s9353_s9, 128  ;;  %p11247_p9 = scmp.lt.s32.totalorder %s9353_s9, %s9353_s9 }
  0x93   :  { %v145_v5 = vld [vmem:[#allocation5 + $0x60] sm:$0xff]  ;;  %v11443_v24 = vcombine.high %v11439_v19, %v11439_v19  ;;  %v146_v25 = vld [vmem:[#allocation5 + $0x68] sm:$0xff]  ;;  %p11243_p8 = scmp.ne.s32.totalorder %s9353_s9, %s11242_s2  ;;  %p11248_p10 = scmp.lt.s32.totalorder %s11242_s2, %s11242_s2 }
  0x94   :  { %v9376_v6 = vcombine.high %v141_v2, %v145_v5  ;;  %v149_v7 = vld [vmem:[#allocation5 + $0x80] sm:$0xff]  ;;  %908 = vmatprep.subr.bf16.mxu0 %v9368_v3  ;;  %v9375_v9 = vcombine.low %v141_v2, %v145_v5  ;;  %v9378_v27 = vcombine.high %v142_v20, %v146_v25  ;;  %v150_v28 = vld [vmem:[#allocation5 + $0x88] sm:$0xff]  ;;  %949 = vmatprep.subr.bf16.mxu1 %v9370_v22 }
  0x95   :  { %v153_v8 = vld [vmem:[#allocation5 + $0xa0] sm:$0xff]  ;;  %909 = vmatpush1.bf16.msra.mxu0 %v9367_v4  ;;  %v154_v29 = vld [vmem:[#allocation5 + $0xa8] sm:$0xff]  ;;  %940 = vmatprep.mubr.bf16.mxu0 %v11443_v24  ;;  %v9377_v32 = vcombine.low %v142_v20, %v146_v25  ;;  %p11249_p11 = por %p11248_p10, %p11247_p9 }
  0x96   :  { %910 = vmatprep.subr.bf16.mxu0 %v9376_v6  ;;  %v9384_v10 = vcombine.high %v149_v7, %v153_v8  ;;  %v157_v11 = vld [vmem:[#allocation5 + $0xc0] sm:$0xff]  ;;  %v9383_v13 = vcombine.low %v149_v7, %v153_v8  ;;  %950 = vmatpush1.bf16.msra.mxu1 %v9369_v23  ;;  %v9386_v34 = vcombine.high %v150_v28, %v154_v29  ;;  %v158_v36 = vld [vmem:[#allocation5 + $0xc8] sm:$0xff] }
  0x97   :  { %v161_v12 = vld [vmem:[#allocation5 + $0xe0] sm:$0xff]  ;;  %951 = vmatprep.subr.bf16.mxu1 %v9378_v27  ;;  %v162_v37 = vld [vmem:[#allocation5 + $0xe8] sm:$0xff]  ;;  %981 = vmatprep.mubr.bf16.mxu1 %v11443_v24  ;;  %v9385_v40 = vcombine.low %v150_v28, %v154_v29  ;;  %p11250_p12 = pnand %p11249_p11, %p11243_p8 }
  0x98   :  { %v9392_v14 = vcombine.high %v157_v11, %v161_v12  ;;  %v165_v15 = vld [vmem:[#allocation5 + $0x100] sm:$0xff]  ;;  %v9391_v21 = vcombine.low %v157_v11, %v161_v12  ;;  %v9394_v42 = vcombine.high %v158_v36, %v162_v37  ;;  %v166_v44 = vld [vmem:[#allocation5 + $0x108] sm:$0xff]  ;;  %v9393_v48 = vcombine.low %v158_v36, %v162_v37 }
  0x99   :  { %911 = vmatpush1.bf16.msra.mxu0 %v9375_v9  ;;  %v169_v16 = vld [vmem:[#allocation5 + $0x120] sm:$0xff]  ;;  %v170_v45 = vld [vmem:[#allocation5 + $0x128] sm:$0xff] }
  0x9a   :  { %912 = vmatprep.subr.bf16.mxu0 %v9384_v10  ;;  %v9400_v26 = vcombine.high %v165_v15, %v169_v16  ;;  %v173_v30 = vld [vmem:[#allocation5 + $0x140] sm:$0xff]  ;;  %v9399_v33 = vcombine.low %v165_v15, %v169_v16  ;;  %952 = vmatpush1.bf16.msra.mxu1 %v9377_v32  ;;  %v9402_v50 = vcombine.high %v166_v44, %v170_v45  ;;  %v174_v52 = vld [vmem:[#allocation5 + $0x148] sm:$0xff] }
  0x9b   :  { %v177_v31 = vld [vmem:[#allocation5 + $0x160] sm:$0xff]  ;;  %953 = vmatprep.subr.bf16.mxu1 %v9386_v34  ;;  %v178_v53 = vld [vmem:[#allocation5 + $0x168] sm:$0xff]  ;;  %v9401_v56 = vcombine.low %v166_v44, %v170_v45 }
  0x9c   :  { %v9408_v35 = vcombine.high %v173_v30, %v177_v31  ;;  %v181_v38 = vld [vmem:[#allocation5 + $0x180] sm:$0xff]  ;;  %v9407_v41 = vcombine.low %v173_v30, %v177_v31  ;;  %v9410_v58 = vcombine.high %v174_v52, %v178_v53  ;;  %v182_v60 = vld [vmem:[#allocation5 + $0x188] sm:$0xff]  ;;  %v9409_v0 = vcombine.low %v174_v52, %v178_v53 }
  0x9d   :  { %913 = vmatpush1.bf16.msra.mxu0 %v9383_v13  ;;  %v185_v39 = vld [vmem:[#allocation5 + $0x1a0] sm:$0xff]  ;;  %v186_v61 = vld [vmem:[#allocation5 + $0x1a8] sm:$0xff] }
  0x9e   :  { %914 = vmatprep.subr.bf16.mxu0 %v9392_v14  ;;  %v9416_v43 = vcombine.high %v181_v38, %v185_v39  ;;  %v189_v46 = vld [vmem:[#allocation5 + $0x1c0] sm:$0xff]  ;;  %954 = vmatpush1.bf16.msra.mxu1 %v9385_v40  ;;  %v9415_v49 = vcombine.low %v181_v38, %v185_v39  ;;  %v9418_v2 = vcombine.high %v182_v60, %v186_v61  ;;  %v190_v4 = vld [vmem:[#allocation5 + $0x1c8] sm:$0xff] }
  0x9f   :  { %v193_v47 = vld [vmem:[#allocation5 + $0x1e0] sm:$0xff]  ;;  %955 = vmatprep.subr.bf16.mxu1 %v9394_v42  ;;  %v194_v5 = vld [vmem:[#allocation5 + $0x1e8] sm:$0xff]  ;;  %v9417_v8 = vcombine.low %v182_v60, %v186_v61 }
  0xa0   :  { %v9424_v51 = vcombine.high %v189_v46, %v193_v47  ;;  %v197_v54 = vld [vmem:[#allocation5 + $0x200] sm:$0xff]  ;;  %v9423_v57 = vcombine.low %v189_v46, %v193_v47  ;;  %v9426_v10 = vcombine.high %v190_v4, %v194_v5  ;;  %v198_v12 = vld [vmem:[#allocation5 + $0x208] sm:$0xff]  ;;  %v9425_v16 = vcombine.low %v190_v4, %v194_v5 }
  0xa1   :  { %915 = vmatpush1.bf16.msra.mxu0 %v9391_v21  ;;  %v201_v55 = vld [vmem:[#allocation5 + $0x220] sm:$0xff]  ;;  %v202_v13 = vld [vmem:[#allocation5 + $0x228] sm:$0xff] }
  0xa2   :  { %916 = vmatprep.subr.bf16.mxu0 %v9400_v26  ;;  %956 = vmatpush1.bf16.msra.mxu1 %v9393_v48  ;;  %v9432_v59 = vcombine.high %v197_v54, %v201_v55  ;;  %v205_v62 = vld [vmem:[#allocation5 + $0x240] sm:$0xff]  ;;  %v9431_v1 = vcombine.low %v197_v54, %v201_v55  ;;  %v9434_v18 = vcombine.high %v198_v12, %v202_v13  ;;  %v206_v21 = vld [vmem:[#allocation5 + $0x248] sm:$0xff] }
  0xa3   :  { %957 = vmatprep.subr.bf16.mxu1 %v9402_v50  ;;  %v209_v63 = vld [vmem:[#allocation5 + $0x260] sm:$0xff]  ;;  %v210_v22 = vld [vmem:[#allocation5 + $0x268] sm:$0xff]  ;;  %v9433_v26 = vcombine.low %v198_v12, %v202_v13  ;;  %v136_v12 = vld [vmem:[#allocation5 + $0x18] sm:$0xff] }
  0xa4   :  { %v9440_v3 = vcombine.high %v205_v62, %v209_v63  ;;  %v213_v6 = vld [vmem:[#allocation5 + $0x280] sm:$0xff]  ;;  %v9439_v9 = vcombine.low %v205_v62, %v209_v63  ;;  %v9442_v28 = vcombine.high %v206_v21, %v210_v22  ;;  %v214_v30 = vld [vmem:[#allocation5 + $0x288] sm:$0xff]  ;;  %v9441_v34 = vcombine.low %v206_v21, %v210_v22  ;;  %v143_v63 = vld [vmem:[#allocation5 + $0x50] sm:$0xff] }
  0xa5   :  { %917 = vmatpush1.bf16.msra.mxu0 %v9399_v33  ;;  %v217_v7 = vld [vmem:[#allocation5 + $0x2a0] sm:$0xff]  ;;  %v218_v31 = vld [vmem:[#allocation5 + $0x2a8] sm:$0xff]  ;;  %v148_v21 = vld [vmem:[#allocation5 + $0x78] sm:$0xff] }
  0xa6   :  { %918 = vmatprep.subr.bf16.mxu0 %v9408_v35  ;;  %958 = vmatpush1.bf16.msra.mxu1 %v9401_v56  ;;  %v9448_v11 = vcombine.high %v213_v6, %v217_v7  ;;  %v221_v14 = vld [vmem:[#allocation5 + $0x2c0] sm:$0xff]  ;;  %v9447_v17 = vcombine.low %v213_v6, %v217_v7  ;;  %v9450_v36 = vcombine.high %v214_v30, %v218_v31  ;;  %v222_v38 = vld [vmem:[#allocation5 + $0x2c8] sm:$0xff]  ;;  %v135_v56 = vld [vmem:[#allocation5 + $0x10] sm:$0xff] }
  0xa7   :  { %959 = vmatprep.subr.bf16.mxu1 %v9410_v58  ;;  %v225_v15 = vld [vmem:[#allocation5 + $0x2e0] sm:$0xff]  ;;  %v226_v39 = vld [vmem:[#allocation5 + $0x2e8] sm:$0xff]  ;;  %v9449_v42 = vcombine.low %v214_v30, %v218_v31  ;;  %v156_v30 = vld [vmem:[#allocation5 + $0xb8] sm:$0xff] }
  0xa8   :  { %v9456_v20 = vcombine.high %v221_v14, %v225_v15  ;;  %v229_v23 = vld [vmem:[#allocation5 + $0x300] sm:$0xff]  ;;  %v9455_v27 = vcombine.low %v221_v14, %v225_v15  ;;  %v9458_v44 = vcombine.high %v222_v38, %v226_v39  ;;  %v230_v46 = vld [vmem:[#allocation5 + $0x308] sm:$0xff]  ;;  %v9457_v50 = vcombine.low %v222_v38, %v226_v39  ;;  %v159_v14 = vld [vmem:[#allocation5 + $0xd0] sm:$0xff] }
  0xa9   :  { %919 = vmatpush1.bf16.msra.mxu0 %v9407_v41  ;;  %v233_v25 = vld [vmem:[#allocation5 + $0x320] sm:$0xff]  ;;  %v234_v47 = vld [vmem:[#allocation5 + $0x328] sm:$0xff]  ;;  %v163_v15 = vld [vmem:[#allocation5 + $0xf0] sm:$0xff] }
  0xaa   :  { %920 = vmatprep.subr.bf16.mxu0 %v9416_v43  ;;  %960 = vmatpush1.bf16.msra.mxu1 %v9409_v0  ;;  %v9464_v29 = vcombine.high %v229_v23, %v233_v25  ;;  %v237_v32 = vld [vmem:[#allocation5 + $0x340] sm:$0xff]  ;;  %v9463_v35 = vcombine.low %v229_v23, %v233_v25  ;;  %v9466_v52 = vcombine.high %v230_v46, %v234_v47  ;;  %v238_v54 = vld [vmem:[#allocation5 + $0x348] sm:$0xff]  ;;  %v147_v0 = vld [vmem:[#allocation5 + $0x70] sm:$0xff] }
  0xab   :  { %961 = vmatprep.subr.bf16.mxu1 %v9418_v2  ;;  %v241_v33 = vld [vmem:[#allocation5 + $0x360] sm:$0xff]  ;;  %v242_v55 = vld [vmem:[#allocation5 + $0x368] sm:$0xff]  ;;  %v9465_v58 = vcombine.low %v230_v46, %v234_v47  ;;  %v11449_v2 = vcombine.low %v11439_v19, %v11439_v19  ;;  %v9379_v13 = vcombine.low %v143_v63, %v147_v0  ;;  %v167_v23 = vld [vmem:[#allocation5 + $0x110] sm:$0xff]  ;;  %v9395_v31 = vcombine.low %v159_v14, %v163_v15 }
  0xac   :  { %v9472_v37 = vcombine.high %v237_v32, %v241_v33  ;;  %v245_v40 = vld [vmem:[#allocation5 + $0x380] sm:$0xff]  ;;  %v9471_v43 = vcombine.low %v237_v32, %v241_v33  ;;  %v250_v60 = vld [vmem:[#allocation5 + $0x3a8] sm:$0xff]  ;;  %v9474_v62 = vcombine.high %v238_v54, %v242_v55  ;;  %v171_v25 = vld [vmem:[#allocation5 + $0x130] sm:$0xff] }
  0xad   :  { %921 = vmatpush1.bf16.msra.mxu0 %v9415_v49  ;;  %v249_v41 = vld [vmem:[#allocation5 + $0x3a0] sm:$0xff]  ;;  %v254_v4 = vld [vmem:[#allocation5 + $0x3c8] sm:$0xff]  ;;  %v175_v32 = vld [vmem:[#allocation5 + $0x150] sm:$0xff]  ;;  %v9403_v39 = vcombine.low %v167_v23, %v171_v25 }
  0xae   :  { %922 = vmatprep.subr.bf16.mxu0 %v9424_v51  ;;  %962 = vmatpush1.bf16.msra.mxu1 %v9417_v8  ;;  %v9480_v45 = vcombine.high %v245_v40, %v249_v41  ;;  %v253_v48 = vld [vmem:[#allocation5 + $0x3c0] sm:$0xff]  ;;  %v9479_v51 = vcombine.low %v245_v40, %v249_v41  ;;  %v258_v5 = vld [vmem:[#allocation5 + $0x3e8] sm:$0xff]  ;;  %v151_v8 = vld [vmem:[#allocation5 + $0x90] sm:$0xff] }
  0xaf   :  { %963 = vmatprep.subr.bf16.mxu1 %v9426_v10  ;;  %v257_v49 = vld [vmem:[#allocation5 + $0x3e0] sm:$0xff]  ;;  %v9380_v10 = vcombine.high %v143_v63, %v147_v0  ;;  %v9490_v19 = vcombine.high %v254_v4, %v258_v5  ;;  %v179_v33 = vld [vmem:[#allocation5 + $0x170] sm:$0xff]  ;;  %v164_v38 = vld [vmem:[#allocation5 + $0xf8] sm:$0xff] }
  0xb0   :  { %v9488_v53 = vcombine.high %v253_v48, %v257_v49  ;;  %v9487_v61 = vcombine.low %v253_v48, %v257_v49  ;;  %v183_v40 = vld [vmem:[#allocation5 + $0x190] sm:$0xff]  ;;  %v172_v46 = vld [vmem:[#allocation5 + $0x138] sm:$0xff]  ;;  %v9411_v47 = vcombine.low %v175_v32, %v179_v33 }
  0xb1   :  { %923 = vmatpush1.bf16.msra.mxu0 %v9423_v57  ;;  %v139_v57 = vld [vmem:[#allocation5 + $0x30] sm:$0xff] }
  0xb2   :  { %924 = vmatprep.subr.bf16.mxu0 %v9432_v59  ;;  %964 = vmatpush1.bf16.msra.mxu1 %v9425_v16  ;;  %v246_v59 = vld [vmem:[#allocation5 + $0x388] sm:$0xff]  ;;  %v9371_v7 = vcombine.low %v135_v56, %v139_v57  ;;  %v140_v16 = vld [vmem:[#allocation5 + $0x38] sm:$0xff]  ;;  %v187_v41 = vld [vmem:[#allocation5 + $0x1b0] sm:$0xff] }
  0xb3   :  { %965 = vmatprep.subr.bf16.mxu1 %v9434_v18  ;;  %v9482_v6 = vcombine.high %v246_v59, %v250_v60  ;;  %v9489_v18 = vcombine.low %v254_v4, %v258_v5  ;;  %v191_v48 = vld [vmem:[#allocation5 + $0x1d0] sm:$0xff]  ;;  %v192_v5 = vld [vmem:[#allocation5 + $0x1d8] sm:$0xff] }
  0xb4   :  { %v195_v49 = vld [vmem:[#allocation5 + $0x1f0] sm:$0xff] }
  0xb5   :  { %925 = vmatpush1.bf16.msra.mxu0 %v9431_v1  ;;  %v9372_v1 = vcombine.high %v135_v56, %v139_v57  ;;  %v203_v56 = vld [vmem:[#allocation5 + $0x230] sm:$0xff] }
  0xb6   :  { %926 = vmatprep.subr.bf16.mxu0 %v9440_v3  ;;  %966 = vmatpush1.bf16.msra.mxu1 %v9433_v26  ;;  %v9473_v3 = vcombine.low %v238_v54, %v242_v55  ;;  %v9374_v26 = vcombine.high %v136_v12, %v140_v16  ;;  %v9419_v54 = vcombine.low %v183_v40, %v187_v41  ;;  %v199_v55 = vld [vmem:[#allocation5 + $0x210] sm:$0xff] }
  0xb7   :  { %967 = vmatprep.subr.bf16.mxu1 %v9442_v28  ;;  %v9373_v28 = vcombine.low %v136_v12, %v140_v16  ;;  %v207_v63 = vld [vmem:[#allocation5 + $0x250] sm:$0xff] }
  0xb8   :  { %v211_v0 = vld [vmem:[#allocation5 + $0x270] sm:$0xff] }
  0xb9   :  { %927 = vmatpush1.bf16.msra.mxu0 %v9439_v9  ;;  %v155_v9 = vld [vmem:[#allocation5 + $0xb0] sm:$0xff] }
  0xba   :  { %928 = vmatprep.subr.bf16.mxu0 %v9448_v11  ;;  %968 = vmatpush1.bf16.msra.mxu1 %v9441_v34  ;;  %v9481_v11 = vcombine.low %v246_v59, %v250_v60  ;;  %v9387_v22 = vcombine.low %v151_v8, %v155_v9  ;;  %v184_v60 = vld [vmem:[#allocation5 + $0x198] sm:$0xff]  ;;  %v227_v16 = vld [vmem:[#allocation5 + $0x2f0] sm:$0xff] }
  0xbb   :  { %969 = vmatprep.subr.bf16.mxu1 %v9450_v36 }
  0xbd   :  { %929 = vmatpush1.bf16.msra.mxu0 %v9447_v17  ;;  %v9388_v17 = vcombine.high %v151_v8, %v155_v9  ;;  %v215_v8 = vld [vmem:[#allocation5 + $0x290] sm:$0xff] }
  0xbe   :  { %930 = vmatprep.subr.bf16.mxu0 %v9456_v20  ;;  %970 = vmatpush1.bf16.msra.mxu1 %v9449_v42  ;;  %v144_v20 = vld [vmem:[#allocation5 + $0x58] sm:$0xff]  ;;  %v219_v9 = vld [vmem:[#allocation5 + $0x2b0] sm:$0xff] }
  0xbf   :  { %971 = vmatprep.subr.bf16.mxu1 %v9458_v44  ;;  %v9382_v34 = vcombine.high %v144_v20, %v148_v21  ;;  %v9381_v36 = vcombine.low %v144_v20, %v148_v21  ;;  %v208_v21 = vld [vmem:[#allocation5 + $0x258] sm:$0xff] }
  0xc1   :  { %931 = vmatpush1.bf16.msra.mxu0 %v9455_v27  ;;  %v9396_v27 = vcombine.high %v159_v14, %v163_v15  ;;  %v9443_v14 = vcombine.low %v207_v63, %v211_v0  ;;  %v223_v15 = vld [vmem:[#allocation5 + $0x2d0] sm:$0xff] }
  0xc2   :  { %932 = vmatprep.subr.bf16.mxu0 %v9464_v29  ;;  %972 = vmatpush1.bf16.msra.mxu1 %v9457_v50  ;;  %v152_v29 = vld [vmem:[#allocation5 + $0x98] sm:$0xff] }
  0xc3   :  { %973 = vmatprep.subr.bf16.mxu1 %v9466_v52  ;;  %v9390_v42 = vcombine.high %v152_v29, %v156_v30  ;;  %v9389_v44 = vcombine.low %v152_v29, %v156_v30  ;;  %v176_v52 = vld [vmem:[#allocation5 + $0x158] sm:$0xff]  ;;  %v9459_v30 = vcombine.low %v223_v15, %v227_v16 }
  0xc5   :  { %933 = vmatpush1.bf16.msra.mxu0 %v9463_v35  ;;  %v9404_v35 = vcombine.high %v167_v23, %v171_v25  ;;  %v9460_v25 = vcombine.high %v223_v15, %v227_v16  ;;  %v1117_v15 = vld [vmem:[#allocation7 + $0x8] sm:$0xff] }
  0xc6   :  { %934 = vmatprep.subr.bf16.mxu0 %v9472_v37  ;;  %974 = vmatpush1.bf16.msra.mxu1 %v9465_v58  ;;  %v160_v37 = vld [vmem:[#allocation5 + $0xd8] sm:$0xff]  ;;  %v9428_v58 = vcombine.high %v191_v48, %v195_v49  ;;  %v1121_v16 = vld [vmem:[#allocation7 + $0x28] sm:$0xff] }
  0xc7   :  { %975 = vmatprep.subr.bf16.mxu1 %v9474_v62  ;;  %v9398_v50 = vcombine.high %v160_v37, %v164_v38  ;;  %v9427_v62 = vcombine.low %v191_v48, %v195_v49  ;;  %v232_v49 = vld [vmem:[#allocation5 + $0x318] sm:$0xff] }
  0xc9   :  { %935 = vmatpush1.bf16.msra.mxu0 %v9471_v43  ;;  %v9412_v43 = vcombine.high %v175_v32, %v179_v33  ;;  %v216_v33 = vld [vmem:[#allocation5 + $0x298] sm:$0xff] }
  0xca   :  { %936 = vmatprep.subr.bf16.mxu0 %v9480_v45  ;;  %976 = vmatpush1.bf16.msra.mxu1 %v9473_v3  ;;  %v168_v45 = vld [vmem:[#allocation5 + $0x118] sm:$0xff]  ;;  %v9436_v3 = vcombine.high %v199_v55, %v203_v56 }
  0xcb   :  { %977 = vmatprep.subr.bf16.mxu1 %v9482_v6  ;;  %v9406_v57 = vcombine.high %v168_v45, %v172_v46  ;;  %v9405_v59 = vcombine.low %v168_v45, %v172_v46  ;;  %v196_v6 = vld [vmem:[#allocation5 + $0x1f8] sm:$0xff] }
  0xcc   :  { %v9429_v20 = vcombine.low %v192_v5, %v196_v6 }
  0xcd   :  { %937 = vmatpush1.bf16.msra.mxu0 %v9479_v51  ;;  %v9397_v51 = vcombine.low %v160_v37, %v164_v38 }
  0xce   :  { %938 = vmatprep.subr.bf16.mxu0 %v9488_v53  ;;  %978 = vmatpush1.bf16.msra.mxu1 %v9481_v11  ;;  %v180_v53 = vld [vmem:[#allocation5 + $0x178] sm:$0xff]  ;;  %v9444_v11 = vcombine.high %v207_v63, %v211_v0 }
  0xcf   :  { %979 = vmatprep.subr.bf16.mxu1 %v9490_v19  ;;  %v9413_v4 = vcombine.low %v176_v52, %v180_v53  ;;  %v200_v19 = vld [vmem:[#allocation5 + $0x218] sm:$0xff] }
  0xd0   :  { %v248_v63 = vld [vmem:[#allocation5 + $0x398] sm:$0xff] }
  0xd1   :  { %939 = vmatpush1.bf16.msra.mxu0 %v9487_v61  ;;  %v188_v61 = vld [vmem:[#allocation5 + $0x1b8] sm:$0xff] }
  0xd2   :  { %990 = vmatprep.subr.bf16.mxu0 %v9372_v1  ;;  %980 = vmatpush1.bf16.msra.mxu1 %v9489_v18  ;;  %v9414_v1 = vcombine.high %v176_v52, %v180_v53  ;;  %v9421_v12 = vcombine.low %v184_v60, %v188_v61  ;;  %v9452_v18 = vcombine.high %v215_v8, %v219_v9  ;;  %v252_v0 = vld [vmem:[#allocation5 + $0x3b8] sm:$0xff] }
  0xd3   :  { %1031 = vmatprep.subr.bf16.mxu1 %v9374_v26  ;;  %v212_v26 = vld [vmem:[#allocation5 + $0x278] sm:$0xff] }
  0xd4   :  { %941 = vmatmul.mubr.bf16.vlgmr.msra.gmra.mrb[0].mxu0 %v11449_v2  ;;  %v9445_v37 = vcombine.low %v208_v21, %v212_v26 }
  0xd5   :  { %991 = vmatpush1.bf16.msra.mxu0 %v9371_v7  ;;  %1022 = vmatprep.mubr.bf16.mxu0 %v11443_v24  ;;  %v9435_v7 = vcombine.low %v199_v55, %v203_v56  ;;  %v240_v56 = vld [vmem:[#allocation5 + $0x358] sm:$0xff] }
  0xd6   :  { %992 = vmatprep.subr.bf16.mxu0 %v9380_v10  ;;  %982 = vmatmul.mubr.bf16.vlgmr.msra.gmra.mrb[0].mxu1 %v11449_v2  ;;  %v9422_v10 = vcombine.high %v184_v60, %v188_v61 }
  0xd7   :  { %1032 = vmatpush1.bf16.msra.mxu1 %v9373_v28  ;;  %1063 = vmatprep.mubr.bf16.mxu1 %v11443_v24  ;;  %v9420_v24 = vcombine.high %v183_v40, %v187_v41  ;;  %v235_v28 = vld [vmem:[#allocation5 + $0x330] sm:$0xff]  ;;  %v224_v41 = vld [vmem:[#allocation5 + $0x2d8] sm:$0xff] }
  0xd8   :  { %1033 = vmatprep.subr.bf16.mxu1 %v9382_v34  ;;  %v220_v34 = vld [vmem:[#allocation5 + $0x2b8] sm:$0xff] }
  0xd9   :  { %993 = vmatpush1.bf16.msra.mxu0 %v9379_v13  ;;  %v204_v13 = vld [vmem:[#allocation5 + $0x238] sm:$0xff]  ;;  %v9453_v45 = vcombine.low %v216_v33, %v220_v34 }
  0xda   :  { %994 = vmatprep.subr.bf16.mxu0 %v9388_v17  ;;  %v9430_v17 = vcombine.high %v192_v5, %v196_v6  ;;  %v9438_v23 = vcombine.high %v200_v19, %v204_v13  ;;  %v9437_v29 = vcombine.low %v200_v19, %v204_v13  ;;  %v9486_v6 = vcombine.high %v248_v63, %v252_v0 }
  0xdb   :  { %1034 = vmatpush1.bf16.msra.mxu1 %v9381_v36  ;;  %v243_v36 = vld [vmem:[#allocation5 + $0x370] sm:$0xff]  ;;  %v9485_v19 = vcombine.low %v248_v63, %v252_v0  ;;  %v11463_v63 = vld [vmem:[#allocation7 + $0x428] sm:$0xff] }
  0xdc   :  { %1035 = vmatprep.subr.bf16.mxu1 %v9390_v42  ;;  %v228_v42 = vld [vmem:[#allocation5 + $0x2f8] sm:$0xff] }
  0xdd   :  { %995 = vmatpush1.bf16.msra.mxu0 %v9387_v22  ;;  %v9451_v22 = vcombine.low %v215_v8, %v219_v9  ;;  %v9461_v52 = vcombine.low %v224_v41, %v228_v42  ;;  %v256_v8 = vld [vmem:[#allocation5 + $0x3d8] sm:$0xff] }
  0xde   :  { %996 = vmatprep.subr.bf16.mxu0 %v9396_v27  ;;  %v231_v27 = vld [vmem:[#allocation5 + $0x310] sm:$0xff]  ;;  %v260_v9 = vld [vmem:[#allocation5 + $0x3f8] sm:$0xff] }
  0xdf   :  { %1036 = vmatpush1.bf16.msra.mxu1 %v9389_v44  ;;  %v9468_v32 = vcombine.high %v231_v27, %v235_v28  ;;  %v9467_v38 = vcombine.low %v231_v27, %v235_v28  ;;  %v251_v44 = vld [vmem:[#allocation5 + $0x3b0] sm:$0xff]  ;;  %v9494_v13 = vcombine.high %v256_v8, %v260_v9  ;;  %v1148_v28 = vld [vmem:[#allocation7 + $0x100] sm:$0xff] }
  0xe0   :  { %1037 = vmatprep.subr.bf16.mxu1 %v9398_v50  ;;  %v236_v50 = vld [vmem:[#allocation5 + $0x338] sm:$0xff] }
  0xe1   :  { %997 = vmatpush1.bf16.msra.mxu0 %v9395_v31  ;;  %v9446_v31 = vcombine.high %v208_v21, %v212_v26  ;;  %v9469_v60 = vcombine.low %v232_v49, %v236_v50  ;;  %v9493_v21 = vcombine.low %v256_v8, %v260_v9  ;;  %v1129_v26 = vld [vmem:[#allocation7 + $0x68] sm:$0xff]  ;;  %v1188_v9 = vld [vmem:[#allocation7 + $0x240] sm:$0xff] }
  0xe2   :  { %998 = vmatprep.subr.bf16.mxu0 %v9404_v35  ;;  %v239_v35 = vld [vmem:[#allocation5 + $0x350] sm:$0xff] }
  0xe3   :  { %1038 = vmatpush1.bf16.msra.mxu1 %v9397_v51  ;;  %v9476_v40 = vcombine.high %v239_v35, %v243_v36  ;;  %v9475_v46 = vcombine.low %v239_v35, %v243_v36  ;;  %v259_v51 = vld [vmem:[#allocation5 + $0x3f0] sm:$0xff]  ;;  %v1156_v36 = vld [vmem:[#allocation7 + $0x140] sm:$0xff] }
  0xe4   :  { %1039 = vmatprep.subr.bf16.mxu1 %v9406_v57  ;;  %v244_v57 = vld [vmem:[#allocation5 + $0x378] sm:$0xff] }
  0xe5   :  { %999 = vmatpush1.bf16.msra.mxu0 %v9403_v39  ;;  %v9454_v39 = vcombine.high %v216_v33, %v220_v34  ;;  %v9477_v5 = vcombine.low %v240_v56, %v244_v57  ;;  %v1133_v33 = vld [vmem:[#allocation7 + $0x88] sm:$0xff] }
  0xe6   :  { %1000 = vmatprep.subr.bf16.mxu0 %v9412_v43  ;;  %v247_v43 = vld [vmem:[#allocation5 + $0x390] sm:$0xff]  ;;  %v1137_v34 = vld [vmem:[#allocation7 + $0xa8] sm:$0xff] }
  0xe7   :  { %1040 = vmatpush1.bf16.msra.mxu1 %v9405_v59  ;;  %v9484_v48 = vcombine.high %v247_v43, %v251_v44  ;;  %v9483_v53 = vcombine.low %v247_v43, %v251_v44  ;;  %v1120_v59 = vld [vmem:[#allocation7 + $0x20] sm:$0xff] }
  0xe8   :  { %1041 = vmatprep.subr.bf16.mxu1 %v9414_v1  ;;  %v1164_v44 = vld [vmem:[#allocation7 + $0x180] sm:$0xff] }
  0xe9   :  { %1001 = vmatpush1.bf16.msra.mxu0 %v9411_v47  ;;  %v9462_v47 = vcombine.high %v224_v41, %v228_v42  ;;  %v1141_v41 = vld [vmem:[#allocation7 + $0xc8] sm:$0xff] }
  0xea   :  { %1002 = vmatprep.subr.bf16.mxu0 %v9420_v24  ;;  %v255_v24 = vld [vmem:[#allocation5 + $0x3d0] sm:$0xff]  ;;  %v1145_v42 = vld [vmem:[#allocation7 + $0xe8] sm:$0xff] }
  0xeb   :  { %1042 = vmatpush1.bf16.msra.mxu1 %v9413_v4  ;;  %v9492_v55 = vcombine.high %v255_v24, %v259_v51  ;;  %v9491_v61 = vcombine.low %v255_v24, %v259_v51  ;;  %v1128_v4 = vld [vmem:[#allocation7 + $0x60] sm:$0xff] }
  0xec   :  { %1043 = vmatprep.subr.bf16.mxu1 %v9422_v10  ;;  %v1172_v24 = vld [vmem:[#allocation7 + $0x1c0] sm:$0xff] }
  0xed   :  { %1003 = vmatpush1.bf16.msra.mxu0 %v9419_v54  ;;  %v9470_v54 = vcombine.high %v232_v49, %v236_v50  ;;  %v1153_v49 = vld [vmem:[#allocation7 + $0x128] sm:$0xff]  ;;  %v1176_v51 = vld [vmem:[#allocation7 + $0x1e0] sm:$0xff] }
  0xee   :  { %1004 = vmatprep.subr.bf16.mxu0 %v9428_v58  ;;  %v1116_v58 = vld [vmem:[#allocation7] sm:$0xff] }
  0xef   :  { %1044 = vmatpush1.bf16.msra.mxu1 %v9421_v12  ;;  %v9496_v1 = vcombine.high %v1116_v58, %v1120_v59  ;;  %v1136_v12 = vld [vmem:[#allocation7 + $0xa0] sm:$0xff] }
  0xf0   :  { %1045 = vmatprep.subr.bf16.mxu1 %v9430_v17 }
  0xf1   :  { %1005 = vmatpush1.bf16.msra.mxu0 %v9427_v62  ;;  %v9478_v62 = vcombine.high %v240_v56, %v244_v57  ;;  %v9552_v57 = vcombine.high %v1172_v24, %v1176_v51 }
  0xf2   :  { %1006 = vmatprep.subr.bf16.mxu0 %v9436_v3  ;;  %v1124_v3 = vld [vmem:[#allocation7 + $0x40] sm:$0xff] }
  0xf3   :  { %1046 = vmatpush1.bf16.msra.mxu1 %v9429_v20  ;;  %v9504_v10 = vcombine.high %v1124_v3, %v1128_v4  ;;  %v1144_v20 = vld [vmem:[#allocation7 + $0xe0] sm:$0xff] }
  0xf4   :  { %1047 = vmatprep.subr.bf16.mxu1 %v9438_v23 }
  0xf5   :  { %1007 = vmatpush1.bf16.msra.mxu0 %v9435_v7  ;;  %v9495_v7 = vcombine.low %v1116_v58, %v1120_v59  ;;  %v11457_v58 = vld [vmem:[#allocation7 + $0x400] sm:$0xff] }
  0xf6   :  { %1008 = vmatprep.subr.bf16.mxu0 %v9444_v11  ;;  %v1132_v11 = vld [vmem:[#allocation7 + $0x80] sm:$0xff] }
  0xf7   :  { %1048 = vmatpush1.bf16.msra.mxu1 %v9437_v29  ;;  %v9512_v17 = vcombine.high %v1132_v11, %v1136_v12  ;;  %v9511_v23 = vcombine.low %v1132_v11, %v1136_v12  ;;  %v1152_v29 = vld [vmem:[#allocation7 + $0x120] sm:$0xff] }
  0xf8   :  { %1049 = vmatprep.subr.bf16.mxu1 %v9446_v31  ;;  %v9528_v35 = vcombine.high %v1148_v28, %v1152_v29  ;;  %v11459_v59 = vld [vmem:[#allocation7 + $0x420] sm:$0xff] }
  0xf9   :  { %1009 = vmatpush1.bf16.msra.mxu0 %v9443_v14  ;;  %v9503_v14 = vcombine.low %v1124_v3, %v1128_v4 }
  0xfa   :  { %1010 = vmatprep.subr.bf16.mxu0 %v9452_v18  ;;  %v1140_v18 = vld [vmem:[#allocation7 + $0xc0] sm:$0xff] }
  0xfb   :  { %1050 = vmatpush1.bf16.msra.mxu1 %v9445_v37  ;;  %v9520_v27 = vcombine.high %v1140_v18, %v1144_v20  ;;  %v1160_v37 = vld [vmem:[#allocation7 + $0x160] sm:$0xff] }
  0xfc   :  { %1051 = vmatprep.subr.bf16.mxu1 %v9454_v39  ;;  %v9514_v39 = vcombine.high %v1133_v33, %v1137_v34  ;;  %v9536_v43 = vcombine.high %v1156_v36, %v1160_v37 }
  0xfd   :  { %1011 = vmatpush1.bf16.msra.mxu0 %v9451_v22  ;;  %v9498_v22 = vcombine.high %v1117_v15, %v1121_v16 }
  0xfe   :  { %1012 = vmatprep.subr.bf16.mxu0 %v9460_v25  ;;  %v1125_v25 = vld [vmem:[#allocation7 + $0x48] sm:$0xff] }
  0xff   :  { %1052 = vmatpush1.bf16.msra.mxu1 %v9453_v45  ;;  %v9506_v31 = vcombine.high %v1125_v25, %v1129_v26  ;;  %v1168_v45 = vld [vmem:[#allocation7 + $0x1a0] sm:$0xff] }
 0x100   :  { %1053 = vmatprep.subr.bf16.mxu1 %v9462_v47  ;;  %v9522_v47 = vcombine.high %v1141_v41, %v1145_v42  ;;  %v9544_v50 = vcombine.high %v1164_v44, %v1168_v45  ;;  %v9543_v56 = vcombine.low %v1164_v44, %v1168_v45 }
 0x101   :  { %1013 = vmatpush1.bf16.msra.mxu0 %v9459_v30  ;;  %v9497_v30 = vcombine.low %v1117_v15, %v1121_v16  ;;  %v1196_v16 = vld [vmem:[#allocation7 + $0x280] sm:$0xff] }
 0x102   :  { %1014 = vmatprep.subr.bf16.mxu0 %v9468_v32  ;;  %v9519_v32 = vcombine.low %v1140_v18, %v1144_v20 }
 0x103   :  { %1054 = vmatpush1.bf16.msra.mxu1 %v9461_v52  ;;  %v9521_v52 = vcombine.low %v1141_v41, %v1145_v42  ;;  %v1220_v42 = vld [vmem:[#allocation7 + $0x340] sm:$0xff] }
 0x104   :  { %1055 = vmatprep.subr.bf16.mxu1 %v9470_v54  ;;  %v1157_v54 = vld [vmem:[#allocation7 + $0x148] sm:$0xff] }
 0x105   :  { %1015 = vmatpush1.bf16.msra.mxu0 %v9467_v38  ;;  %v9505_v38 = vcombine.low %v1125_v25, %v1129_v26  ;;  %v1204_v26 = vld [vmem:[#allocation7 + $0x2c0] sm:$0xff] }
 0x106   :  { %1016 = vmatprep.subr.bf16.mxu0 %v9476_v40  ;;  %v9527_v40 = vcombine.low %v1148_v28, %v1152_v29 }
 0x107   :  { %1056 = vmatpush1.bf16.msra.mxu1 %v9469_v60  ;;  %v11461_v60 = vld [vmem:[#allocation7 + $0x408] sm:$0xff] }
 0x108   :  { %1057 = vmatprep.subr.bf16.mxu1 %v9478_v62  ;;  %v1184_v62 = vld [vmem:[#allocation7 + $0x220] sm:$0xff]  ;;  %v9625_v3 = vcombine.low %v11461_v60, %v11463_v63 }
 0x109   :  { %1017 = vmatpush1.bf16.msra.mxu0 %v9475_v46  ;;  %v9513_v46 = vcombine.low %v1133_v33, %v1137_v34  ;;  %v1212_v34 = vld [vmem:[#allocation7 + $0x300] sm:$0xff] }
 0x10a   :  { %1018 = vmatprep.subr.bf16.mxu0 %v9484_v48  ;;  %v1149_v48 = vld [vmem:[#allocation7 + $0x108] sm:$0xff] }
 0x10b   :  { %1058 = vmatpush1.bf16.msra.mxu1 %v9477_v5  ;;  %v9529_v0 = vcombine.low %v1149_v48, %v1153_v49  ;;  %v9551_v5 = vcombine.low %v1172_v24, %v1176_v51 }
 0x10c   :  { %1059 = vmatprep.subr.bf16.mxu1 %v9486_v6  ;;  %v1165_v6 = vld [vmem:[#allocation7 + $0x188] sm:$0xff] }
 0x10d   :  { %1019 = vmatpush1.bf16.msra.mxu0 %v9483_v53  ;;  %v9530_v53 = vcombine.high %v1149_v48, %v1153_v49  ;;  %v1228_v49 = vld [vmem:[#allocation7 + $0x380] sm:$0xff] }
 0x10e   :  { %1020 = vmatprep.subr.bf16.mxu0 %v9492_v55  ;;  %v1161_v55 = vld [vmem:[#allocation7 + $0x168] sm:$0xff] }
 0x10f   :  { %1060 = vmatpush1.bf16.msra.mxu1 %v9485_v19  ;;  %v9538_v4 = vcombine.high %v1157_v54, %v1161_v55  ;;  %v9537_v11 = vcombine.low %v1157_v54, %v1161_v55  ;;  %v1217_v54 = vld [vmem:[#allocation7 + $0x328] sm:$0xff] }
 0x110   :  { %1061 = vmatprep.subr.bf16.mxu1 %v9494_v13  ;;  %v1173_v13 = vld [vmem:[#allocation7 + $0x1c8] sm:$0xff] }
 0x111   :  { %1021 = vmatpush1.bf16.msra.mxu0 %v9491_v61  ;;  %v1180_v61 = vld [vmem:[#allocation7 + $0x200] sm:$0xff] }
 0x112   :  { %4188 = vmatprep.subr.bf16.mxu0 %v9496_v1  ;;  %v9623_v1 = vcombine.low %v11457_v58, %v11459_v59  ;;  %v9560_v8 = vcombine.high %v1180_v61, %v1184_v62  ;;  %v9559_v19 = vcombine.low %v1180_v61, %v1184_v62 }
 0x113   :  { %1062 = vmatpush1.bf16.msra.mxu1 %v9493_v21 }
 0x114   :  { %1023 = vmatmul.mubr.bf16.vlgmr.msra.gmra.mrb[4].mxu0 %v11449_v2  ;;  %4352 = vmatprep.subr.bf16.mxu1 %v9498_v22  ;;  %v1181_v22 = vld [vmem:[#allocation7 + $0x208] sm:$0xff] }
 0x115   :  { %4189 = vmatpush1.bf16.msra.mxu0 %v9495_v7  ;;  %v1169_v7 = vld [vmem:[#allocation7 + $0x1a8] sm:$0xff] }
 0x116   :  { %4190 = vmatprep.subr.bf16.mxu0 %v9504_v10  ;;  %1064 = vmatmul.mubr.bf16.vlgmr.msra.gmra.mrb[4].mxu1 %v11449_v2  ;;  %v9535_v2 = vcombine.low %v1156_v36, %v1160_v37  ;;  %v1192_v10 = vld [vmem:[#allocation7 + $0x260] sm:$0xff]  ;;  %v9546_v12 = vcombine.high %v1165_v6, %v1169_v7  ;;  %v9545_v18 = vcombine.low %v1165_v6, %v1169_v7 }
 0x117   :  { %4353 = vmatpush1.bf16.msra.mxu1 %v9497_v30  ;;  %v9568_v15 = vcombine.high %v1188_v9, %v1192_v10  ;;  %v9567_v21 = vcombine.low %v1188_v9, %v1192_v10  ;;  %v1229_v10 = vld [vmem:[#allocation7 + $0x388] sm:$0xff] }
 0x118   :  { %4354 = vmatprep.subr.bf16.mxu1 %v9506_v31  ;;  %v1189_v31 = vld [vmem:[#allocation7 + $0x248] sm:$0xff] }
 0x119   :  { %4191 = vmatpush1.bf16.msra.mxu0 %v9503_v14  ;;  %v1177_v14 = vld [vmem:[#allocation7 + $0x1e8] sm:$0xff] }
 0x11a   :  { %4192 = vmatprep.subr.bf16.mxu0 %v9512_v17  ;;  %v1200_v17 = vld [vmem:[#allocation7 + $0x2a0] sm:$0xff]  ;;  %v9554_v20 = vcombine.high %v1173_v13, %v1177_v14  ;;  %v9553_v28 = vcombine.low %v1173_v13, %v1177_v14  ;;  %v1237_v14 = vld [vmem:[#allocation7 + $0x3c8] sm:$0xff] }
 0x11b   :  { %4355 = vmatpush1.bf16.msra.mxu1 %v9505_v38  ;;  %v9576_v25 = vcombine.high %v1196_v16, %v1200_v17  ;;  %v9575_v30 = vcombine.low %v1196_v16, %v1200_v17 }
 0x11c   :  { %4356 = vmatprep.subr.bf16.mxu1 %v9514_v39  ;;  %v1197_v39 = vld [vmem:[#allocation7 + $0x288] sm:$0xff] }
 0x11d   :  { %4193 = vmatpush1.bf16.msra.mxu0 %v9511_v23  ;;  %v1185_v23 = vld [vmem:[#allocation7 + $0x228] sm:$0xff] }
 0x11e   :  { %4194 = vmatprep.subr.bf16.mxu0 %v9520_v27  ;;  %v1208_v27 = vld [vmem:[#allocation7 + $0x2e0] sm:$0xff]  ;;  %v9562_v29 = vcombine.high %v1181_v22, %v1185_v23  ;;  %v9561_v36 = vcombine.low %v1181_v22, %v1185_v23 }
 0x11f   :  { %4357 = vmatpush1.bf16.msra.mxu1 %v9513_v46  ;;  %v9584_v33 = vcombine.high %v1204_v26, %v1208_v27  ;;  %v9583_v38 = vcombine.low %v1204_v26, %v1208_v27 }
 0x120   :  { %4358 = vmatprep.subr.bf16.mxu1 %v9522_v47  ;;  %v1205_v47 = vld [vmem:[#allocation7 + $0x2c8] sm:$0xff] }
 0x121   :  { %4195 = vmatpush1.bf16.msra.mxu0 %v9519_v32  ;;  %v1193_v32 = vld [vmem:[#allocation7 + $0x268] sm:$0xff] }
 0x122   :  { %4196 = vmatprep.subr.bf16.mxu0 %v9528_v35  ;;  %v1216_v35 = vld [vmem:[#allocation7 + $0x320] sm:$0xff]  ;;  %v9570_v37 = vcombine.high %v1189_v31, %v1193_v32  ;;  %v9569_v44 = vcombine.low %v1189_v31, %v1193_v32  ;;  %v1253_v32 = vld [vmem:[#allocation7 + $0x448] sm:$0xff] }
 0x123   :  { %4359 = vmatpush1.bf16.msra.mxu1 %v9521_v52  ;;  %v9592_v41 = vcombine.high %v1212_v34, %v1216_v35  ;;  %v9591_v46 = vcombine.low %v1212_v34, %v1216_v35  ;;  %v1256_v31 = vld [vmem:[#allocation7 + $0x460] sm:$0xff] }
 0x124   :  { %4360 = vmatprep.subr.bf16.mxu1 %v9530_v53  ;;  %v1213_v53 = vld [vmem:[#allocation7 + $0x308] sm:$0xff] }
 0x125   :  { %4197 = vmatpush1.bf16.msra.mxu0 %v9527_v40  ;;  %v1201_v40 = vld [vmem:[#allocation7 + $0x2a8] sm:$0xff]  ;;  %v9594_v62 = vcombine.high %v1213_v53, %v1217_v54  ;;  %v9593_v7 = vcombine.low %v1213_v53, %v1217_v54 }
 0x126   :  { %4198 = vmatprep.subr.bf16.mxu0 %v9536_v43  ;;  %v1224_v43 = vld [vmem:[#allocation7 + $0x360] sm:$0xff]  ;;  %v9578_v45 = vcombine.high %v1197_v39, %v1201_v40  ;;  %v9577_v24 = vcombine.low %v1197_v39, %v1201_v40 }
 0x127   :  { %4361 = vmatpush1.bf16.msra.mxu1 %v9529_v0  ;;  %v9600_v48 = vcombine.high %v1220_v42, %v1224_v43  ;;  %v9599_v52 = vcombine.low %v1220_v42, %v1224_v43  ;;  %v1261_v42 = vld [vmem:[#allocation7 + $0x488] sm:$0xff]  ;;  %v1271_v43 = vld [vmem:[#allocation7 + $0x4d8] sm:$0xff] }
 0x128   :  { %4362 = vmatprep.subr.bf16.mxu1 %v9538_v4  ;;  %v1221_v4 = vld [vmem:[#allocation7 + $0x348] sm:$0xff] }
 0x129   :  { %4199 = vmatpush1.bf16.msra.mxu0 %v9535_v2  ;;  %v1209_v2 = vld [vmem:[#allocation7 + $0x2e8] sm:$0xff] }
 0x12a   :  { %4200 = vmatprep.subr.bf16.mxu0 %v9544_v50  ;;  %v1232_v50 = vld [vmem:[#allocation7 + $0x3a0] sm:$0xff]  ;;  %v9586_v51 = vcombine.high %v1205_v47, %v1209_v2  ;;  %v9585_v61 = vcombine.low %v1205_v47, %v1209_v2 }
 0x12b   :  { %4363 = vmatpush1.bf16.msra.mxu1 %v9537_v11  ;;  %v9608_v55 = vcombine.high %v1228_v49, %v1232_v50  ;;  %v9607_v0 = vcombine.low %v1228_v49, %v1232_v50  ;;  %v1233_v11 = vld [vmem:[#allocation7 + $0x3a8] sm:$0xff]  ;;  %v1268_v49 = vld [vmem:[#allocation7 + $0x4c0] sm:$0xff] }
 0x12c   :  { %4364 = vmatprep.subr.bf16.mxu1 %v9546_v12  ;;  %v9624_v12 = vcombine.high %v11457_v58, %v11459_v59  ;;  %v9610_v13 = vcombine.high %v1229_v10, %v1233_v11  ;;  %v9609_v16 = vcombine.low %v1229_v10, %v1233_v11  ;;  %v1288_v10 = vld [vmem:[#allocation7 + $0x560] sm:$0xff]  ;;  %v1285_v11 = vld [vmem:[#allocation7 + $0x548] sm:$0xff] }
 0x12d   :  { %4201 = vmatpush1.bf16.msra.mxu0 %v9543_v56  ;;  %v1236_v56 = vld [vmem:[#allocation7 + $0x3c0] sm:$0xff] }
 0x12e   :  { %4202 = vmatprep.subr.bf16.mxu0 %v9552_v57  ;;  %v1240_v57 = vld [vmem:[#allocation7 + $0x3e0] sm:$0xff] }
 0x12f   :  { %4365 = vmatpush1.bf16.msra.mxu1 %v9545_v18  ;;  %v9616_v6 = vcombine.high %v1236_v56, %v1240_v57  ;;  %v9615_v9 = vcombine.low %v1236_v56, %v1240_v57  ;;  %v1280_v56 = vld [vmem:[#allocation7 + $0x520] sm:$0xff]  ;;  %v1277_v57 = vld [vmem:[#allocation7 + $0x508] sm:$0xff] }
 0x130   :  { %4366 = vmatprep.subr.bf16.mxu1 %v9554_v20  ;;  %v9626_v20 = vcombine.high %v11461_v60, %v11463_v63 }
 0x131   :  { %4203 = vmatpush1.bf16.msra.mxu0 %v9551_v5  ;;  %v1225_v5 = vld [vmem:[#allocation7 + $0x368] sm:$0xff] }
 0x132   :  { %4204 = vmatprep.subr.bf16.mxu0 %v9560_v8  ;;  %v9602_v8 = vcombine.high %v1221_v4, %v1225_v5 }
 0x133   :  { %4367 = vmatpush1.bf16.msra.mxu1 %v9553_v28  ;;  %v1252_v28 = vld [vmem:[#allocation7 + $0x440] sm:$0xff] }
 0x134   :  { %4368 = vmatprep.subr.bf16.mxu1 %v9562_v29  ;;  %v9632_v39 = vcombine.high %v1252_v28, %v1256_v31 }
 0x135   :  { %4205 = vmatpush1.bf16.msra.mxu0 %v9559_v19  ;;  %v9601_v19 = vcombine.low %v1221_v4, %v1225_v5 }
 0x136   :  { %4206 = vmatprep.subr.bf16.mxu0 %v9568_v15  ;;  %v1241_v15 = vld [vmem:[#allocation7 + $0x3e8] sm:$0xff] }
 0x137   :  { %4369 = vmatpush1.bf16.msra.mxu1 %v9561_v36  ;;  %v9618_v17 = vcombine.high %v1237_v14, %v1241_v15  ;;  %v9617_v18 = vcombine.low %v1237_v14, %v1241_v15  ;;  %v1260_v36 = vld [vmem:[#allocation7 + $0x480] sm:$0xff] }
 0x138   :  { %4370 = vmatprep.subr.bf16.mxu1 %v9570_v37 }
 0x139   :  { %4207 = vmatpush1.bf16.msra.mxu0 %v9567_v21  ;;  %v1072_v21 = vld [vmem:[#allocation11] sm:$0xff] }
 0x13a   :  { %4208 = vmatprep.subr.bf16.mxu0 %v9576_v25  ;;  %v1076_v22 = vunpack.c.l.bf16 %v1072_v21  ;;  %v1077_v23 = vunpack.c.h.bf16 %v1072_v21 }
 0x13b   :  { %4371 = vmatpush1.bf16.msra.mxu1 %v9569_v44  ;;  %v1265_v44 = vld [vmem:[#allocation7 + $0x4a8] sm:$0xff] }
 0x13c   :  { %4372 = vmatprep.subr.bf16.mxu1 %v9578_v45  ;;  %v11491_v45 = vld [vmem:[#allocation11 + $0x8] sm:$0xff]  ;;  %v9641_v59 = vcombine.low %v1261_v42, %v1265_v44 }
 0x13d   :  { %4209 = vmatpush1.bf16.msra.mxu0 %v9575_v30  ;;  %v1079_v50 = vunpack.c.h.bf16 %v11491_v45 }
 0x13e   :  { %4210 = vmatprep.subr.bf16.mxu0 %v9584_v33  ;;  %v1257_v33 = vld [vmem:[#allocation7 + $0x468] sm:$0xff] }
 0x13f   :  { %4373 = vmatpush1.bf16.msra.mxu1 %v9577_v24  ;;  %v9634_v40 = vcombine.high %v1253_v32, %v1257_v33  ;;  %v9633_v47 = vcombine.low %v1253_v32, %v1257_v33  ;;  %v1272_v24 = vld [vmem:[#allocation7 + $0x4e0] sm:$0xff] }
 0x140   :  { %4374 = vmatprep.subr.bf16.mxu1 %v9586_v51  ;;  %v1269_v51 = vld [vmem:[#allocation7 + $0x4c8] sm:$0xff]  ;;  %v9648_v63 = vcombine.high %v1268_v49, %v1272_v24  ;;  %v9647_v5 = vcombine.low %v1268_v49, %v1272_v24 }
 0x141   :  { %4211 = vmatpush1.bf16.msra.mxu0 %v9583_v38  ;;  %v1321_v49 = vld [vmem:[#allocation7 + $0x668] sm:$0xff]  ;;  %v1154_v38 = vld [vmem:[#allocation7 + $0x130] sm:$0xff] }
 0x142   :  { %4212 = vmatprep.subr.bf16.mxu0 %v9592_v41  ;;  %v1264_v41 = vld [vmem:[#allocation7 + $0x4a0] sm:$0xff] }
 0x143   :  { %4375 = vmatpush1.bf16.msra.mxu1 %v9585_v61  ;;  %v9640_v2 = vcombine.high %v1260_v36, %v1264_v41  ;;  %v9639_v58 = vcombine.low %v1260_v36, %v1264_v41  ;;  %v1281_v61 = vld [vmem:[#allocation7 + $0x528] sm:$0xff]  ;;  %v1312_v36 = vld [vmem:[#allocation7 + $0x620] sm:$0xff] }
 0x144   :  { %4376 = vmatprep.subr.bf16.mxu1 %v9594_v62 }
 0x145   :  { %4213 = vmatpush1.bf16.msra.mxu0 %v9591_v46  ;;  %v9631_v46 = vcombine.low %v1252_v28, %v1256_v31  ;;  %v1301_v28 = vld [vmem:[#allocation7 + $0x5c8] sm:$0xff] }
 0x146   :  { %4214 = vmatprep.subr.bf16.mxu0 %v9600_v48  ;;  %v9642_v48 = vcombine.high %v1261_v42, %v1265_v44 }
 0x147   :  { %4377 = vmatpush1.bf16.msra.mxu1 %v9593_v7 }
 0x148   :  { %4378 = vmatprep.subr.bf16.mxu1 %v9602_v8  ;;  %v9658_v8 = vcombine.high %v1277_v57, %v1281_v61 }
 0x149   :  { %4215 = vmatpush1.bf16.msra.mxu0 %v9599_v52  ;;  %v1273_v52 = vld [vmem:[#allocation7 + $0x4e8] sm:$0xff] }
 0x14a   :  { %4216 = vmatprep.subr.bf16.mxu0 %v9608_v55 }
 0x14b   :  { %4379 = vmatpush1.bf16.msra.mxu1 %v9601_v19 }
 0x14c   :  { %4380 = vmatprep.subr.bf16.mxu1 %v9610_v13  ;;  %v9657_v13 = vcombine.low %v1277_v57, %v1281_v61  ;;  %v1336_v57 = vld [vmem:[#allocation7 + $0x6e0] sm:$0xff]  ;;  %v1333_v61 = vld [vmem:[#allocation7 + $0x6c8] sm:$0xff] }
 0x14d   :  { %4217 = vmatpush1.bf16.msra.mxu0 %v9607_v0  ;;  %v1283_v0 = vld [vmem:[#allocation7 + $0x538] sm:$0xff] }
 0x14e   :  { %4218 = vmatprep.subr.bf16.mxu0 %v9616_v6  ;;  %v9649_v6 = vcombine.low %v1269_v51, %v1273_v52 }
 0x14f   :  { %4381 = vmatpush1.bf16.msra.mxu1 %v9609_v16  ;;  %v1292_v16 = vld [vmem:[#allocation7 + $0x580] sm:$0xff] }
 0x150   :  { %4382 = vmatprep.subr.bf16.mxu1 %v9618_v17  ;;  %v1296_v17 = vld [vmem:[#allocation7 + $0x5a0] sm:$0xff] }
 0x151   :  { %4219 = vmatpush1.bf16.msra.mxu0 %v9615_v9  ;;  %v1284_v9 = vld [vmem:[#allocation7 + $0x540] sm:$0xff] }
 0x152   :  { %4229 = vmatprep.subr.bf16.mxu0 %v9624_v12  ;;  %v1289_v12 = vld [vmem:[#allocation7 + $0x568] sm:$0xff]  ;;  %v9664_v14 = vcombine.high %v1284_v9, %v1288_v10  ;;  %v9663_v21 = vcombine.low %v1284_v9, %v1288_v10  ;;  %v1340_v9 = vld [vmem:[#allocation7 + $0x700] sm:$0xff] }
 0x153   :  { %4383 = vmatpush1.bf16.msra.mxu1 %v9617_v18  ;;  %v9666_v15 = vcombine.high %v1285_v11, %v1289_v12  ;;  %v1293_v18 = vld [vmem:[#allocation7 + $0x588] sm:$0xff]  ;;  %v1344_v10 = vld [vmem:[#allocation7 + $0x720] sm:$0xff] }
 0x154   :  { %4393 = vmatprep.subr.bf16.mxu1 %v9626_v20  ;;  %v1297_v20 = vld [vmem:[#allocation7 + $0x5a8] sm:$0xff] }
 0x155   :  { %v9673_v31 = vcombine.low %v1293_v18, %v1297_v20 }
 0x1a7   :  { %v942_v25 = vpop.f32.mrb[0].mxu0 }
 0x1a8   :  { %v1092_v26 = vmul.f32 %v1076_v22, %v942_v25  ;;  %v944_v27 = vpop.f32.mrb[1].mxu0  ;;  %vm1084_vm1 = vcmp.gt.f32.partialorder %v942_v25, 0.0  ;;  %v9665_v22 = vcombine.low %v1285_v11, %v1289_v12  ;;  %v9674_v25 = vcombine.high %v1293_v18, %v1297_v20  ;;  %v1341_v11 = vld [vmem:[#allocation7 + $0x708] sm:$0xff] }
 0x1a9   :  { %vm1085_vm0 = vcmp.gt.f32.partialorder %v944_v27, 0.0  ;;  %v1093_v29 = vmul.f32 %v1077_v23, %v944_v27  ;;  %v946_v30 = vpop.f32.mrb[2].mxu0  ;;  %vm11481_vm3 = vmpackc.low %vm1084_vm1, %vm1084_vm1  ;;  %v11506_v53 = vpop.f32.mrb[0].mxu1  ;;  %v9672_v23 = vcombine.high %v1292_v16, %v1296_v17  ;;  %v1304_v27 = vld [vmem:[#allocation7 + $0x5e0] sm:$0xff]  ;;  %v1345_v12 = vld [vmem:[#allocation7 + $0x728] sm:$0xff] }
 0x1aa   :  { %v947_v34 = vpop.f32.mrb[3].mxu0  ;;  %v11475_v37 = vpack.c.bf16 %v1092_v26, %v1092_v26  ;;  %vm11477_vm2 = vmpackc.low %vm1085_vm0, %vm1085_vm0  ;;  %v985_v60 = vpop.f32.mrb[1].mxu1  ;;  %v1300_v26 = vld [vmem:[#allocation7 + $0x5c0] sm:$0xff]  ;;  %v9671_v30 = vcombine.low %v1292_v16, %v1296_v17  ;;  %v1349_v18 = vld [vmem:[#allocation7 + $0x748] sm:$0xff]  ;;  %vm1086_vm6 = vcmp.gt.f32.partialorder %v11506_v53, 0.0 }
 0x1ab   :  { %v11473_v35 = vpack.c.bf16 %v1093_v29, %v1093_v29  ;;  %vm1087_vm4 = vcmp.gt.f32.partialorder %v985_v60, 0.0  ;;  %v1095_v54 = vmul.f32 %v1079_v50, %v985_v60  ;;  %v987_v55 = vpop.f32.mrb[2].mxu1  ;;  %v1305_v29 = vld [vmem:[#allocation7 + $0x5e8] sm:$0xff]  ;;  %v9680_v32 = vcombine.high %v1300_v26, %v1304_v27  ;;  %v1308_v34 = vld [vmem:[#allocation7 + $0x600] sm:$0xff]  ;;  %vm11530_vm8 = vmpackc.low %vm1086_vm6, %vm1086_vm6 }
 0x1ac   :  { %v988_v62 = vpop.f32.mrb[3].mxu1  ;;  %vm11508_vm5 = vmpackc.low %vm1087_vm4, %vm1087_vm4  ;;  %v9682_v33 = vcombine.high %v1301_v28, %v1305_v29  ;;  %v9679_v41 = vcombine.low %v1300_v26, %v1304_v27  ;;  %v9681_v42 = vcombine.low %v1301_v28, %v1305_v29  ;;  %v9688_v44 = vcombine.high %v1308_v34, %v1312_v36  ;;  %v1325_v60 = vld [vmem:[#allocation7 + $0x688] sm:$0xff]  ;;  %v1348_v16 = vld [vmem:[#allocation7 + $0x740] sm:$0xff] }
 0x1ad   :  { %10009 = vmatprep.mubr.msk.bf16.mxu0 %vm11477_vm2, %v11473_v35  ;;  %10033 = vmatprep.mubr.msk.bf16.mxu1 %vm11477_vm2, %v11473_v35  ;;  %v11512_v4 = vpack.c.bf16 %v1095_v54, %v1095_v54  ;;  %v9687_v50 = vcombine.low %v1308_v34, %v1312_v36  ;;  %v1337_v62 = vld [vmem:[#allocation7 + $0x6e8] sm:$0xff]  ;;  %v1352_v17 = vld [vmem:[#allocation7 + $0x760] sm:$0xff] }
 0x1ae   :  { %10012 = vmatmul.mubr.msk.bf16.vlgmr.msra.gmra.mrb[8].mxu0 %vm11481_vm3, %v11475_v37  ;;  %10036 = vmatmul.mubr.msk.bf16.vlgmr.msra.gmra.mrb[8].mxu1 %vm11481_vm3, %v11475_v37  ;;  %v1353_v20 = vld [vmem:[#allocation7 + $0x768] sm:$0xff]  ;;  %v1356_v26 = vld [vmem:[#allocation7 + $0x780] sm:$0xff] }
 0x1af   :  { %4230 = vmatpush1.bf16.msra.mxu0 %v9623_v1  ;;  %4394 = vmatpush1.bf16.msra.mxu1 %v9625_v3  ;;  %v9650_v1 = vcombine.high %v1269_v51, %v1273_v52  ;;  %v1276_v3 = vld [vmem:[#allocation7 + $0x500] sm:$0xff]  ;;  %v1357_v28 = vld [vmem:[#allocation7 + $0x788] sm:$0xff] }
 0x1b0   :  { %4231 = vmatprep.subr.bf16.mxu0 %v9632_v39  ;;  %4395 = vmatprep.subr.bf16.mxu1 %v9634_v40  ;;  %v9656_v7 = vcombine.high %v1276_v3, %v1280_v56  ;;  %v9655_v19 = vcombine.low %v1276_v3, %v1280_v56  ;;  %v1309_v39 = vld [vmem:[#allocation7 + $0x608] sm:$0xff]  ;;  %v1332_v56 = vld [vmem:[#allocation7 + $0x6c0] sm:$0xff] }
 0x1b1   :  { %10015 = vmatprep.mubr.msk.bf16.mxu0 %vm11508_vm5, %v11512_v4  ;;  %10039 = vmatprep.mubr.msk.bf16.mxu1 %vm11508_vm5, %v11512_v4  ;;  %v1313_v40 = vld [vmem:[#allocation7 + $0x628] sm:$0xff]  ;;  %v1360_v27 = vld [vmem:[#allocation7 + $0x7a0] sm:$0xff] }
 0x1b2   :  { %v9689_v24 = vcombine.low %v1309_v39, %v1313_v40  ;;  %v1361_v29 = vld [vmem:[#allocation7 + $0x7a8] sm:$0xff]  ;;  %v1364_v34 = vld [vmem:[#allocation7 + $0x7c0] sm:$0xff] }
 0x1b3   :  { %4232 = vmatpush1.bf16.msra.mxu0 %v9631_v46  ;;  %4396 = vmatpush1.bf16.msra.mxu1 %v9633_v47  ;;  %v9690_v46 = vcombine.high %v1309_v39, %v1313_v40  ;;  %v1316_v47 = vld [vmem:[#allocation7 + $0x640] sm:$0xff]  ;;  %v1365_v39 = vld [vmem:[#allocation7 + $0x7c8] sm:$0xff] }
 0x1b4   :  { %4233 = vmatprep.subr.bf16.mxu0 %v9640_v2  ;;  %4397 = vmatprep.subr.bf16.mxu1 %v9642_v48  ;;  %v1320_v2 = vld [vmem:[#allocation7 + $0x660] sm:$0xff]  ;;  %v1317_v48 = vld [vmem:[#allocation7 + $0x648] sm:$0xff] }
 0x1b5   :  { %v9696_v51 = vcombine.high %v1316_v47, %v1320_v2  ;;  %v9698_v52 = vcombine.high %v1317_v48, %v1321_v49  ;;  %v9697_v3 = vcombine.low %v1317_v48, %v1321_v49  ;;  %v1368_v36 = vld [vmem:[#allocation7 + $0x7e0] sm:$0xff]  ;;  %v1369_v40 = vld [vmem:[#allocation7 + $0x7e8] sm:$0xff] }
 0x1b6   :  { %v1372_v48 = vld [vmem:[#allocation7 + $0x800] sm:$0xff] }
 0x1b7   :  { %4234 = vmatpush1.bf16.msra.mxu0 %v9639_v58  ;;  %4398 = vmatpush1.bf16.msra.mxu1 %v9641_v59  ;;  %v1324_v58 = vld [vmem:[#allocation7 + $0x680] sm:$0xff] }
 0x1b8   :  { %4235 = vmatprep.subr.bf16.mxu0 %v9648_v63  ;;  %4399 = vmatprep.subr.bf16.mxu1 %v9650_v1  ;;  %v1328_v59 = vld [vmem:[#allocation7 + $0x6a0] sm:$0xff]  ;;  %v1329_v63 = vld [vmem:[#allocation7 + $0x6a8] sm:$0xff]  ;;  %v9695_v1 = vcombine.low %v1316_v47, %v1320_v2  ;;  %v9744_v47 = vcombine.high %v1364_v34, %v1368_v36  ;;  %v9746_v2 = vcombine.high %v1365_v39, %v1369_v40 }
 0x1b9   :  { %v9704_v54 = vcombine.high %v1324_v58, %v1328_v59  ;;  %v9706_v55 = vcombine.high %v1325_v60, %v1329_v63  ;;  %v1376_v49 = vld [vmem:[#allocation7 + $0x820] sm:$0xff] }
 0x1bb   :  { %4236 = vmatpush1.bf16.msra.mxu0 %v9647_v5  ;;  %4400 = vmatpush1.bf16.msra.mxu1 %v9649_v6  ;;  %v9703_v5 = vcombine.low %v1324_v58, %v1328_v59  ;;  %v9705_v6 = vcombine.low %v1325_v60, %v1329_v63  ;;  %v9745_v58 = vcombine.low %v1365_v39, %v1369_v40 }
 0x1bc   :  { %4237 = vmatprep.subr.bf16.mxu0 %v9656_v7  ;;  %4401 = vmatprep.subr.bf16.mxu1 %v9658_v8  ;;  %v9712_v7 = vcombine.high %v1332_v56, %v1336_v57  ;;  %v9714_v8 = vcombine.high %v1333_v61, %v1337_v62  ;;  %v9752_v60 = vcombine.high %v1372_v48, %v1376_v49 }
 0x1bf   :  { %4238 = vmatpush1.bf16.msra.mxu0 %v9655_v19  ;;  %4402 = vmatpush1.bf16.msra.mxu1 %v9657_v13  ;;  %v9711_v19 = vcombine.low %v1332_v56, %v1336_v57  ;;  %v9713_v13 = vcombine.low %v1333_v61, %v1337_v62  ;;  %v1385_v56 = vld [vmem:[#allocation7 + $0x868] sm:$0xff] }
 0x1c0   :  { %4239 = vmatprep.subr.bf16.mxu0 %v9664_v14  ;;  %4403 = vmatprep.subr.bf16.mxu1 %v9666_v15  ;;  %v9720_v14 = vcombine.high %v1340_v9, %v1344_v10  ;;  %v9722_v15 = vcombine.high %v1341_v11, %v1345_v12 }
 0x1c3   :  { %4240 = vmatpush1.bf16.msra.mxu0 %v9663_v21  ;;  %4404 = vmatpush1.bf16.msra.mxu1 %v9665_v22  ;;  %v9719_v21 = vcombine.low %v1340_v9, %v1344_v10  ;;  %v9721_v22 = vcombine.low %v1341_v11, %v1345_v12  ;;  %v1388_v10 = vld [vmem:[#allocation7 + $0x880] sm:$0xff]  ;;  %v1399_v12 = vld [vmem:[#allocation7 + $0x8d8] sm:$0xff] }
 0x1c4   :  { %4241 = vmatprep.subr.bf16.mxu0 %v9672_v23  ;;  %4405 = vmatprep.subr.bf16.mxu1 %v9674_v25  ;;  %v9728_v23 = vcombine.high %v1348_v16, %v1352_v17  ;;  %v9730_v25 = vcombine.high %v1349_v18, %v1353_v20  ;;  %v1392_v11 = vld [vmem:[#allocation7 + $0x8a0] sm:$0xff] }
 0x1c7   :  { %4242 = vmatpush1.bf16.msra.mxu0 %v9671_v30  ;;  %4406 = vmatpush1.bf16.msra.mxu1 %v9673_v31  ;;  %v9727_v30 = vcombine.low %v1348_v16, %v1352_v17  ;;  %v9729_v31 = vcombine.low %v1349_v18, %v1353_v20  ;;  %v9768_v17 = vcombine.high %v1388_v10, %v1392_v11  ;;  %v1396_v20 = vld [vmem:[#allocation7 + $0x8c0] sm:$0xff] }
 0x1c8   :  { %4243 = vmatprep.subr.bf16.mxu0 %v9680_v32  ;;  %4407 = vmatprep.subr.bf16.mxu1 %v9682_v33  ;;  %v9736_v32 = vcombine.high %v1356_v26, %v1360_v27  ;;  %v9738_v33 = vcombine.high %v1357_v28, %v1361_v29 }
 0x1cb   :  { %4244 = vmatpush1.bf16.msra.mxu0 %v9679_v41  ;;  %4408 = vmatpush1.bf16.msra.mxu1 %v9681_v42  ;;  %v1078_v41 = vunpack.c.l.bf16 %v11491_v45  ;;  %v11521_v42 = vld [vmem:[#allocation11 + $0x10] sm:$0xff]  ;;  %v9743_v45 = vcombine.low %v1364_v34, %v1368_v36  ;;  %v1405_v34 = vld [vmem:[#allocation7 + $0x908] sm:$0xff] }
 0x1cc   :  { %4245 = vmatprep.subr.bf16.mxu0 %v9688_v44  ;;  %4409 = vmatprep.subr.bf16.mxu1 %v9690_v46  ;;  %v9735_v44 = vcombine.low %v1356_v26, %v1360_v27  ;;  %v9737_v46 = vcombine.low %v1357_v28, %v1361_v29  ;;  %v9767_v26 = vcombine.low %v1388_v10, %v1392_v11  ;;  %v1409_v36 = vld [vmem:[#allocation7 + $0x928] sm:$0xff]  ;;  %v1436_v10 = vld [vmem:[#allocation7 + $0xa00] sm:$0xff] }
 0x1cd   :  { %v1440_v11 = vld [vmem:[#allocation7 + $0xa20] sm:$0xff] }
 0x1cf   :  { %4246 = vmatpush1.bf16.msra.mxu0 %v9687_v50  ;;  %4410 = vmatpush1.bf16.msra.mxu1 %v9689_v24  ;;  %v1373_v50 = vld [vmem:[#allocation7 + $0x808] sm:$0xff] }
 0x1d0   :  { %4247 = vmatprep.subr.bf16.mxu0 %v9696_v51  ;;  %4411 = vmatprep.subr.bf16.mxu1 %v9698_v52  ;;  %v1377_v24 = vld [vmem:[#allocation7 + $0x828] sm:$0xff]  ;;  %v1081_v51 = vunpack.c.h.bf16 %v11521_v42  ;;  %v1094_v52 = vmul.f32 %v1078_v41, %v11506_v53 }
 0x1d1   :  { %v9754_v63 = vcombine.high %v1373_v50, %v1377_v24  ;;  %v1393_v53 = vld [vmem:[#allocation7 + $0x8a8] sm:$0xff] }
 0x1d2   :  { %v11528_v62 = vpack.c.bf16 %v1094_v52, %v1094_v52 }
 0x1d3   :  { %4248 = vmatpush1.bf16.msra.mxu0 %v9695_v1  ;;  %4412 = vmatpush1.bf16.msra.mxu1 %v9697_v3  ;;  %v1380_v1 = vld [vmem:[#allocation7 + $0x840] sm:$0xff] }
 0x1d4   :  { %4249 = vmatprep.subr.bf16.mxu0 %v9704_v54  ;;  %4413 = vmatprep.subr.bf16.mxu1 %v9706_v55  ;;  %v1384_v54 = vld [vmem:[#allocation7 + $0x860] sm:$0xff]  ;;  %v1381_v55 = vld [vmem:[#allocation7 + $0x848] sm:$0xff] }
 0x1d5   :  { %v9762_v9 = vcombine.high %v1381_v55, %v1385_v56  ;;  %v9761_v16 = vcombine.low %v1381_v55, %v1385_v56  ;;  %v1428_v56 = vld [vmem:[#allocation7 + $0x9c0] sm:$0xff] }
 0x1d7   :  { %4250 = vmatpush1.bf16.msra.mxu0 %v9703_v5  ;;  %4414 = vmatpush1.bf16.msra.mxu1 %v9705_v6  ;;  %v9751_v6 = vcombine.low %v1372_v48, %v1376_v49  ;;  %v1413_v48 = vld [vmem:[#allocation7 + $0x948] sm:$0xff] }
 0x1d8   :  { %4251 = vmatprep.subr.bf16.mxu0 %v9712_v7  ;;  %4415 = vmatprep.subr.bf16.mxu1 %v9714_v8  ;;  %v9753_v7 = vcombine.low %v1373_v50, %v1377_v24  ;;  %v9760_v8 = vcombine.high %v1380_v1, %v1384_v54  ;;  %v1417_v49 = vld [vmem:[#allocation7 + $0x968] sm:$0xff]  ;;  %v9785_v24 = vcombine.low %v1405_v34, %v1409_v36 }
 0x1d9   :  { %v9794_v52 = vcombine.high %v1413_v48, %v1417_v49 }
 0x1db   :  { %4252 = vmatpush1.bf16.msra.mxu0 %v9711_v19  ;;  %4416 = vmatpush1.bf16.msra.mxu1 %v9713_v13  ;;  %v1389_v19 = vld [vmem:[#allocation7 + $0x888] sm:$0xff] }
 0x1dc   :  { %4253 = vmatprep.subr.bf16.mxu0 %v9720_v14  ;;  %4417 = vmatprep.subr.bf16.mxu1 %v9722_v15  ;;  %v9759_v15 = vcombine.low %v1380_v1, %v1384_v54  ;;  %v9770_v18 = vcombine.high %v1389_v19, %v1393_v53  ;;  %v9769_v27 = vcombine.low %v1389_v19, %v1393_v53  ;;  %v1437_v19 = vld [vmem:[#allocation7 + $0xa08] sm:$0xff]  ;;  %v1411_v14 = vld [vmem:[#allocation7 + $0x938] sm:$0xff] }
 0x1dd   :  { %v1441_v53 = vld [vmem:[#allocation7 + $0xa28] sm:$0xff] }
 0x1df   :  { %4254 = vmatpush1.bf16.msra.mxu0 %v9719_v21  ;;  %4418 = vmatpush1.bf16.msra.mxu1 %v9721_v22  ;;  %v1400_v21 = vld [vmem:[#allocation7 + $0x8e0] sm:$0xff]  ;;  %v1397_v22 = vld [vmem:[#allocation7 + $0x8c8] sm:$0xff] }
 0x1e0   :  { %4255 = vmatprep.subr.bf16.mxu0 %v9728_v23  ;;  %4419 = vmatprep.subr.bf16.mxu1 %v9730_v25  ;;  %v1401_v23 = vld [vmem:[#allocation7 + $0x8e8] sm:$0xff]  ;;  %v9776_v29 = vcombine.high %v1396_v20, %v1400_v21  ;;  %v9775_v40 = vcombine.low %v1396_v20, %v1400_v21  ;;  %v1444_v20 = vld [vmem:[#allocation7 + $0xa40] sm:$0xff] }
 0x1e1   :  { %v9777_v41 = vcombine.low %v1397_v22, %v1401_v23  ;;  %v1448_v21 = vld [vmem:[#allocation7 + $0xa60] sm:$0xff] }
 0x1e3   :  { %4256 = vmatpush1.bf16.msra.mxu0 %v9727_v30  ;;  %4420 = vmatpush1.bf16.msra.mxu1 %v9729_v31  ;;  %v9778_v30 = vcombine.high %v1397_v22, %v1401_v23  ;;  %v1404_v31 = vld [vmem:[#allocation7 + $0x900] sm:$0xff]  ;;  %v1445_v22 = vld [vmem:[#allocation7 + $0xa48] sm:$0xff] }
 0x1e4   :  { %4257 = vmatprep.subr.bf16.mxu0 %v9736_v32  ;;  %4421 = vmatprep.subr.bf16.mxu1 %v9738_v33  ;;  %v1408_v33 = vld [vmem:[#allocation7 + $0x920] sm:$0xff]  ;;  %v1449_v23 = vld [vmem:[#allocation7 + $0xa68] sm:$0xff] }
 0x1e5   :  { %v9783_v50 = vcombine.low %v1404_v31, %v1408_v33 }
 0x1e7   :  { %4258 = vmatpush1.bf16.msra.mxu0 %v9735_v44  ;;  %4422 = vmatpush1.bf16.msra.mxu1 %v9737_v46  ;;  %v11525_v59 = vpop.f32.mrb[4].mxu0  ;;  %v9784_v44 = vcombine.high %v1404_v31, %v1408_v33  ;;  %v9786_v46 = vcombine.high %v1405_v34, %v1409_v36  ;;  %v1452_v31 = vld [vmem:[#allocation7 + $0xa80] sm:$0xff]  ;;  %v1453_v33 = vld [vmem:[#allocation7 + $0xa88] sm:$0xff]  ;;  %v9823_v36 = vcombine.low %v1444_v20, %v1448_v21 }
 0x1e8   :  { %4259 = vmatprep.subr.bf16.mxu0 %v9744_v47  ;;  %4423 = vmatprep.subr.bf16.mxu1 %v9746_v2  ;;  %v1026_v3 = vpop.f32.mrb[5].mxu0  ;;  %v1412_v47 = vld [vmem:[#allocation7 + $0x940] sm:$0xff]  ;;  %v1457_v34 = vld [vmem:[#allocation7 + $0xaa8] sm:$0xff]  ;;  %vm1088_vm10 = vcmp.gt.f32.partialorder %v11525_v59, 0.0 }
 0x1e9   :  { %v1097_v57 = vmul.f32 %v1081_v51, %v1026_v3  ;;  %v1028_v61 = vpop.f32.mrb[6].mxu0  ;;  %vm1089_vm7 = vcmp.gt.f32.partialorder %v1026_v3, 0.0  ;;  %v11552_v25 = vpop.f32.mrb[4].mxu1  ;;  %v1416_v2 = vld [vmem:[#allocation7 + $0x960] sm:$0xff]  ;;  %v9793_v3 = vcombine.low %v1413_v48, %v1417_v49  ;;  %v9833_v49 = vcombine.low %v1453_v33, %v1457_v34  ;;  %vm11566_vm12 = vmpackc.low %vm1088_vm10, %vm1088_vm10 }
 0x1ea   :  { %v1029_v5 = vpop.f32.mrb[7].mxu0  ;;  %vm11542_vm9 = vmpackc.low %vm1089_vm7, %vm1089_vm7  ;;  %v11554_v28 = vpop.f32.mrb[5].mxu1  ;;  %v9792_v51 = vcombine.high %v1412_v47, %v1416_v2  ;;  %v9791_v1 = vcombine.low %v1412_v47, %v1416_v2  ;;  %v1429_v61 = vld [vmem:[#allocation7 + $0x9c8] sm:$0xff]  ;;  %vm1090_vm14 = vcmp.gt.f32.partialorder %v11552_v25, 0.0 }
 0x1eb   :  { %4260 = vmatpush1.bf16.msra.mxu0 %v9743_v45  ;;  %4424 = vmatpush1.bf16.msra.mxu1 %v9745_v58  ;;  %v11534_v13 = vpack.c.bf16 %v1097_v57, %v1097_v57  ;;  %v1069_v32 = vpop.f32.mrb[6].mxu1  ;;  %v1420_v45 = vld [vmem:[#allocation7 + $0x980] sm:$0xff]  ;;  %v1433_v5 = vld [vmem:[#allocation7 + $0x9e8] sm:$0xff]  ;;  %vm1091_vm11 = vcmp.gt.f32.partialorder %v11554_v28, 0.0  ;;  %vm11593_vm15 = vmpackc.low %vm1090_vm14, %vm1090_vm14 }
 0x1ec   :  { %4270 = vmatprep.subr.bf16.mxu0 %v9752_v60  ;;  %4434 = vmatprep.subr.bf16.mxu1 %v9754_v63  ;;  %v1070_v39 = vpop.f32.mrb[7].mxu1  ;;  %v1424_v58 = vld [vmem:[#allocation7 + $0x9a0] sm:$0xff]  ;;  %v1421_v60 = vld [vmem:[#allocation7 + $0x988] sm:$0xff]  ;;  %vm11578_vm13 = vmpackc.low %vm1091_vm11, %vm1091_vm11 }
 0x1ed   :  { %v1425_v63 = vld [vmem:[#allocation7 + $0x9a8] sm:$0xff]  ;;  %v9800_v54 = vcombine.high %v1420_v45, %v1424_v58  ;;  %v1432_v57 = vld [vmem:[#allocation7 + $0x9e0] sm:$0xff]  ;;  %v9825_v39 = vcombine.low %v1445_v22, %v1449_v23 }
 0x1ee   :  { %10018 = vmatmul.mubr.msk.bf16.vlgmr.msra.gmra.mrb[8].mxu0 %vm11530_vm8, %v11528_v62  ;;  %10042 = vmatmul.mubr.msk.bf16.vlgmr.msra.gmra.mrb[8].mxu1 %vm11530_vm8, %v11528_v62  ;;  %v9802_v55 = vcombine.high %v1421_v60, %v1425_v63  ;;  %v1456_v32 = vld [vmem:[#allocation7 + $0xaa0] sm:$0xff]  ;;  %v1461_v47 = vld [vmem:[#allocation7 + $0xac8] sm:$0xff] }
 0x1ef   :  { %4271 = vmatpush1.bf16.msra.mxu0 %v9751_v6  ;;  %4435 = vmatpush1.bf16.msra.mxu1 %v9753_v7  ;;  %v9799_v6 = vcombine.low %v1420_v45, %v1424_v58  ;;  %v9801_v7 = vcombine.low %v1421_v60, %v1425_v63  ;;  %v1465_v2 = vld [vmem:[#allocation7 + $0xae8] sm:$0xff]  ;;  %v9831_v48 = vcombine.low %v1452_v31, %v1456_v32 }
 0x1f0   :  { %4272 = vmatprep.subr.bf16.mxu0 %v9760_v8  ;;  %4436 = vmatprep.subr.bf16.mxu1 %v9762_v9  ;;  %v9808_v8 = vcombine.high %v1428_v56, %v1432_v57  ;;  %v9810_v9 = vcombine.high %v1429_v61, %v1433_v5  ;;  %v1469_v45 = vld [vmem:[#allocation7 + $0xb08] sm:$0xff]  ;;  %v9841_v63 = vcombine.low %v1461_v47, %v1465_v2 }
 0x1f1   :  { %10021 = vmatprep.mubr.msk.bf16.mxu0 %vm11542_vm9, %v11534_v13  ;;  %10045 = vmatprep.mubr.msk.bf16.mxu1 %vm11542_vm9, %v11534_v13  ;;  %v1473_v58 = vld [vmem:[#allocation7 + $0xb28] sm:$0xff] }
 0x1f3   :  { %4273 = vmatpush1.bf16.msra.mxu0 %v9759_v15  ;;  %4437 = vmatpush1.bf16.msra.mxu1 %v9761_v16  ;;  %v9807_v15 = vcombine.low %v1428_v56, %v1432_v57  ;;  %v9809_v16 = vcombine.low %v1429_v61, %v1433_v5  ;;  %v1477_v56 = vld [vmem:[#allocation7 + $0xb48] sm:$0xff]  ;;  %v9849_v5 = vcombine.low %v1469_v45, %v1473_v58 }
 0x1f4   :  { %4274 = vmatprep.subr.bf16.mxu0 %v9768_v17  ;;  %4438 = vmatprep.subr.bf16.mxu1 %v9770_v18  ;;  %v9816_v17 = vcombine.high %v1436_v10, %v1440_v11  ;;  %v9818_v18 = vcombine.high %v1437_v19, %v1441_v53  ;;  %v1481_v57 = vld [vmem:[#allocation7 + $0xb68] sm:$0xff] }
 0x1f7   :  { %4275 = vmatpush1.bf16.msra.mxu0 %v9767_v26  ;;  %4439 = vmatpush1.bf16.msra.mxu1 %v9769_v27  ;;  %v9815_v26 = vcombine.low %v1436_v10, %v1440_v11  ;;  %v9817_v27 = vcombine.low %v1437_v19, %v1441_v53  ;;  %v1485_v10 = vld [vmem:[#allocation7 + $0xb88] sm:$0xff]  ;;  %v9857_v53 = vcombine.low %v1477_v56, %v1481_v57 }
 0x1f8   :  { %4276 = vmatprep.subr.bf16.mxu0 %v9776_v29  ;;  %4440 = vmatprep.subr.bf16.mxu1 %v9778_v30  ;;  %v9824_v29 = vcombine.high %v1444_v20, %v1448_v21  ;;  %v9826_v30 = vcombine.high %v1445_v22, %v1449_v23  ;;  %v1489_v11 = vld [vmem:[#allocation7 + $0xba8] sm:$0xff]  ;;  %v1080_v22 = vunpack.c.l.bf16 %v11521_v42  ;;  %v11557_v23 = vld [vmem:[#allocation11 + $0x18] sm:$0xff] }
 0x1f9   :  { %v1493_v20 = vld [vmem:[#allocation7 + $0xbc8] sm:$0xff] }
 0x1fa   :  { %v1497_v21 = vld [vmem:[#allocation7 + $0xbe8] sm:$0xff] }
 0x1fb   :  { %4277 = vmatpush1.bf16.msra.mxu0 %v9775_v40  ;;  %4441 = vmatpush1.bf16.msra.mxu1 %v9777_v41  ;;  %v9832_v40 = vcombine.high %v1452_v31, %v1456_v32  ;;  %v9834_v41 = vcombine.high %v1453_v33, %v1457_v34  ;;  %v1500_v31 = vld [vmem:[#allocation7 + $0xc00] sm:$0xff]  ;;  %v1501_v33 = vld [vmem:[#allocation7 + $0xc08] sm:$0xff] }
 0x1fc   :  { %4278 = vmatprep.subr.bf16.mxu0 %v9784_v44  ;;  %4442 = vmatprep.subr.bf16.mxu1 %v9786_v46  ;;  %v1460_v44 = vld [vmem:[#allocation7 + $0xac0] sm:$0xff]  ;;  %v1505_v34 = vld [vmem:[#allocation7 + $0xc28] sm:$0xff] }
 0x1fd   :  { %v1464_v46 = vld [vmem:[#allocation7 + $0xae0] sm:$0xff] }
 0x1fe   :  { %v9839_v60 = vcombine.low %v1460_v44, %v1464_v46  ;;  %v1504_v32 = vld [vmem:[#allocation7 + $0xc20] sm:$0xff] }
 0x1ff   :  { %4279 = vmatpush1.bf16.msra.mxu0 %v9783_v50  ;;  %4443 = vmatpush1.bf16.msra.mxu1 %v9785_v24  ;;  %v9840_v50 = vcombine.high %v1460_v44, %v1464_v46  ;;  %v9842_v24 = vcombine.high %v1461_v47, %v1465_v2  ;;  %v9882_v44 = vcombine.high %v1501_v33, %v1505_v34  ;;  %v1508_v46 = vld [vmem:[#allocation7 + $0xc40] sm:$0xff]  ;;  %v1509_v2 = vld [vmem:[#allocation7 + $0xc48] sm:$0xff] }
 0x200   :  { %4280 = vmatprep.subr.bf16.mxu0 %v9792_v51  ;;  %4444 = vmatprep.subr.bf16.mxu1 %v9794_v52  ;;  %v1468_v51 = vld [vmem:[#allocation7 + $0xb00] sm:$0xff] }
 0x201   :  { %v1472_v52 = vld [vmem:[#allocation7 + $0xb20] sm:$0xff] }
 0x202   :  { %v9847_v61 = vcombine.low %v1468_v51, %v1472_v52  ;;  %v1512_v47 = vld [vmem:[#allocation7 + $0xc60] sm:$0xff] }
 0x203   :  { %4281 = vmatpush1.bf16.msra.mxu0 %v9791_v1  ;;  %4445 = vmatpush1.bf16.msra.mxu1 %v9793_v3  ;;  %v9848_v1 = vcombine.high %v1468_v51, %v1472_v52  ;;  %v9850_v3 = vcombine.high %v1469_v45, %v1473_v58  ;;  %v9881_v51 = vcombine.low %v1501_v33, %v1505_v34  ;;  %v1516_v58 = vld [vmem:[#allocation7 + $0xc80] sm:$0xff] }
 0x204   :  { %4282 = vmatprep.subr.bf16.mxu0 %v9800_v54  ;;  %4446 = vmatprep.subr.bf16.mxu1 %v9802_v55  ;;  %v1476_v54 = vld [vmem:[#allocation7 + $0xb40] sm:$0xff]  ;;  %v9888_v52 = vcombine.high %v1508_v46, %v1512_v47 }
 0x205   :  { %v1480_v55 = vld [vmem:[#allocation7 + $0xb60] sm:$0xff] }
 0x206   :  { %v9855_v19 = vcombine.low %v1476_v54, %v1480_v55  ;;  %v1548_v34 = vld [vmem:[#allocation7 + $0xd80] sm:$0xff] }
 0x207   :  { %4283 = vmatpush1.bf16.msra.mxu0 %v9799_v6  ;;  %4447 = vmatpush1.bf16.msra.mxu1 %v9801_v7  ;;  %v9856_v6 = vcombine.high %v1476_v54, %v1480_v55  ;;  %v9858_v7 = vcombine.high %v1477_v56, %v1481_v57  ;;  %v9887_v54 = vcombine.low %v1508_v46, %v1512_v47  ;;  %v1556_v47 = vld [vmem:[#allocation7 + $0xdc0] sm:$0xff] }
 0x208   :  { %4284 = vmatprep.subr.bf16.mxu0 %v9808_v8  ;;  %4448 = vmatprep.subr.bf16.mxu1 %v9810_v9  ;;  %v1484_v8 = vld [vmem:[#allocation7 + $0xb80] sm:$0xff] }
 0x209   :  { %v1488_v9 = vld [vmem:[#allocation7 + $0xba0] sm:$0xff] }
 0x20b   :  { %4285 = vmatpush1.bf16.msra.mxu0 %v9807_v15  ;;  %4449 = vmatpush1.bf16.msra.mxu1 %v9809_v16  ;;  %v9864_v15 = vcombine.high %v1484_v8, %v1488_v9  ;;  %v9866_v16 = vcombine.high %v1485_v10, %v1489_v11 }
 0x20c   :  { %4286 = vmatprep.subr.bf16.mxu0 %v9816_v17  ;;  %4450 = vmatprep.subr.bf16.mxu1 %v9818_v18  ;;  %v1492_v17 = vld [vmem:[#allocation7 + $0xbc0] sm:$0xff] }
 0x20d   :  { %v1496_v18 = vld [vmem:[#allocation7 + $0xbe0] sm:$0xff] }
 0x20e   :  { %v9871_v42 = vcombine.low %v1492_v17, %v1496_v18 }
 0x20f   :  { %4287 = vmatpush1.bf16.msra.mxu0 %v9815_v26  ;;  %4451 = vmatpush1.bf16.msra.mxu1 %v9817_v27  ;;  %v9863_v26 = vcombine.low %v1484_v8, %v1488_v9  ;;  %v9865_v27 = vcombine.low %v1485_v10, %v1489_v11 }
 0x210   :  { %4288 = vmatprep.subr.bf16.mxu0 %v9824_v29  ;;  %4452 = vmatprep.subr.bf16.mxu1 %v9826_v30  ;;  %v9872_v29 = vcombine.high %v1492_v17, %v1496_v18  ;;  %v9874_v30 = vcombine.high %v1493_v20, %v1497_v21 }
 0x213   :  { %4289 = vmatpush1.bf16.msra.mxu0 %v9823_v36  ;;  %4453 = vmatpush1.bf16.msra.mxu1 %v9825_v39  ;;  %v1083_v36 = vunpack.c.h.bf16 %v11557_v23  ;;  %v1096_v39 = vmul.f32 %v1080_v22, %v11525_v59  ;;  %v1521_v59 = vld [vmem:[#allocation7 + $0xca8] sm:$0xff]  ;;  %v1540_v22 = vld [vmem:[#allocation7 + $0xd40] sm:$0xff] }
 0x214   :  { %4290 = vmatprep.subr.bf16.mxu0 %v9832_v40  ;;  %4454 = vmatprep.subr.bf16.mxu1 %v9834_v41  ;;  %v9873_v40 = vcombine.low %v1493_v20, %v1497_v21  ;;  %v9880_v41 = vcombine.high %v1500_v31, %v1504_v32 }
 0x217   :  { %4291 = vmatpush1.bf16.msra.mxu0 %v9831_v48  ;;  %4455 = vmatpush1.bf16.msra.mxu1 %v9833_v49  ;;  %v1513_v48 = vld [vmem:[#allocation7 + $0xc68] sm:$0xff]  ;;  %v1099_v49 = vmul.f32 %v1083_v36, %v11554_v28  ;;  %v1552_v36 = vld [vmem:[#allocation7 + $0xda0] sm:$0xff]  ;;  %v1539_v28 = vld [vmem:[#allocation7 + $0xd38] sm:$0xff] }
 0x218   :  { %4292 = vmatprep.subr.bf16.mxu0 %v9840_v50  ;;  %4456 = vmatprep.subr.bf16.mxu1 %v9842_v24  ;;  %v11563_v50 = vpack.c.bf16 %v1096_v39, %v1096_v39  ;;  %v9879_v24 = vcombine.low %v1500_v31, %v1504_v32  ;;  %v9890_v45 = vcombine.high %v1509_v2, %v1513_v48  ;;  %v1549_v39 = vld [vmem:[#allocation7 + $0xd88] sm:$0xff] }
 0x219   :  { %v9889_v55 = vcombine.low %v1509_v2, %v1513_v48  ;;  %v1560_v2 = vld [vmem:[#allocation7 + $0xde0] sm:$0xff]  ;;  %v1557_v48 = vld [vmem:[#allocation7 + $0xdc8] sm:$0xff] }
 0x21b   :  { %4293 = vmatpush1.bf16.msra.mxu0 %v9839_v60  ;;  %4457 = vmatpush1.bf16.msra.mxu1 %v9841_v63  ;;  %v1520_v60 = vld [vmem:[#allocation7 + $0xca0] sm:$0xff]  ;;  %v1527_v63 = vld [vmem:[#allocation7 + $0xcd8] sm:$0xff] }
 0x21c   :  { %4294 = vmatprep.subr.bf16.mxu0 %v9848_v1  ;;  %4458 = vmatprep.subr.bf16.mxu1 %v9850_v3  ;;  %v1517_v1 = vld [vmem:[#allocation7 + $0xc88] sm:$0xff]  ;;  %v11570_v3 = vpack.c.bf16 %v1099_v49, %v1099_v49  ;;  %v9896_v56 = vcombine.high %v1516_v58, %v1520_v60  ;;  %v9895_v8 = vcombine.low %v1516_v58, %v1520_v60  ;;  %v1564_v58 = vld [vmem:[#allocation7 + $0xe00] sm:$0xff] }
 0x21d   :  { %v9898_v57 = vcombine.high %v1517_v1, %v1521_v59  ;;  %v9897_v9 = vcombine.low %v1517_v1, %v1521_v59  ;;  %v1561_v49 = vld [vmem:[#allocation7 + $0xde8] sm:$0xff]  ;;  %v1568_v60 = vld [vmem:[#allocation7 + $0xe20] sm:$0xff] }
 0x21e   :  { %v1565_v1 = vld [vmem:[#allocation7 + $0xe08] sm:$0xff] }
 0x21f   :  { %4295 = vmatpush1.bf16.msra.mxu0 %v9847_v61  ;;  %4459 = vmatpush1.bf16.msra.mxu1 %v9849_v5  ;;  %v1524_v61 = vld [vmem:[#allocation7 + $0xcc0] sm:$0xff]  ;;  %v1569_v59 = vld [vmem:[#allocation7 + $0xe28] sm:$0xff] }
 0x220   :  { %4296 = vmatprep.subr.bf16.mxu0 %v9856_v6  ;;  %4460 = vmatprep.subr.bf16.mxu1 %v9858_v7  ;;  %v1528_v5 = vld [vmem:[#allocation7 + $0xce0] sm:$0xff]  ;;  %v1525_v6 = vld [vmem:[#allocation7 + $0xcc8] sm:$0xff] }
 0x221   :  { %v1529_v7 = vld [vmem:[#allocation7 + $0xce8] sm:$0xff]  ;;  %v9904_v10 = vcombine.high %v1524_v61, %v1528_v5  ;;  %v9903_v17 = vcombine.low %v1524_v61, %v1528_v5  ;;  %v1572_v61 = vld [vmem:[#allocation7 + $0xe40] sm:$0xff] }
 0x222   :  { %v9906_v11 = vcombine.high %v1525_v6, %v1529_v7  ;;  %v9905_v18 = vcombine.low %v1525_v6, %v1529_v7  ;;  %v1576_v5 = vld [vmem:[#allocation7 + $0xe60] sm:$0xff]  ;;  %v1573_v6 = vld [vmem:[#allocation7 + $0xe48] sm:$0xff] }
 0x223   :  { %4297 = vmatpush1.bf16.msra.mxu0 %v9855_v19  ;;  %4461 = vmatpush1.bf16.msra.mxu1 %v9857_v53  ;;  %v1532_v19 = vld [vmem:[#allocation7 + $0xd00] sm:$0xff]  ;;  %v1577_v7 = vld [vmem:[#allocation7 + $0xe68] sm:$0xff] }
 0x224   :  { %4298 = vmatprep.subr.bf16.mxu0 %v9864_v15  ;;  %4462 = vmatprep.subr.bf16.mxu1 %v9866_v16  ;;  %v1536_v53 = vld [vmem:[#allocation7 + $0xd20] sm:$0xff]  ;;  %v1533_v15 = vld [vmem:[#allocation7 + $0xd08] sm:$0xff] }
 0x225   :  { %v1537_v16 = vld [vmem:[#allocation7 + $0xd28] sm:$0xff]  ;;  %v9912_v20 = vcombine.high %v1532_v19, %v1536_v53 }
 0x226   :  { %v9914_v21 = vcombine.high %v1533_v15, %v1537_v16  ;;  %v9913_v31 = vcombine.low %v1533_v15, %v1537_v16  ;;  %v1581_v15 = vld [vmem:[#allocation7 + $0xe88] sm:$0xff] }
 0x227   :  { %4299 = vmatpush1.bf16.msra.mxu0 %v9863_v26  ;;  %4463 = vmatpush1.bf16.msra.mxu1 %v9865_v27  ;;  %v1544_v26 = vld [vmem:[#allocation7 + $0xd60] sm:$0xff]  ;;  %v1541_v27 = vld [vmem:[#allocation7 + $0xd48] sm:$0xff] }
 0x228   :  { %4300 = vmatprep.subr.bf16.mxu0 %v9872_v29  ;;  %4464 = vmatprep.subr.bf16.mxu1 %v9874_v30  ;;  %v1545_v29 = vld [vmem:[#allocation7 + $0xd68] sm:$0xff]  ;;  %v9911_v30 = vcombine.low %v1532_v19, %v1536_v53  ;;  %v9920_v32 = vcombine.high %v1540_v22, %v1544_v26  ;;  %v1580_v19 = vld [vmem:[#allocation7 + $0xe80] sm:$0xff] }
 0x229   :  { %v9922_v33 = vcombine.high %v1541_v27, %v1545_v29  ;;  %v1584_v53 = vld [vmem:[#allocation7 + $0xea0] sm:$0xff]  ;;  %v1585_v16 = vld [vmem:[#allocation7 + $0xea8] sm:$0xff] }
 0x22b   :  { %4301 = vmatpush1.bf16.msra.mxu0 %v9871_v42  ;;  %4465 = vmatpush1.bf16.msra.mxu1 %v9873_v40  ;;  %v1553_v42 = vld [vmem:[#allocation7 + $0xda8] sm:$0xff]  ;;  %v9919_v40 = vcombine.low %v1540_v22, %v1544_v26  ;;  %v1588_v22 = vld [vmem:[#allocation7 + $0xec0] sm:$0xff] }
 0x22c   :  { %4311 = vmatprep.subr.bf16.mxu0 %v9880_v41  ;;  %4475 = vmatprep.subr.bf16.mxu1 %v9882_v44  ;;  %v9921_v41 = vcombine.low %v1541_v27, %v1545_v29  ;;  %v9928_v44 = vcombine.high %v1548_v34, %v1552_v36  ;;  %v9930_v46 = vcombine.high %v1549_v39, %v1553_v42  ;;  %v1592_v26 = vld [vmem:[#allocation7 + $0xee0] sm:$0xff]  ;;  %v1589_v27 = vld [vmem:[#allocation7 + $0xec8] sm:$0xff] }
 0x22d   :  { %v1593_v29 = vld [vmem:[#allocation7 + $0xee8] sm:$0xff] }
 0x22e   :  { %10024 = vmatmul.mubr.msk.bf16.vlgmr.msra.gmra.mrb[8].mxu0 %vm11566_vm12, %v11563_v50  ;;  %10048 = vmatmul.mubr.msk.bf16.vlgmr.msra.gmra.mrb[8].mxu1 %vm11566_vm12, %v11563_v50 }
 0x22f   :  { %4312 = vmatpush1.bf16.msra.mxu0 %v9879_v24  ;;  %4476 = vmatpush1.bf16.msra.mxu1 %v9881_v51  ;;  %v9927_v24 = vcombine.low %v1548_v34, %v1552_v36  ;;  %v9929_v51 = vcombine.low %v1549_v39, %v1553_v42  ;;  %v1596_v34 = vld [vmem:[#allocation7 + $0xf00] sm:$0xff]  ;;  %v1597_v39 = vld [vmem:[#allocation7 + $0xf08] sm:$0xff] }
 0x230   :  { %4313 = vmatprep.subr.bf16.mxu0 %v9888_v52  ;;  %4477 = vmatprep.subr.bf16.mxu1 %v9890_v45  ;;  %v9936_v52 = vcombine.high %v1556_v47, %v1560_v2  ;;  %v9938_v45 = vcombine.high %v1557_v48, %v1561_v49  ;;  %v1600_v36 = vld [vmem:[#allocation7 + $0xf20] sm:$0xff]  ;;  %v1601_v42 = vld [vmem:[#allocation7 + $0xf28] sm:$0xff] }
 0x231   :  { %10027 = vmatprep.mubr.msk.bf16.mxu0 %vm11578_vm13, %v11570_v3  ;;  %10051 = vmatprep.mubr.msk.bf16.mxu1 %vm11578_vm13, %v11570_v3 }
 0x233   :  { %4314 = vmatpush1.bf16.msra.mxu0 %v9887_v54  ;;  %4478 = vmatpush1.bf16.msra.mxu1 %v9889_v55  ;;  %v9935_v54 = vcombine.low %v1556_v47, %v1560_v2  ;;  %v9937_v55 = vcombine.low %v1557_v48, %v1561_v49  ;;  %v1604_v47 = vld [vmem:[#allocation7 + $0xf40] sm:$0xff]  ;;  %v1605_v48 = vld [vmem:[#allocation7 + $0xf48] sm:$0xff] }
 0x234   :  { %4315 = vmatprep.subr.bf16.mxu0 %v9896_v56  ;;  %4479 = vmatprep.subr.bf16.mxu1 %v9898_v57  ;;  %v9944_v56 = vcombine.high %v1564_v58, %v1568_v60  ;;  %v9946_v57 = vcombine.high %v1565_v1, %v1569_v59  ;;  %v1608_v2 = vld [vmem:[#allocation7 + $0xf60] sm:$0xff]  ;;  %v1609_v49 = vld [vmem:[#allocation7 + $0xf68] sm:$0xff] }
 0x237   :  { %4316 = vmatpush1.bf16.msra.mxu0 %v9895_v8  ;;  %4480 = vmatpush1.bf16.msra.mxu1 %v9897_v9  ;;  %v9943_v8 = vcombine.low %v1564_v58, %v1568_v60  ;;  %v9945_v9 = vcombine.low %v1565_v1, %v1569_v59  ;;  %v1612_v58 = vld [vmem:[#allocation7 + $0xf80] sm:$0xff]  ;;  %v1613_v1 = vld [vmem:[#allocation7 + $0xf88] sm:$0xff] }
 0x238   :  { %4317 = vmatprep.subr.bf16.mxu0 %v9904_v10  ;;  %4481 = vmatprep.subr.bf16.mxu1 %v9906_v11  ;;  %v9952_v10 = vcombine.high %v1572_v61, %v1576_v5  ;;  %v9954_v11 = vcombine.high %v1573_v6, %v1577_v7  ;;  %v1616_v60 = vld [vmem:[#allocation7 + $0xfa0] sm:$0xff]  ;;  %v1617_v59 = vld [vmem:[#allocation7 + $0xfa8] sm:$0xff] }
 0x23b   :  { %4318 = vmatpush1.bf16.msra.mxu0 %v9903_v17  ;;  %4482 = vmatpush1.bf16.msra.mxu1 %v9905_v18  ;;  %v9951_v17 = vcombine.low %v1572_v61, %v1576_v5  ;;  %v9953_v18 = vcombine.low %v1573_v6, %v1577_v7  ;;  %v1620_v61 = vld [vmem:[#allocation7 + $0xfc0] sm:$0xff]  ;;  %v1621_v6 = vld [vmem:[#allocation7 + $0xfc8] sm:$0xff] }
 0x23c   :  { %4319 = vmatprep.subr.bf16.mxu0 %v9912_v20  ;;  %4483 = vmatprep.subr.bf16.mxu1 %v9914_v21  ;;  %v9960_v20 = vcombine.high %v1580_v19, %v1584_v53  ;;  %v9962_v21 = vcombine.high %v1581_v15, %v1585_v16  ;;  %v1624_v5 = vld [vmem:[#allocation7 + $0xfe0] sm:$0xff]  ;;  %v1625_v7 = vld [vmem:[#allocation7 + $0xfe8] sm:$0xff] }
 0x23f   :  { %4320 = vmatpush1.bf16.msra.mxu0 %v9911_v30  ;;  %4484 = vmatpush1.bf16.msra.mxu1 %v9913_v31  ;;  %v9959_v30 = vcombine.low %v1580_v19, %v1584_v53  ;;  %v9961_v31 = vcombine.low %v1581_v15, %v1585_v16  ;;  %v10002_v19 = vcombine.high %v1621_v6, %v1625_v7  ;;  %v1118_v53 = vld [vmem:[#allocation7 + $0x10] sm:$0xff]  ;;  %v1119_v16 = vld [vmem:[#allocation7 + $0x18] sm:$0xff] }
 0x240   :  { %4321 = vmatprep.subr.bf16.mxu0 %v9920_v32  ;;  %4485 = vmatprep.subr.bf16.mxu1 %v9922_v33  ;;  %v9968_v32 = vcombine.high %v1588_v22, %v1592_v26  ;;  %v9970_v33 = vcombine.high %v1589_v27, %v1593_v29  ;;  %v1122_v15 = vld [vmem:[#allocation7 + $0x30] sm:$0xff] }
 0x243   :  { %4322 = vmatpush1.bf16.msra.mxu0 %v9919_v40  ;;  %4486 = vmatpush1.bf16.msra.mxu1 %v9921_v41  ;;  %v9967_v40 = vcombine.low %v1588_v22, %v1592_v26  ;;  %v9969_v41 = vcombine.low %v1589_v27, %v1593_v29  ;;  %v9500_v22 = vcombine.high %v1118_v53, %v1122_v15  ;;  %v1126_v27 = vld [vmem:[#allocation7 + $0x50] sm:$0xff]  ;;  %v1127_v29 = vld [vmem:[#allocation7 + $0x58] sm:$0xff] }
 0x244   :  { %4323 = vmatprep.subr.bf16.mxu0 %v9928_v44  ;;  %4487 = vmatprep.subr.bf16.mxu1 %v9930_v46  ;;  %v9976_v44 = vcombine.high %v1596_v34, %v1600_v36  ;;  %v9978_v46 = vcombine.high %v1597_v39, %v1601_v42 }
 0x247   :  { %4324 = vmatpush1.bf16.msra.mxu0 %v9927_v24  ;;  %4488 = vmatpush1.bf16.msra.mxu1 %v9929_v51  ;;  %v9975_v24 = vcombine.low %v1596_v34, %v1600_v36  ;;  %v9977_v51 = vcombine.low %v1597_v39, %v1601_v42  ;;  %v1134_v42 = vld [vmem:[#allocation7 + $0x90] sm:$0xff]  ;;  %v4913_v34 = vld [vmem:[#allocation8 + $0xc8] sm:$0xff] }
 0x248   :  { %4325 = vmatprep.subr.bf16.mxu0 %v9936_v52  ;;  %4489 = vmatprep.subr.bf16.mxu1 %v9938_v45  ;;  %v9984_v52 = vcombine.high %v1604_v47, %v1608_v2  ;;  %v9986_v45 = vcombine.high %v1605_v48, %v1609_v49 }
 0x24b   :  { %4326 = vmatpush1.bf16.msra.mxu0 %v9935_v54  ;;  %4490 = vmatpush1.bf16.msra.mxu1 %v9937_v55  ;;  %v9983_v54 = vcombine.low %v1604_v47, %v1608_v2  ;;  %v9985_v55 = vcombine.low %v1605_v48, %v1609_v49  ;;  %v1142_v48 = vld [vmem:[#allocation7 + $0xd0] sm:$0xff] }
 0x24c   :  { %4327 = vmatprep.subr.bf16.mxu0 %v9944_v56  ;;  %4491 = vmatprep.subr.bf16.mxu1 %v9946_v57  ;;  %v9992_v56 = vcombine.high %v1612_v58, %v1616_v60  ;;  %v9994_v57 = vcombine.high %v1613_v1, %v1617_v59  ;;  %v1146_v49 = vld [vmem:[#allocation7 + $0xf0] sm:$0xff] }
 0x24f   :  { %4328 = vmatpush1.bf16.msra.mxu0 %v9943_v8  ;;  %4492 = vmatpush1.bf16.msra.mxu1 %v9945_v9  ;;  %v9991_v8 = vcombine.low %v1612_v58, %v1616_v60  ;;  %v9993_v9 = vcombine.low %v1613_v1, %v1617_v59  ;;  %v9524_v58 = vcombine.high %v1142_v48, %v1146_v49  ;;  %v1150_v1 = vld [vmem:[#allocation7 + $0x110] sm:$0xff]  ;;  %v1155_v59 = vld [vmem:[#allocation7 + $0x138] sm:$0xff] }
 0x250   :  { %4329 = vmatprep.subr.bf16.mxu0 %v9952_v10  ;;  %4493 = vmatprep.subr.bf16.mxu1 %v9954_v11  ;;  %v1082_v10 = vunpack.c.l.bf16 %v11557_v23  ;;  %v10000_v11 = vcombine.high %v1620_v61, %v1624_v5  ;;  %v1130_v23 = vld [vmem:[#allocation7 + $0x70] sm:$0xff] }
 0x251   :  { %v9508_v36 = vcombine.high %v1126_v27, %v1130_v23 }
 0x253   :  { %4330 = vmatpush1.bf16.msra.mxu0 %v9951_v17  ;;  %4494 = vmatpush1.bf16.msra.mxu1 %v9953_v18  ;;  %v1123_v17 = vld [vmem:[#allocation7 + $0x38] sm:$0xff]  ;;  %v9999_v18 = vcombine.low %v1620_v61, %v1624_v5  ;;  %v1158_v61 = vld [vmem:[#allocation7 + $0x150] sm:$0xff] }
 0x254   :  { %4331 = vmatprep.subr.bf16.mxu0 %v9960_v20  ;;  %4495 = vmatprep.subr.bf16.mxu1 %v9962_v21  ;;  %v10001_v20 = vcombine.low %v1621_v6, %v1625_v7  ;;  %v1098_v21 = vmul.f32 %v1082_v10, %v11552_v25  ;;  %v9502_v26 = vcombine.high %v1119_v16, %v1123_v17  ;;  %v1135_v25 = vld [vmem:[#allocation7 + $0x98] sm:$0xff]  ;;  %v1162_v5 = vld [vmem:[#allocation7 + $0x170] sm:$0xff] }
 0x255   :  { %v1159_v6 = vld [vmem:[#allocation7 + $0x158] sm:$0xff]  ;;  %v9540_v10 = vcombine.high %v1158_v61, %v1162_v5 }
 0x256   :  { %v1163_v7 = vld [vmem:[#allocation7 + $0x178] sm:$0xff] }
 0x257   :  { %4332 = vmatpush1.bf16.msra.mxu0 %v9959_v30  ;;  %4496 = vmatpush1.bf16.msra.mxu1 %v9961_v31  ;;  %v1131_v30 = vld [vmem:[#allocation7 + $0x78] sm:$0xff]  ;;  %v9499_v31 = vcombine.low %v1118_v53, %v1122_v15  ;;  %v1170_v53 = vld [vmem:[#allocation7 + $0x1b0] sm:$0xff] }
 0x258   :  { %4333 = vmatprep.subr.bf16.mxu0 %v9968_v32  ;;  %4497 = vmatprep.subr.bf16.mxu1 %v9970_v33  ;;  %v11591_v32 = vpack.c.bf16 %v1098_v21, %v1098_v21  ;;  %v9501_v33 = vcombine.low %v1119_v16, %v1123_v17  ;;  %v9510_v39 = vcombine.high %v1127_v29, %v1131_v30  ;;  %v1167_v15 = vld [vmem:[#allocation7 + $0x198] sm:$0xff] }
 0x259   :  { %v1171_v16 = vld [vmem:[#allocation7 + $0x1b8] sm:$0xff]  ;;  %v9539_v17 = vcombine.low %v1158_v61, %v1162_v5 }
 0x25a   :  { %v9550_v21 = vcombine.high %v1167_v15, %v1171_v16  ;;  %v1207_v61 = vld [vmem:[#allocation7 + $0x2d8] sm:$0xff] }
 0x25b   :  { %4334 = vmatpush1.bf16.msra.mxu0 %v9967_v40  ;;  %4498 = vmatpush1.bf16.msra.mxu1 %v9969_v41  ;;  %v1138_v40 = vld [vmem:[#allocation7 + $0xb0] sm:$0xff]  ;;  %v1139_v41 = vld [vmem:[#allocation7 + $0xb8] sm:$0xff] }
 0x25c   :  { %4335 = vmatprep.subr.bf16.mxu0 %v9976_v44  ;;  %4499 = vmatprep.subr.bf16.mxu1 %v9978_v46  ;;  %v9507_v44 = vcombine.low %v1126_v27, %v1130_v23  ;;  %v9509_v46 = vcombine.low %v1127_v29, %v1131_v30  ;;  %v9516_v47 = vcombine.high %v1134_v42, %v1138_v40  ;;  %v1175_v27 = vld [vmem:[#allocation7 + $0x1d8] sm:$0xff] }
 0x25d   :  { %v9518_v2 = vcombine.high %v1135_v25, %v1139_v41  ;;  %v1179_v23 = vld [vmem:[#allocation7 + $0x1f8] sm:$0xff]  ;;  %v9549_v30 = vcombine.low %v1167_v15, %v1171_v16 }
 0x25e   :  { %v1211_v5 = vld [vmem:[#allocation7 + $0x2f8] sm:$0xff] }
 0x25f   :  { %4336 = vmatpush1.bf16.msra.mxu0 %v9975_v24  ;;  %4500 = vmatpush1.bf16.msra.mxu1 %v9977_v51  ;;  %v1143_v24 = vld [vmem:[#allocation7 + $0xd8] sm:$0xff]  ;;  %v9589_v16 = vcombine.low %v1207_v61, %v1211_v5 }
 0x260   :  { %4337 = vmatprep.subr.bf16.mxu0 %v9984_v52  ;;  %4501 = vmatprep.subr.bf16.mxu1 %v9986_v45  ;;  %v1147_v51 = vld [vmem:[#allocation7 + $0xf8] sm:$0xff]  ;;  %v9515_v52 = vcombine.low %v1134_v42, %v1138_v40  ;;  %v9517_v45 = vcombine.low %v1135_v25, %v1139_v41  ;;  %v9557_v41 = vcombine.low %v1175_v27, %v1179_v23 }
 0x261   :  { %v9526_v60 = vcombine.high %v1143_v24, %v1147_v51  ;;  %v1183_v42 = vld [vmem:[#allocation7 + $0x218] sm:$0xff] }
 0x262   :  { %v1187_v40 = vld [vmem:[#allocation7 + $0x238] sm:$0xff] }
 0x263   :  { %4338 = vmatpush1.bf16.msra.mxu0 %v9983_v54  ;;  %4502 = vmatpush1.bf16.msra.mxu1 %v9985_v55  ;;  %v9523_v54 = vcombine.low %v1142_v48, %v1146_v49  ;;  %v9525_v55 = vcombine.low %v1143_v24, %v1147_v51  ;;  %v1191_v48 = vld [vmem:[#allocation7 + $0x258] sm:$0xff]  ;;  %v9565_v51 = vcombine.low %v1183_v42, %v1187_v40 }
 0x264   :  { %4339 = vmatprep.subr.bf16.mxu0 %v9992_v56  ;;  %4503 = vmatprep.subr.bf16.mxu1 %v9994_v57  ;;  %v9532_v56 = vcombine.high %v1150_v1, %v1154_v38  ;;  %v1195_v49 = vld [vmem:[#allocation7 + $0x278] sm:$0xff] }
 0x267   :  { %4340 = vmatpush1.bf16.msra.mxu0 %v9991_v8  ;;  %4504 = vmatpush1.bf16.msra.mxu1 %v9993_v9  ;;  %v9531_v8 = vcombine.low %v1150_v1, %v1154_v38  ;;  %v1199_v1 = vld [vmem:[#allocation7 + $0x298] sm:$0xff] }
 0x268   :  { %4341 = vmatprep.subr.bf16.mxu0 %v10000_v11  ;;  %4505 = vmatprep.subr.bf16.mxu1 %v10002_v19  ;;  %v9542_v11 = vcombine.high %v1159_v6, %v1163_v7  ;;  %v1166_v19 = vld [vmem:[#allocation7 + $0x190] sm:$0xff]  ;;  %v1203_v38 = vld [vmem:[#allocation7 + $0x2b8] sm:$0xff] }
 0x269   :  { %v9547_v29 = vcombine.low %v1166_v19, %v1170_v53 }
 0x26b   :  { %4342 = vmatpush1.bf16.msra.mxu0 %v9999_v18  ;;  %4506 = vmatpush1.bf16.msra.mxu1 %v10001_v20  ;;  %v9541_v18 = vcombine.low %v1159_v6, %v1163_v7  ;;  %v9548_v20 = vcombine.high %v1166_v19, %v1170_v53  ;;  %v9581_v7 = vcombine.low %v1199_v1, %v1203_v38  ;;  %v1215_v19 = vld [vmem:[#allocation7 + $0x318] sm:$0xff] }
 0x26c   :  { %4516 = vmatprep.subr.bf16.mxu0 %v9500_v22  ;;  %4680 = vmatprep.subr.bf16.mxu1 %v9502_v26  ;;  %v1174_v22 = vld [vmem:[#allocation7 + $0x1d0] sm:$0xff]  ;;  %v1219_v53 = vld [vmem:[#allocation7 + $0x338] sm:$0xff] }
 0x26d   :  { %v1178_v26 = vld [vmem:[#allocation7 + $0x1f0] sm:$0xff] }
 0x26e   :  { %10030 = vmatmul.mubr.msk.bf16.vlgmr.msra.gmra.mrb[8].mxu0 %vm11593_vm15, %v11591_v32  ;;  %10054 = vmatmul.mubr.msk.bf16.vlgmr.msra.gmra.mrb[8].mxu1 %vm11593_vm15, %v11591_v32  ;;  %v9555_v25 = vcombine.low %v1174_v22, %v1178_v26 }
 0x26f   :  { %4517 = vmatpush1.bf16.msra.mxu0 %v9499_v31  ;;  %10057 = vmatprep.mubr.msk.bf16.mxu0 %vm11477_vm2, %v11473_v35  ;;  %v9556_v31 = vcombine.high %v1174_v22, %v1178_v26  ;;  %v1223_v22 = vld [vmem:[#allocation7 + $0x358] sm:$0xff] }
 0x270   :  { %4681 = vmatpush1.bf16.msra.mxu1 %v9501_v33  ;;  %10081 = vmatprep.mubr.msk.bf16.mxu1 %vm11477_vm2, %v11473_v35  ;;  %v1151_v35 = vld [vmem:[#allocation7 + $0x118] sm:$0xff]  ;;  %v9558_v33 = vcombine.high %v1175_v27, %v1179_v23  ;;  %v9597_v23 = vcombine.low %v1215_v19, %v1219_v53 }
 0x271   :  { %4518 = vmatprep.subr.bf16.mxu0 %v9508_v36  ;;  %4682 = vmatprep.subr.bf16.mxu1 %v9510_v39  ;;  %v9534_v57 = vcombine.high %v1151_v35, %v1155_v59  ;;  %v9533_v9 = vcombine.low %v1151_v35, %v1155_v59  ;;  %v1182_v36 = vld [vmem:[#allocation7 + $0x210] sm:$0xff]  ;;  %v9573_v59 = vcombine.low %v1191_v48, %v1195_v49  ;;  %v1227_v26 = vld [vmem:[#allocation7 + $0x378] sm:$0xff] }
 0x272   :  { %v1186_v39 = vld [vmem:[#allocation7 + $0x230] sm:$0xff] }
 0x273   :  { %4519 = vmatpush1.bf16.msra.mxu0 %v9507_v44  ;;  %v9564_v44 = vcombine.high %v1182_v36, %v1186_v39  ;;  %v9563_v24 = vcombine.low %v1182_v36, %v1186_v39  ;;  %v1231_v36 = vld [vmem:[#allocation7 + $0x398] sm:$0xff] }
 0x274   :  { %4683 = vmatpush1.bf16.msra.mxu1 %v9509_v46  ;;  %4520 = vmatprep.subr.bf16.mxu0 %v9516_v47  ;;  %v9566_v46 = vcombine.high %v1183_v42, %v1187_v40  ;;  %v1190_v47 = vld [vmem:[#allocation7 + $0x250] sm:$0xff]  ;;  %v1235_v39 = vld [vmem:[#allocation7 + $0x3b8] sm:$0xff]  ;;  %v9605_v40 = vcombine.low %v1223_v22, %v1227_v26 }
 0x275   :  { %4684 = vmatprep.subr.bf16.mxu1 %v9518_v2  ;;  %v1194_v2 = vld [vmem:[#allocation7 + $0x270] sm:$0xff] }
 0x276   :  { %v9571_v35 = vcombine.low %v1190_v47, %v1194_v2 }
 0x277   :  { %4521 = vmatpush1.bf16.msra.mxu0 %v9515_v52  ;;  %v9572_v52 = vcombine.high %v1190_v47, %v1194_v2  ;;  %v1239_v47 = vld [vmem:[#allocation7 + $0x3d8] sm:$0xff] }
 0x278   :  { %4685 = vmatpush1.bf16.msra.mxu1 %v9517_v45  ;;  %4522 = vmatprep.subr.bf16.mxu0 %v9524_v58  ;;  %v9574_v45 = vcombine.high %v1191_v48, %v1195_v49  ;;  %v1198_v58 = vld [vmem:[#allocation7 + $0x290] sm:$0xff]  ;;  %v1243_v2 = vld [vmem:[#allocation7 + $0x3f8] sm:$0xff]  ;;  %v9613_v49 = vcombine.low %v1231_v36, %v1235_v39 }
 0x279   :  { %4686 = vmatprep.subr.bf16.mxu1 %v9526_v60  ;;  %v1202_v60 = vld [vmem:[#allocation7 + $0x2b0] sm:$0xff] }
 0x27a   :  { %v9579_v6 = vcombine.low %v1198_v58, %v1202_v60 }
 0x27b   :  { %4523 = vmatpush1.bf16.msra.mxu0 %v9523_v54  ;;  %v9580_v54 = vcombine.high %v1198_v58, %v1202_v60  ;;  %v1247_v58 = vld [vmem:[#allocation7 + $0x418] sm:$0xff] }
 0x27c   :  { %4687 = vmatpush1.bf16.msra.mxu1 %v9525_v55  ;;  %4524 = vmatprep.subr.bf16.mxu0 %v9532_v56  ;;  %v9582_v55 = vcombine.high %v1199_v1, %v1203_v38  ;;  %v1206_v56 = vld [vmem:[#allocation7 + $0x2d0] sm:$0xff]  ;;  %v1251_v60 = vld [vmem:[#allocation7 + $0x438] sm:$0xff]  ;;  %v9621_v38 = vcombine.low %v1239_v47, %v1243_v2 }
 0x27d   :  { %4688 = vmatprep.subr.bf16.mxu1 %v9534_v57  ;;  %v1210_v57 = vld [vmem:[#allocation7 + $0x2f0] sm:$0xff] }
 0x27e   :  { %v9587_v15 = vcombine.low %v1206_v56, %v1210_v57 }
 0x27f   :  { %4525 = vmatpush1.bf16.msra.mxu0 %v9531_v8  ;;  %v9588_v8 = vcombine.high %v1206_v56, %v1210_v57  ;;  %v1255_v57 = vld [vmem:[#allocation7 + $0x458] sm:$0xff] }
 0x280   :  { %4689 = vmatpush1.bf16.msra.mxu1 %v9533_v9  ;;  %4526 = vmatprep.subr.bf16.mxu0 %v9540_v10  ;;  %v9590_v9 = vcombine.high %v1207_v61, %v1211_v5  ;;  %v1214_v10 = vld [vmem:[#allocation7 + $0x310] sm:$0xff]  ;;  %v1259_v61 = vld [vmem:[#allocation7 + $0x478] sm:$0xff]  ;;  %v9629_v5 = vcombine.low %v1247_v58, %v1251_v60 }
 0x281   :  { %4690 = vmatprep.subr.bf16.mxu1 %v9542_v11  ;;  %v1218_v11 = vld [vmem:[#allocation7 + $0x330] sm:$0xff] }
 0x282   :  { %v9595_v27 = vcombine.low %v1214_v10, %v1218_v11 }
 0x283   :  { %4527 = vmatpush1.bf16.msra.mxu0 %v9539_v17  ;;  %v9596_v17 = vcombine.high %v1214_v10, %v1218_v11  ;;  %v1263_v10 = vld [vmem:[#allocation7 + $0x498] sm:$0xff] }
 0x284   :  { %4691 = vmatpush1.bf16.msra.mxu1 %v9541_v18  ;;  %4528 = vmatprep.subr.bf16.mxu0 %v9548_v20  ;;  %v9598_v18 = vcombine.high %v1215_v19, %v1219_v53  ;;  %v1222_v20 = vld [vmem:[#allocation7 + $0x350] sm:$0xff]  ;;  %v1267_v11 = vld [vmem:[#allocation7 + $0x4b8] sm:$0xff]  ;;  %v9637_v53 = vcombine.low %v1255_v57, %v1259_v61 }
 0x285   :  { %4692 = vmatprep.subr.bf16.mxu1 %v9550_v21  ;;  %v1226_v21 = vld [vmem:[#allocation7 + $0x370] sm:$0xff] }
 0x286   :  { %v9603_v42 = vcombine.low %v1222_v20, %v1226_v21 }
 0x287   :  { %4529 = vmatpush1.bf16.msra.mxu0 %v9547_v29  ;;  %v9604_v29 = vcombine.high %v1222_v20, %v1226_v21  ;;  %v9645_v21 = vcombine.low %v1263_v10, %v1267_v11 }
 0x288   :  { %4693 = vmatpush1.bf16.msra.mxu1 %v9549_v30  ;;  %4530 = vmatprep.subr.bf16.mxu0 %v9556_v31  ;;  %v9606_v30 = vcombine.high %v1223_v22, %v1227_v26  ;;  %v1230_v31 = vld [vmem:[#allocation7 + $0x390] sm:$0xff] }
 0x289   :  { %4694 = vmatprep.subr.bf16.mxu1 %v9558_v33  ;;  %v1234_v33 = vld [vmem:[#allocation7 + $0x3b0] sm:$0xff] }
 0x28a   :  { %v9611_v48 = vcombine.low %v1230_v31, %v1234_v33 }
 0x28b   :  { %4531 = vmatpush1.bf16.msra.mxu0 %v9555_v25  ;;  %v9612_v25 = vcombine.high %v1230_v31, %v1234_v33 }
 0x28c   :  { %4695 = vmatpush1.bf16.msra.mxu1 %v9557_v41  ;;  %4532 = vmatprep.subr.bf16.mxu0 %v9564_v44  ;;  %v9614_v41 = vcombine.high %v1231_v36, %v1235_v39  ;;  %v1238_v44 = vld [vmem:[#allocation7 + $0x3d0] sm:$0xff] }
 0x28d   :  { %4696 = vmatprep.subr.bf16.mxu1 %v9566_v46  ;;  %v1242_v46 = vld [vmem:[#allocation7 + $0x3f0] sm:$0xff] }
 0x28e   :  { %v9619_v1 = vcombine.low %v1238_v44, %v1242_v46  ;;  %v1286_v36 = vld [vmem:[#allocation7 + $0x550] sm:$0xff] }
 0x28f   :  { %4533 = vmatpush1.bf16.msra.mxu0 %v9563_v24  ;;  %v9620_v24 = vcombine.high %v1238_v44, %v1242_v46  ;;  %v1290_v39 = vld [vmem:[#allocation7 + $0x570] sm:$0xff] }
 0x290   :  { %4697 = vmatpush1.bf16.msra.mxu1 %v9565_v51  ;;  %4534 = vmatprep.subr.bf16.mxu0 %v9572_v52  ;;  %v9622_v51 = vcombine.high %v1239_v47, %v1243_v2  ;;  %v1246_v52 = vld [vmem:[#allocation7 + $0x410] sm:$0xff]  ;;  %v9668_v44 = vcombine.high %v1286_v36, %v1290_v39 }
 0x291   :  { %4698 = vmatprep.subr.bf16.mxu1 %v9574_v45  ;;  %v1250_v45 = vld [vmem:[#allocation7 + $0x430] sm:$0xff] }
 0x292   :  { %v9627_v56 = vcombine.low %v1246_v52, %v1250_v45  ;;  %v1294_v47 = vld [vmem:[#allocation7 + $0x590] sm:$0xff] }
 0x293   :  { %4535 = vmatpush1.bf16.msra.mxu0 %v9571_v35  ;;  %v9628_v35 = vcombine.high %v1246_v52, %v1250_v45  ;;  %v1298_v2 = vld [vmem:[#allocation7 + $0x5b0] sm:$0xff] }
 0x294   :  { %4699 = vmatpush1.bf16.msra.mxu1 %v9573_v59  ;;  %4536 = vmatprep.subr.bf16.mxu0 %v9580_v54  ;;  %v9630_v59 = vcombine.high %v1247_v58, %v1251_v60  ;;  %v1254_v54 = vld [vmem:[#allocation7 + $0x450] sm:$0xff]  ;;  %v9676_v52 = vcombine.high %v1294_v47, %v1298_v2 }
 0x295   :  { %4700 = vmatprep.subr.bf16.mxu1 %v9582_v55  ;;  %v1258_v55 = vld [vmem:[#allocation7 + $0x470] sm:$0xff] }
 0x296   :  { %v9635_v19 = vcombine.low %v1254_v54, %v1258_v55  ;;  %v1302_v58 = vld [vmem:[#allocation7 + $0x5d0] sm:$0xff] }
 0x297   :  { %4537 = vmatpush1.bf16.msra.mxu0 %v9579_v6  ;;  %v9636_v6 = vcombine.high %v1254_v54, %v1258_v55  ;;  %v1306_v60 = vld [vmem:[#allocation7 + $0x5f0] sm:$0xff] }
 0x298   :  { %4701 = vmatpush1.bf16.msra.mxu1 %v9581_v7  ;;  %4538 = vmatprep.subr.bf16.mxu0 %v9588_v8  ;;  %v1262_v7 = vld [vmem:[#allocation7 + $0x490] sm:$0xff]  ;;  %v9684_v54 = vcombine.high %v1302_v58, %v1306_v60 }
 0x299   :  { %4702 = vmatprep.subr.bf16.mxu1 %v9590_v9  ;;  %v1266_v8 = vld [vmem:[#allocation7 + $0x4b0] sm:$0xff]  ;;  %v9638_v9 = vcombine.high %v1255_v57, %v1259_v61  ;;  %v1311_v61 = vld [vmem:[#allocation7 + $0x618] sm:$0xff] }
 0x29a   :  { %v9643_v20 = vcombine.low %v1262_v7, %v1266_v8  ;;  %v1314_v57 = vld [vmem:[#allocation7 + $0x630] sm:$0xff] }
 0x29b   :  { %4539 = vmatpush1.bf16.msra.mxu0 %v9587_v15  ;;  %v9644_v15 = vcombine.high %v1262_v7, %v1266_v8 }
 0x29c   :  { %4703 = vmatpush1.bf16.msra.mxu1 %v9589_v16  ;;  %4540 = vmatprep.subr.bf16.mxu0 %v9596_v17  ;;  %v9646_v16 = vcombine.high %v1263_v10, %v1267_v11  ;;  %v1270_v17 = vld [vmem:[#allocation7 + $0x4d0] sm:$0xff] }
 0x29d   :  { %4704 = vmatprep.subr.bf16.mxu1 %v9598_v18  ;;  %v1274_v18 = vld [vmem:[#allocation7 + $0x4f0] sm:$0xff] }
 0x29e   :  { %v9652_v22 = vcombine.high %v1270_v17, %v1274_v18  ;;  %v1318_v10 = vld [vmem:[#allocation7 + $0x650] sm:$0xff] }
 0x29f   :  { %4541 = vmatpush1.bf16.msra.mxu0 %v9595_v27  ;;  %v1278_v27 = vld [vmem:[#allocation7 + $0x510] sm:$0xff] }
 0x2a0   :  { %4705 = vmatpush1.bf16.msra.mxu1 %v9597_v23  ;;  %4542 = vmatprep.subr.bf16.mxu0 %v9604_v29  ;;  %v1282_v23 = vld [vmem:[#allocation7 + $0x530] sm:$0xff]  ;;  %v1279_v29 = vld [vmem:[#allocation7 + $0x518] sm:$0xff] }
 0x2a1   :  { %4706 = vmatprep.subr.bf16.mxu1 %v9606_v30  ;;  %v9660_v31 = vcombine.high %v1278_v27, %v1282_v23  ;;  %v9662_v33 = vcombine.high %v1279_v29, %v1283_v0  ;;  %v1322_v11 = vld [vmem:[#allocation7 + $0x670] sm:$0xff] }
 0x2a3   :  { %4543 = vmatpush1.bf16.msra.mxu0 %v9603_v42  ;;  %v1287_v42 = vld [vmem:[#allocation7 + $0x558] sm:$0xff] }
 0x2a4   :  { %4707 = vmatpush1.bf16.msra.mxu1 %v9605_v40  ;;  %4544 = vmatprep.subr.bf16.mxu0 %v9612_v25  ;;  %v1291_v40 = vld [vmem:[#allocation7 + $0x578] sm:$0xff]  ;;  %v9659_v25 = vcombine.low %v1278_v27, %v1282_v23 }
 0x2a5   :  { %4708 = vmatprep.subr.bf16.mxu1 %v9614_v41  ;;  %v9661_v41 = vcombine.low %v1279_v29, %v1283_v0  ;;  %v9670_v46 = vcombine.high %v1287_v42, %v1291_v40  ;;  %v1334_v29 = vld [vmem:[#allocation7 + $0x6d0] sm:$0xff] }
 0x2a6   :  { %v1338_v0 = vld [vmem:[#allocation7 + $0x6f0] sm:$0xff] }
 0x2a7   :  { %4545 = vmatpush1.bf16.msra.mxu0 %v9611_v48  ;;  %v1295_v48 = vld [vmem:[#allocation7 + $0x598] sm:$0xff] }
 0x2a8   :  { %4709 = vmatpush1.bf16.msra.mxu1 %v9613_v49  ;;  %4546 = vmatprep.subr.bf16.mxu0 %v9620_v24  ;;  %v1299_v49 = vld [vmem:[#allocation7 + $0x5b8] sm:$0xff]  ;;  %v9667_v24 = vcombine.low %v1286_v36, %v1290_v39  ;;  %v9716_v36 = vcombine.high %v1334_v29, %v1338_v0 }
 0x2a9   :  { %4710 = vmatprep.subr.bf16.mxu1 %v9622_v51  ;;  %v9669_v51 = vcombine.low %v1287_v42, %v1291_v40  ;;  %v9678_v45 = vcombine.high %v1295_v48, %v1299_v49  ;;  %v1342_v42 = vld [vmem:[#allocation7 + $0x710] sm:$0xff] }
 0x2aa   :  { %v1346_v40 = vld [vmem:[#allocation7 + $0x730] sm:$0xff] }
 0x2ab   :  { %4547 = vmatpush1.bf16.msra.mxu0 %v9619_v1  ;;  %v1303_v1 = vld [vmem:[#allocation7 + $0x5d8] sm:$0xff] }
 0x2ac   :  { %4711 = vmatpush1.bf16.msra.mxu1 %v9621_v38  ;;  %4557 = vmatprep.subr.bf16.mxu0 %v9628_v35  ;;  %v1307_v38 = vld [vmem:[#allocation7 + $0x5f8] sm:$0xff]  ;;  %v9675_v35 = vcombine.low %v1294_v47, %v1298_v2  ;;  %v9724_v47 = vcombine.high %v1342_v42, %v1346_v40 }
 0x2ad   :  { %4721 = vmatprep.subr.bf16.mxu1 %v9630_v59  ;;  %v9677_v59 = vcombine.low %v1295_v48, %v1299_v49  ;;  %v9686_v55 = vcombine.high %v1303_v1, %v1307_v38  ;;  %v9685_v7 = vcombine.low %v1303_v1, %v1307_v38  ;;  %v1350_v48 = vld [vmem:[#allocation7 + $0x750] sm:$0xff] }
 0x2ae   :  { %10060 = vmatmul.mubr.msk.bf16.vlgmr.msra.gmra.mrb[12].mxu0 %vm11481_vm3, %v11475_v37  ;;  %v1354_v49 = vld [vmem:[#allocation7 + $0x770] sm:$0xff] }
 0x2af   :  { %10084 = vmatmul.mubr.msk.bf16.vlgmr.msra.gmra.mrb[12].mxu1 %vm11481_vm3, %v11475_v37  ;;  %4558 = vmatpush1.bf16.msra.mxu0 %v9627_v56  ;;  %v1275_v37 = vld [vmem:[#allocation7 + $0x4f8] sm:$0xff]  ;;  %v1310_v56 = vld [vmem:[#allocation7 + $0x610] sm:$0xff] }
 0x2b0   :  { %10063 = vmatprep.mubr.msk.bf16.mxu0 %vm11508_vm5, %v11512_v4  ;;  %4722 = vmatpush1.bf16.msra.mxu1 %v9629_v5  ;;  %v9654_v26 = vcombine.high %v1271_v43, %v1275_v37  ;;  %v9653_v30 = vcombine.low %v1271_v43, %v1275_v37  ;;  %v1315_v5 = vld [vmem:[#allocation7 + $0x638] sm:$0xff]  ;;  %v9692_v8 = vcombine.high %v1310_v56, %v1314_v57  ;;  %v1326_v43 = vld [vmem:[#allocation7 + $0x690] sm:$0xff] }
 0x2b1   :  { %10087 = vmatprep.mubr.msk.bf16.mxu1 %vm11508_vm5, %v11512_v4  ;;  %4559 = vmatprep.subr.bf16.mxu0 %v9636_v6  ;;  %v9651_v4 = vcombine.low %v1270_v17, %v1274_v18  ;;  %v9683_v6 = vcombine.low %v1302_v58, %v1306_v60  ;;  %v9700_v17 = vcombine.high %v1318_v10, %v1322_v11  ;;  %v1330_v37 = vld [vmem:[#allocation7 + $0x6b0] sm:$0xff] }
 0x2b2   :  { %4723 = vmatprep.subr.bf16.mxu1 %v9638_v9  ;;  %v9694_v9 = vcombine.high %v1311_v61, %v1315_v5  ;;  %v9708_v27 = vcombine.high %v1326_v43, %v1330_v37  ;;  %v9732_v58 = vcombine.high %v1350_v48, %v1354_v49  ;;  %v1358_v1 = vld [vmem:[#allocation7 + $0x790] sm:$0xff] }
 0x2b3   :  { %4560 = vmatpush1.bf16.msra.mxu0 %v9635_v19  ;;  %v1319_v19 = vld [vmem:[#allocation7 + $0x658] sm:$0xff]  ;;  %v1362_v38 = vld [vmem:[#allocation7 + $0x7b0] sm:$0xff] }
 0x2b4   :  { %4724 = vmatpush1.bf16.msra.mxu1 %v9637_v53  ;;  %4561 = vmatprep.subr.bf16.mxu0 %v9644_v15  ;;  %v1323_v53 = vld [vmem:[#allocation7 + $0x678] sm:$0xff]  ;;  %v9691_v15 = vcombine.low %v1310_v56, %v1314_v57  ;;  %v9740_v56 = vcombine.high %v1358_v1, %v1362_v38 }
 0x2b5   :  { %4725 = vmatprep.subr.bf16.mxu1 %v9646_v16  ;;  %v9693_v16 = vcombine.low %v1311_v61, %v1315_v5  ;;  %v9702_v18 = vcombine.high %v1319_v19, %v1323_v53  ;;  %v1366_v61 = vld [vmem:[#allocation7 + $0x7d0] sm:$0xff] }
 0x2b6   :  { %v1370_v5 = vld [vmem:[#allocation7 + $0x7f0] sm:$0xff] }
 0x2b7   :  { %4562 = vmatpush1.bf16.msra.mxu0 %v9643_v20  ;;  %v1327_v20 = vld [vmem:[#allocation7 + $0x698] sm:$0xff] }
 0x2b8   :  { %4726 = vmatpush1.bf16.msra.mxu1 %v9645_v21  ;;  %4563 = vmatprep.subr.bf16.mxu0 %v9652_v22  ;;  %v1331_v21 = vld [vmem:[#allocation7 + $0x6b8] sm:$0xff]  ;;  %v9699_v22 = vcombine.low %v1318_v10, %v1322_v11  ;;  %v9748_v10 = vcombine.high %v1366_v61, %v1370_v5 }
 0x2b9   :  { %4727 = vmatprep.subr.bf16.mxu1 %v9654_v26  ;;  %v9701_v26 = vcombine.low %v1319_v19, %v1323_v53  ;;  %v9710_v23 = vcombine.high %v1327_v20, %v1331_v21  ;;  %v1374_v19 = vld [vmem:[#allocation7 + $0x810] sm:$0xff] }
 0x2ba   :  { %v1378_v53 = vld [vmem:[#allocation7 + $0x830] sm:$0xff] }
 0x2bb   :  { %4564 = vmatpush1.bf16.msra.mxu0 %v9651_v4  ;;  %v1335_v4 = vld [vmem:[#allocation7 + $0x6d8] sm:$0xff] }
 0x2bc   :  { %4728 = vmatpush1.bf16.msra.mxu1 %v9653_v30  ;;  %4565 = vmatprep.subr.bf16.mxu0 %v9660_v31  ;;  %v1339_v30 = vld [vmem:[#allocation7 + $0x6f8] sm:$0xff]  ;;  %v9707_v31 = vcombine.low %v1326_v43, %v1330_v37  ;;  %v9756_v43 = vcombine.high %v1374_v19, %v1378_v53 }
 0x2bd   :  { %4729 = vmatprep.subr.bf16.mxu1 %v9662_v33  ;;  %v9709_v33 = vcombine.low %v1327_v20, %v1331_v21  ;;  %v9718_v39 = vcombine.high %v1335_v4, %v1339_v30  ;;  %v1382_v20 = vld [vmem:[#allocation7 + $0x850] sm:$0xff] }
 0x2be   :  { %v1386_v21 = vld [vmem:[#allocation7 + $0x870] sm:$0xff] }
 0x2bf   :  { %4566 = vmatpush1.bf16.msra.mxu0 %v9659_v25  ;;  %v1343_v25 = vld [vmem:[#allocation7 + $0x718] sm:$0xff] }
 0x2c0   :  { %4730 = vmatpush1.bf16.msra.mxu1 %v9661_v41  ;;  %4567 = vmatprep.subr.bf16.mxu0 %v9668_v44  ;;  %v1347_v41 = vld [vmem:[#allocation7 + $0x738] sm:$0xff]  ;;  %v9715_v44 = vcombine.low %v1334_v29, %v1338_v0  ;;  %v9764_v29 = vcombine.high %v1382_v20, %v1386_v21  ;;  %v1390_v0 = vld [vmem:[#allocation7 + $0x890] sm:$0xff] }
 0x2c1   :  { %4731 = vmatprep.subr.bf16.mxu1 %v9670_v46  ;;  %v9717_v46 = vcombine.low %v1335_v4, %v1339_v30  ;;  %v9726_v2 = vcombine.high %v1343_v25, %v1347_v41  ;;  %v1394_v4 = vld [vmem:[#allocation7 + $0x8b0] sm:$0xff] }
 0x2c3   :  { %4568 = vmatpush1.bf16.msra.mxu0 %v9667_v24  ;;  %v1351_v24 = vld [vmem:[#allocation7 + $0x758] sm:$0xff] }
 0x2c4   :  { %4732 = vmatpush1.bf16.msra.mxu1 %v9669_v51  ;;  %4569 = vmatprep.subr.bf16.mxu0 %v9676_v52  ;;  %v1355_v51 = vld [vmem:[#allocation7 + $0x778] sm:$0xff]  ;;  %v9723_v52 = vcombine.low %v1342_v42, %v1346_v40  ;;  %v9772_v42 = vcombine.high %v1390_v0, %v1394_v4 }
 0x2c5   :  { %4733 = vmatprep.subr.bf16.mxu1 %v9678_v45  ;;  %v9725_v45 = vcombine.low %v1343_v25, %v1347_v41  ;;  %v9734_v60 = vcombine.high %v1351_v24, %v1355_v51  ;;  %v1398_v25 = vld [vmem:[#allocation7 + $0x8d0] sm:$0xff] }
 0x2c6   :  { %v1402_v41 = vld [vmem:[#allocation7 + $0x8f0] sm:$0xff] }
 0x2c7   :  { %4570 = vmatpush1.bf16.msra.mxu0 %v9675_v35  ;;  %v1359_v35 = vld [vmem:[#allocation7 + $0x798] sm:$0xff] }
 0x2c8   :  { %4734 = vmatpush1.bf16.msra.mxu1 %v9677_v59  ;;  %4571 = vmatprep.subr.bf16.mxu0 %v9684_v54  ;;  %v1363_v59 = vld [vmem:[#allocation7 + $0x7b8] sm:$0xff]  ;;  %v9731_v54 = vcombine.low %v1350_v48, %v1354_v49  ;;  %v1406_v48 = vld [vmem:[#allocation7 + $0x910] sm:$0xff] }
 0x2c9   :  { %4735 = vmatprep.subr.bf16.mxu1 %v9686_v55  ;;  %v9733_v55 = vcombine.low %v1351_v24, %v1355_v51  ;;  %v9742_v57 = vcombine.high %v1359_v35, %v1363_v59  ;;  %v1410_v49 = vld [vmem:[#allocation7 + $0x930] sm:$0xff]  ;;  %v1407_v24 = vld [vmem:[#allocation7 + $0x918] sm:$0xff] }
 0x2cb   :  { %4572 = vmatpush1.bf16.msra.mxu0 %v9683_v6  ;;  %v1367_v6 = vld [vmem:[#allocation7 + $0x7d8] sm:$0xff] }
 0x2cc   :  { %4736 = vmatpush1.bf16.msra.mxu1 %v9685_v7  ;;  %4573 = vmatprep.subr.bf16.mxu0 %v9692_v8  ;;  %v1371_v7 = vld [vmem:[#allocation7 + $0x7f8] sm:$0xff]  ;;  %v9739_v8 = vcombine.low %v1358_v1, %v1362_v38 }
 0x2cd   :  { %4737 = vmatprep.subr.bf16.mxu1 %v9694_v9  ;;  %v9741_v9 = vcombine.low %v1359_v35, %v1363_v59  ;;  %v9750_v11 = vcombine.high %v1367_v6, %v1371_v7  ;;  %v1415_v1 = vld [vmem:[#allocation7 + $0x958] sm:$0xff]  ;;  %v9787_v35 = vcombine.low %v1406_v48, %v1410_v49  ;;  %v9789_v59 = vcombine.low %v1407_v24, %v1411_v14 }
 0x2ce   :  { %v1419_v38 = vld [vmem:[#allocation7 + $0x978] sm:$0xff] }
 0x2cf   :  { %4574 = vmatpush1.bf16.msra.mxu0 %v9691_v15  ;;  %v1375_v15 = vld [vmem:[#allocation7 + $0x818] sm:$0xff] }
 0x2d0   :  { %4738 = vmatpush1.bf16.msra.mxu1 %v9693_v16  ;;  %4575 = vmatprep.subr.bf16.mxu0 %v9700_v17  ;;  %v1379_v16 = vld [vmem:[#allocation7 + $0x838] sm:$0xff]  ;;  %v9747_v17 = vcombine.low %v1366_v61, %v1370_v5 }
 0x2d1   :  { %4739 = vmatprep.subr.bf16.mxu1 %v9702_v18  ;;  %v9749_v18 = vcombine.low %v1367_v6, %v1371_v7  ;;  %v9758_v37 = vcombine.high %v1375_v15, %v1379_v16  ;;  %v1423_v61 = vld [vmem:[#allocation7 + $0x998] sm:$0xff]  ;;  %v9797_v7 = vcombine.low %v1415_v1, %v1419_v38 }
 0x2d2   :  { %v1427_v5 = vld [vmem:[#allocation7 + $0x9b8] sm:$0xff] }
 0x2d3   :  { %4576 = vmatpush1.bf16.msra.mxu0 %v9699_v22  ;;  %v9755_v22 = vcombine.low %v1374_v19, %v1378_v53  ;;  %v1431_v19 = vld [vmem:[#allocation7 + $0x9d8] sm:$0xff] }
 0x2d4   :  { %4740 = vmatpush1.bf16.msra.mxu1 %v9701_v26  ;;  %4577 = vmatprep.subr.bf16.mxu0 %v9708_v27  ;;  %v1383_v26 = vld [vmem:[#allocation7 + $0x858] sm:$0xff] }
 0x2d5   :  { %4741 = vmatprep.subr.bf16.mxu1 %v9710_v23  ;;  %v1387_v27 = vld [vmem:[#allocation7 + $0x878] sm:$0xff]  ;;  %v9757_v23 = vcombine.low %v1375_v15, %v1379_v16  ;;  %v9805_v16 = vcombine.low %v1423_v61, %v1427_v5 }
 0x2d6   :  { %v9766_v30 = vcombine.high %v1383_v26, %v1387_v27  ;;  %v1435_v53 = vld [vmem:[#allocation7 + $0x9f8] sm:$0xff] }
 0x2d7   :  { %4578 = vmatpush1.bf16.msra.mxu0 %v9707_v31  ;;  %v1391_v31 = vld [vmem:[#allocation7 + $0x898] sm:$0xff] }
 0x2d8   :  { %4742 = vmatpush1.bf16.msra.mxu1 %v9709_v33  ;;  %4579 = vmatprep.subr.bf16.mxu0 %v9716_v36  ;;  %v1395_v33 = vld [vmem:[#allocation7 + $0x8b8] sm:$0xff]  ;;  %v9763_v36 = vcombine.low %v1382_v20, %v1386_v21 }
 0x2d9   :  { %4743 = vmatprep.subr.bf16.mxu1 %v9718_v39  ;;  %v9765_v39 = vcombine.low %v1383_v26, %v1387_v27  ;;  %v9774_v40 = vcombine.high %v1391_v31, %v1395_v33  ;;  %v1439_v20 = vld [vmem:[#allocation7 + $0xa18] sm:$0xff]  ;;  %v9813_v26 = vcombine.low %v1431_v19, %v1435_v53 }
 0x2da   :  { %v1443_v21 = vld [vmem:[#allocation7 + $0xa38] sm:$0xff] }
 0x2db   :  { %4580 = vmatpush1.bf16.msra.mxu0 %v9715_v44  ;;  %v9771_v44 = vcombine.low %v1390_v0, %v1394_v4  ;;  %v1450_v0 = vld [vmem:[#allocation7 + $0xa70] sm:$0xff]  ;;  %v1447_v4 = vld [vmem:[#allocation7 + $0xa58] sm:$0xff] }
 0x2dc   :  { %4744 = vmatpush1.bf16.msra.mxu1 %v9717_v46  ;;  %4581 = vmatprep.subr.bf16.mxu0 %v9724_v47  ;;  %v9773_v46 = vcombine.low %v1391_v31, %v1395_v33  ;;  %v9780_v47 = vcombine.high %v1398_v25, %v1402_v41  ;;  %v9821_v33 = vcombine.low %v1439_v20, %v1443_v21 }
 0x2dd   :  { %4745 = vmatprep.subr.bf16.mxu1 %v9726_v2 }
 0x2df   :  { %4582 = vmatpush1.bf16.msra.mxu0 %v9723_v52  ;;  %v9788_v52 = vcombine.high %v1406_v48, %v1410_v49  ;;  %v1463_v48 = vld [vmem:[#allocation7 + $0xad8] sm:$0xff] }
 0x2e0   :  { %4746 = vmatpush1.bf16.msra.mxu1 %v9725_v45  ;;  %4583 = vmatprep.subr.bf16.mxu0 %v9732_v58  ;;  %v9790_v45 = vcombine.high %v1407_v24, %v1411_v14  ;;  %v1414_v58 = vld [vmem:[#allocation7 + $0x950] sm:$0xff]  ;;  %v1467_v49 = vld [vmem:[#allocation7 + $0xaf8] sm:$0xff] }
 0x2e1   :  { %4747 = vmatprep.subr.bf16.mxu1 %v9734_v60  ;;  %v1418_v60 = vld [vmem:[#allocation7 + $0x970] sm:$0xff] }
 0x2e2   :  { %v9795_v6 = vcombine.low %v1414_v58, %v1418_v60 }
 0x2e3   :  { %4584 = vmatpush1.bf16.msra.mxu0 %v9731_v54  ;;  %v9796_v54 = vcombine.high %v1414_v58, %v1418_v60  ;;  %v1471_v58 = vld [vmem:[#allocation7 + $0xb18] sm:$0xff] }
 0x2e4   :  { %4748 = vmatpush1.bf16.msra.mxu1 %v9733_v55  ;;  %4585 = vmatprep.subr.bf16.mxu0 %v9740_v56  ;;  %v9798_v55 = vcombine.high %v1415_v1, %v1419_v38  ;;  %v1422_v56 = vld [vmem:[#allocation7 + $0x990] sm:$0xff]  ;;  %v1475_v60 = vld [vmem:[#allocation7 + $0xb38] sm:$0xff]  ;;  %v9845_v38 = vcombine.low %v1463_v48, %v1467_v49 }
 0x2e5   :  { %4749 = vmatprep.subr.bf16.mxu1 %v9742_v57  ;;  %v1426_v57 = vld [vmem:[#allocation7 + $0x9b0] sm:$0xff] }
 0x2e6   :  { %v9803_v15 = vcombine.low %v1422_v56, %v1426_v57 }
 0x2e7   :  { %4586 = vmatpush1.bf16.msra.mxu0 %v9739_v8  ;;  %v9804_v8 = vcombine.high %v1422_v56, %v1426_v57  ;;  %v1479_v56 = vld [vmem:[#allocation7 + $0xb58] sm:$0xff] }
 0x2e8   :  { %4750 = vmatpush1.bf16.msra.mxu1 %v9741_v9  ;;  %4587 = vmatprep.subr.bf16.mxu0 %v9748_v10  ;;  %v9806_v9 = vcombine.high %v1423_v61, %v1427_v5  ;;  %v1430_v10 = vld [vmem:[#allocation7 + $0x9d0] sm:$0xff]  ;;  %v1483_v57 = vld [vmem:[#allocation7 + $0xb78] sm:$0xff]  ;;  %v9853_v5 = vcombine.low %v1471_v58, %v1475_v60 }
 0x2e9   :  { %4751 = vmatprep.subr.bf16.mxu1 %v9750_v11  ;;  %v1434_v11 = vld [vmem:[#allocation7 + $0x9f0] sm:$0xff] }
 0x2eb   :  { %4588 = vmatpush1.bf16.msra.mxu0 %v9747_v17  ;;  %v9812_v17 = vcombine.high %v1430_v10, %v1434_v11 }
 0x2ec   :  { %4752 = vmatpush1.bf16.msra.mxu1 %v9749_v18  ;;  %4598 = vmatprep.subr.bf16.mxu0 %v9756_v43  ;;  %v9814_v18 = vcombine.high %v1431_v19, %v1435_v53  ;;  %v1438_v43 = vld [vmem:[#allocation7 + $0xa10] sm:$0xff]  ;;  %v9861_v53 = vcombine.low %v1479_v56, %v1483_v57 }
 0x2ed   :  { %4762 = vmatprep.subr.bf16.mxu1 %v9758_v37  ;;  %v1442_v37 = vld [vmem:[#allocation7 + $0xa30] sm:$0xff] }
 0x2ee   :  { %10066 = vmatmul.mubr.msk.bf16.vlgmr.msra.gmra.mrb[12].mxu0 %vm11530_vm8, %v11528_v62  ;;  %v9820_v27 = vcombine.high %v1438_v43, %v1442_v37  ;;  %v9819_v31 = vcombine.low %v1438_v43, %v1442_v37  ;;  %v1495_v43 = vld [vmem:[#allocation7 + $0xbd8] sm:$0xff] }
 0x2ef   :  { %10090 = vmatmul.mubr.msk.bf16.vlgmr.msra.gmra.mrb[12].mxu1 %vm11530_vm8, %v11528_v62  ;;  %4599 = vmatpush1.bf16.msra.mxu0 %v9755_v22  ;;  %v1403_v62 = vld [vmem:[#allocation7 + $0x8f8] sm:$0xff]  ;;  %v9811_v22 = vcombine.low %v1430_v10, %v1434_v11 }
 0x2f0   :  { %10069 = vmatprep.mubr.msk.bf16.mxu0 %vm11542_vm9, %v11534_v13  ;;  %4763 = vmatpush1.bf16.msra.mxu1 %v9757_v23  ;;  %v9782_v2 = vcombine.high %v1399_v12, %v1403_v62  ;;  %v9781_v51 = vcombine.low %v1399_v12, %v1403_v62  ;;  %v9822_v23 = vcombine.high %v1439_v20, %v1443_v21  ;;  %v1487_v10 = vld [vmem:[#allocation7 + $0xb98] sm:$0xff] }
 0x2f1   :  { %10093 = vmatprep.mubr.msk.bf16.mxu1 %vm11542_vm9, %v11534_v13  ;;  %4600 = vmatprep.subr.bf16.mxu0 %v9764_v29  ;;  %v9779_v13 = vcombine.low %v1398_v25, %v1402_v41  ;;  %v1446_v29 = vld [vmem:[#allocation7 + $0xa50] sm:$0xff]  ;;  %v1455_v25 = vld [vmem:[#allocation7 + $0xa98] sm:$0xff] }
 0x2f2   :  { %4764 = vmatprep.subr.bf16.mxu1 %v9766_v30  ;;  %v1451_v30 = vld [vmem:[#allocation7 + $0xa78] sm:$0xff]  ;;  %v9827_v12 = vcombine.low %v1446_v29, %v1450_v0 }
 0x2f3   :  { %4601 = vmatpush1.bf16.msra.mxu0 %v9763_v36  ;;  %v9828_v36 = vcombine.high %v1446_v29, %v1450_v0  ;;  %v1459_v41 = vld [vmem:[#allocation7 + $0xab8] sm:$0xff]  ;;  %v9829_v62 = vcombine.low %v1447_v4, %v1451_v30 }
 0x2f4   :  { %4765 = vmatpush1.bf16.msra.mxu1 %v9765_v39  ;;  %4602 = vmatprep.subr.bf16.mxu0 %v9772_v42  ;;  %v9830_v39 = vcombine.high %v1447_v4, %v1451_v30  ;;  %v1454_v42 = vld [vmem:[#allocation7 + $0xa90] sm:$0xff]  ;;  %v9837_v14 = vcombine.low %v1455_v25, %v1459_v41  ;;  %v1491_v11 = vld [vmem:[#allocation7 + $0xbb8] sm:$0xff] }
 0x2f5   :  { %4766 = vmatprep.subr.bf16.mxu1 %v9774_v40  ;;  %v1458_v40 = vld [vmem:[#allocation7 + $0xab0] sm:$0xff]  ;;  %v1499_v37 = vld [vmem:[#allocation7 + $0xbf8] sm:$0xff]  ;;  %v9869_v21 = vcombine.low %v1487_v10, %v1491_v11 }
 0x2f6   :  { %v9835_v24 = vcombine.low %v1454_v42, %v1458_v40  ;;  %v1503_v29 = vld [vmem:[#allocation7 + $0xc18] sm:$0xff]  ;;  %v9877_v30 = vcombine.low %v1495_v43, %v1499_v37 }
 0x2f7   :  { %4603 = vmatpush1.bf16.msra.mxu0 %v9771_v44  ;;  %v9836_v44 = vcombine.high %v1454_v42, %v1458_v40  ;;  %v1507_v0 = vld [vmem:[#allocation7 + $0xc38] sm:$0xff] }
 0x2f8   :  { %4767 = vmatpush1.bf16.msra.mxu1 %v9773_v46  ;;  %4604 = vmatprep.subr.bf16.mxu0 %v9780_v47  ;;  %v9838_v46 = vcombine.high %v1455_v25, %v1459_v41  ;;  %v1462_v47 = vld [vmem:[#allocation7 + $0xad0] sm:$0xff]  ;;  %v1511_v40 = vld [vmem:[#allocation7 + $0xc58] sm:$0xff]  ;;  %v9885_v41 = vcombine.low %v1503_v29, %v1507_v0 }
 0x2f9   :  { %4768 = vmatprep.subr.bf16.mxu1 %v9782_v2  ;;  %v1466_v2 = vld [vmem:[#allocation7 + $0xaf0] sm:$0xff]  ;;  %v1515_v25 = vld [vmem:[#allocation7 + $0xc78] sm:$0xff] }
 0x2fa   :  { %v9843_v1 = vcombine.low %v1462_v47, %v1466_v2 }
 0x2fb   :  { %4605 = vmatpush1.bf16.msra.mxu0 %v9779_v13  ;;  %v9844_v13 = vcombine.high %v1462_v47, %v1466_v2  ;;  %v1519_v47 = vld [vmem:[#allocation7 + $0xc98] sm:$0xff] }
 0x2fc   :  { %4769 = vmatpush1.bf16.msra.mxu1 %v9781_v51  ;;  %4606 = vmatprep.subr.bf16.mxu0 %v9788_v52  ;;  %v9846_v51 = vcombine.high %v1463_v48, %v1467_v49  ;;  %v1470_v52 = vld [vmem:[#allocation7 + $0xb10] sm:$0xff]  ;;  %v1523_v2 = vld [vmem:[#allocation7 + $0xcb8] sm:$0xff]  ;;  %v9893_v49 = vcombine.low %v1511_v40, %v1515_v25 }
 0x2fd   :  { %4770 = vmatprep.subr.bf16.mxu1 %v9790_v45  ;;  %v1474_v45 = vld [vmem:[#allocation7 + $0xb30] sm:$0xff] }
 0x2fe   :  { %v9851_v61 = vcombine.low %v1470_v52, %v1474_v45 }
 0x2ff   :  { %4607 = vmatpush1.bf16.msra.mxu0 %v9787_v35  ;;  %v9852_v35 = vcombine.high %v1470_v52, %v1474_v45  ;;  %v9901_v45 = vcombine.low %v1519_v47, %v1523_v2 }
 0x300   :  { %4771 = vmatpush1.bf16.msra.mxu1 %v9789_v59  ;;  %4608 = vmatprep.subr.bf16.mxu0 %v9796_v54  ;;  %v9854_v59 = vcombine.high %v1471_v58, %v1475_v60  ;;  %v1478_v54 = vld [vmem:[#allocation7 + $0xb50] sm:$0xff] }
 0x301   :  { %4772 = vmatprep.subr.bf16.mxu1 %v9798_v55  ;;  %v1482_v55 = vld [vmem:[#allocation7 + $0xb70] sm:$0xff] }
 0x302   :  { %v9859_v19 = vcombine.low %v1478_v54, %v1482_v55 }
 0x303   :  { %4609 = vmatpush1.bf16.msra.mxu0 %v9795_v6  ;;  %v9860_v6 = vcombine.high %v1478_v54, %v1482_v55 }
 0x304   :  { %4773 = vmatpush1.bf16.msra.mxu1 %v9797_v7  ;;  %4610 = vmatprep.subr.bf16.mxu0 %v9804_v8  ;;  %v9862_v7 = vcombine.high %v1479_v56, %v1483_v57  ;;  %v1486_v8 = vld [vmem:[#allocation7 + $0xb90] sm:$0xff] }
 0x305   :  { %4774 = vmatprep.subr.bf16.mxu1 %v9806_v9  ;;  %v1490_v9 = vld [vmem:[#allocation7 + $0xbb0] sm:$0xff] }
 0x306   :  { %v9867_v20 = vcombine.low %v1486_v8, %v1490_v9  ;;  %v1542_v56 = vld [vmem:[#allocation7 + $0xd50] sm:$0xff] }
 0x307   :  { %4611 = vmatpush1.bf16.msra.mxu0 %v9803_v15  ;;  %v9868_v15 = vcombine.high %v1486_v8, %v1490_v9  ;;  %v1546_v57 = vld [vmem:[#allocation7 + $0xd70] sm:$0xff] }
 0x308   :  { %4775 = vmatpush1.bf16.msra.mxu1 %v9805_v16  ;;  %4612 = vmatprep.subr.bf16.mxu0 %v9812_v17  ;;  %v9870_v16 = vcombine.high %v1487_v10, %v1491_v11  ;;  %v1494_v17 = vld [vmem:[#allocation7 + $0xbd0] sm:$0xff]  ;;  %v9924_v8 = vcombine.high %v1542_v56, %v1546_v57 }
 0x309   :  { %4776 = vmatprep.subr.bf16.mxu1 %v9814_v18  ;;  %v1498_v18 = vld [vmem:[#allocation7 + $0xbf0] sm:$0xff] }
 0x30a   :  { %v9875_v4 = vcombine.low %v1494_v17, %v1498_v18  ;;  %v1550_v10 = vld [vmem:[#allocation7 + $0xd90] sm:$0xff] }
 0x30b   :  { %4613 = vmatpush1.bf16.msra.mxu0 %v9811_v22  ;;  %v9876_v22 = vcombine.high %v1494_v17, %v1498_v18  ;;  %v1554_v11 = vld [vmem:[#allocation7 + $0xdb0] sm:$0xff] }
 0x30c   :  { %4777 = vmatpush1.bf16.msra.mxu1 %v9813_v26  ;;  %4614 = vmatprep.subr.bf16.mxu0 %v9820_v27  ;;  %v9878_v26 = vcombine.high %v1495_v43, %v1499_v37  ;;  %v1502_v27 = vld [vmem:[#allocation7 + $0xc10] sm:$0xff]  ;;  %v9932_v17 = vcombine.high %v1550_v10, %v1554_v11 }
 0x30d   :  { %4778 = vmatprep.subr.bf16.mxu1 %v9822_v23  ;;  %v1506_v23 = vld [vmem:[#allocation7 + $0xc30] sm:$0xff] }
 0x30e   :  { %v9883_v42 = vcombine.low %v1502_v27, %v1506_v23 }
 0x30f   :  { %4615 = vmatpush1.bf16.msra.mxu0 %v9819_v31  ;;  %v9884_v31 = vcombine.high %v1502_v27, %v1506_v23  ;;  %v1559_v27 = vld [vmem:[#allocation7 + $0xdd8] sm:$0xff] }
 0x310   :  { %4779 = vmatpush1.bf16.msra.mxu1 %v9821_v33  ;;  %4616 = vmatprep.subr.bf16.mxu0 %v9828_v36  ;;  %v9886_v33 = vcombine.high %v1503_v29, %v1507_v0  ;;  %v1510_v36 = vld [vmem:[#allocation7 + $0xc50] sm:$0xff]  ;;  %v1563_v23 = vld [vmem:[#allocation7 + $0xdf8] sm:$0xff] }
 0x311   :  { %4780 = vmatprep.subr.bf16.mxu1 %v9830_v39  ;;  %v1514_v39 = vld [vmem:[#allocation7 + $0xc70] sm:$0xff] }
 0x312   :  { %v9891_v48 = vcombine.low %v1510_v36, %v1514_v39 }
 0x313   :  { %4617 = vmatpush1.bf16.msra.mxu0 %v9827_v12  ;;  %v9892_v12 = vcombine.high %v1510_v36, %v1514_v39  ;;  %v9942_v39 = vcombine.high %v1559_v27, %v1563_v23 }
 0x314   :  { %4781 = vmatpush1.bf16.msra.mxu1 %v9829_v62  ;;  %4618 = vmatprep.subr.bf16.mxu0 %v9836_v44  ;;  %v1518_v62 = vld [vmem:[#allocation7 + $0xc90] sm:$0xff] }
 0x315   :  { %4782 = vmatprep.subr.bf16.mxu1 %v9838_v46  ;;  %v1522_v44 = vld [vmem:[#allocation7 + $0xcb0] sm:$0xff]  ;;  %v9894_v46 = vcombine.high %v1511_v40, %v1515_v25  ;;  %v1567_v25 = vld [vmem:[#allocation7 + $0xe18] sm:$0xff] }
 0x316   :  { %v9899_v52 = vcombine.low %v1518_v62, %v1522_v44  ;;  %v1570_v40 = vld [vmem:[#allocation7 + $0xe30] sm:$0xff] }
 0x317   :  { %4619 = vmatpush1.bf16.msra.mxu0 %v9835_v24  ;;  %v9900_v24 = vcombine.high %v1518_v62, %v1522_v44  ;;  %v9941_v62 = vcombine.low %v1559_v27, %v1563_v23  ;;  %v1614_v27 = vld [vmem:[#allocation7 + $0xf90] sm:$0xff] }
 0x318   :  { %4783 = vmatpush1.bf16.msra.mxu1 %v9837_v14  ;;  %4620 = vmatprep.subr.bf16.mxu0 %v9844_v13  ;;  %v9902_v14 = vcombine.high %v1519_v47, %v1523_v2  ;;  %v1526_v13 = vld [vmem:[#allocation7 + $0xcd0] sm:$0xff] }
 0x319   :  { %4784 = vmatprep.subr.bf16.mxu1 %v9846_v51  ;;  %v1530_v51 = vld [vmem:[#allocation7 + $0xcf0] sm:$0xff] }
 0x31a   :  { %v9908_v58 = vcombine.high %v1526_v13, %v1530_v51  ;;  %v1574_v47 = vld [vmem:[#allocation7 + $0xe50] sm:$0xff] }
 0x31b   :  { %4621 = vmatpush1.bf16.msra.mxu0 %v9843_v1  ;;  %v1534_v1 = vld [vmem:[#allocation7 + $0xd10] sm:$0xff] }
 0x31c   :  { %4785 = vmatpush1.bf16.msra.mxu1 %v9845_v38  ;;  %4622 = vmatprep.subr.bf16.mxu0 %v9852_v35  ;;  %v1538_v38 = vld [vmem:[#allocation7 + $0xd30] sm:$0xff]  ;;  %v1535_v35 = vld [vmem:[#allocation7 + $0xd18] sm:$0xff] }
 0x31d   :  { %4786 = vmatprep.subr.bf16.mxu1 %v9854_v59  ;;  %v9916_v54 = vcombine.high %v1534_v1, %v1538_v38  ;;  %v9918_v55 = vcombine.high %v1535_v35, %v1539_v28  ;;  %v1578_v2 = vld [vmem:[#allocation7 + $0xe70] sm:$0xff] }
 0x31e   :  { %v1618_v23 = vld [vmem:[#allocation7 + $0xfb0] sm:$0xff] }
 0x31f   :  { %4623 = vmatpush1.bf16.msra.mxu0 %v9851_v61  ;;  %v1543_v61 = vld [vmem:[#allocation7 + $0xd58] sm:$0xff] }
 0x320   :  { %4787 = vmatpush1.bf16.msra.mxu1 %v9853_v5  ;;  %4624 = vmatprep.subr.bf16.mxu0 %v9860_v6  ;;  %v1547_v5 = vld [vmem:[#allocation7 + $0xd78] sm:$0xff]  ;;  %v9915_v6 = vcombine.low %v1534_v1, %v1538_v38 }
 0x321   :  { %4788 = vmatprep.subr.bf16.mxu1 %v9862_v7  ;;  %v9917_v7 = vcombine.low %v1535_v35, %v1539_v28  ;;  %v9926_v9 = vcombine.high %v1543_v61, %v1547_v5  ;;  %v1590_v35 = vld [vmem:[#allocation7 + $0xed0] sm:$0xff] }
 0x322   :  { %v1594_v28 = vld [vmem:[#allocation7 + $0xef0] sm:$0xff] }
 0x323   :  { %4625 = vmatpush1.bf16.msra.mxu0 %v9859_v19  ;;  %v1551_v19 = vld [vmem:[#allocation7 + $0xd98] sm:$0xff] }
 0x324   :  { %4789 = vmatpush1.bf16.msra.mxu1 %v9861_v53  ;;  %4626 = vmatprep.subr.bf16.mxu0 %v9868_v15  ;;  %v1555_v53 = vld [vmem:[#allocation7 + $0xdb8] sm:$0xff]  ;;  %v9923_v15 = vcombine.low %v1542_v56, %v1546_v57  ;;  %v9972_v56 = vcombine.high %v1590_v35, %v1594_v28 }
 0x325   :  { %4790 = vmatprep.subr.bf16.mxu1 %v9870_v16  ;;  %v9925_v16 = vcombine.low %v1543_v61, %v1547_v5  ;;  %v9934_v37 = vcombine.high %v1551_v19, %v1555_v53  ;;  %v1598_v61 = vld [vmem:[#allocation7 + $0xf10] sm:$0xff] }
 0x326   :  { %v1602_v5 = vld [vmem:[#allocation7 + $0xf30] sm:$0xff] }
 0x327   :  { %4627 = vmatpush1.bf16.msra.mxu0 %v9867_v20  ;;  %v1558_v20 = vld [vmem:[#allocation7 + $0xdd0] sm:$0xff] }
 0x328   :  { %4791 = vmatpush1.bf16.msra.mxu1 %v9869_v21  ;;  %4628 = vmatprep.subr.bf16.mxu0 %v9876_v22  ;;  %v1562_v21 = vld [vmem:[#allocation7 + $0xdf0] sm:$0xff] }
 0x329   :  { %4792 = vmatprep.subr.bf16.mxu1 %v9878_v26  ;;  %v9940_v36 = vcombine.high %v1558_v20, %v1562_v21 }
 0x32b   :  { %4629 = vmatpush1.bf16.msra.mxu0 %v9875_v4  ;;  %v9931_v4 = vcombine.low %v1550_v10, %v1554_v11  ;;  %v9980_v10 = vcombine.high %v1598_v61, %v1602_v5 }
 0x32c   :  { %4793 = vmatpush1.bf16.msra.mxu1 %v9877_v30  ;;  %4639 = vmatprep.subr.bf16.mxu0 %v9884_v31 }
 0x32d   :  { %4803 = vmatprep.subr.bf16.mxu1 %v9886_v33  ;;  %v9933_v33 = vcombine.low %v1551_v19, %v1555_v53  ;;  %v1606_v19 = vld [vmem:[#allocation7 + $0xf50] sm:$0xff] }
 0x32e   :  { %10072 = vmatmul.mubr.msk.bf16.vlgmr.msra.gmra.mrb[12].mxu0 %vm11566_vm12, %v11563_v50  ;;  %v1610_v53 = vld [vmem:[#allocation7 + $0xf70] sm:$0xff] }
 0x32f   :  { %10096 = vmatmul.mubr.msk.bf16.vlgmr.msra.gmra.mrb[12].mxu1 %vm11566_vm12, %v11563_v50  ;;  %4640 = vmatpush1.bf16.msra.mxu0 %v9883_v42  ;;  %v1531_v50 = vld [vmem:[#allocation7 + $0xcf8] sm:$0xff]  ;;  %v1566_v42 = vld [vmem:[#allocation7 + $0xe10] sm:$0xff] }
 0x330   :  { %10075 = vmatprep.mubr.msk.bf16.mxu0 %vm11578_vm13, %v11570_v3  ;;  %4804 = vmatpush1.bf16.msra.mxu1 %v9885_v41  ;;  %v9910_v60 = vcombine.high %v1527_v63, %v1531_v50  ;;  %v9909_v59 = vcombine.low %v1527_v63, %v1531_v50  ;;  %v1571_v41 = vld [vmem:[#allocation7 + $0xe38] sm:$0xff]  ;;  %v9948_v44 = vcombine.high %v1566_v42, %v1570_v40  ;;  %v1582_v63 = vld [vmem:[#allocation7 + $0xe90] sm:$0xff] }
 0x331   :  { %10099 = vmatprep.mubr.msk.bf16.mxu1 %vm11578_vm13, %v11570_v3  ;;  %4641 = vmatprep.subr.bf16.mxu0 %v9892_v12  ;;  %v9907_v3 = vcombine.low %v1526_v13, %v1530_v51  ;;  %v9939_v12 = vcombine.low %v1558_v20, %v1562_v21  ;;  %v9956_v13 = vcombine.high %v1574_v47, %v1578_v2  ;;  %v1586_v50 = vld [vmem:[#allocation7 + $0xeb0] sm:$0xff] }
 0x332   :  { %4805 = vmatprep.subr.bf16.mxu1 %v9894_v46  ;;  %v9950_v46 = vcombine.high %v1567_v25, %v1571_v41  ;;  %v9964_v1 = vcombine.high %v1582_v63, %v1586_v50  ;;  %v9988_v20 = vcombine.high %v1606_v19, %v1610_v53 }
 0x333   :  { %4642 = vmatpush1.bf16.msra.mxu0 %v9891_v48  ;;  %v1575_v48 = vld [vmem:[#allocation7 + $0xe58] sm:$0xff] }
 0x334   :  { %4806 = vmatpush1.bf16.msra.mxu1 %v9893_v49  ;;  %4643 = vmatprep.subr.bf16.mxu0 %v9900_v24  ;;  %v1579_v49 = vld [vmem:[#allocation7 + $0xe78] sm:$0xff]  ;;  %v9947_v24 = vcombine.low %v1566_v42, %v1570_v40 }
 0x335   :  { %4807 = vmatprep.subr.bf16.mxu1 %v9902_v14  ;;  %v9949_v14 = vcombine.low %v1567_v25, %v1571_v41  ;;  %v9958_v51 = vcombine.high %v1575_v48, %v1579_v49  ;;  %v1623_v42 = vld [vmem:[#allocation7 + $0xfd8] sm:$0xff]  ;;  %v11653_v25 = vld [vmem:[#allocation13] sm:$0xff]  ;;  %v9995_v41 = vcombine.low %v1614_v27, %v1618_v23 }
 0x336   :  { %v1627_v40 = vld [vmem:[#allocation7 + $0xff8] sm:$0xff] }
 0x337   :  { %4644 = vmatpush1.bf16.msra.mxu0 %v9899_v52  ;;  %v1583_v52 = vld [vmem:[#allocation7 + $0xe98] sm:$0xff] }
 0x338   :  { %4808 = vmatpush1.bf16.msra.mxu1 %v9901_v45  ;;  %4645 = vmatprep.subr.bf16.mxu0 %v9908_v58  ;;  %v1587_v45 = vld [vmem:[#allocation7 + $0xeb8] sm:$0xff]  ;;  %v9955_v58 = vcombine.low %v1574_v47, %v1578_v2  ;;  %v4892_v47 = vld [vmem:[#allocation8 + $0x20] sm:$0xff]  ;;  %v4849_v2 = vunpack.c.h.bf16 %v11653_v25 }
 0x339   :  { %4809 = vmatprep.subr.bf16.mxu1 %v9910_v60  ;;  %v9957_v60 = vcombine.low %v1575_v48, %v1579_v49  ;;  %v9966_v38 = vcombine.high %v1583_v52, %v1587_v45  ;;  %v4889_v48 = vld [vmem:[#allocation8 + $0x8] sm:$0xff] }
 0x33a   :  { %v4893_v49 = vld [vmem:[#allocation8 + $0x28] sm:$0xff] }
 0x33b   :  { %4646 = vmatpush1.bf16.msra.mxu0 %v9907_v3  ;;  %v1591_v3 = vld [vmem:[#allocation7 + $0xed8] sm:$0xff] }
 0x33c   :  { %4810 = vmatpush1.bf16.msra.mxu1 %v9909_v59  ;;  %4647 = vmatprep.subr.bf16.mxu0 %v9916_v54  ;;  %v1595_v59 = vld [vmem:[#allocation7 + $0xef8] sm:$0xff]  ;;  %v9963_v54 = vcombine.low %v1582_v63, %v1586_v50  ;;  %v4896_v50 = vld [vmem:[#allocation8 + $0x40] sm:$0xff] }
 0x33d   :  { %4811 = vmatprep.subr.bf16.mxu1 %v9918_v55  ;;  %v9965_v55 = vcombine.low %v1583_v52, %v1587_v45  ;;  %v9974_v57 = vcombine.high %v1591_v3, %v1595_v59  ;;  %v4900_v52 = vld [vmem:[#allocation8 + $0x60] sm:$0xff] }
 0x33f   :  { %4648 = vmatpush1.bf16.msra.mxu0 %v9915_v6  ;;  %v1599_v6 = vld [vmem:[#allocation7 + $0xf18] sm:$0xff] }
 0x340   :  { %4812 = vmatpush1.bf16.msra.mxu1 %v9917_v7  ;;  %4649 = vmatprep.subr.bf16.mxu0 %v9924_v8  ;;  %v1603_v7 = vld [vmem:[#allocation7 + $0xf38] sm:$0xff]  ;;  %v9971_v8 = vcombine.low %v1590_v35, %v1594_v28  ;;  %v4904_v35 = vld [vmem:[#allocation8 + $0x80] sm:$0xff] }
 0x341   :  { %v11645_v18 = vpop.f32.mrb[8].mxu0  ;;  %v11647_v43 = vpop.f32.mrb[8].mxu1  ;;  %4813 = vmatprep.subr.bf16.mxu1 %v9926_v9  ;;  %v9973_v9 = vcombine.low %v1591_v3, %v1595_v59  ;;  %v9982_v11 = vcombine.high %v1599_v6, %v1603_v7  ;;  %v4908_v28 = vld [vmem:[#allocation8 + $0xa0] sm:$0xff] }
 0x342   :  { %v11649_v22 = vpop.f32.mrb[9].mxu0  ;;  %v11651_v26 = vpop.f32.mrb[9].mxu1  ;;  %vm4856_vm2 = vcmp.gt.f32.partialorder %v11645_v18, 0.0  ;;  %vm4858_vm6 = vcmp.gt.f32.partialorder %v11647_v43, 0.0 }
 0x343   :  { %v4349_v29 = vpop.f32.mrb[10].mxu0  ;;  %v4513_v0 = vpop.f32.mrb[10].mxu1  ;;  %4650 = vmatpush1.bf16.msra.mxu0 %v9923_v15  ;;  %v1607_v15 = vld [vmem:[#allocation7 + $0xf58] sm:$0xff]  ;;  %v4865_v63 = vmul.f32 %v4849_v2, %v11649_v22  ;;  %vm4857_vm0 = vcmp.gt.f32.partialorder %v11649_v22, 0.0  ;;  %v10111_v22 = vcombine.low %v4896_v50, %v4900_v52  ;;  %v4945_v2 = vld [vmem:[#allocation8 + $0x1c8] sm:$0xff]  ;;  %vm4859_vm3 = vcmp.gt.f32.partialorder %v11651_v26, 0.0  ;;  %vm11686_vm4 = vmpackc.low %vm4856_vm2, %vm4856_vm2 }
 0x344   :  { %4814 = vmatpush1.bf16.msra.mxu1 %v9925_v16  ;;  %v4350_v30 = vpop.f32.mrb[11].mxu0  ;;  %v4514_v31 = vpop.f32.mrb[11].mxu1  ;;  %4651 = vmatprep.subr.bf16.mxu0 %v9932_v17  ;;  %v1611_v16 = vld [vmem:[#allocation7 + $0xf78] sm:$0xff]  ;;  %v9979_v17 = vcombine.low %v1598_v61, %v1602_v5  ;;  %vm11663_vm1 = vmpackc.low %vm4857_vm0, %vm4857_vm0  ;;  %v10120_v61 = vcombine.high %v4904_v35, %v4908_v28 }
 0x345   :  { %4815 = vmatprep.subr.bf16.mxu1 %v9934_v37  ;;  %v9981_v37 = vcombine.low %v1599_v6, %v1603_v7  ;;  %v9990_v21 = vcombine.high %v1607_v15, %v1611_v16  ;;  %v1615_v29 = vld [vmem:[#allocation7 + $0xf98] sm:$0xff]  ;;  %v9989_v30 = vcombine.low %v1607_v15, %v1611_v16  ;;  %v9996_v31 = vcombine.high %v1614_v27, %v1618_v23  ;;  %v4912_v6 = vld [vmem:[#allocation8 + $0xc0] sm:$0xff]  ;;  %v4921_v15 = vld [vmem:[#allocation8 + $0x108] sm:$0xff] }
 0x346   :  { %v1619_v0 = vld [vmem:[#allocation7 + $0xfb8] sm:$0xff]  ;;  %v11658_v3 = vpack.c.bf16 %v4865_v63, %v4865_v63  ;;  %v4916_v7 = vld [vmem:[#allocation8 + $0xe0] sm:$0xff]  ;;  %v4925_v16 = vld [vmem:[#allocation8 + $0x128] sm:$0xff] }
 0x347   :  { %4652 = vmatpush1.bf16.msra.mxu0 %v9931_v4  ;;  %v9987_v4 = vcombine.low %v1606_v19, %v1610_v53  ;;  %v4920_v19 = vld [vmem:[#allocation8 + $0x100] sm:$0xff]  ;;  %vm11695_vm5 = vmpackc.low %vm4859_vm3, %vm4859_vm3 }
 0x348   :  { %4816 = vmatpush1.bf16.msra.mxu1 %v9933_v33  ;;  %4653 = vmatprep.subr.bf16.mxu0 %v9940_v36  ;;  %v9998_v33 = vcombine.high %v1615_v29, %v1619_v0  ;;  %v1622_v36 = vld [vmem:[#allocation7 + $0xfd0] sm:$0xff]  ;;  %v4924_v53 = vld [vmem:[#allocation8 + $0x120] sm:$0xff]  ;;  %vm11713_vm7 = vmpackc.low %vm4858_vm6, %vm4858_vm6 }
 0x349   :  { %4817 = vmatprep.subr.bf16.mxu1 %v9942_v39  ;;  %v1626_v39 = vld [vmem:[#allocation7 + $0xff0] sm:$0xff]  ;;  %v4928_v27 = vld [vmem:[#allocation8 + $0x140] sm:$0xff] }
 0x34a   :  { %v4932_v23 = vld [vmem:[#allocation8 + $0x160] sm:$0xff] }
 0x34b   :  { %4654 = vmatpush1.bf16.msra.mxu0 %v9939_v12  ;;  %v9997_v12 = vcombine.low %v1615_v29, %v1619_v0  ;;  %v4929_v29 = vld [vmem:[#allocation8 + $0x148] sm:$0xff]  ;;  %v4956_v63 = vld [vmem:[#allocation8 + $0x220] sm:$0xff] }
 0x34c   :  { %4818 = vmatpush1.bf16.msra.mxu1 %v9941_v62  ;;  %4655 = vmatprep.subr.bf16.mxu0 %v9948_v44  ;;  %v10004_v62 = vcombine.high %v1622_v36, %v1626_v39  ;;  %v10006_v44 = vcombine.high %v1623_v42, %v1627_v40  ;;  %v4933_v0 = vld [vmem:[#allocation8 + $0x168] sm:$0xff] }
 0x34d   :  { %4819 = vmatprep.subr.bf16.mxu1 %v9950_v46  ;;  %v4888_v46 = vld [vmem:[#allocation8] sm:$0xff] }
 0x34e   :  { %v10103_v45 = vcombine.low %v4888_v46, %v4892_v47 }
 0x34f   :  { %4656 = vmatpush1.bf16.msra.mxu0 %v9947_v24  ;;  %v10003_v24 = vcombine.low %v1622_v36, %v1626_v39  ;;  %v4936_v36 = vld [vmem:[#allocation8 + $0x180] sm:$0xff] }
 0x350   :  { %4820 = vmatpush1.bf16.msra.mxu1 %v9949_v14  ;;  %4657 = vmatprep.subr.bf16.mxu0 %v9956_v13  ;;  %v10005_v14 = vcombine.low %v1623_v42, %v1627_v40  ;;  %v10104_v13 = vcombine.high %v4888_v46, %v4892_v47  ;;  %v4940_v39 = vld [vmem:[#allocation8 + $0x1a0] sm:$0xff]  ;;  %v4937_v42 = vld [vmem:[#allocation8 + $0x188] sm:$0xff] }
 0x351   :  { %4821 = vmatprep.subr.bf16.mxu1 %v9958_v51  ;;  %v10106_v51 = vcombine.high %v4889_v48, %v4893_v49  ;;  %v4941_v40 = vld [vmem:[#allocation8 + $0x1a8] sm:$0xff]  ;;  %v4944_v46 = vld [vmem:[#allocation8 + $0x1c0] sm:$0xff] }
 0x352   :  { %v4948_v47 = vld [vmem:[#allocation8 + $0x1e0] sm:$0xff] }
 0x353   :  { %4658 = vmatpush1.bf16.msra.mxu0 %v9955_v58  ;;  %v4897_v58 = vld [vmem:[#allocation8 + $0x48] sm:$0xff] }
 0x354   :  { %4822 = vmatpush1.bf16.msra.mxu1 %v9957_v60  ;;  %4659 = vmatprep.subr.bf16.mxu0 %v9964_v1  ;;  %v4901_v60 = vld [vmem:[#allocation8 + $0x68] sm:$0xff]  ;;  %v10105_v1 = vcombine.low %v4889_v48, %v4893_v49  ;;  %v10151_v49 = vcombine.low %v4936_v36, %v4940_v39 }
 0x355   :  { %4823 = vmatprep.subr.bf16.mxu1 %v9966_v38  ;;  %v10112_v38 = vcombine.high %v4896_v50, %v4900_v52  ;;  %v10114_v59 = vcombine.high %v4897_v58, %v4901_v60  ;;  %v4949_v48 = vld [vmem:[#allocation8 + $0x1e8] sm:$0xff] }
 0x356   :  { %v4953_v50 = vld [vmem:[#allocation8 + $0x208] sm:$0xff] }
 0x357   :  { %4660 = vmatpush1.bf16.msra.mxu0 %v9963_v54  ;;  %v4905_v54 = vld [vmem:[#allocation8 + $0x88] sm:$0xff] }
 0x358   :  { %4824 = vmatpush1.bf16.msra.mxu1 %v9965_v55  ;;  %4661 = vmatprep.subr.bf16.mxu0 %v9972_v56  ;;  %v4909_v55 = vld [vmem:[#allocation8 + $0xa8] sm:$0xff]  ;;  %v4926_v56 = vld [vmem:[#allocation8 + $0x130] sm:$0xff] }
 0x359   :  { %4825 = vmatprep.subr.bf16.mxu1 %v9974_v57  ;;  %v10113_v57 = vcombine.low %v4897_v58, %v4901_v60  ;;  %v10122_v5 = vcombine.high %v4905_v54, %v4909_v55  ;;  %v4957_v52 = vld [vmem:[#allocation8 + $0x228] sm:$0xff]  ;;  %v10161_v58 = vcombine.low %v4945_v2, %v4949_v48 }
 0x35b   :  { %4662 = vmatpush1.bf16.msra.mxu0 %v9971_v8  ;;  %v10119_v8 = vcombine.low %v4904_v35, %v4908_v28  ;;  %v4964_v35 = vld [vmem:[#allocation8 + $0x260] sm:$0xff]  ;;  %v4961_v28 = vld [vmem:[#allocation8 + $0x248] sm:$0xff] }
 0x35c   :  { %4826 = vmatpush1.bf16.msra.mxu1 %v9973_v9  ;;  %4663 = vmatprep.subr.bf16.mxu0 %v9980_v10  ;;  %v10121_v9 = vcombine.low %v4905_v54, %v4909_v55  ;;  %v10128_v10 = vcombine.high %v4912_v6, %v4916_v7  ;;  %v10169_v55 = vcombine.low %v4953_v50, %v4957_v52 }
 0x35d   :  { %4827 = vmatprep.subr.bf16.mxu1 %v9982_v11 }
 0x35f   :  { %4664 = vmatpush1.bf16.msra.mxu0 %v9979_v17  ;;  %v10127_v17 = vcombine.low %v4912_v6, %v4916_v7  ;;  %v4969_v6 = vld [vmem:[#allocation8 + $0x288] sm:$0xff] }
 0x360   :  { %4828 = vmatpush1.bf16.msra.mxu1 %v9981_v37  ;;  %4665 = vmatprep.subr.bf16.mxu0 %v9988_v20  ;;  %v10136_v20 = vcombine.high %v4920_v19, %v4924_v53  ;;  %v4973_v7 = vld [vmem:[#allocation8 + $0x2a8] sm:$0xff] }
 0x361   :  { %4829 = vmatprep.subr.bf16.mxu1 %v9990_v21  ;;  %v10138_v21 = vcombine.high %v4921_v15, %v4925_v16 }
 0x363   :  { %4666 = vmatpush1.bf16.msra.mxu0 %v9987_v4  ;;  %v10135_v4 = vcombine.low %v4920_v19, %v4924_v53  ;;  %v4977_v19 = vld [vmem:[#allocation8 + $0x2c8] sm:$0xff] }
 0x364   :  { %4830 = vmatpush1.bf16.msra.mxu1 %v9989_v30  ;;  %4667 = vmatprep.subr.bf16.mxu0 %v9996_v31  ;;  %v10137_v30 = vcombine.low %v4921_v15, %v4925_v16  ;;  %v10144_v31 = vcombine.high %v4928_v27, %v4932_v23  ;;  %v4981_v53 = vld [vmem:[#allocation8 + $0x2e8] sm:$0xff]  ;;  %v10185_v16 = vcombine.low %v4969_v6, %v4973_v7 }
 0x365   :  { %4831 = vmatprep.subr.bf16.mxu1 %v9998_v33  ;;  %v10146_v33 = vcombine.high %v4929_v29, %v4933_v0 }
 0x367   :  { %4668 = vmatpush1.bf16.msra.mxu0 %v9995_v41  ;;  %v10143_v41 = vcombine.low %v4928_v27, %v4932_v23  ;;  %v4985_v27 = vld [vmem:[#allocation8 + $0x308] sm:$0xff] }
 0x368   :  { %4832 = vmatpush1.bf16.msra.mxu1 %v9997_v12  ;;  %4669 = vmatprep.subr.bf16.mxu0 %v10004_v62  ;;  %v10145_v12 = vcombine.low %v4929_v29, %v4933_v0  ;;  %v10152_v62 = vcombine.high %v4936_v36, %v4940_v39  ;;  %v4989_v23 = vld [vmem:[#allocation8 + $0x328] sm:$0xff]  ;;  %v10193_v0 = vcombine.low %v4977_v19, %v4981_v53 }
 0x369   :  { %4833 = vmatprep.subr.bf16.mxu1 %v10006_v44  ;;  %v10154_v44 = vcombine.high %v4937_v42, %v4941_v40  ;;  %v4993_v36 = vld [vmem:[#allocation8 + $0x348] sm:$0xff] }
 0x36a   :  { %v4997_v39 = vld [vmem:[#allocation8 + $0x368] sm:$0xff] }
 0x36b   :  { %4670 = vmatpush1.bf16.msra.mxu0 %v10003_v24  ;;  %v10153_v24 = vcombine.low %v4937_v42, %v4941_v40  ;;  %v10201_v40 = vcombine.low %v4985_v27, %v4989_v23 }
 0x36c   :  { %4834 = vmatpush1.bf16.msra.mxu1 %v10005_v14  ;;  %7960 = vmatprep.subr.bf16.mxu0 %v10104_v13  ;;  %v10160_v14 = vcombine.high %v4944_v46, %v4948_v47  ;;  %v10162_v13 = vcombine.high %v4945_v2, %v4949_v48  ;;  %v10209_v48 = vcombine.low %v4993_v36, %v4997_v39 }
 0x36d   :  { %8124 = vmatprep.subr.bf16.mxu1 %v10106_v51  ;;  %v4952_v51 = vld [vmem:[#allocation8 + $0x200] sm:$0xff] }
 0x36e   :  { %10078 = vmatmul.mubr.msk.bf16.vlgmr.msra.gmra.mrb[12].mxu0 %vm11593_vm15, %v11591_v32  ;;  %v10168_v60 = vcombine.high %v4952_v51, %v4956_v63  ;;  %v10167_v54 = vcombine.low %v4952_v51, %v4956_v63  ;;  %v5009_v51 = vld [vmem:[#allocation8 + $0x3c8] sm:$0xff] }
 0x36f   :  { %10102 = vmatmul.mubr.msk.bf16.vlgmr.msra.gmra.mrb[12].mxu1 %vm11593_vm15, %v11591_v32  ;;  %7961 = vmatpush1.bf16.msra.mxu0 %v10103_v45  ;;  %v4917_v32 = vld [vmem:[#allocation8 + $0xe8] sm:$0xff]  ;;  %v10159_v45 = vcombine.low %v4944_v46, %v4948_v47 }
 0x370   :  { %10617 = vmatprep.mubr.msk.bf16.mxu0 %vm11663_vm1, %v11658_v3  ;;  %8125 = vmatpush1.bf16.msra.mxu1 %v10105_v1  ;;  %v10130_v11 = vcombine.high %v4913_v34, %v4917_v32  ;;  %v10129_v37 = vcombine.low %v4913_v34, %v4917_v32  ;;  %v10170_v1 = vcombine.high %v4953_v50, %v4957_v52  ;;  %v5001_v46 = vld [vmem:[#allocation8 + $0x388] sm:$0xff] }
 0x371   :  { %10641 = vmatprep.mubr.msk.bf16.mxu1 %vm11663_vm1, %v11658_v3  ;;  %7962 = vmatprep.subr.bf16.mxu0 %v10112_v38  ;;  %v4960_v38 = vld [vmem:[#allocation8 + $0x240] sm:$0xff]  ;;  %v5005_v47 = vld [vmem:[#allocation8 + $0x3a8] sm:$0xff] }
 0x372   :  { %8126 = vmatprep.subr.bf16.mxu1 %v10114_v59  ;;  %v4965_v59 = vld [vmem:[#allocation8 + $0x268] sm:$0xff]  ;;  %v10175_v34 = vcombine.low %v4960_v38, %v4964_v35 }
 0x373   :  { %7963 = vmatpush1.bf16.msra.mxu0 %v10111_v22  ;;  %v10176_v22 = vcombine.high %v4960_v38, %v4964_v35  ;;  %v10177_v32 = vcombine.low %v4961_v28, %v4965_v59  ;;  %v5013_v63 = vld [vmem:[#allocation8 + $0x3e8] sm:$0xff]  ;;  %v5016_v38 = vld [vmem:[#allocation8 + $0x400] sm:$0xff] }
 0x374   :  { %8127 = vmatpush1.bf16.msra.mxu1 %v10113_v57  ;;  %7964 = vmatprep.subr.bf16.mxu0 %v10120_v61  ;;  %v10178_v57 = vcombine.high %v4961_v28, %v4965_v59  ;;  %v4968_v61 = vld [vmem:[#allocation8 + $0x280] sm:$0xff]  ;;  %v11676_v50 = vld [vmem:[#allocation13 + $0x8] sm:$0xff] }
 0x375   :  { %8128 = vmatprep.subr.bf16.mxu1 %v10122_v5  ;;  %v4972_v5 = vld [vmem:[#allocation8 + $0x2a0] sm:$0xff]  ;;  %v4851_v28 = vunpack.c.h.bf16 %v11676_v50  ;;  %v5017_v59 = vld [vmem:[#allocation8 + $0x408] sm:$0xff] }
 0x376   :  { %v10183_v15 = vcombine.low %v4968_v61, %v4972_v5  ;;  %v5020_v35 = vld [vmem:[#allocation8 + $0x420] sm:$0xff] }
 0x377   :  { %7965 = vmatpush1.bf16.msra.mxu0 %v10119_v8  ;;  %v10184_v8 = vcombine.high %v4968_v61, %v4972_v5  ;;  %v4867_v5 = vmul.f32 %v4851_v28, %v11651_v26  ;;  %v5037_v26 = vld [vmem:[#allocation8 + $0x4a8] sm:$0xff] }
 0x378   :  { %8129 = vmatpush1.bf16.msra.mxu1 %v10121_v9  ;;  %7966 = vmatprep.subr.bf16.mxu0 %v10128_v10  ;;  %v10186_v9 = vcombine.high %v4969_v6, %v4973_v7  ;;  %v4976_v10 = vld [vmem:[#allocation8 + $0x2c0] sm:$0xff] }
 0x379   :  { %8130 = vmatprep.subr.bf16.mxu1 %v10130_v11  ;;  %v4980_v11 = vld [vmem:[#allocation8 + $0x2e0] sm:$0xff] }
 0x37a   :  { %v10191_v29 = vcombine.low %v4976_v10, %v4980_v11  ;;  %v5024_v6 = vld [vmem:[#allocation8 + $0x440] sm:$0xff] }
 0x37b   :  { %7967 = vmatpush1.bf16.msra.mxu0 %v10127_v17  ;;  %v10192_v17 = vcombine.high %v4976_v10, %v4980_v11  ;;  %v5028_v7 = vld [vmem:[#allocation8 + $0x460] sm:$0xff]  ;;  %v5043_v11 = vld [vmem:[#allocation8 + $0x4d8] sm:$0xff] }
 0x37c   :  { %8131 = vmatpush1.bf16.msra.mxu1 %v10129_v37  ;;  %7968 = vmatprep.subr.bf16.mxu0 %v10136_v20  ;;  %v10194_v37 = vcombine.high %v4977_v19, %v4981_v53  ;;  %v4984_v20 = vld [vmem:[#allocation8 + $0x300] sm:$0xff] }
 0x37d   :  { %8132 = vmatprep.subr.bf16.mxu1 %v10138_v21  ;;  %v4988_v21 = vld [vmem:[#allocation8 + $0x320] sm:$0xff] }
 0x37e   :  { %v10199_v42 = vcombine.low %v4984_v20, %v4988_v21  ;;  %v5032_v19 = vld [vmem:[#allocation8 + $0x480] sm:$0xff] }
 0x37f   :  { %7969 = vmatpush1.bf16.msra.mxu0 %v10135_v4  ;;  %v10200_v4 = vcombine.high %v4984_v20, %v4988_v21  ;;  %v5036_v53 = vld [vmem:[#allocation8 + $0x4a0] sm:$0xff]  ;;  %v10239_v20 = vcombine.low %v5024_v6, %v5028_v7 }
 0x380   :  { %8133 = vmatpush1.bf16.msra.mxu1 %v10137_v30  ;;  %7970 = vmatprep.subr.bf16.mxu0 %v10144_v31  ;;  %v10202_v30 = vcombine.high %v4985_v27, %v4989_v23  ;;  %v4992_v31 = vld [vmem:[#allocation8 + $0x340] sm:$0xff]  ;;  %v10248_v27 = vcombine.high %v5032_v19, %v5036_v53 }
 0x381   :  { %8134 = vmatprep.subr.bf16.mxu1 %v10146_v33  ;;  %v4996_v33 = vld [vmem:[#allocation8 + $0x360] sm:$0xff] }
 0x382   :  { %v10207_v2 = vcombine.low %v4992_v31, %v4996_v33 }
 0x383   :  { %7971 = vmatpush1.bf16.msra.mxu0 %v10143_v41  ;;  %v10208_v41 = vcombine.high %v4992_v31, %v4996_v33  ;;  %v10247_v31 = vcombine.low %v5032_v19, %v5036_v53  ;;  %v5088_v53 = vld [vmem:[#allocation8 + $0x640] sm:$0xff] }
 0x384   :  { %8135 = vmatpush1.bf16.msra.mxu1 %v10145_v12  ;;  %7972 = vmatprep.subr.bf16.mxu0 %v10152_v62  ;;  %v10210_v12 = vcombine.high %v4993_v36, %v4997_v39  ;;  %v5000_v62 = vld [vmem:[#allocation8 + $0x380] sm:$0xff] }
 0x385   :  { %8136 = vmatprep.subr.bf16.mxu1 %v10154_v44  ;;  %v5004_v44 = vld [vmem:[#allocation8 + $0x3a0] sm:$0xff] }
 0x386   :  { %v10215_v52 = vcombine.low %v5000_v62, %v5004_v44 }
 0x387   :  { %7973 = vmatpush1.bf16.msra.mxu0 %v10151_v49  ;;  %v10216_v49 = vcombine.high %v5000_v62, %v5004_v44 }
 0x388   :  { %8137 = vmatpush1.bf16.msra.mxu1 %v10153_v24  ;;  %7974 = vmatprep.subr.bf16.mxu0 %v10160_v14  ;;  %v10218_v24 = vcombine.high %v5001_v46, %v5005_v47  ;;  %v5008_v14 = vld [vmem:[#allocation8 + $0x3c0] sm:$0xff] }
 0x389   :  { %8138 = vmatprep.subr.bf16.mxu1 %v10162_v13  ;;  %v5012_v13 = vld [vmem:[#allocation8 + $0x3e0] sm:$0xff] }
 0x38b   :  { %7975 = vmatpush1.bf16.msra.mxu0 %v10159_v45  ;;  %v4848_v45 = vunpack.c.l.bf16 %v11653_v25  ;;  %v10232_v25 = vcombine.high %v5016_v38, %v5020_v35 }
 0x38c   :  { %8139 = vmatpush1.bf16.msra.mxu1 %v10161_v58  ;;  %7976 = vmatprep.subr.bf16.mxu0 %v10168_v60  ;;  %v10217_v58 = vcombine.low %v5001_v46, %v5005_v47  ;;  %v10224_v60 = vcombine.high %v5008_v14, %v5012_v13 }
 0x38d   :  { %8140 = vmatprep.subr.bf16.mxu1 %v10170_v1  ;;  %v10226_v1 = vcombine.high %v5009_v51, %v5013_v63 }
 0x38f   :  { %7977 = vmatpush1.bf16.msra.mxu0 %v10167_v54  ;;  %v5021_v54 = vld [vmem:[#allocation8 + $0x428] sm:$0xff] }
 0x390   :  { %8141 = vmatpush1.bf16.msra.mxu1 %v10169_v55  ;;  %7978 = vmatprep.subr.bf16.mxu0 %v10176_v22  ;;  %v10223_v55 = vcombine.low %v5008_v14, %v5012_v13  ;;  %v4864_v22 = vmul.f32 %v4848_v45, %v11645_v18  ;;  %v10234_v61 = vcombine.high %v5017_v59, %v5021_v54  ;;  %v5068_v45 = vld [vmem:[#allocation8 + $0x5a0] sm:$0xff] }
 0x391   :  { %8142 = vmatprep.subr.bf16.mxu1 %v10178_v57  ;;  %v10225_v57 = vcombine.low %v5009_v51, %v5013_v63  ;;  %v10233_v10 = vcombine.low %v5017_v59, %v5021_v54  ;;  %v10240_v18 = vcombine.high %v5024_v6, %v5028_v7  ;;  %v5072_v59 = vld [vmem:[#allocation8 + $0x5c0] sm:$0xff] }
 0x392   :  { %v5076_v54 = vld [vmem:[#allocation8 + $0x5e0] sm:$0xff] }
 0x393   :  { %7979 = vmatpush1.bf16.msra.mxu0 %v10175_v34  ;;  %v10231_v34 = vcombine.low %v5016_v38, %v5020_v35  ;;  %v5080_v6 = vld [vmem:[#allocation8 + $0x600] sm:$0xff] }
 0x394   :  { %8143 = vmatpush1.bf16.msra.mxu1 %v10177_v32  ;;  %7980 = vmatprep.subr.bf16.mxu0 %v10184_v8  ;;  %v5025_v32 = vld [vmem:[#allocation8 + $0x448] sm:$0xff]  ;;  %v5084_v7 = vld [vmem:[#allocation8 + $0x620] sm:$0xff] }
 0x395   :  { %8144 = vmatprep.subr.bf16.mxu1 %v10186_v9  ;;  %v5029_v8 = vld [vmem:[#allocation8 + $0x468] sm:$0xff]  ;;  %v11683_v9 = vpack.c.bf16 %v4864_v22, %v4864_v22 }
 0x396   :  { %v10241_v21 = vcombine.low %v5025_v32, %v5029_v8  ;;  %v5077_v22 = vld [vmem:[#allocation8 + $0x5e8] sm:$0xff] }
 0x397   :  { %7981 = vmatpush1.bf16.msra.mxu0 %v10183_v15  ;;  %v11690_v15 = vpack.c.bf16 %v4867_v5, %v4867_v5 }
 0x398   :  { %8145 = vmatpush1.bf16.msra.mxu1 %v10185_v16  ;;  %7982 = vmatprep.subr.bf16.mxu0 %v10192_v17  ;;  %v10242_v16 = vcombine.high %v5025_v32, %v5029_v8  ;;  %v5033_v17 = vld [vmem:[#allocation8 + $0x488] sm:$0xff]  ;;  %v10287_v8 = vcombine.low %v5072_v59, %v5076_v54 }
 0x399   :  { %8146 = vmatprep.subr.bf16.mxu1 %v10194_v37  ;;  %v10250_v23 = vcombine.high %v5033_v17, %v5037_v26  ;;  %v10249_v33 = vcombine.low %v5033_v17, %v5037_v26  ;;  %v5085_v32 = vld [vmem:[#allocation8 + $0x628] sm:$0xff]  ;;  %v5055_v37 = vld [vmem:[#allocation8 + $0x538] sm:$0xff] }
 0x39a   :  { %v5089_v17 = vld [vmem:[#allocation8 + $0x648] sm:$0xff] }
 0x39b   :  { %7983 = vmatpush1.bf16.msra.mxu0 %v10191_v29  ;;  %v5040_v29 = vld [vmem:[#allocation8 + $0x4c0] sm:$0xff]  ;;  %v5093_v26 = vld [vmem:[#allocation8 + $0x668] sm:$0xff] }
 0x39c   :  { %8147 = vmatpush1.bf16.msra.mxu1 %v10193_v0  ;;  %7984 = vmatprep.subr.bf16.mxu0 %v10200_v4  ;;  %v5044_v0 = vld [vmem:[#allocation8 + $0x4e0] sm:$0xff]  ;;  %v5041_v4 = vld [vmem:[#allocation8 + $0x4c8] sm:$0xff] }
 0x39d   :  { %8148 = vmatprep.subr.bf16.mxu1 %v10202_v30  ;;  %v5045_v30 = vld [vmem:[#allocation8 + $0x4e8] sm:$0xff]  ;;  %v10256_v36 = vcombine.high %v5040_v29, %v5044_v0  ;;  %v10255_v62 = vcombine.low %v5040_v29, %v5044_v0  ;;  %v5096_v29 = vld [vmem:[#allocation8 + $0x680] sm:$0xff] }
 0x39e   :  { %v10258_v39 = vcombine.high %v5041_v4, %v5045_v30  ;;  %v10257_v44 = vcombine.low %v5041_v4, %v5045_v30  ;;  %v5100_v0 = vld [vmem:[#allocation8 + $0x6a0] sm:$0xff]  ;;  %v5097_v4 = vld [vmem:[#allocation8 + $0x688] sm:$0xff] }
 0x39f   :  { %7985 = vmatpush1.bf16.msra.mxu0 %v10199_v42  ;;  %v5048_v42 = vld [vmem:[#allocation8 + $0x500] sm:$0xff]  ;;  %v5101_v30 = vld [vmem:[#allocation8 + $0x6a8] sm:$0xff] }
 0x3a0   :  { %8149 = vmatpush1.bf16.msra.mxu1 %v10201_v40  ;;  %7986 = vmatprep.subr.bf16.mxu0 %v10208_v41  ;;  %v5052_v40 = vld [vmem:[#allocation8 + $0x520] sm:$0xff]  ;;  %v5049_v41 = vld [vmem:[#allocation8 + $0x508] sm:$0xff] }
 0x3a1   :  { %8150 = vmatprep.subr.bf16.mxu1 %v10210_v12  ;;  %v5053_v12 = vld [vmem:[#allocation8 + $0x528] sm:$0xff]  ;;  %v10264_v46 = vcombine.high %v5048_v42, %v5052_v40  ;;  %v10263_v14 = vcombine.low %v5048_v42, %v5052_v40  ;;  %v5104_v42 = vld [vmem:[#allocation8 + $0x6c0] sm:$0xff] }
 0x3a2   :  { %v10266_v47 = vcombine.high %v5049_v41, %v5053_v12  ;;  %v10265_v13 = vcombine.low %v5049_v41, %v5053_v12  ;;  %v5108_v40 = vld [vmem:[#allocation8 + $0x6e0] sm:$0xff]  ;;  %v5105_v41 = vld [vmem:[#allocation8 + $0x6c8] sm:$0xff] }
 0x3a3   :  { %7987 = vmatpush1.bf16.msra.mxu0 %v10207_v2  ;;  %v5056_v2 = vld [vmem:[#allocation8 + $0x540] sm:$0xff]  ;;  %v5109_v12 = vld [vmem:[#allocation8 + $0x6e8] sm:$0xff] }
 0x3a4   :  { %8151 = vmatpush1.bf16.msra.mxu1 %v10209_v48  ;;  %7988 = vmatprep.subr.bf16.mxu0 %v10216_v49  ;;  %v5060_v48 = vld [vmem:[#allocation8 + $0x560] sm:$0xff]  ;;  %v5057_v49 = vld [vmem:[#allocation8 + $0x548] sm:$0xff] }
 0x3a5   :  { %8152 = vmatprep.subr.bf16.mxu1 %v10218_v24  ;;  %v5061_v24 = vld [vmem:[#allocation8 + $0x568] sm:$0xff]  ;;  %v10272_v51 = vcombine.high %v5056_v2, %v5060_v48 }
 0x3a6   :  { %v10274_v63 = vcombine.high %v5057_v49, %v5061_v24  ;;  %v10273_v38 = vcombine.low %v5057_v49, %v5061_v24  ;;  %v5113_v49 = vld [vmem:[#allocation8 + $0x708] sm:$0xff] }
 0x3a7   :  { %7989 = vmatpush1.bf16.msra.mxu0 %v10215_v52  ;;  %v5064_v52 = vld [vmem:[#allocation8 + $0x580] sm:$0xff]  ;;  %v5117_v24 = vld [vmem:[#allocation8 + $0x728] sm:$0xff] }
 0x3a8   :  { %8153 = vmatpush1.bf16.msra.mxu1 %v10217_v58  ;;  %7990 = vmatprep.subr.bf16.mxu0 %v10224_v60  ;;  %v5065_v58 = vld [vmem:[#allocation8 + $0x588] sm:$0xff]  ;;  %v10280_v35 = vcombine.high %v5064_v52, %v5068_v45 }
 0x3a9   :  { %8154 = vmatprep.subr.bf16.mxu1 %v10226_v1  ;;  %v5069_v60 = vld [vmem:[#allocation8 + $0x5a8] sm:$0xff]  ;;  %v10271_v1 = vcombine.low %v5056_v2, %v5060_v48  ;;  %v5112_v2 = vld [vmem:[#allocation8 + $0x700] sm:$0xff] }
 0x3aa   :  { %v10282_v28 = vcombine.high %v5065_v58, %v5069_v60  ;;  %v5116_v48 = vld [vmem:[#allocation8 + $0x720] sm:$0xff] }
 0x3ab   :  { %7991 = vmatpush1.bf16.msra.mxu0 %v10223_v55  ;;  %v5073_v55 = vld [vmem:[#allocation8 + $0x5c8] sm:$0xff] }
 0x3ac   :  { %8155 = vmatpush1.bf16.msra.mxu1 %v10225_v57  ;;  %8001 = vmatprep.subr.bf16.mxu0 %v10232_v25  ;;  %v10279_v57 = vcombine.low %v5064_v52, %v5068_v45  ;;  %v10281_v25 = vcombine.low %v5065_v58, %v5069_v60  ;;  %v10290_v5 = vcombine.high %v5073_v55, %v5077_v22  ;;  %v5120_v52 = vld [vmem:[#allocation8 + $0x740] sm:$0xff]  ;;  %v5121_v58 = vld [vmem:[#allocation8 + $0x748] sm:$0xff] }
 0x3ad   :  { %8165 = vmatprep.subr.bf16.mxu1 %v10234_v61  ;;  %v10288_v61 = vcombine.high %v5072_v59, %v5076_v54  ;;  %v5124_v45 = vld [vmem:[#allocation8 + $0x760] sm:$0xff]  ;;  %v5125_v60 = vld [vmem:[#allocation8 + $0x768] sm:$0xff] }
 0x3ae   :  { %10620 = vmatmul.mubr.msk.bf16.vlgmr.msra.gmra.mrb[16].mxu0 %vm11686_vm4, %v11683_v9  ;;  %v5128_v59 = vld [vmem:[#allocation8 + $0x780] sm:$0xff] }
 0x3af   :  { %10644 = vmatmul.mubr.msk.bf16.vlgmr.msra.gmra.mrb[16].mxu1 %vm11686_vm4, %v11683_v9  ;;  %8002 = vmatpush1.bf16.msra.mxu0 %v10231_v34  ;;  %v5081_v34 = vld [vmem:[#allocation8 + $0x608] sm:$0xff]  ;;  %v5132_v54 = vld [vmem:[#allocation8 + $0x7a0] sm:$0xff] }
 0x3b0   :  { %10623 = vmatprep.mubr.msk.bf16.mxu0 %vm11695_vm5, %v11690_v15  ;;  %8166 = vmatpush1.bf16.msra.mxu1 %v10233_v10  ;;  %v10289_v10 = vcombine.low %v5073_v55, %v5077_v22  ;;  %v10298_v19 = vcombine.high %v5081_v34, %v5085_v32  ;;  %v5129_v55 = vld [vmem:[#allocation8 + $0x788] sm:$0xff] }
 0x3b1   :  { %10647 = vmatprep.mubr.msk.bf16.mxu1 %vm11695_vm5, %v11690_v15  ;;  %8003 = vmatprep.subr.bf16.mxu0 %v10240_v18  ;;  %v10296_v18 = vcombine.high %v5080_v6, %v5084_v7  ;;  %v5133_v22 = vld [vmem:[#allocation8 + $0x7a8] sm:$0xff] }
 0x3b2   :  { %8167 = vmatprep.subr.bf16.mxu1 %v10242_v16  ;;  %v5092_v16 = vld [vmem:[#allocation8 + $0x660] sm:$0xff] }
 0x3b3   :  { %8004 = vmatpush1.bf16.msra.mxu0 %v10239_v20  ;;  %v10295_v20 = vcombine.low %v5080_v6, %v5084_v7  ;;  %v5136_v6 = vld [vmem:[#allocation8 + $0x7c0] sm:$0xff] }
 0x3b4   :  { %8168 = vmatpush1.bf16.msra.mxu1 %v10241_v21  ;;  %8005 = vmatprep.subr.bf16.mxu0 %v10248_v27  ;;  %v10297_v21 = vcombine.low %v5081_v34, %v5085_v32  ;;  %v10304_v27 = vcombine.high %v5088_v53, %v5092_v16  ;;  %v5140_v7 = vld [vmem:[#allocation8 + $0x7e0] sm:$0xff]  ;;  %v5137_v34 = vld [vmem:[#allocation8 + $0x7c8] sm:$0xff] }
 0x3b5   :  { %8169 = vmatprep.subr.bf16.mxu1 %v10250_v23  ;;  %v10306_v23 = vcombine.high %v5089_v17, %v5093_v26  ;;  %v5141_v32 = vld [vmem:[#allocation8 + $0x7e8] sm:$0xff] }
 0x3b7   :  { %8006 = vmatpush1.bf16.msra.mxu0 %v10247_v31  ;;  %v10303_v31 = vcombine.low %v5088_v53, %v5092_v16  ;;  %v10354_v53 = vcombine.high %v5137_v34, %v5141_v32  ;;  %v5144_v16 = vld [vmem:[#allocation8 + $0x800] sm:$0xff] }
 0x3b8   :  { %8170 = vmatpush1.bf16.msra.mxu1 %v10249_v33  ;;  %8007 = vmatprep.subr.bf16.mxu0 %v10256_v36  ;;  %v10305_v33 = vcombine.low %v5089_v17, %v5093_v26  ;;  %v10312_v36 = vcombine.high %v5096_v29, %v5100_v0  ;;  %v5148_v17 = vld [vmem:[#allocation8 + $0x820] sm:$0xff]  ;;  %v5145_v26 = vld [vmem:[#allocation8 + $0x808] sm:$0xff] }
 0x3b9   :  { %8171 = vmatprep.subr.bf16.mxu1 %v10258_v39  ;;  %v10314_v39 = vcombine.high %v5097_v4, %v5101_v30 }
 0x3bb   :  { %8008 = vmatpush1.bf16.msra.mxu0 %v10255_v62  ;;  %v10311_v62 = vcombine.low %v5096_v29, %v5100_v0  ;;  %v10360_v29 = vcombine.high %v5144_v16, %v5148_v17  ;;  %v5152_v0 = vld [vmem:[#allocation8 + $0x840] sm:$0xff] }
 0x3bc   :  { %8172 = vmatpush1.bf16.msra.mxu1 %v10257_v44  ;;  %8009 = vmatprep.subr.bf16.mxu0 %v10264_v46  ;;  %v10313_v44 = vcombine.low %v5097_v4, %v5101_v30  ;;  %v10320_v46 = vcombine.high %v5104_v42, %v5108_v40  ;;  %v5156_v4 = vld [vmem:[#allocation8 + $0x860] sm:$0xff]  ;;  %v5153_v30 = vld [vmem:[#allocation8 + $0x848] sm:$0xff] }
 0x3bd   :  { %8173 = vmatprep.subr.bf16.mxu1 %v10266_v47  ;;  %v10322_v47 = vcombine.high %v5105_v41, %v5109_v12 }
 0x3bf   :  { %8010 = vmatpush1.bf16.msra.mxu0 %v10263_v14  ;;  %v10319_v14 = vcombine.low %v5104_v42, %v5108_v40  ;;  %v10368_v42 = vcombine.high %v5152_v0, %v5156_v4  ;;  %v5171_v40 = vld [vmem:[#allocation8 + $0x8d8] sm:$0xff] }
 0x3c0   :  { %8174 = vmatpush1.bf16.msra.mxu1 %v10265_v13  ;;  %8011 = vmatprep.subr.bf16.mxu0 %v10272_v51  ;;  %v10321_v13 = vcombine.low %v5105_v41, %v5109_v12  ;;  %v10328_v51 = vcombine.high %v5112_v2, %v5116_v48  ;;  %v5160_v12 = vld [vmem:[#allocation8 + $0x880] sm:$0xff] }
 0x3c1   :  { %8175 = vmatprep.subr.bf16.mxu1 %v10274_v63  ;;  %v10330_v63 = vcombine.high %v5113_v49, %v5117_v24 }
 0x3c3   :  { %8012 = vmatpush1.bf16.msra.mxu0 %v10271_v1  ;;  %v10327_v1 = vcombine.low %v5112_v2, %v5116_v48 }
 0x3c4   :  { %8176 = vmatpush1.bf16.msra.mxu1 %v10273_v38  ;;  %8013 = vmatprep.subr.bf16.mxu0 %v10280_v35  ;;  %v10329_v38 = vcombine.low %v5113_v49, %v5117_v24  ;;  %v10336_v35 = vcombine.high %v5120_v52, %v5124_v45  ;;  %v5168_v49 = vld [vmem:[#allocation8 + $0x8c0] sm:$0xff] }
 0x3c5   :  { %8177 = vmatprep.subr.bf16.mxu1 %v10282_v28  ;;  %v10338_v28 = vcombine.high %v5121_v58, %v5125_v60  ;;  %v5172_v24 = vld [vmem:[#allocation8 + $0x8e0] sm:$0xff] }
 0x3c7   :  { %8014 = vmatpush1.bf16.msra.mxu0 %v10279_v57  ;;  %v10335_v57 = vcombine.low %v5120_v52, %v5124_v45  ;;  %v10384_v52 = vcombine.high %v5168_v49, %v5172_v24 }
 0x3c8   :  { %8178 = vmatpush1.bf16.msra.mxu1 %v10281_v25  ;;  %8015 = vmatprep.subr.bf16.mxu0 %v10288_v61  ;;  %v10337_v25 = vcombine.low %v5121_v58, %v5125_v60  ;;  %v10344_v61 = vcombine.high %v5128_v59, %v5132_v54  ;;  %v5176_v58 = vld [vmem:[#allocation8 + $0x900] sm:$0xff] }
 0x3c9   :  { %8179 = vmatprep.subr.bf16.mxu1 %v10290_v5  ;;  %v10346_v5 = vcombine.high %v5129_v55, %v5133_v22  ;;  %v5180_v60 = vld [vmem:[#allocation8 + $0x920] sm:$0xff] }
 0x3cb   :  { %8016 = vmatpush1.bf16.msra.mxu0 %v10287_v8  ;;  %v10343_v8 = vcombine.low %v5128_v59, %v5132_v54  ;;  %v10392_v59 = vcombine.high %v5176_v58, %v5180_v60 }
 0x3cc   :  { %8180 = vmatpush1.bf16.msra.mxu1 %v10289_v10  ;;  %8017 = vmatprep.subr.bf16.mxu0 %v10296_v18  ;;  %v4850_v10 = vunpack.c.l.bf16 %v11676_v50  ;;  %v10345_v18 = vcombine.low %v5129_v55, %v5133_v22  ;;  %v5184_v55 = vld [vmem:[#allocation8 + $0x940] sm:$0xff] }
 0x3cd   :  { %8181 = vmatprep.subr.bf16.mxu1 %v10298_v19  ;;  %v10352_v19 = vcombine.high %v5136_v6, %v5140_v7  ;;  %v5188_v22 = vld [vmem:[#allocation8 + $0x960] sm:$0xff] }
 0x3cf   :  { %8018 = vmatpush1.bf16.msra.mxu0 %v10295_v20  ;;  %v5149_v20 = vld [vmem:[#allocation8 + $0x828] sm:$0xff] }
 0x3d0   :  { %8182 = vmatpush1.bf16.msra.mxu1 %v10297_v21  ;;  %8019 = vmatprep.subr.bf16.mxu0 %v10304_v27  ;;  %v10351_v21 = vcombine.low %v5136_v6, %v5140_v7  ;;  %v4866_v27 = vmul.f32 %v4850_v10, %v11647_v43  ;;  %v10362_v50 = vcombine.high %v5145_v26, %v5149_v20  ;;  %v5161_v43 = vld [vmem:[#allocation8 + $0x888] sm:$0xff] }
 0x3d1   :  { %8183 = vmatprep.subr.bf16.mxu1 %v10306_v23  ;;  %v10353_v23 = vcombine.low %v5137_v34, %v5141_v32  ;;  %v10400_v6 = vcombine.high %v5184_v55, %v5188_v22  ;;  %v5192_v34 = vld [vmem:[#allocation8 + $0x980] sm:$0xff]  ;;  %v5197_v10 = vld [vmem:[#allocation8 + $0x9a8] sm:$0xff] }
 0x3d2   :  { %v5196_v32 = vld [vmem:[#allocation8 + $0x9a0] sm:$0xff] }
 0x3d3   :  { %8020 = vmatpush1.bf16.msra.mxu0 %v10303_v31  ;;  %v5157_v31 = vld [vmem:[#allocation8 + $0x868] sm:$0xff] }
 0x3d4   :  { %8184 = vmatpush1.bf16.msra.mxu1 %v10305_v33  ;;  %8021 = vmatprep.subr.bf16.mxu0 %v10312_v36  ;;  %v10359_v33 = vcombine.low %v5144_v16, %v5148_v17  ;;  %v11711_v36 = vpack.c.bf16 %v4866_v27, %v4866_v27  ;;  %v10370_v41 = vcombine.high %v5153_v30, %v5157_v31  ;;  %v5200_v17 = vld [vmem:[#allocation8 + $0x9c0] sm:$0xff] }
 0x3d5   :  { %8185 = vmatprep.subr.bf16.mxu1 %v10314_v39  ;;  %v10361_v39 = vcombine.low %v5145_v26, %v5149_v20  ;;  %v5204_v26 = vld [vmem:[#allocation8 + $0x9e0] sm:$0xff]  ;;  %v5201_v20 = vld [vmem:[#allocation8 + $0x9c8] sm:$0xff]  ;;  %v10407_v27 = vcombine.low %v5192_v34, %v5196_v32 }
 0x3d7   :  { %8022 = vmatpush1.bf16.msra.mxu0 %v10311_v62  ;;  %v5164_v62 = vld [vmem:[#allocation8 + $0x8a0] sm:$0xff] }
 0x3d8   :  { %8186 = vmatpush1.bf16.msra.mxu1 %v10313_v44  ;;  %8023 = vmatprep.subr.bf16.mxu0 %v10320_v46  ;;  %v5165_v44 = vld [vmem:[#allocation8 + $0x8a8] sm:$0xff]  ;;  %v10367_v46 = vcombine.low %v5152_v0, %v5156_v4  ;;  %v10376_v2 = vcombine.high %v5160_v12, %v5164_v62  ;;  %v5208_v0 = vld [vmem:[#allocation8 + $0xa00] sm:$0xff] }
 0x3d9   :  { %8187 = vmatprep.subr.bf16.mxu1 %v10322_v47  ;;  %v10369_v47 = vcombine.low %v5153_v30, %v5157_v31  ;;  %v10378_v48 = vcombine.high %v5161_v43, %v5165_v44  ;;  %v5212_v4 = vld [vmem:[#allocation8 + $0xa20] sm:$0xff]  ;;  %v5209_v30 = vld [vmem:[#allocation8 + $0xa08] sm:$0xff] }
 0x3da   :  { %v5213_v31 = vld [vmem:[#allocation8 + $0xa28] sm:$0xff] }
 0x3db   :  { %8024 = vmatpush1.bf16.msra.mxu0 %v10319_v14  ;;  %v5169_v14 = vld [vmem:[#allocation8 + $0x8c8] sm:$0xff] }
 0x3dc   :  { %8188 = vmatpush1.bf16.msra.mxu1 %v10321_v13  ;;  %8025 = vmatprep.subr.bf16.mxu0 %v10328_v51  ;;  %v5173_v13 = vld [vmem:[#allocation8 + $0x8e8] sm:$0xff]  ;;  %v10375_v51 = vcombine.low %v5160_v12, %v5164_v62  ;;  %v5216_v12 = vld [vmem:[#allocation8 + $0xa40] sm:$0xff] }
 0x3dd   :  { %8189 = vmatprep.subr.bf16.mxu1 %v10330_v63  ;;  %v10377_v63 = vcombine.low %v5161_v43, %v5165_v44  ;;  %v10386_v45 = vcombine.high %v5169_v14, %v5173_v13  ;;  %v5220_v62 = vld [vmem:[#allocation8 + $0xa60] sm:$0xff]  ;;  %v5217_v43 = vld [vmem:[#allocation8 + $0xa48] sm:$0xff] }
 0x3de   :  { %v5221_v44 = vld [vmem:[#allocation8 + $0xa68] sm:$0xff] }
 0x3df   :  { %8026 = vmatpush1.bf16.msra.mxu0 %v10327_v1  ;;  %v5177_v1 = vld [vmem:[#allocation8 + $0x908] sm:$0xff] }
 0x3e0   :  { %8190 = vmatpush1.bf16.msra.mxu1 %v10329_v38  ;;  %8027 = vmatprep.subr.bf16.mxu0 %v10336_v35  ;;  %v5181_v38 = vld [vmem:[#allocation8 + $0x928] sm:$0xff]  ;;  %v10383_v35 = vcombine.low %v5168_v49, %v5172_v24  ;;  %v5224_v49 = vld [vmem:[#allocation8 + $0xa80] sm:$0xff] }
 0x3e1   :  { %8191 = vmatprep.subr.bf16.mxu1 %v10338_v28  ;;  %v10385_v28 = vcombine.low %v5169_v14, %v5173_v13  ;;  %v10394_v54 = vcombine.high %v5177_v1, %v5181_v38  ;;  %v5228_v24 = vld [vmem:[#allocation8 + $0xaa0] sm:$0xff]  ;;  %v5225_v14 = vld [vmem:[#allocation8 + $0xa88] sm:$0xff] }
 0x3e2   :  { %v5229_v13 = vld [vmem:[#allocation8 + $0xaa8] sm:$0xff] }
 0x3e3   :  { %8028 = vmatpush1.bf16.msra.mxu0 %v10335_v57  ;;  %v5185_v57 = vld [vmem:[#allocation8 + $0x948] sm:$0xff] }
 0x3e4   :  { %8192 = vmatpush1.bf16.msra.mxu1 %v10337_v25  ;;  %8029 = vmatprep.subr.bf16.mxu0 %v10344_v61  ;;  %v5189_v25 = vld [vmem:[#allocation8 + $0x968] sm:$0xff]  ;;  %v10391_v61 = vcombine.low %v5176_v58, %v5180_v60  ;;  %v5232_v58 = vld [vmem:[#allocation8 + $0xac0] sm:$0xff] }
 0x3e5   :  { %8193 = vmatprep.subr.bf16.mxu1 %v10346_v5  ;;  %v10393_v5 = vcombine.low %v5177_v1, %v5181_v38  ;;  %v10402_v7 = vcombine.high %v5185_v57, %v5189_v25  ;;  %v5236_v60 = vld [vmem:[#allocation8 + $0xae0] sm:$0xff]  ;;  %v5233_v1 = vld [vmem:[#allocation8 + $0xac8] sm:$0xff] }
 0x3e6   :  { %v5237_v38 = vld [vmem:[#allocation8 + $0xae8] sm:$0xff] }
 0x3e7   :  { %8030 = vmatpush1.bf16.msra.mxu0 %v10343_v8  ;;  %v5193_v8 = vld [vmem:[#allocation8 + $0x988] sm:$0xff] }
 0x3e8   :  { %8194 = vmatpush1.bf16.msra.mxu1 %v10345_v18  ;;  %8031 = vmatprep.subr.bf16.mxu0 %v10352_v19  ;;  %v10399_v18 = vcombine.low %v5184_v55, %v5188_v22  ;;  %v10401_v19 = vcombine.low %v5185_v57, %v5189_v25  ;;  %v10410_v16 = vcombine.high %v5193_v8, %v5197_v10  ;;  %v5240_v55 = vld [vmem:[#allocation8 + $0xb00] sm:$0xff]  ;;  %v5241_v57 = vld [vmem:[#allocation8 + $0xb08] sm:$0xff] }
 0x3e9   :  { %8195 = vmatprep.subr.bf16.mxu1 %v10354_v53  ;;  %v10408_v53 = vcombine.high %v5192_v34, %v5196_v32  ;;  %v5244_v22 = vld [vmem:[#allocation8 + $0xb20] sm:$0xff]  ;;  %v5245_v25 = vld [vmem:[#allocation8 + $0xb28] sm:$0xff] }
 0x3ea   :  { %v5248_v34 = vld [vmem:[#allocation8 + $0xb40] sm:$0xff] }
 0x3eb   :  { %8032 = vmatpush1.bf16.msra.mxu0 %v10351_v21  ;;  %v5205_v21 = vld [vmem:[#allocation8 + $0x9e8] sm:$0xff]  ;;  %v5252_v32 = vld [vmem:[#allocation8 + $0xb60] sm:$0xff] }
 0x3ec   :  { %8196 = vmatpush1.bf16.msra.mxu1 %v10353_v23  ;;  %8042 = vmatprep.subr.bf16.mxu0 %v10360_v29  ;;  %v10409_v23 = vcombine.low %v5193_v8, %v5197_v10  ;;  %v10416_v29 = vcombine.high %v5200_v17, %v5204_v26  ;;  %v5249_v8 = vld [vmem:[#allocation8 + $0xb48] sm:$0xff] }
 0x3ed   :  { %8206 = vmatprep.subr.bf16.mxu1 %v10362_v50  ;;  %v10418_v50 = vcombine.high %v5201_v20, %v5205_v21  ;;  %v5253_v10 = vld [vmem:[#allocation8 + $0xb68] sm:$0xff] }
 0x3ee   :  { %10626 = vmatmul.mubr.msk.bf16.vlgmr.msra.gmra.mrb[16].mxu0 %vm11713_vm7, %v11711_v36 }
 0x3ef   :  { %10650 = vmatmul.mubr.msk.bf16.vlgmr.msra.gmra.mrb[16].mxu1 %vm11713_vm7, %v11711_v36  ;;  %8043 = vmatpush1.bf16.msra.mxu0 %v10359_v33  ;;  %v10415_v33 = vcombine.low %v5200_v17, %v5204_v26  ;;  %v5256_v17 = vld [vmem:[#allocation8 + $0xb80] sm:$0xff] }
 0x3f0   :  { %8207 = vmatpush1.bf16.msra.mxu1 %v10361_v39  ;;  %8044 = vmatprep.subr.bf16.mxu0 %v10368_v42  ;;  %v10417_v39 = vcombine.low %v5201_v20, %v5205_v21  ;;  %v10424_v42 = vcombine.high %v5208_v0, %v5212_v4  ;;  %v5260_v26 = vld [vmem:[#allocation8 + $0xba0] sm:$0xff]  ;;  %v5257_v20 = vld [vmem:[#allocation8 + $0xb88] sm:$0xff] }
 0x3f1   :  { %8208 = vmatprep.subr.bf16.mxu1 %v10370_v41  ;;  %v10426_v41 = vcombine.high %v5209_v30, %v5213_v31  ;;  %v5261_v21 = vld [vmem:[#allocation8 + $0xba8] sm:$0xff] }
 0x3f3   :  { %8045 = vmatpush1.bf16.msra.mxu0 %v10367_v46  ;;  %v10423_v46 = vcombine.low %v5208_v0, %v5212_v4  ;;  %v5264_v0 = vld [vmem:[#allocation8 + $0xbc0] sm:$0xff] }
 0x3f4   :  { %8209 = vmatpush1.bf16.msra.mxu1 %v10369_v47  ;;  %8046 = vmatprep.subr.bf16.mxu0 %v10376_v2  ;;  %v10425_v47 = vcombine.low %v5209_v30, %v5213_v31  ;;  %v10432_v2 = vcombine.high %v5216_v12, %v5220_v62  ;;  %v5268_v4 = vld [vmem:[#allocation8 + $0xbe0] sm:$0xff]  ;;  %v5265_v30 = vld [vmem:[#allocation8 + $0xbc8] sm:$0xff] }
 0x3f5   :  { %8210 = vmatprep.subr.bf16.mxu1 %v10378_v48  ;;  %v10434_v48 = vcombine.high %v5217_v43, %v5221_v44  ;;  %v5269_v31 = vld [vmem:[#allocation8 + $0xbe8] sm:$0xff] }
 0x3f7   :  { %8047 = vmatpush1.bf16.msra.mxu0 %v10375_v51  ;;  %v10431_v51 = vcombine.low %v5216_v12, %v5220_v62  ;;  %v5272_v12 = vld [vmem:[#allocation8 + $0xc00] sm:$0xff] }
 0x3f8   :  { %8211 = vmatpush1.bf16.msra.mxu1 %v10377_v63  ;;  %8048 = vmatprep.subr.bf16.mxu0 %v10384_v52  ;;  %v10433_v63 = vcombine.low %v5217_v43, %v5221_v44  ;;  %v10440_v52 = vcombine.high %v5224_v49, %v5228_v24  ;;  %v5276_v62 = vld [vmem:[#allocation8 + $0xc20] sm:$0xff]  ;;  %v5273_v43 = vld [vmem:[#allocation8 + $0xc08] sm:$0xff] }
 0x3f9   :  { %8212 = vmatprep.subr.bf16.mxu1 %v10386_v45  ;;  %v10442_v45 = vcombine.high %v5225_v14, %v5229_v13  ;;  %v5277_v44 = vld [vmem:[#allocation8 + $0xc28] sm:$0xff] }
 0x3fb   :  { %8049 = vmatpush1.bf16.msra.mxu0 %v10383_v35  ;;  %v10439_v35 = vcombine.low %v5224_v49, %v5228_v24  ;;  %v4846_v49 = vld [vmem:[#allocation13 + $0x10] sm:$0xff]  ;;  %v11723_v24 = vld [vmem:[#allocation13 + $0x18] sm:$0xff] }
 0x3fc   :  { %8213 = vmatpush1.bf16.msra.mxu1 %v10385_v28  ;;  %8050 = vmatprep.subr.bf16.mxu0 %v10392_v59  ;;  %v10441_v28 = vcombine.low %v5225_v14, %v5229_v13  ;;  %v10448_v59 = vcombine.high %v5232_v58, %v5236_v60  ;;  %v4852_v14 = vunpack.c.l.bf16 %v4846_v49  ;;  %v4853_v13 = vunpack.c.h.bf16 %v4846_v49  ;;  %v5313_v49 = vld [vmem:[#allocation8 + $0xd48] sm:$0xff] }
 0x3fd   :  { %8214 = vmatprep.subr.bf16.mxu1 %v10394_v54  ;;  %v10450_v54 = vcombine.high %v5233_v1, %v5237_v38 }
 0x3ff   :  { %8051 = vmatpush1.bf16.msra.mxu0 %v10391_v61  ;;  %v10447_v61 = vcombine.low %v5232_v58, %v5236_v60 }
 0x400   :  { %8215 = vmatpush1.bf16.msra.mxu1 %v10393_v5  ;;  %8052 = vmatprep.subr.bf16.mxu0 %v10400_v6  ;;  %v10449_v5 = vcombine.low %v5233_v1, %v5237_v38  ;;  %v10456_v6 = vcombine.high %v5240_v55, %v5244_v22 }
 0x401   :  { %8216 = vmatprep.subr.bf16.mxu1 %v10402_v7  ;;  %v10458_v7 = vcombine.high %v5241_v57, %v5245_v25 }
 0x403   :  { %8053 = vmatpush1.bf16.msra.mxu0 %v10399_v18  ;;  %v10455_v18 = vcombine.low %v5240_v55, %v5244_v22  ;;  %v5284_v55 = vld [vmem:[#allocation8 + $0xc60] sm:$0xff]  ;;  %v5281_v22 = vld [vmem:[#allocation8 + $0xc48] sm:$0xff] }
 0x404   :  { %8217 = vmatpush1.bf16.msra.mxu1 %v10401_v19  ;;  %8054 = vmatprep.subr.bf16.mxu0 %v10408_v53  ;;  %v10457_v19 = vcombine.low %v5241_v57, %v5245_v25  ;;  %v10464_v53 = vcombine.high %v5248_v34, %v5252_v32  ;;  %v5285_v57 = vld [vmem:[#allocation8 + $0xc68] sm:$0xff] }
 0x405   :  { %8218 = vmatprep.subr.bf16.mxu1 %v10410_v16  ;;  %v10466_v16 = vcombine.high %v5249_v8, %v5253_v10 }
 0x407   :  { %8055 = vmatpush1.bf16.msra.mxu0 %v10407_v27  ;;  %v10463_v27 = vcombine.low %v5248_v34, %v5252_v32  ;;  %v5288_v32 = vld [vmem:[#allocation8 + $0xc80] sm:$0xff]  ;;  %v5183_v34 = vld [vmem:[#allocation8 + $0x938] sm:$0xff] }
 0x408   :  { %8219 = vmatpush1.bf16.msra.mxu1 %v10409_v23  ;;  %8056 = vmatprep.subr.bf16.mxu0 %v10416_v29  ;;  %v10465_v23 = vcombine.low %v5249_v8, %v5253_v10  ;;  %v10472_v29 = vcombine.high %v5256_v17, %v5260_v26  ;;  %v5292_v8 = vld [vmem:[#allocation8 + $0xca0] sm:$0xff]  ;;  %v5299_v10 = vld [vmem:[#allocation8 + $0xcd8] sm:$0xff] }
 0x409   :  { %8220 = vmatprep.subr.bf16.mxu1 %v10418_v50  ;;  %v10474_v50 = vcombine.high %v5257_v20, %v5261_v21 }
 0x40b   :  { %8057 = vmatpush1.bf16.msra.mxu0 %v10415_v33  ;;  %v10471_v33 = vcombine.low %v5256_v17, %v5260_v26  ;;  %v5311_v26 = vld [vmem:[#allocation8 + $0xd38] sm:$0xff] }
 0x40c   :  { %8221 = vmatpush1.bf16.msra.mxu1 %v10417_v39  ;;  %8058 = vmatprep.subr.bf16.mxu0 %v10424_v42  ;;  %v10473_v39 = vcombine.low %v5257_v20, %v5261_v21  ;;  %v10480_v42 = vcombine.high %v5264_v0, %v5268_v4  ;;  %v10497_v21 = vcombine.low %v5281_v22, %v5285_v57 }
 0x40d   :  { %8222 = vmatprep.subr.bf16.mxu1 %v10426_v41  ;;  %v10482_v41 = vcombine.high %v5265_v30, %v5269_v31 }
 0x40f   :  { %8059 = vmatpush1.bf16.msra.mxu0 %v10423_v46  ;;  %v10479_v46 = vcombine.low %v5264_v0, %v5268_v4  ;;  %v5297_v0 = vld [vmem:[#allocation8 + $0xcc8] sm:$0xff] }
 0x410   :  { %8223 = vmatpush1.bf16.msra.mxu1 %v10425_v47  ;;  %8060 = vmatprep.subr.bf16.mxu0 %v10432_v2  ;;  %v10481_v47 = vcombine.low %v5265_v30, %v5269_v31  ;;  %v10488_v2 = vcombine.high %v5272_v12, %v5276_v62  ;;  %v5301_v4 = vld [vmem:[#allocation8 + $0xce8] sm:$0xff]  ;;  %v10503_v30 = vcombine.low %v5288_v32, %v5292_v8 }
 0x411   :  { %8224 = vmatprep.subr.bf16.mxu1 %v10434_v48  ;;  %v10490_v48 = vcombine.high %v5273_v43, %v5277_v44 }
 0x413   :  { %8061 = vmatpush1.bf16.msra.mxu0 %v10431_v51  ;;  %v4855_v51 = vunpack.c.h.bf16 %v11723_v24 }
 0x414   :  { %8225 = vmatpush1.bf16.msra.mxu1 %v10433_v63  ;;  %8062 = vmatprep.subr.bf16.mxu0 %v10440_v52 }
 0x415   :  { %8226 = vmatprep.subr.bf16.mxu1 %v10442_v45 }
 0x417   :  { %8063 = vmatpush1.bf16.msra.mxu0 %v10439_v35  ;;  %v5280_v35 = vld [vmem:[#allocation8 + $0xc40] sm:$0xff] }
 0x418   :  { %8227 = vmatpush1.bf16.msra.mxu1 %v10441_v28  ;;  %8064 = vmatprep.subr.bf16.mxu0 %v10448_v59  ;;  %v10495_v20 = vcombine.low %v5280_v35, %v5284_v55 }
 0x419   :  { %8228 = vmatprep.subr.bf16.mxu1 %v10450_v54 }
 0x41b   :  { %8065 = vmatpush1.bf16.msra.mxu0 %v10447_v61 }
 0x41c   :  { %8229 = vmatpush1.bf16.msra.mxu1 %v10449_v5  ;;  %8066 = vmatprep.subr.bf16.mxu0 %v10456_v6  ;;  %v10487_v5 = vcombine.low %v5272_v12, %v5276_v62  ;;  %v10489_v6 = vcombine.low %v5273_v43, %v5277_v44  ;;  %v5305_v12 = vld [vmem:[#allocation8 + $0xd08] sm:$0xff]  ;;  %v10513_v44 = vcombine.low %v5297_v0, %v5301_v4 }
 0x41d   :  { %8230 = vmatprep.subr.bf16.mxu1 %v10458_v7  ;;  %v5309_v62 = vld [vmem:[#allocation8 + $0xd28] sm:$0xff] }
 0x41f   :  { %8067 = vmatpush1.bf16.msra.mxu0 %v10455_v18  ;;  %v10496_v18 = vcombine.high %v5280_v35, %v5284_v55  ;;  %v5328_v55 = vld [vmem:[#allocation8 + $0xdc0] sm:$0xff] }
 0x420   :  { %8231 = vmatpush1.bf16.msra.mxu1 %v10457_v19  ;;  %8068 = vmatprep.subr.bf16.mxu0 %v10464_v53  ;;  %v10498_v19 = vcombine.high %v5281_v22, %v5285_v57  ;;  %v5289_v53 = vld [vmem:[#allocation8 + $0xc88] sm:$0xff]  ;;  %v5332_v22 = vld [vmem:[#allocation8 + $0xde0] sm:$0xff] }
 0x421   :  { %8232 = vmatprep.subr.bf16.mxu1 %v10466_v16  ;;  %v5293_v16 = vld [vmem:[#allocation8 + $0xca8] sm:$0xff] }
 0x422   :  { %v10505_v31 = vcombine.low %v5289_v53, %v5293_v16  ;;  %v5329_v57 = vld [vmem:[#allocation8 + $0xdc8] sm:$0xff] }
 0x423   :  { %8069 = vmatpush1.bf16.msra.mxu0 %v10463_v27  ;;  %v10504_v27 = vcombine.high %v5288_v32, %v5292_v8  ;;  %v10544_v32 = vcombine.high %v5328_v55, %v5332_v22 }
 0x424   :  { %8233 = vmatpush1.bf16.msra.mxu1 %v10465_v23  ;;  %8070 = vmatprep.subr.bf16.mxu0 %v10472_v29  ;;  %v10506_v23 = vcombine.high %v5289_v53, %v5293_v16  ;;  %v5296_v29 = vld [vmem:[#allocation8 + $0xcc0] sm:$0xff]  ;;  %v5337_v53 = vld [vmem:[#allocation8 + $0xe08] sm:$0xff] }
 0x425   :  { %8234 = vmatprep.subr.bf16.mxu1 %v10474_v50  ;;  %v5300_v50 = vld [vmem:[#allocation8 + $0xce0] sm:$0xff]  ;;  %v5341_v16 = vld [vmem:[#allocation8 + $0xe28] sm:$0xff] }
 0x426   :  { %v10511_v43 = vcombine.low %v5296_v29, %v5300_v50 }
 0x427   :  { %8071 = vmatpush1.bf16.msra.mxu0 %v10471_v33  ;;  %v10512_v33 = vcombine.high %v5296_v29, %v5300_v50  ;;  %v5344_v29 = vld [vmem:[#allocation8 + $0xe40] sm:$0xff] }
 0x428   :  { %8235 = vmatpush1.bf16.msra.mxu1 %v10473_v39  ;;  %8072 = vmatprep.subr.bf16.mxu0 %v10480_v42  ;;  %v10514_v39 = vcombine.high %v5297_v0, %v5301_v4  ;;  %v5304_v42 = vld [vmem:[#allocation8 + $0xd00] sm:$0xff]  ;;  %v5345_v0 = vld [vmem:[#allocation8 + $0xe48] sm:$0xff] }
 0x429   :  { %8236 = vmatprep.subr.bf16.mxu1 %v10482_v41  ;;  %v5308_v41 = vld [vmem:[#allocation8 + $0xd20] sm:$0xff]  ;;  %v5349_v4 = vld [vmem:[#allocation8 + $0xe68] sm:$0xff] }
 0x42a   :  { %v5348_v50 = vld [vmem:[#allocation8 + $0xe60] sm:$0xff] }
 0x42b   :  { %8073 = vmatpush1.bf16.msra.mxu0 %v10479_v46  ;;  %v10520_v46 = vcombine.high %v5304_v42, %v5308_v41 }
 0x42c   :  { %8237 = vmatpush1.bf16.msra.mxu1 %v10481_v47  ;;  %8083 = vmatprep.subr.bf16.mxu0 %v10488_v2  ;;  %v10522_v47 = vcombine.high %v5305_v12, %v5309_v62  ;;  %v5312_v2 = vld [vmem:[#allocation8 + $0xd40] sm:$0xff] }
 0x42d   :  { %8247 = vmatprep.subr.bf16.mxu1 %v10490_v48  ;;  %v5316_v48 = vld [vmem:[#allocation8 + $0xd60] sm:$0xff] }
 0x42e   :  { %v10527_v35 = vcombine.low %v5312_v2, %v5316_v48 }
 0x441   :  { %v4673_v63 = vpop.f32.mrb[12].mxu0 }
 0x442   :  { %v4868_v52 = vmul.f32 %v4852_v14, %v4673_v63  ;;  %v11726_v45 = vpop.f32.mrb[12].mxu1  ;;  %v4675_v58 = vpop.f32.mrb[13].mxu0  ;;  %vm4860_vm9 = vcmp.gt.f32.partialorder %v4673_v63, 0.0  ;;  %v5317_v14 = vld [vmem:[#allocation8 + $0xd68] sm:$0xff]  ;;  %v10528_v63 = vcombine.high %v5312_v2, %v5316_v48  ;;  %v5360_v2 = vld [vmem:[#allocation8 + $0xec0] sm:$0xff] }
 0x443   :  { %vm4861_vm8 = vcmp.gt.f32.partialorder %v4675_v58, 0.0  ;;  %v4869_v60 = vmul.f32 %v4853_v13, %v4675_v58  ;;  %v4839_v1 = vpop.f32.mrb[13].mxu1  ;;  %v4677_v38 = vpop.f32.mrb[14].mxu0  ;;  %vm11740_vm12 = vmpackc.low %vm4860_vm9, %vm4860_vm9  ;;  %v10519_v13 = vcombine.low %v5304_v42, %v5308_v41  ;;  %v5320_v58 = vld [vmem:[#allocation8 + $0xd80] sm:$0xff]  ;;  %vm4862_vm14 = vcmp.gt.f32.partialorder %v11726_v45, 0.0 }
 0x444   :  { %v4871_v28 = vmul.f32 %v4855_v51, %v4839_v1  ;;  %v4841_v59 = vpop.f32.mrb[14].mxu1  ;;  %v4678_v54 = vpop.f32.mrb[15].mxu0  ;;  %v11730_v7 = vpack.c.bf16 %v4868_v52, %v4868_v52  ;;  %vm11734_vm10 = vmpackc.low %vm4861_vm8, %vm4861_vm8  ;;  %vm4863_vm11 = vcmp.gt.f32.partialorder %v4839_v1, 0.0  ;;  %v10521_v51 = vcombine.low %v5305_v12, %v5309_v62  ;;  %v5321_v1 = vld [vmem:[#allocation8 + $0xd88] sm:$0xff]  ;;  %v5352_v42 = vld [vmem:[#allocation8 + $0xe80] sm:$0xff] }
 0x445   :  { %v11728_v25 = vpack.c.bf16 %v4869_v60, %v4869_v60  ;;  %v4842_v61 = vpop.f32.mrb[15].mxu1  ;;  %vm11758_vm13 = vmpackc.low %vm4863_vm11, %vm4863_vm11  ;;  %v10530_v52 = vcombine.high %v5313_v49, %v5317_v14  ;;  %v5324_v60 = vld [vmem:[#allocation8 + $0xda0] sm:$0xff]  ;;  %v5325_v38 = vld [vmem:[#allocation8 + $0xda8] sm:$0xff] }
 0x446   :  { %v11750_v17 = vpack.c.bf16 %v4871_v28, %v4871_v28  ;;  %v10529_v28 = vcombine.low %v5313_v49, %v5317_v14  ;;  %v10536_v59 = vcombine.high %v5320_v58, %v5324_v60  ;;  %v10538_v54 = vcombine.high %v5321_v1, %v5325_v38  ;;  %v5333_v61 = vld [vmem:[#allocation8 + $0xde8] sm:$0xff]  ;;  %v5356_v41 = vld [vmem:[#allocation8 + $0xea0] sm:$0xff]  ;;  %vm11773_vm15 = vmpackc.low %vm4862_vm14, %vm4862_vm14 }
 0x447   :  { %10629 = vmatprep.mubr.msk.bf16.mxu0 %vm11734_vm10, %v11728_v25  ;;  %10653 = vmatprep.mubr.msk.bf16.mxu1 %vm11734_vm10, %v11728_v25  ;;  %v10546_v8 = vcombine.high %v5329_v57, %v5333_v61  ;;  %v5353_v12 = vld [vmem:[#allocation8 + $0xe88] sm:$0xff]  ;;  %v5364_v48 = vld [vmem:[#allocation8 + $0xee0] sm:$0xff] }
 0x448   :  { %10632 = vmatmul.mubr.msk.bf16.vlgmr.msra.gmra.mrb[16].mxu0 %vm11740_vm12, %v11730_v7  ;;  %10656 = vmatmul.mubr.msk.bf16.vlgmr.msra.gmra.mrb[16].mxu1 %vm11740_vm12, %v11730_v7  ;;  %v5357_v62 = vld [vmem:[#allocation8 + $0xea8] sm:$0xff] }
 0x449   :  { %8084 = vmatpush1.bf16.msra.mxu0 %v10487_v5  ;;  %8248 = vmatpush1.bf16.msra.mxu1 %v10489_v6  ;;  %v10535_v5 = vcombine.low %v5320_v58, %v5324_v60  ;;  %v10537_v6 = vcombine.low %v5321_v1, %v5325_v38  ;;  %v5361_v49 = vld [vmem:[#allocation8 + $0xec8] sm:$0xff]  ;;  %v5368_v58 = vld [vmem:[#allocation8 + $0xf00] sm:$0xff] }
 0x44a   :  { %10635 = vmatprep.mubr.msk.bf16.mxu0 %vm11758_vm13, %v11750_v17  ;;  %10659 = vmatprep.mubr.msk.bf16.mxu1 %vm11758_vm13, %v11750_v17  ;;  %v5365_v14 = vld [vmem:[#allocation8 + $0xee8] sm:$0xff]  ;;  %v5372_v60 = vld [vmem:[#allocation8 + $0xf20] sm:$0xff] }
 0x44b   :  { %8085 = vmatprep.subr.bf16.mxu0 %v10496_v18  ;;  %8249 = vmatprep.subr.bf16.mxu1 %v10498_v19  ;;  %v5336_v18 = vld [vmem:[#allocation8 + $0xe00] sm:$0xff]  ;;  %v5369_v1 = vld [vmem:[#allocation8 + $0xf08] sm:$0xff] }
 0x44c   :  { %v5340_v19 = vld [vmem:[#allocation8 + $0xe20] sm:$0xff]  ;;  %v5373_v38 = vld [vmem:[#allocation8 + $0xf28] sm:$0xff] }
 0x44d   :  { %8086 = vmatpush1.bf16.msra.mxu0 %v10495_v20  ;;  %8250 = vmatpush1.bf16.msra.mxu1 %v10497_v21  ;;  %v10543_v20 = vcombine.low %v5328_v55, %v5332_v22  ;;  %v10545_v21 = vcombine.low %v5329_v57, %v5333_v61  ;;  %v5376_v55 = vld [vmem:[#allocation8 + $0xf40] sm:$0xff]  ;;  %v5377_v57 = vld [vmem:[#allocation8 + $0xf48] sm:$0xff] }
 0x44e   :  { %8087 = vmatprep.subr.bf16.mxu0 %v10504_v27  ;;  %8251 = vmatprep.subr.bf16.mxu1 %v10506_v23  ;;  %v10552_v27 = vcombine.high %v5336_v18, %v5340_v19  ;;  %v10554_v23 = vcombine.high %v5337_v53, %v5341_v16  ;;  %v5380_v22 = vld [vmem:[#allocation8 + $0xf60] sm:$0xff]  ;;  %v5381_v61 = vld [vmem:[#allocation8 + $0xf68] sm:$0xff] }
 0x451   :  { %8088 = vmatpush1.bf16.msra.mxu0 %v10503_v30  ;;  %8252 = vmatpush1.bf16.msra.mxu1 %v10505_v31  ;;  %v10551_v30 = vcombine.low %v5336_v18, %v5340_v19  ;;  %v10553_v31 = vcombine.low %v5337_v53, %v5341_v16  ;;  %v5384_v18 = vld [vmem:[#allocation8 + $0xf80] sm:$0xff]  ;;  %v5385_v53 = vld [vmem:[#allocation8 + $0xf88] sm:$0xff] }
 0x452   :  { %8089 = vmatprep.subr.bf16.mxu0 %v10512_v33  ;;  %8253 = vmatprep.subr.bf16.mxu1 %v10514_v39  ;;  %v10560_v33 = vcombine.high %v5344_v29, %v5348_v50  ;;  %v10562_v39 = vcombine.high %v5345_v0, %v5349_v4  ;;  %v5388_v19 = vld [vmem:[#allocation8 + $0xfa0] sm:$0xff]  ;;  %v5389_v16 = vld [vmem:[#allocation8 + $0xfa8] sm:$0xff] }
 0x455   :  { %8090 = vmatpush1.bf16.msra.mxu0 %v10511_v43  ;;  %8254 = vmatpush1.bf16.msra.mxu1 %v10513_v44  ;;  %v10559_v43 = vcombine.low %v5344_v29, %v5348_v50  ;;  %v10561_v44 = vcombine.low %v5345_v0, %v5349_v4  ;;  %v5392_v29 = vld [vmem:[#allocation8 + $0xfc0] sm:$0xff]  ;;  %v5393_v0 = vld [vmem:[#allocation8 + $0xfc8] sm:$0xff] }
 0x456   :  { %8091 = vmatprep.subr.bf16.mxu0 %v10520_v46  ;;  %8255 = vmatprep.subr.bf16.mxu1 %v10522_v47  ;;  %v10568_v46 = vcombine.high %v5352_v42, %v5356_v41  ;;  %v10570_v47 = vcombine.high %v5353_v12, %v5357_v62  ;;  %v5396_v50 = vld [vmem:[#allocation8 + $0xfe0] sm:$0xff]  ;;  %v5397_v4 = vld [vmem:[#allocation8 + $0xfe8] sm:$0xff] }
 0x459   :  { %8092 = vmatpush1.bf16.msra.mxu0 %v10519_v13  ;;  %8256 = vmatpush1.bf16.msra.mxu1 %v10521_v51  ;;  %v10567_v13 = vcombine.low %v5352_v42, %v5356_v41  ;;  %v10569_v51 = vcombine.low %v5353_v12, %v5357_v62  ;;  %v10610_v42 = vcombine.high %v5393_v0, %v5397_v4  ;;  %v4890_v41 = vld [vmem:[#allocation8 + $0x10] sm:$0xff]  ;;  %v4891_v62 = vld [vmem:[#allocation8 + $0x18] sm:$0xff] }
 0x45a   :  { %8093 = vmatprep.subr.bf16.mxu0 %v10528_v63  ;;  %8257 = vmatprep.subr.bf16.mxu1 %v10530_v52  ;;  %v10576_v63 = vcombine.high %v5360_v2, %v5364_v48  ;;  %v10578_v52 = vcombine.high %v5361_v49, %v5365_v14  ;;  %v4894_v12 = vld [vmem:[#allocation8 + $0x30] sm:$0xff] }
 0x45d   :  { %8094 = vmatpush1.bf16.msra.mxu0 %v10527_v35  ;;  %8258 = vmatpush1.bf16.msra.mxu1 %v10529_v28  ;;  %v10575_v35 = vcombine.low %v5360_v2, %v5364_v48  ;;  %v10577_v28 = vcombine.low %v5361_v49, %v5365_v14  ;;  %v10108_v2 = vcombine.high %v4890_v41, %v4894_v12  ;;  %v4898_v49 = vld [vmem:[#allocation8 + $0x50] sm:$0xff]  ;;  %v4899_v14 = vld [vmem:[#allocation8 + $0x58] sm:$0xff] }
 0x45e   :  { %8095 = vmatprep.subr.bf16.mxu0 %v10536_v59  ;;  %8259 = vmatprep.subr.bf16.mxu1 %v10538_v54  ;;  %v10584_v59 = vcombine.high %v5368_v58, %v5372_v60  ;;  %v10586_v54 = vcombine.high %v5369_v1, %v5373_v38 }
 0x461   :  { %8096 = vmatpush1.bf16.msra.mxu0 %v10535_v5  ;;  %8260 = vmatpush1.bf16.msra.mxu1 %v10537_v6  ;;  %v10583_v5 = vcombine.low %v5368_v58, %v5372_v60  ;;  %v10585_v6 = vcombine.low %v5369_v1, %v5373_v38  ;;  %v4906_v38 = vld [vmem:[#allocation8 + $0x90] sm:$0xff]  ;;  %v11011_v58 = vld [vmem:[#allocation10 + $0xd8] sm:$0xff]  }
 0x462   :  { %8097 = vmatprep.subr.bf16.mxu0 %v10544_v32  ;;  %8261 = vmatprep.subr.bf16.mxu1 %v10546_v8  ;;  %v10592_v32 = vcombine.high %v5376_v55, %v5380_v22  ;;  %v10594_v8 = vcombine.high %v5377_v57, %v5381_v61 }
 0x465   :  { %8098 = vmatpush1.bf16.msra.mxu0 %v10543_v20  ;;  %8262 = vmatpush1.bf16.msra.mxu1 %v10545_v21  ;;  %v10591_v20 = vcombine.low %v5376_v55, %v5380_v22  ;;  %v10593_v21 = vcombine.low %v5377_v57, %v5381_v61  ;;  %v4914_v57 = vld [vmem:[#allocation8 + $0xd0] sm:$0xff] }
 0x466   :  { %8099 = vmatprep.subr.bf16.mxu0 %v10552_v27  ;;  %8263 = vmatprep.subr.bf16.mxu1 %v10554_v23  ;;  %v10600_v27 = vcombine.high %v5384_v18, %v5388_v19  ;;  %v10602_v23 = vcombine.high %v5385_v53, %v5389_v16  ;;  %v4918_v61 = vld [vmem:[#allocation8 + $0xf0] sm:$0xff] }
 0x469   :  { %8100 = vmatpush1.bf16.msra.mxu0 %v10551_v30  ;;  %8264 = vmatpush1.bf16.msra.mxu1 %v10553_v31  ;;  %v10599_v30 = vcombine.low %v5384_v18, %v5388_v19  ;;  %v10601_v31 = vcombine.low %v5385_v53, %v5389_v16  ;;  %v10132_v18 = vcombine.high %v4914_v57, %v4918_v61  ;;  %v4922_v53 = vld [vmem:[#allocation8 + $0x110] sm:$0xff]  ;;  %v4927_v16 = vld [vmem:[#allocation8 + $0x138] sm:$0xff] }
 0x46a   :  { %8101 = vmatprep.subr.bf16.mxu0 %v10560_v33  ;;  %8265 = vmatprep.subr.bf16.mxu1 %v10562_v39  ;;  %v4854_v33 = vunpack.c.l.bf16 %v11723_v24  ;;  %v10608_v39 = vcombine.high %v5392_v29, %v5396_v50  ;;  %v4902_v24 = vld [vmem:[#allocation8 + $0x70] sm:$0xff] }
 0x46b   :  { %v10116_v60 = vcombine.high %v4898_v49, %v4902_v24 }
 0x46d   :  { %8102 = vmatpush1.bf16.msra.mxu0 %v10559_v43  ;;  %8266 = vmatpush1.bf16.msra.mxu1 %v10561_v44  ;;  %v4895_v43 = vld [vmem:[#allocation8 + $0x38] sm:$0xff]  ;;  %v10607_v44 = vcombine.low %v5392_v29, %v5396_v50  ;;  %v4930_v29 = vld [vmem:[#allocation8 + $0x150] sm:$0xff] }
 0x46e   :  { %8103 = vmatprep.subr.bf16.mxu0 %v10568_v46  ;;  %8267 = vmatprep.subr.bf16.mxu1 %v10570_v47  ;;  %v10609_v46 = vcombine.low %v5393_v0, %v5397_v4  ;;  %v4870_v47 = vmul.f32 %v4854_v33, %v11726_v45  ;;  %v10110_v48 = vcombine.high %v4891_v62, %v4895_v43  ;;  %v4907_v45 = vld [vmem:[#allocation8 + $0x98] sm:$0xff]  ;;  %v4934_v50 = vld [vmem:[#allocation8 + $0x170] sm:$0xff] }
 0x46f   :  { %v4931_v0 = vld [vmem:[#allocation8 + $0x158] sm:$0xff]  ;;  %v10148_v33 = vcombine.high %v4930_v29, %v4934_v50 }
 0x470   :  { %v4935_v4 = vld [vmem:[#allocation8 + $0x178] sm:$0xff] }
 0x471   :  { %8104 = vmatpush1.bf16.msra.mxu0 %v10567_v13  ;;  %8268 = vmatpush1.bf16.msra.mxu1 %v10569_v51  ;;  %v4903_v13 = vld [vmem:[#allocation8 + $0x78] sm:$0xff]  ;;  %v10107_v51 = vcombine.low %v4890_v41, %v4894_v12  ;;  %v4942_v41 = vld [vmem:[#allocation8 + $0x1b0] sm:$0xff] }
 0x472   :  { %8105 = vmatprep.subr.bf16.mxu0 %v10576_v63  ;;  %8269 = vmatprep.subr.bf16.mxu1 %v10578_v52  ;;  %v11771_v63 = vpack.c.bf16 %v4870_v47, %v4870_v47  ;;  %v10109_v52 = vcombine.low %v4891_v62, %v4895_v43  ;;  %v10118_v1 = vcombine.high %v4899_v14, %v4903_v13  ;;  %v4939_v12 = vld [vmem:[#allocation8 + $0x198] sm:$0xff] }
 0x473   :  { %v4943_v62 = vld [vmem:[#allocation8 + $0x1b8] sm:$0xff]  ;;  %v10147_v43 = vcombine.low %v4930_v29, %v4934_v50 }
 0x474   :  { %v10158_v47 = vcombine.high %v4939_v12, %v4943_v62  ;;  %v4979_v29 = vld [vmem:[#allocation8 + $0x2d8] sm:$0xff] }
 0x475   :  { %8106 = vmatpush1.bf16.msra.mxu0 %v10575_v35  ;;  %8270 = vmatpush1.bf16.msra.mxu1 %v10577_v28  ;;  %v4910_v35 = vld [vmem:[#allocation8 + $0xb0] sm:$0xff]  ;;  %v4911_v28 = vld [vmem:[#allocation8 + $0xb8] sm:$0xff] }
 0x476   :  { %8107 = vmatprep.subr.bf16.mxu0 %v10584_v59  ;;  %8271 = vmatprep.subr.bf16.mxu1 %v10586_v54  ;;  %v10115_v59 = vcombine.low %v4898_v49, %v4902_v24  ;;  %v10117_v54 = vcombine.low %v4899_v14, %v4903_v13  ;;  %v10124_v55 = vcombine.high %v4906_v38, %v4910_v35  ;;  %v4947_v49 = vld [vmem:[#allocation8 + $0x1d8] sm:$0xff] }
 0x477   :  { %v10126_v22 = vcombine.high %v4907_v45, %v4911_v28  ;;  %v4951_v24 = vld [vmem:[#allocation8 + $0x1f8] sm:$0xff]  ;;  %v10157_v13 = vcombine.low %v4939_v12, %v4943_v62 }
 0x478   :  { %v4983_v50 = vld [vmem:[#allocation8 + $0x2f8] sm:$0xff] }
 0x479   :  { %8108 = vmatpush1.bf16.msra.mxu0 %v10583_v5  ;;  %8272 = vmatpush1.bf16.msra.mxu1 %v10585_v6  ;;  %v4915_v5 = vld [vmem:[#allocation8 + $0xd8] sm:$0xff]  ;;  %v10197_v62 = vcombine.low %v4979_v29, %v4983_v50 }
 0x47a   :  { %8109 = vmatprep.subr.bf16.mxu0 %v10592_v32  ;;  %8273 = vmatprep.subr.bf16.mxu1 %v10594_v8  ;;  %v4919_v6 = vld [vmem:[#allocation8 + $0xf8] sm:$0xff]  ;;  %v10123_v32 = vcombine.low %v4906_v38, %v4910_v35  ;;  %v10125_v8 = vcombine.low %v4907_v45, %v4911_v28  ;;  %v10165_v28 = vcombine.low %v4947_v49, %v4951_v24 }
 0x47b   :  { %v10134_v19 = vcombine.high %v4915_v5, %v4919_v6  ;;  %v4955_v38 = vld [vmem:[#allocation8 + $0x218] sm:$0xff] }
 0x47c   :  { %v4959_v35 = vld [vmem:[#allocation8 + $0x238] sm:$0xff] }
 0x47d   :  { %8110 = vmatpush1.bf16.msra.mxu0 %v10591_v20  ;;  %8274 = vmatpush1.bf16.msra.mxu1 %v10593_v21  ;;  %v10131_v20 = vcombine.low %v4914_v57, %v4918_v61  ;;  %v10133_v21 = vcombine.low %v4915_v5, %v4919_v6  ;;  %v4963_v57 = vld [vmem:[#allocation8 + $0x258] sm:$0xff]  ;;  %v10173_v6 = vcombine.low %v4955_v38, %v4959_v35 }
 0x47e   :  { %8111 = vmatprep.subr.bf16.mxu0 %v10600_v27  ;;  %8275 = vmatprep.subr.bf16.mxu1 %v10602_v23  ;;  %v10140_v27 = vcombine.high %v4922_v53, %v4926_v56  ;;  %v4967_v61 = vld [vmem:[#allocation8 + $0x278] sm:$0xff] }
 0x481   :  { %8112 = vmatpush1.bf16.msra.mxu0 %v10599_v30  ;;  %8276 = vmatpush1.bf16.msra.mxu1 %v10601_v31  ;;  %v10139_v30 = vcombine.low %v4922_v53, %v4926_v56  ;;  %v4971_v53 = vld [vmem:[#allocation8 + $0x298] sm:$0xff] }
 0x482   :  { %8113 = vmatprep.subr.bf16.mxu0 %v10608_v39  ;;  %8277 = vmatprep.subr.bf16.mxu1 %v10610_v42  ;;  %v10150_v39 = vcombine.high %v4931_v0, %v4935_v4  ;;  %v4938_v42 = vld [vmem:[#allocation8 + $0x190] sm:$0xff]  ;;  %v4975_v56 = vld [vmem:[#allocation8 + $0x2b8] sm:$0xff] }
 0x483   :  { %v10155_v14 = vcombine.low %v4938_v42, %v4942_v41 }
 0x485   :  { %8114 = vmatpush1.bf16.msra.mxu0 %v10607_v44  ;;  %8278 = vmatpush1.bf16.msra.mxu1 %v10609_v46  ;;  %v10149_v44 = vcombine.low %v4931_v0, %v4935_v4  ;;  %v10156_v46 = vcombine.high %v4938_v42, %v4942_v41  ;;  %v10189_v4 = vcombine.low %v4971_v53, %v4975_v56  ;;  %v4987_v42 = vld [vmem:[#allocation8 + $0x318] sm:$0xff] }
 0x486   :  { %8288 = vmatprep.subr.bf16.mxu0 %v10108_v2  ;;  %8452 = vmatprep.subr.bf16.mxu1 %v10110_v48  ;;  %v4946_v2 = vld [vmem:[#allocation8 + $0x1d0] sm:$0xff]  ;;  %v4991_v41 = vld [vmem:[#allocation8 + $0x338] sm:$0xff] }
 0x487   :  { %v4950_v48 = vld [vmem:[#allocation8 + $0x1f0] sm:$0xff] }
 0x488   :  { %10638 = vmatmul.mubr.msk.bf16.vlgmr.msra.gmra.mrb[16].mxu0 %vm11773_vm15, %v11771_v63  ;;  %10662 = vmatmul.mubr.msk.bf16.vlgmr.msra.gmra.mrb[16].mxu1 %vm11773_vm15, %v11771_v63  ;;  %v10163_v45 = vcombine.low %v4946_v2, %v4950_v48 }
 0x489   :  { %8289 = vmatpush1.bf16.msra.mxu0 %v10107_v51  ;;  %10665 = vmatprep.mubr.msk.bf16.mxu0 %vm11663_vm1, %v11658_v3  ;;  %v10164_v51 = vcombine.high %v4946_v2, %v4950_v48  ;;  %v4995_v2 = vld [vmem:[#allocation8 + $0x358] sm:$0xff] }
 0x48a   :  { %8453 = vmatpush1.bf16.msra.mxu1 %v10109_v52  ;;  %10689 = vmatprep.mubr.msk.bf16.mxu1 %vm11663_vm1, %v11658_v3  ;;  %v4923_v3 = vld [vmem:[#allocation8 + $0x118] sm:$0xff]  ;;  %v10166_v52 = vcombine.high %v4947_v49, %v4951_v24  ;;  %v10205_v24 = vcombine.low %v4987_v42, %v4991_v41 }
 0x48b   :  { %8290 = vmatprep.subr.bf16.mxu0 %v10116_v60  ;;  %8454 = vmatprep.subr.bf16.mxu1 %v10118_v1  ;;  %v10142_v23 = vcombine.high %v4923_v3, %v4927_v16  ;;  %v10141_v31 = vcombine.low %v4923_v3, %v4927_v16  ;;  %v4954_v60 = vld [vmem:[#allocation8 + $0x210] sm:$0xff]  ;;  %v10181_v16 = vcombine.low %v4963_v57, %v4967_v61  ;;  %v4999_v48 = vld [vmem:[#allocation8 + $0x378] sm:$0xff] }
 0x48c   :  { %v4958_v1 = vld [vmem:[#allocation8 + $0x230] sm:$0xff] }
 0x48d   :  { %8291 = vmatpush1.bf16.msra.mxu0 %v10115_v59  ;;  %v10172_v59 = vcombine.high %v4954_v60, %v4958_v1  ;;  %v10171_v5 = vcombine.low %v4954_v60, %v4958_v1  ;;  %v5003_v60 = vld [vmem:[#allocation8 + $0x398] sm:$0xff] }
 0x48e   :  { %8455 = vmatpush1.bf16.msra.mxu1 %v10117_v54  ;;  %8292 = vmatprep.subr.bf16.mxu0 %v10124_v55  ;;  %v10174_v54 = vcombine.high %v4955_v38, %v4959_v35  ;;  %v4962_v55 = vld [vmem:[#allocation8 + $0x250] sm:$0xff]  ;;  %v5007_v1 = vld [vmem:[#allocation8 + $0x3b8] sm:$0xff]  ;;  %v10213_v35 = vcombine.low %v4995_v2, %v4999_v48 }
 0x48f   :  { %8456 = vmatprep.subr.bf16.mxu1 %v10126_v22  ;;  %v4966_v22 = vld [vmem:[#allocation8 + $0x270] sm:$0xff] }
 0x490   :  { %v10179_v3 = vcombine.low %v4962_v55, %v4966_v22 }
 0x491   :  { %8293 = vmatpush1.bf16.msra.mxu0 %v10123_v32  ;;  %v10180_v32 = vcombine.high %v4962_v55, %v4966_v22  ;;  %v5011_v55 = vld [vmem:[#allocation8 + $0x3d8] sm:$0xff] }
 0x492   :  { %8457 = vmatpush1.bf16.msra.mxu1 %v10125_v8  ;;  %8294 = vmatprep.subr.bf16.mxu0 %v10132_v18  ;;  %v10182_v8 = vcombine.high %v4963_v57, %v4967_v61  ;;  %v4970_v18 = vld [vmem:[#allocation8 + $0x290] sm:$0xff]  ;;  %v5015_v22 = vld [vmem:[#allocation8 + $0x3f8] sm:$0xff]  ;;  %v10221_v61 = vcombine.low %v5003_v60, %v5007_v1 }
 0x493   :  { %8458 = vmatprep.subr.bf16.mxu1 %v10134_v19  ;;  %v4974_v19 = vld [vmem:[#allocation8 + $0x2b0] sm:$0xff] }
 0x494   :  { %v10187_v0 = vcombine.low %v4970_v18, %v4974_v19 }
 0x495   :  { %8295 = vmatpush1.bf16.msra.mxu0 %v10131_v20  ;;  %v10188_v20 = vcombine.high %v4970_v18, %v4974_v19  ;;  %v5019_v18 = vld [vmem:[#allocation8 + $0x418] sm:$0xff] }
 0x496   :  { %8459 = vmatpush1.bf16.msra.mxu1 %v10133_v21  ;;  %8296 = vmatprep.subr.bf16.mxu0 %v10140_v27  ;;  %v10190_v21 = vcombine.high %v4971_v53, %v4975_v56  ;;  %v4978_v27 = vld [vmem:[#allocation8 + $0x2d0] sm:$0xff]  ;;  %v5023_v19 = vld [vmem:[#allocation8 + $0x438] sm:$0xff]  ;;  %v10229_v56 = vcombine.low %v5011_v55, %v5015_v22 }
 0x497   :  { %8460 = vmatprep.subr.bf16.mxu1 %v10142_v23  ;;  %v4982_v23 = vld [vmem:[#allocation8 + $0x2f0] sm:$0xff] }
 0x498   :  { %v10195_v12 = vcombine.low %v4978_v27, %v4982_v23 }
 0x499   :  { %8297 = vmatpush1.bf16.msra.mxu0 %v10139_v30  ;;  %v10196_v30 = vcombine.high %v4978_v27, %v4982_v23  ;;  %v5027_v23 = vld [vmem:[#allocation8 + $0x458] sm:$0xff] }
 0x49a   :  { %8461 = vmatpush1.bf16.msra.mxu1 %v10141_v31  ;;  %8298 = vmatprep.subr.bf16.mxu0 %v10148_v33  ;;  %v10198_v31 = vcombine.high %v4979_v29, %v4983_v50  ;;  %v4986_v33 = vld [vmem:[#allocation8 + $0x310] sm:$0xff]  ;;  %v5031_v29 = vld [vmem:[#allocation8 + $0x478] sm:$0xff]  ;;  %v10237_v50 = vcombine.low %v5019_v18, %v5023_v19 }
 0x49b   :  { %8462 = vmatprep.subr.bf16.mxu1 %v10150_v39  ;;  %v4990_v39 = vld [vmem:[#allocation8 + $0x330] sm:$0xff] }
 0x49c   :  { %v10203_v49 = vcombine.low %v4986_v33, %v4990_v39 }
 0x49d   :  { %8299 = vmatpush1.bf16.msra.mxu0 %v10147_v43  ;;  %v10204_v43 = vcombine.high %v4986_v33, %v4990_v39  ;;  %v5035_v33 = vld [vmem:[#allocation8 + $0x498] sm:$0xff] }
 0x49e   :  { %8463 = vmatpush1.bf16.msra.mxu1 %v10149_v44  ;;  %8300 = vmatprep.subr.bf16.mxu0 %v10156_v46  ;;  %v10206_v44 = vcombine.high %v4987_v42, %v4991_v41  ;;  %v4994_v46 = vld [vmem:[#allocation8 + $0x350] sm:$0xff]  ;;  %v5039_v39 = vld [vmem:[#allocation8 + $0x4b8] sm:$0xff]  ;;  %v10245_v41 = vcombine.low %v5027_v23, %v5031_v29 }
 0x49f   :  { %8464 = vmatprep.subr.bf16.mxu1 %v10158_v47  ;;  %v4998_v47 = vld [vmem:[#allocation8 + $0x370] sm:$0xff] }
 0x4a0   :  { %v10211_v38 = vcombine.low %v4994_v46, %v4998_v47 }
 0x4a1   :  { %8301 = vmatpush1.bf16.msra.mxu0 %v10155_v14  ;;  %v10212_v14 = vcombine.high %v4994_v46, %v4998_v47  ;;  %v10253_v47 = vcombine.low %v5035_v33, %v5039_v39 }
 0x4a2   :  { %8465 = vmatpush1.bf16.msra.mxu1 %v10157_v13  ;;  %8302 = vmatprep.subr.bf16.mxu0 %v10164_v51  ;;  %v10214_v13 = vcombine.high %v4995_v2, %v4999_v48  ;;  %v5002_v51 = vld [vmem:[#allocation8 + $0x390] sm:$0xff] }
 0x4a3   :  { %8466 = vmatprep.subr.bf16.mxu1 %v10166_v52  ;;  %v5006_v52 = vld [vmem:[#allocation8 + $0x3b0] sm:$0xff] }
 0x4a4   :  { %v10219_v57 = vcombine.low %v5002_v51, %v5006_v52 }
 0x4a5   :  { %8303 = vmatpush1.bf16.msra.mxu0 %v10163_v45  ;;  %v10220_v45 = vcombine.high %v5002_v51, %v5006_v52 }
 0x4a6   :  { %8467 = vmatpush1.bf16.msra.mxu1 %v10165_v28  ;;  %8304 = vmatprep.subr.bf16.mxu0 %v10172_v59  ;;  %v10222_v28 = vcombine.high %v5003_v60, %v5007_v1  ;;  %v5010_v59 = vld [vmem:[#allocation8 + $0x3d0] sm:$0xff] }
 0x4a7   :  { %8468 = vmatprep.subr.bf16.mxu1 %v10174_v54  ;;  %v5014_v54 = vld [vmem:[#allocation8 + $0x3f0] sm:$0xff] }
 0x4a8   :  { %v10227_v53 = vcombine.low %v5010_v59, %v5014_v54  ;;  %v5058_v60 = vld [vmem:[#allocation8 + $0x550] sm:$0xff] }
 0x4a9   :  { %8305 = vmatpush1.bf16.msra.mxu0 %v10171_v5  ;;  %v10228_v5 = vcombine.high %v5010_v59, %v5014_v54  ;;  %v5062_v1 = vld [vmem:[#allocation8 + $0x570] sm:$0xff] }
 0x4aa   :  { %8469 = vmatpush1.bf16.msra.mxu1 %v10173_v6  ;;  %8306 = vmatprep.subr.bf16.mxu0 %v10180_v32  ;;  %v10230_v6 = vcombine.high %v5011_v55, %v5015_v22  ;;  %v5018_v32 = vld [vmem:[#allocation8 + $0x410] sm:$0xff]  ;;  %v10276_v59 = vcombine.high %v5058_v60, %v5062_v1 }
 0x4ab   :  { %8470 = vmatprep.subr.bf16.mxu1 %v10182_v8  ;;  %v5022_v8 = vld [vmem:[#allocation8 + $0x430] sm:$0xff] }
 0x4ac   :  { %v10235_v27 = vcombine.low %v5018_v32, %v5022_v8  ;;  %v5066_v55 = vld [vmem:[#allocation8 + $0x590] sm:$0xff] }
 0x4ad   :  { %8307 = vmatpush1.bf16.msra.mxu0 %v10179_v3  ;;  %v10236_v3 = vcombine.high %v5018_v32, %v5022_v8  ;;  %v5070_v22 = vld [vmem:[#allocation8 + $0x5b0] sm:$0xff] }
 0x4ae   :  { %8471 = vmatpush1.bf16.msra.mxu1 %v10181_v16  ;;  %8308 = vmatprep.subr.bf16.mxu0 %v10188_v20  ;;  %v10238_v16 = vcombine.high %v5019_v18, %v5023_v19  ;;  %v5026_v20 = vld [vmem:[#allocation8 + $0x450] sm:$0xff]  ;;  %v10284_v32 = vcombine.high %v5066_v55, %v5070_v22 }
 0x4af   :  { %8472 = vmatprep.subr.bf16.mxu1 %v10190_v21  ;;  %v5030_v21 = vld [vmem:[#allocation8 + $0x470] sm:$0xff] }
 0x4b0   :  { %v10243_v42 = vcombine.low %v5026_v20, %v5030_v21  ;;  %v5074_v18 = vld [vmem:[#allocation8 + $0x5d0] sm:$0xff] }
 0x4b1   :  { %8309 = vmatpush1.bf16.msra.mxu0 %v10187_v0  ;;  %v10244_v0 = vcombine.high %v5026_v20, %v5030_v21  ;;  %v5078_v19 = vld [vmem:[#allocation8 + $0x5f0] sm:$0xff] }
 0x4b2   :  { %8473 = vmatpush1.bf16.msra.mxu1 %v10189_v4  ;;  %8310 = vmatprep.subr.bf16.mxu0 %v10196_v30  ;;  %v5034_v4 = vld [vmem:[#allocation8 + $0x490] sm:$0xff]  ;;  %v10292_v20 = vcombine.high %v5074_v18, %v5078_v19 }
 0x4b3   :  { %8474 = vmatprep.subr.bf16.mxu1 %v10198_v31  ;;  %v5038_v30 = vld [vmem:[#allocation8 + $0x4b0] sm:$0xff]  ;;  %v10246_v31 = vcombine.high %v5027_v23, %v5031_v29  ;;  %v5083_v29 = vld [vmem:[#allocation8 + $0x618] sm:$0xff] }
 0x4b4   :  { %v10251_v46 = vcombine.low %v5034_v4, %v5038_v30  ;;  %v5086_v23 = vld [vmem:[#allocation8 + $0x630] sm:$0xff] }
 0x4b5   :  { %8311 = vmatpush1.bf16.msra.mxu0 %v10195_v12  ;;  %v10252_v12 = vcombine.high %v5034_v4, %v5038_v30 }
 0x4b6   :  { %8475 = vmatpush1.bf16.msra.mxu1 %v10197_v62  ;;  %8312 = vmatprep.subr.bf16.mxu0 %v10204_v43  ;;  %v10254_v62 = vcombine.high %v5035_v33, %v5039_v39  ;;  %v5042_v43 = vld [vmem:[#allocation8 + $0x4d0] sm:$0xff] }
 0x4b7   :  { %8476 = vmatprep.subr.bf16.mxu1 %v10206_v44  ;;  %v5046_v44 = vld [vmem:[#allocation8 + $0x4f0] sm:$0xff] }
 0x4b8   :  { %v10260_v2 = vcombine.high %v5042_v43, %v5046_v44  ;;  %v5090_v33 = vld [vmem:[#allocation8 + $0x650] sm:$0xff] }
 0x4b9   :  { %8313 = vmatpush1.bf16.msra.mxu0 %v10203_v49  ;;  %v5050_v49 = vld [vmem:[#allocation8 + $0x510] sm:$0xff] }
 0x4ba   :  { %8477 = vmatpush1.bf16.msra.mxu1 %v10205_v24  ;;  %8314 = vmatprep.subr.bf16.mxu0 %v10212_v14  ;;  %v5054_v24 = vld [vmem:[#allocation8 + $0x530] sm:$0xff]  ;;  %v5051_v14 = vld [vmem:[#allocation8 + $0x518] sm:$0xff] }
 0x4bb   :  { %8478 = vmatprep.subr.bf16.mxu1 %v10214_v13  ;;  %v10268_v51 = vcombine.high %v5050_v49, %v5054_v24  ;;  %v10270_v52 = vcombine.high %v5051_v14, %v5055_v37  ;;  %v5094_v39 = vld [vmem:[#allocation8 + $0x670] sm:$0xff] }
 0x4bd   :  { %8315 = vmatpush1.bf16.msra.mxu0 %v10211_v38  ;;  %v5059_v38 = vld [vmem:[#allocation8 + $0x558] sm:$0xff] }
 0x4be   :  { %8479 = vmatpush1.bf16.msra.mxu1 %v10213_v35  ;;  %8316 = vmatprep.subr.bf16.mxu0 %v10220_v45  ;;  %v5063_v35 = vld [vmem:[#allocation8 + $0x578] sm:$0xff]  ;;  %v10267_v45 = vcombine.low %v5050_v49, %v5054_v24 }
 0x4bf   :  { %8480 = vmatprep.subr.bf16.mxu1 %v10222_v28  ;;  %v10269_v28 = vcombine.low %v5051_v14, %v5055_v37  ;;  %v10278_v54 = vcombine.high %v5059_v38, %v5063_v35  ;;  %v5106_v14 = vld [vmem:[#allocation8 + $0x6d0] sm:$0xff] }
 0x4c0   :  { %v5110_v37 = vld [vmem:[#allocation8 + $0x6f0] sm:$0xff] }
 0x4c1   :  { %8317 = vmatpush1.bf16.msra.mxu0 %v10219_v57  ;;  %v5067_v57 = vld [vmem:[#allocation8 + $0x598] sm:$0xff] }
 0x4c2   :  { %8481 = vmatpush1.bf16.msra.mxu1 %v10221_v61  ;;  %8318 = vmatprep.subr.bf16.mxu0 %v10228_v5  ;;  %v5071_v61 = vld [vmem:[#allocation8 + $0x5b8] sm:$0xff]  ;;  %v10275_v5 = vcombine.low %v5058_v60, %v5062_v1  ;;  %v10324_v60 = vcombine.high %v5106_v14, %v5110_v37 }
 0x4c3   :  { %8482 = vmatprep.subr.bf16.mxu1 %v10230_v6  ;;  %v10277_v6 = vcombine.low %v5059_v38, %v5063_v35  ;;  %v10286_v8 = vcombine.high %v5067_v57, %v5071_v61  ;;  %v5114_v38 = vld [vmem:[#allocation8 + $0x710] sm:$0xff] }
 0x4c4   :  { %v5118_v35 = vld [vmem:[#allocation8 + $0x730] sm:$0xff] }
 0x4c5   :  { %8319 = vmatpush1.bf16.msra.mxu0 %v10227_v53  ;;  %v5075_v53 = vld [vmem:[#allocation8 + $0x5d8] sm:$0xff] }
 0x4c6   :  { %8483 = vmatpush1.bf16.msra.mxu1 %v10229_v56  ;;  %8329 = vmatprep.subr.bf16.mxu0 %v10236_v3  ;;  %v5079_v56 = vld [vmem:[#allocation8 + $0x5f8] sm:$0xff]  ;;  %v10283_v3 = vcombine.low %v5066_v55, %v5070_v22  ;;  %v10332_v55 = vcombine.high %v5114_v38, %v5118_v35 }
 0x4c7   :  { %8493 = vmatprep.subr.bf16.mxu1 %v10238_v16  ;;  %v10285_v16 = vcombine.low %v5067_v57, %v5071_v61  ;;  %v10294_v21 = vcombine.high %v5075_v53, %v5079_v56  ;;  %v10293_v4 = vcombine.low %v5075_v53, %v5079_v56  ;;  %v5122_v57 = vld [vmem:[#allocation8 + $0x750] sm:$0xff] }
 0x4c8   :  { %10668 = vmatmul.mubr.msk.bf16.vlgmr.msra.gmra.mrb[20].mxu0 %vm11686_vm4, %v11683_v9  ;;  %v5126_v61 = vld [vmem:[#allocation8 + $0x770] sm:$0xff] }
 0x4c9   :  { %10692 = vmatmul.mubr.msk.bf16.vlgmr.msra.gmra.mrb[20].mxu1 %vm11686_vm4, %v11683_v9  ;;  %8330 = vmatpush1.bf16.msra.mxu0 %v10235_v27  ;;  %v5047_v9 = vld [vmem:[#allocation8 + $0x4f8] sm:$0xff]  ;;  %v5082_v27 = vld [vmem:[#allocation8 + $0x610] sm:$0xff] }
 0x4ca   :  { %10671 = vmatprep.mubr.msk.bf16.mxu0 %vm11695_vm5, %v11690_v15  ;;  %8494 = vmatpush1.bf16.msra.mxu1 %v10237_v50  ;;  %v10262_v48 = vcombine.high %v5043_v11, %v5047_v9  ;;  %v10261_v13 = vcombine.low %v5043_v11, %v5047_v9  ;;  %v5087_v50 = vld [vmem:[#allocation8 + $0x638] sm:$0xff]  ;;  %v10300_v30 = vcombine.high %v5082_v27, %v5086_v23  ;;  %v5098_v11 = vld [vmem:[#allocation8 + $0x690] sm:$0xff] }
 0x4cb   :  { %10695 = vmatprep.mubr.msk.bf16.mxu1 %vm11695_vm5, %v11690_v15  ;;  %8331 = vmatprep.subr.bf16.mxu0 %v10244_v0  ;;  %v10259_v15 = vcombine.low %v5042_v43, %v5046_v44  ;;  %v10291_v0 = vcombine.low %v5074_v18, %v5078_v19  ;;  %v10308_v43 = vcombine.high %v5090_v33, %v5094_v39  ;;  %v5102_v9 = vld [vmem:[#allocation8 + $0x6b0] sm:$0xff] }
 0x4cc   :  { %8495 = vmatprep.subr.bf16.mxu1 %v10246_v31  ;;  %v10302_v31 = vcombine.high %v5083_v29, %v5087_v50  ;;  %v10316_v49 = vcombine.high %v5098_v11, %v5102_v9  ;;  %v10340_v18 = vcombine.high %v5122_v57, %v5126_v61  ;;  %v5130_v53 = vld [vmem:[#allocation8 + $0x790] sm:$0xff] }
 0x4cd   :  { %8332 = vmatpush1.bf16.msra.mxu0 %v10243_v42  ;;  %v5091_v42 = vld [vmem:[#allocation8 + $0x658] sm:$0xff]  ;;  %v5134_v56 = vld [vmem:[#allocation8 + $0x7b0] sm:$0xff] }
 0x4ce   :  { %8496 = vmatpush1.bf16.msra.mxu1 %v10245_v41  ;;  %8333 = vmatprep.subr.bf16.mxu0 %v10252_v12  ;;  %v5095_v41 = vld [vmem:[#allocation8 + $0x678] sm:$0xff]  ;;  %v10299_v12 = vcombine.low %v5082_v27, %v5086_v23  ;;  %v10348_v27 = vcombine.high %v5130_v53, %v5134_v56 }
 0x4cf   :  { %8497 = vmatprep.subr.bf16.mxu1 %v10254_v62  ;;  %v10301_v62 = vcombine.low %v5083_v29, %v5087_v50  ;;  %v10310_v44 = vcombine.high %v5091_v42, %v5095_v41  ;;  %v5138_v29 = vld [vmem:[#allocation8 + $0x7d0] sm:$0xff] }
 0x4d0   :  { %v5142_v50 = vld [vmem:[#allocation8 + $0x7f0] sm:$0xff] }
 0x4d1   :  { %8334 = vmatpush1.bf16.msra.mxu0 %v10251_v46  ;;  %v5099_v46 = vld [vmem:[#allocation8 + $0x698] sm:$0xff] }
 0x4d2   :  { %8498 = vmatpush1.bf16.msra.mxu1 %v10253_v47  ;;  %8335 = vmatprep.subr.bf16.mxu0 %v10260_v2  ;;  %v5103_v47 = vld [vmem:[#allocation8 + $0x6b8] sm:$0xff]  ;;  %v10307_v2 = vcombine.low %v5090_v33, %v5094_v39  ;;  %v10356_v33 = vcombine.high %v5138_v29, %v5142_v50 }
 0x4d3   :  { %8499 = vmatprep.subr.bf16.mxu1 %v10262_v48  ;;  %v10309_v48 = vcombine.low %v5091_v42, %v5095_v41  ;;  %v10318_v24 = vcombine.high %v5099_v46, %v5103_v47  ;;  %v5146_v42 = vld [vmem:[#allocation8 + $0x810] sm:$0xff] }
 0x4d4   :  { %v5150_v41 = vld [vmem:[#allocation8 + $0x830] sm:$0xff] }
 0x4d5   :  { %8336 = vmatpush1.bf16.msra.mxu0 %v10259_v15  ;;  %v5107_v15 = vld [vmem:[#allocation8 + $0x6d8] sm:$0xff] }
 0x4d6   :  { %8500 = vmatpush1.bf16.msra.mxu1 %v10261_v13  ;;  %8337 = vmatprep.subr.bf16.mxu0 %v10268_v51  ;;  %v5111_v13 = vld [vmem:[#allocation8 + $0x6f8] sm:$0xff]  ;;  %v10315_v51 = vcombine.low %v5098_v11, %v5102_v9  ;;  %v10364_v11 = vcombine.high %v5146_v42, %v5150_v41 }
 0x4d7   :  { %8501 = vmatprep.subr.bf16.mxu1 %v10270_v52  ;;  %v10317_v52 = vcombine.low %v5099_v46, %v5103_v47  ;;  %v10326_v1 = vcombine.high %v5107_v15, %v5111_v13  ;;  %v5154_v46 = vld [vmem:[#allocation8 + $0x850] sm:$0xff] }
 0x4d8   :  { %v5158_v47 = vld [vmem:[#allocation8 + $0x870] sm:$0xff] }
 0x4d9   :  { %8338 = vmatpush1.bf16.msra.mxu0 %v10267_v45  ;;  %v5115_v45 = vld [vmem:[#allocation8 + $0x718] sm:$0xff] }
 0x4da   :  { %8502 = vmatpush1.bf16.msra.mxu1 %v10269_v28  ;;  %8339 = vmatprep.subr.bf16.mxu0 %v10276_v59  ;;  %v5119_v28 = vld [vmem:[#allocation8 + $0x738] sm:$0xff]  ;;  %v10323_v59 = vcombine.low %v5106_v14, %v5110_v37  ;;  %v10372_v14 = vcombine.high %v5154_v46, %v5158_v47  ;;  %v5162_v37 = vld [vmem:[#allocation8 + $0x890] sm:$0xff] }
 0x4db   :  { %8503 = vmatprep.subr.bf16.mxu1 %v10278_v54  ;;  %v10325_v54 = vcombine.low %v5107_v15, %v5111_v13  ;;  %v10334_v22 = vcombine.high %v5115_v45, %v5119_v28  ;;  %v5166_v15 = vld [vmem:[#allocation8 + $0x8b0] sm:$0xff] }
 0x4dd   :  { %8340 = vmatpush1.bf16.msra.mxu0 %v10275_v5  ;;  %v5123_v5 = vld [vmem:[#allocation8 + $0x758] sm:$0xff] }
 0x4de   :  { %8504 = vmatpush1.bf16.msra.mxu1 %v10277_v6  ;;  %8341 = vmatprep.subr.bf16.mxu0 %v10284_v32  ;;  %v5127_v6 = vld [vmem:[#allocation8 + $0x778] sm:$0xff]  ;;  %v10331_v32 = vcombine.low %v5114_v38, %v5118_v35  ;;  %v10380_v38 = vcombine.high %v5162_v37, %v5166_v15 }
 0x4df   :  { %8505 = vmatprep.subr.bf16.mxu1 %v10286_v8  ;;  %v10333_v8 = vcombine.low %v5115_v45, %v5119_v28  ;;  %v10342_v19 = vcombine.high %v5123_v5, %v5127_v6  ;;  %v5170_v45 = vld [vmem:[#allocation8 + $0x8d0] sm:$0xff] }
 0x4e0   :  { %v5174_v28 = vld [vmem:[#allocation8 + $0x8f0] sm:$0xff] }
 0x4e1   :  { %8342 = vmatpush1.bf16.msra.mxu0 %v10283_v3  ;;  %v5131_v3 = vld [vmem:[#allocation8 + $0x798] sm:$0xff] }
 0x4e2   :  { %8506 = vmatpush1.bf16.msra.mxu1 %v10285_v16  ;;  %8343 = vmatprep.subr.bf16.mxu0 %v10292_v20  ;;  %v5135_v16 = vld [vmem:[#allocation8 + $0x7b8] sm:$0xff]  ;;  %v10339_v20 = vcombine.low %v5122_v57, %v5126_v61  ;;  %v5178_v57 = vld [vmem:[#allocation8 + $0x910] sm:$0xff] }
 0x4e3   :  { %8507 = vmatprep.subr.bf16.mxu1 %v10294_v21  ;;  %v10341_v21 = vcombine.low %v5123_v5, %v5127_v6  ;;  %v10350_v23 = vcombine.high %v5131_v3, %v5135_v16  ;;  %v5182_v61 = vld [vmem:[#allocation8 + $0x930] sm:$0xff]  ;;  %v5179_v5 = vld [vmem:[#allocation8 + $0x918] sm:$0xff] }
 0x4e5   :  { %8344 = vmatpush1.bf16.msra.mxu0 %v10291_v0  ;;  %v5139_v0 = vld [vmem:[#allocation8 + $0x7d8] sm:$0xff] }
 0x4e6   :  { %8508 = vmatpush1.bf16.msra.mxu1 %v10293_v4  ;;  %8345 = vmatprep.subr.bf16.mxu0 %v10300_v30  ;;  %v5143_v4 = vld [vmem:[#allocation8 + $0x7f8] sm:$0xff]  ;;  %v10347_v30 = vcombine.low %v5130_v53, %v5134_v56 }
 0x4e7   :  { %8509 = vmatprep.subr.bf16.mxu1 %v10302_v31  ;;  %v10349_v31 = vcombine.low %v5131_v3, %v5135_v16  ;;  %v10358_v39 = vcombine.high %v5139_v0, %v5143_v4  ;;  %v5187_v53 = vld [vmem:[#allocation8 + $0x958] sm:$0xff]  ;;  %v10395_v3 = vcombine.low %v5178_v57, %v5182_v61  ;;  %v10397_v16 = vcombine.low %v5179_v5, %v5183_v34 }
 0x4e8   :  { %v5191_v56 = vld [vmem:[#allocation8 + $0x978] sm:$0xff] }
 0x4e9   :  { %8346 = vmatpush1.bf16.msra.mxu0 %v10299_v12  ;;  %v5147_v12 = vld [vmem:[#allocation8 + $0x818] sm:$0xff] }
 0x4ea   :  { %8510 = vmatpush1.bf16.msra.mxu1 %v10301_v62  ;;  %8347 = vmatprep.subr.bf16.mxu0 %v10308_v43  ;;  %v5151_v62 = vld [vmem:[#allocation8 + $0x838] sm:$0xff]  ;;  %v10355_v43 = vcombine.low %v5138_v29, %v5142_v50 }
 0x4eb   :  { %8511 = vmatprep.subr.bf16.mxu1 %v10310_v44  ;;  %v10357_v44 = vcombine.low %v5139_v0, %v5143_v4  ;;  %v10366_v9 = vcombine.high %v5147_v12, %v5151_v62  ;;  %v5195_v29 = vld [vmem:[#allocation8 + $0x998] sm:$0xff]  ;;  %v10405_v4 = vcombine.low %v5187_v53, %v5191_v56 }
 0x4ec   :  { %v5199_v50 = vld [vmem:[#allocation8 + $0x9b8] sm:$0xff] }
 0x4ed   :  { %8348 = vmatpush1.bf16.msra.mxu0 %v10307_v2  ;;  %v10363_v2 = vcombine.low %v5146_v42, %v5150_v41  ;;  %v5203_v42 = vld [vmem:[#allocation8 + $0x9d8] sm:$0xff] }
 0x4ee   :  { %8512 = vmatpush1.bf16.msra.mxu1 %v10309_v48  ;;  %8349 = vmatprep.subr.bf16.mxu0 %v10316_v49  ;;  %v5155_v48 = vld [vmem:[#allocation8 + $0x858] sm:$0xff] }
 0x4ef   :  { %8513 = vmatprep.subr.bf16.mxu1 %v10318_v24  ;;  %v5159_v49 = vld [vmem:[#allocation8 + $0x878] sm:$0xff]  ;;  %v10365_v24 = vcombine.low %v5147_v12, %v5151_v62  ;;  %v10413_v62 = vcombine.low %v5195_v29, %v5199_v50 }
 0x4f0   :  { %v10374_v13 = vcombine.high %v5155_v48, %v5159_v49  ;;  %v5207_v41 = vld [vmem:[#allocation8 + $0x9f8] sm:$0xff] }
 0x4f1   :  { %8350 = vmatpush1.bf16.msra.mxu0 %v10315_v51  ;;  %v5163_v51 = vld [vmem:[#allocation8 + $0x898] sm:$0xff] }
 0x4f2   :  { %8514 = vmatpush1.bf16.msra.mxu1 %v10317_v52  ;;  %8351 = vmatprep.subr.bf16.mxu0 %v10324_v60  ;;  %v5167_v52 = vld [vmem:[#allocation8 + $0x8b8] sm:$0xff]  ;;  %v10371_v60 = vcombine.low %v5154_v46, %v5158_v47 }
 0x4f3   :  { %8515 = vmatprep.subr.bf16.mxu1 %v10326_v1  ;;  %v10373_v1 = vcombine.low %v5155_v48, %v5159_v49  ;;  %v10382_v35 = vcombine.high %v5163_v51, %v5167_v52  ;;  %v5211_v46 = vld [vmem:[#allocation8 + $0xa18] sm:$0xff]  ;;  %v10421_v48 = vcombine.low %v5203_v42, %v5207_v41 }
 0x4f4   :  { %v5215_v47 = vld [vmem:[#allocation8 + $0xa38] sm:$0xff] }
 0x4f5   :  { %8352 = vmatpush1.bf16.msra.mxu0 %v10323_v59  ;;  %v10379_v59 = vcombine.low %v5162_v37, %v5166_v15  ;;  %v5222_v37 = vld [vmem:[#allocation8 + $0xa70] sm:$0xff]  ;;  %v5219_v15 = vld [vmem:[#allocation8 + $0xa58] sm:$0xff] }
 0x4f6   :  { %8516 = vmatpush1.bf16.msra.mxu1 %v10325_v54  ;;  %8353 = vmatprep.subr.bf16.mxu0 %v10332_v55  ;;  %v10381_v54 = vcombine.low %v5163_v51, %v5167_v52  ;;  %v10388_v55 = vcombine.high %v5170_v45, %v5174_v28  ;;  %v10429_v52 = vcombine.low %v5211_v46, %v5215_v47 }
 0x4f7   :  { %8517 = vmatprep.subr.bf16.mxu1 %v10334_v22 }
 0x4f9   :  { %8354 = vmatpush1.bf16.msra.mxu0 %v10331_v32  ;;  %v10396_v32 = vcombine.high %v5178_v57, %v5182_v61  ;;  %v5235_v57 = vld [vmem:[#allocation8 + $0xad8] sm:$0xff] }
 0x4fa   :  { %8518 = vmatpush1.bf16.msra.mxu1 %v10333_v8  ;;  %8355 = vmatprep.subr.bf16.mxu0 %v10340_v18  ;;  %v10398_v8 = vcombine.high %v5179_v5, %v5183_v34  ;;  %v5186_v18 = vld [vmem:[#allocation8 + $0x950] sm:$0xff]  ;;  %v5239_v61 = vld [vmem:[#allocation8 + $0xaf8] sm:$0xff] }
 0x4fb   :  { %8519 = vmatprep.subr.bf16.mxu1 %v10342_v19  ;;  %v5190_v19 = vld [vmem:[#allocation8 + $0x970] sm:$0xff] }
 0x4fc   :  { %v10403_v0 = vcombine.low %v5186_v18, %v5190_v19 }
 0x4fd   :  { %8356 = vmatpush1.bf16.msra.mxu0 %v10339_v20  ;;  %v10404_v20 = vcombine.high %v5186_v18, %v5190_v19  ;;  %v5243_v18 = vld [vmem:[#allocation8 + $0xb18] sm:$0xff] }
 0x4fe   :  { %8520 = vmatpush1.bf16.msra.mxu1 %v10341_v21  ;;  %8357 = vmatprep.subr.bf16.mxu0 %v10348_v27  ;;  %v10406_v21 = vcombine.high %v5187_v53, %v5191_v56  ;;  %v5194_v27 = vld [vmem:[#allocation8 + $0x990] sm:$0xff]  ;;  %v5247_v19 = vld [vmem:[#allocation8 + $0xb38] sm:$0xff]  ;;  %v10453_v56 = vcombine.low %v5235_v57, %v5239_v61 }
 0x4ff   :  { %8521 = vmatprep.subr.bf16.mxu1 %v10350_v23  ;;  %v5198_v23 = vld [vmem:[#allocation8 + $0x9b0] sm:$0xff] }
 0x500   :  { %v10411_v12 = vcombine.low %v5194_v27, %v5198_v23 }
 0x501   :  { %8358 = vmatpush1.bf16.msra.mxu0 %v10347_v30  ;;  %v10412_v30 = vcombine.high %v5194_v27, %v5198_v23  ;;  %v5251_v27 = vld [vmem:[#allocation8 + $0xb58] sm:$0xff] }
 0x502   :  { %8522 = vmatpush1.bf16.msra.mxu1 %v10349_v31  ;;  %8359 = vmatprep.subr.bf16.mxu0 %v10356_v33  ;;  %v10414_v31 = vcombine.high %v5195_v29, %v5199_v50  ;;  %v5202_v33 = vld [vmem:[#allocation8 + $0x9d0] sm:$0xff]  ;;  %v5255_v23 = vld [vmem:[#allocation8 + $0xb78] sm:$0xff]  ;;  %v10461_v50 = vcombine.low %v5243_v18, %v5247_v19 }
 0x503   :  { %8523 = vmatprep.subr.bf16.mxu1 %v10358_v39  ;;  %v5206_v39 = vld [vmem:[#allocation8 + $0x9f0] sm:$0xff] }
 0x505   :  { %8360 = vmatpush1.bf16.msra.mxu0 %v10355_v43  ;;  %v10420_v43 = vcombine.high %v5202_v33, %v5206_v39 }
 0x506   :  { %8524 = vmatpush1.bf16.msra.mxu1 %v10357_v44  ;;  %8370 = vmatprep.subr.bf16.mxu0 %v10364_v11  ;;  %v10422_v44 = vcombine.high %v5203_v42, %v5207_v41  ;;  %v5210_v11 = vld [vmem:[#allocation8 + $0xa10] sm:$0xff]  ;;  %v10469_v41 = vcombine.low %v5251_v27, %v5255_v23 }
 0x507   :  { %8534 = vmatprep.subr.bf16.mxu1 %v10366_v9  ;;  %v5214_v9 = vld [vmem:[#allocation8 + $0xa30] sm:$0xff] }
 0x508   :  { %10674 = vmatmul.mubr.msk.bf16.vlgmr.msra.gmra.mrb[20].mxu0 %vm11713_vm7, %v11711_v36  ;;  %v10428_v49 = vcombine.high %v5210_v11, %v5214_v9  ;;  %v10427_v51 = vcombine.low %v5210_v11, %v5214_v9  ;;  %v5267_v11 = vld [vmem:[#allocation8 + $0xbd8] sm:$0xff] }
 0x509   :  { %10698 = vmatmul.mubr.msk.bf16.vlgmr.msra.gmra.mrb[20].mxu1 %vm11713_vm7, %v11711_v36  ;;  %8371 = vmatpush1.bf16.msra.mxu0 %v10363_v2  ;;  %v5175_v36 = vld [vmem:[#allocation8 + $0x8f8] sm:$0xff]  ;;  %v10419_v2 = vcombine.low %v5202_v33, %v5206_v39 }
 0x50a   :  { %10677 = vmatprep.mubr.msk.bf16.mxu0 %vm11734_vm10, %v11728_v25  ;;  %8535 = vmatpush1.bf16.msra.mxu1 %v10365_v24  ;;  %v10390_v22 = vcombine.high %v5171_v40, %v5175_v36  ;;  %v10389_v6 = vcombine.low %v5171_v40, %v5175_v36  ;;  %v10430_v24 = vcombine.high %v5211_v46, %v5215_v47  ;;  %v5259_v33 = vld [vmem:[#allocation8 + $0xb98] sm:$0xff] }
 0x50b   :  { %10701 = vmatprep.mubr.msk.bf16.mxu1 %vm11734_vm10, %v11728_v25  ;;  %8372 = vmatprep.subr.bf16.mxu0 %v10372_v14  ;;  %v10387_v25 = vcombine.low %v5170_v45, %v5174_v28  ;;  %v5218_v14 = vld [vmem:[#allocation8 + $0xa50] sm:$0xff]  ;;  %v5227_v45 = vld [vmem:[#allocation8 + $0xa98] sm:$0xff] }
 0x50c   :  { %8536 = vmatprep.subr.bf16.mxu1 %v10374_v13  ;;  %v5223_v13 = vld [vmem:[#allocation8 + $0xa78] sm:$0xff]  ;;  %v10435_v40 = vcombine.low %v5218_v14, %v5222_v37 }
 0x50d   :  { %8373 = vmatpush1.bf16.msra.mxu0 %v10371_v60  ;;  %v10436_v60 = vcombine.high %v5218_v14, %v5222_v37  ;;  %v5231_v28 = vld [vmem:[#allocation8 + $0xab8] sm:$0xff]  ;;  %v10437_v36 = vcombine.low %v5219_v15, %v5223_v13 }
 0x50e   :  { %8537 = vmatpush1.bf16.msra.mxu1 %v10373_v1  ;;  %8374 = vmatprep.subr.bf16.mxu0 %v10380_v38  ;;  %v10438_v1 = vcombine.high %v5219_v15, %v5223_v13  ;;  %v5226_v38 = vld [vmem:[#allocation8 + $0xa90] sm:$0xff]  ;;  %v10445_v34 = vcombine.low %v5227_v45, %v5231_v28  ;;  %v5263_v39 = vld [vmem:[#allocation8 + $0xbb8] sm:$0xff] }
 0x50f   :  { %8538 = vmatprep.subr.bf16.mxu1 %v10382_v35  ;;  %v5230_v35 = vld [vmem:[#allocation8 + $0xab0] sm:$0xff]  ;;  %v5271_v9 = vld [vmem:[#allocation8 + $0xbf8] sm:$0xff]  ;;  %v10477_v47 = vcombine.low %v5259_v33, %v5263_v39 }
 0x510   :  { %v10443_v5 = vcombine.low %v5226_v38, %v5230_v35  ;;  %v5275_v14 = vld [vmem:[#allocation8 + $0xc18] sm:$0xff]  ;;  %v10485_v13 = vcombine.low %v5267_v11, %v5271_v9 }
 0x511   :  { %8375 = vmatpush1.bf16.msra.mxu0 %v10379_v59  ;;  %v10444_v59 = vcombine.high %v5226_v38, %v5230_v35  ;;  %v5279_v37 = vld [vmem:[#allocation8 + $0xc38] sm:$0xff] }
 0x512   :  { %8539 = vmatpush1.bf16.msra.mxu1 %v10381_v54  ;;  %8376 = vmatprep.subr.bf16.mxu0 %v10388_v55  ;;  %v10446_v54 = vcombine.high %v5227_v45, %v5231_v28  ;;  %v5234_v55 = vld [vmem:[#allocation8 + $0xad0] sm:$0xff]  ;;  %v5283_v35 = vld [vmem:[#allocation8 + $0xc58] sm:$0xff]  ;;  %v10493_v28 = vcombine.low %v5275_v14, %v5279_v37 }
 0x513   :  { %8540 = vmatprep.subr.bf16.mxu1 %v10390_v22  ;;  %v5238_v22 = vld [vmem:[#allocation8 + $0xaf0] sm:$0xff]  ;;  %v5287_v45 = vld [vmem:[#allocation8 + $0xc78] sm:$0xff] }
 0x514   :  { %v10451_v53 = vcombine.low %v5234_v55, %v5238_v22 }
 0x515   :  { %8377 = vmatpush1.bf16.msra.mxu0 %v10387_v25  ;;  %v10452_v25 = vcombine.high %v5234_v55, %v5238_v22  ;;  %v5291_v55 = vld [vmem:[#allocation8 + $0xc98] sm:$0xff] }
 0x516   :  { %8541 = vmatpush1.bf16.msra.mxu1 %v10389_v6  ;;  %8378 = vmatprep.subr.bf16.mxu0 %v10396_v32  ;;  %v10454_v6 = vcombine.high %v5235_v57, %v5239_v61  ;;  %v5242_v32 = vld [vmem:[#allocation8 + $0xb10] sm:$0xff]  ;;  %v5295_v22 = vld [vmem:[#allocation8 + $0xcb8] sm:$0xff]  ;;  %v10501_v61 = vcombine.low %v5283_v35, %v5287_v45 }
 0x517   :  { %8542 = vmatprep.subr.bf16.mxu1 %v10398_v8  ;;  %v5246_v8 = vld [vmem:[#allocation8 + $0xb30] sm:$0xff] }
 0x518   :  { %v10459_v29 = vcombine.low %v5242_v32, %v5246_v8 }
 0x519   :  { %8379 = vmatpush1.bf16.msra.mxu0 %v10395_v3  ;;  %v10460_v3 = vcombine.high %v5242_v32, %v5246_v8  ;;  %v10509_v8 = vcombine.low %v5291_v55, %v5295_v22 }
 0x51a   :  { %8543 = vmatpush1.bf16.msra.mxu1 %v10397_v16  ;;  %8380 = vmatprep.subr.bf16.mxu0 %v10404_v20  ;;  %v10462_v16 = vcombine.high %v5243_v18, %v5247_v19  ;;  %v5250_v20 = vld [vmem:[#allocation8 + $0xb50] sm:$0xff] }
 0x51b   :  { %8544 = vmatprep.subr.bf16.mxu1 %v10406_v21  ;;  %v5254_v21 = vld [vmem:[#allocation8 + $0xb70] sm:$0xff] }
 0x51c   :  { %v10467_v42 = vcombine.low %v5250_v20, %v5254_v21 }
 0x51d   :  { %8381 = vmatpush1.bf16.msra.mxu0 %v10403_v0  ;;  %v10468_v0 = vcombine.high %v5250_v20, %v5254_v21 }
 0x51e   :  { %8545 = vmatpush1.bf16.msra.mxu1 %v10405_v4  ;;  %8382 = vmatprep.subr.bf16.mxu0 %v10412_v30  ;;  %v10470_v4 = vcombine.high %v5251_v27, %v5255_v23  ;;  %v5258_v30 = vld [vmem:[#allocation8 + $0xb90] sm:$0xff] }
 0x51f   :  { %8546 = vmatprep.subr.bf16.mxu1 %v10414_v31  ;;  %v5262_v31 = vld [vmem:[#allocation8 + $0xbb0] sm:$0xff] }
 0x520   :  { %v10475_v46 = vcombine.low %v5258_v30, %v5262_v31  ;;  %v5314_v27 = vld [vmem:[#allocation8 + $0xd50] sm:$0xff] }
 0x521   :  { %8383 = vmatpush1.bf16.msra.mxu0 %v10411_v12  ;;  %v10476_v12 = vcombine.high %v5258_v30, %v5262_v31  ;;  %v5318_v23 = vld [vmem:[#allocation8 + $0xd70] sm:$0xff] }
 0x522   :  { %8547 = vmatpush1.bf16.msra.mxu1 %v10413_v62  ;;  %8384 = vmatprep.subr.bf16.mxu0 %v10420_v43  ;;  %v10478_v62 = vcombine.high %v5259_v33, %v5263_v39  ;;  %v5266_v43 = vld [vmem:[#allocation8 + $0xbd0] sm:$0xff]  ;;  %v10532_v30 = vcombine.high %v5314_v27, %v5318_v23 }
 0x523   :  { %8548 = vmatprep.subr.bf16.mxu1 %v10422_v44  ;;  %v5270_v44 = vld [vmem:[#allocation8 + $0xbf0] sm:$0xff] }
 0x524   :  { %v10483_v15 = vcombine.low %v5266_v43, %v5270_v44  ;;  %v5322_v33 = vld [vmem:[#allocation8 + $0xd90] sm:$0xff] }
 0x525   :  { %8385 = vmatpush1.bf16.msra.mxu0 %v10419_v2  ;;  %v10484_v2 = vcombine.high %v5266_v43, %v5270_v44  ;;  %v5326_v39 = vld [vmem:[#allocation8 + $0xdb0] sm:$0xff] }
 0x526   :  { %8549 = vmatpush1.bf16.msra.mxu1 %v10421_v48  ;;  %8386 = vmatprep.subr.bf16.mxu0 %v10428_v49  ;;  %v10486_v48 = vcombine.high %v5267_v11, %v5271_v9  ;;  %v5274_v49 = vld [vmem:[#allocation8 + $0xc10] sm:$0xff]  ;;  %v10540_v43 = vcombine.high %v5322_v33, %v5326_v39 }
 0x527   :  { %8550 = vmatprep.subr.bf16.mxu1 %v10430_v24  ;;  %v5278_v24 = vld [vmem:[#allocation8 + $0xc30] sm:$0xff] }
 0x528   :  { %v10491_v38 = vcombine.low %v5274_v49, %v5278_v24 }
 0x529   :  { %8387 = vmatpush1.bf16.msra.mxu0 %v10427_v51  ;;  %v10492_v51 = vcombine.high %v5274_v49, %v5278_v24  ;;  %v5331_v49 = vld [vmem:[#allocation8 + $0xdd8] sm:$0xff] }
 0x52a   :  { %8551 = vmatpush1.bf16.msra.mxu1 %v10429_v52  ;;  %8388 = vmatprep.subr.bf16.mxu0 %v10436_v60  ;;  %v10494_v52 = vcombine.high %v5275_v14, %v5279_v37  ;;  %v5282_v60 = vld [vmem:[#allocation8 + $0xc50] sm:$0xff]  ;;  %v5335_v24 = vld [vmem:[#allocation8 + $0xdf8] sm:$0xff] }
 0x52b   :  { %8552 = vmatprep.subr.bf16.mxu1 %v10438_v1  ;;  %v5286_v1 = vld [vmem:[#allocation8 + $0xc70] sm:$0xff] }
 0x52c   :  { %v10499_v57 = vcombine.low %v5282_v60, %v5286_v1 }
 0x52d   :  { %8389 = vmatpush1.bf16.msra.mxu0 %v10435_v40  ;;  %v10500_v40 = vcombine.high %v5282_v60, %v5286_v1  ;;  %v10550_v1 = vcombine.high %v5331_v49, %v5335_v24 }
 0x52e   :  { %8553 = vmatpush1.bf16.msra.mxu1 %v10437_v36  ;;  %8390 = vmatprep.subr.bf16.mxu0 %v10444_v59  ;;  %v5290_v36 = vld [vmem:[#allocation8 + $0xc90] sm:$0xff] }
 0x52f   :  { %8554 = vmatprep.subr.bf16.mxu1 %v10446_v54  ;;  %v5294_v59 = vld [vmem:[#allocation8 + $0xcb0] sm:$0xff]  ;;  %v10502_v54 = vcombine.high %v5283_v35, %v5287_v45  ;;  %v5339_v45 = vld [vmem:[#allocation8 + $0xe18] sm:$0xff] }
 0x530   :  { %v10507_v32 = vcombine.low %v5290_v36, %v5294_v59  ;;  %v5342_v35 = vld [vmem:[#allocation8 + $0xe30] sm:$0xff] }
 0x531   :  { %8391 = vmatpush1.bf16.msra.mxu0 %v10443_v5  ;;  %v10508_v5 = vcombine.high %v5290_v36, %v5294_v59  ;;  %v10549_v36 = vcombine.low %v5331_v49, %v5335_v24  ;;  %v5386_v49 = vld [vmem:[#allocation8 + $0xf90] sm:$0xff] }
 0x532   :  { %8555 = vmatpush1.bf16.msra.mxu1 %v10445_v34  ;;  %8392 = vmatprep.subr.bf16.mxu0 %v10452_v25  ;;  %v10510_v34 = vcombine.high %v5291_v55, %v5295_v22  ;;  %v5298_v25 = vld [vmem:[#allocation8 + $0xcd0] sm:$0xff] }
 0x533   :  { %8556 = vmatprep.subr.bf16.mxu1 %v10454_v6  ;;  %v5302_v6 = vld [vmem:[#allocation8 + $0xcf0] sm:$0xff] }
 0x534   :  { %v10516_v18 = vcombine.high %v5298_v25, %v5302_v6  ;;  %v5346_v55 = vld [vmem:[#allocation8 + $0xe50] sm:$0xff] }
 0x535   :  { %8393 = vmatpush1.bf16.msra.mxu0 %v10451_v53  ;;  %v5306_v53 = vld [vmem:[#allocation8 + $0xd10] sm:$0xff] }
 0x536   :  { %8557 = vmatpush1.bf16.msra.mxu1 %v10453_v56  ;;  %8394 = vmatprep.subr.bf16.mxu0 %v10460_v3  ;;  %v5310_v56 = vld [vmem:[#allocation8 + $0xd30] sm:$0xff]  ;;  %v5307_v3 = vld [vmem:[#allocation8 + $0xd18] sm:$0xff] }
 0x537   :  { %8558 = vmatprep.subr.bf16.mxu1 %v10462_v16  ;;  %v10524_v20 = vcombine.high %v5306_v53, %v5310_v56  ;;  %v10526_v21 = vcombine.high %v5307_v3, %v5311_v26  ;;  %v5350_v22 = vld [vmem:[#allocation8 + $0xe70] sm:$0xff] }
 0x538   :  { %v5390_v24 = vld [vmem:[#allocation8 + $0xfb0] sm:$0xff] }
 0x539   :  { %8395 = vmatpush1.bf16.msra.mxu0 %v10459_v29  ;;  %v5315_v29 = vld [vmem:[#allocation8 + $0xd58] sm:$0xff] }
 0x53a   :  { %8559 = vmatpush1.bf16.msra.mxu1 %v10461_v50  ;;  %8396 = vmatprep.subr.bf16.mxu0 %v10468_v0  ;;  %v5319_v50 = vld [vmem:[#allocation8 + $0xd78] sm:$0xff]  ;;  %v10523_v0 = vcombine.low %v5306_v53, %v5310_v56 }
 0x53b   :  { %8560 = vmatprep.subr.bf16.mxu1 %v10470_v4  ;;  %v10525_v4 = vcombine.low %v5307_v3, %v5311_v26  ;;  %v10534_v31 = vcombine.high %v5315_v29, %v5319_v50  ;;  %v5362_v3 = vld [vmem:[#allocation8 + $0xed0] sm:$0xff] }
 0x53c   :  { %v5366_v26 = vld [vmem:[#allocation8 + $0xef0] sm:$0xff] }
 0x53d   :  { %8397 = vmatpush1.bf16.msra.mxu0 %v10467_v42  ;;  %v5323_v42 = vld [vmem:[#allocation8 + $0xd98] sm:$0xff] }
 0x53e   :  { %8561 = vmatpush1.bf16.msra.mxu1 %v10469_v41  ;;  %8398 = vmatprep.subr.bf16.mxu0 %v10476_v12  ;;  %v5327_v41 = vld [vmem:[#allocation8 + $0xdb8] sm:$0xff]  ;;  %v10531_v12 = vcombine.low %v5314_v27, %v5318_v23  ;;  %v10580_v27 = vcombine.high %v5362_v3, %v5366_v26 }
 0x53f   :  { %8562 = vmatprep.subr.bf16.mxu1 %v10478_v62  ;;  %v10533_v62 = vcombine.low %v5315_v29, %v5319_v50  ;;  %v10542_v9 = vcombine.high %v5323_v42, %v5327_v41  ;;  %v5370_v29 = vld [vmem:[#allocation8 + $0xf10] sm:$0xff] }
 0x540   :  { %v5374_v50 = vld [vmem:[#allocation8 + $0xf30] sm:$0xff] }
 0x541   :  { %8399 = vmatpush1.bf16.msra.mxu0 %v10475_v46  ;;  %v5330_v46 = vld [vmem:[#allocation8 + $0xdd0] sm:$0xff] }
 0x542   :  { %8563 = vmatpush1.bf16.msra.mxu1 %v10477_v47  ;;  %8400 = vmatprep.subr.bf16.mxu0 %v10484_v2  ;;  %v5334_v47 = vld [vmem:[#allocation8 + $0xdf0] sm:$0xff] }
 0x543   :  { %8564 = vmatprep.subr.bf16.mxu1 %v10486_v48  ;;  %v10548_v60 = vcombine.high %v5330_v46, %v5334_v47 }
 0x545   :  { %8401 = vmatpush1.bf16.msra.mxu0 %v10483_v15  ;;  %v10539_v15 = vcombine.low %v5322_v33, %v5326_v39  ;;  %v10588_v33 = vcombine.high %v5370_v29, %v5374_v50 }
 0x546   :  { %8565 = vmatpush1.bf16.msra.mxu1 %v10485_v13  ;;  %8411 = vmatprep.subr.bf16.mxu0 %v10492_v51 }
 0x547   :  { %8575 = vmatprep.subr.bf16.mxu1 %v10494_v52  ;;  %v10541_v52 = vcombine.low %v5323_v42, %v5327_v41  ;;  %v5378_v42 = vld [vmem:[#allocation8 + $0xf50] sm:$0xff] }
 0x548   :  { %10680 = vmatmul.mubr.msk.bf16.vlgmr.msra.gmra.mrb[20].mxu0 %vm11740_vm12, %v11730_v7  ;;  %v5382_v41 = vld [vmem:[#allocation8 + $0xf70] sm:$0xff] }
 0x549   :  { %10704 = vmatmul.mubr.msk.bf16.vlgmr.msra.gmra.mrb[20].mxu1 %vm11740_vm12, %v11730_v7  ;;  %8412 = vmatpush1.bf16.msra.mxu0 %v10491_v38  ;;  %v5303_v7 = vld [vmem:[#allocation8 + $0xcf8] sm:$0xff]  ;;  %v5338_v38 = vld [vmem:[#allocation8 + $0xe10] sm:$0xff] }
 0x54a   :  { %10683 = vmatprep.mubr.msk.bf16.mxu0 %vm11758_vm13, %v11750_v17  ;;  %8576 = vmatpush1.bf16.msra.mxu1 %v10493_v28  ;;  %v10518_v19 = vcombine.high %v5299_v10, %v5303_v7  ;;  %v10517_v16 = vcombine.low %v5299_v10, %v5303_v7  ;;  %v5343_v28 = vld [vmem:[#allocation8 + $0xe38] sm:$0xff]  ;;  %v10556_v59 = vcombine.high %v5338_v38, %v5342_v35  ;;  %v5354_v10 = vld [vmem:[#allocation8 + $0xe90] sm:$0xff] }
 0x54b   :  { %10707 = vmatprep.mubr.msk.bf16.mxu1 %vm11758_vm13, %v11750_v17  ;;  %8413 = vmatprep.subr.bf16.mxu0 %v10500_v40  ;;  %v10515_v17 = vcombine.low %v5298_v25, %v5302_v6  ;;  %v10547_v40 = vcombine.low %v5330_v46, %v5334_v47  ;;  %v10564_v25 = vcombine.high %v5346_v55, %v5350_v22  ;;  %v5358_v7 = vld [vmem:[#allocation8 + $0xeb0] sm:$0xff] }
 0x54c   :  { %8577 = vmatprep.subr.bf16.mxu1 %v10502_v54  ;;  %v10558_v54 = vcombine.high %v5339_v45, %v5343_v28  ;;  %v10572_v53 = vcombine.high %v5354_v10, %v5358_v7  ;;  %v10596_v46 = vcombine.high %v5378_v42, %v5382_v41 }
 0x54d   :  { %8414 = vmatpush1.bf16.msra.mxu0 %v10499_v57  ;;  %v5347_v57 = vld [vmem:[#allocation8 + $0xe58] sm:$0xff] }
 0x54e   :  { %8578 = vmatpush1.bf16.msra.mxu1 %v10501_v61  ;;  %8415 = vmatprep.subr.bf16.mxu0 %v10508_v5  ;;  %v5351_v61 = vld [vmem:[#allocation8 + $0xe78] sm:$0xff]  ;;  %v10555_v5 = vcombine.low %v5338_v38, %v5342_v35 }
 0x54f   :  { %8579 = vmatprep.subr.bf16.mxu1 %v10510_v34  ;;  %v10557_v34 = vcombine.low %v5339_v45, %v5343_v28  ;;  %v10566_v6 = vcombine.high %v5347_v57, %v5351_v61  ;;  %v5395_v38 = vld [vmem:[#allocation8 + $0xfd8] sm:$0xff]  ;;  %v11833_v45 = vld [vmem:[#allocation14] sm:$0xff]  ;;  %v10603_v28 = vcombine.low %v5386_v49, %v5390_v24 }
 0x550   :  { %v5399_v35 = vld [vmem:[#allocation8 + $0xff8] sm:$0xff] }
 0x551   :  { %8416 = vmatpush1.bf16.msra.mxu0 %v10507_v32  ;;  %v5355_v32 = vld [vmem:[#allocation8 + $0xe98] sm:$0xff] }
 0x552   :  { %8580 = vmatpush1.bf16.msra.mxu1 %v10509_v8  ;;  %8417 = vmatprep.subr.bf16.mxu0 %v10516_v18  ;;  %v5359_v8 = vld [vmem:[#allocation8 + $0xeb8] sm:$0xff]  ;;  %v10563_v18 = vcombine.low %v5346_v55, %v5350_v22  ;;  %v8621_v55 = vunpack.c.h.bf16 %v11833_v45 }
 0x553   :  { %8581 = vmatprep.subr.bf16.mxu1 %v10518_v19  ;;  %v10565_v19 = vcombine.low %v5347_v57, %v5351_v61  ;;  %v10574_v56 = vcombine.high %v5355_v32, %v5359_v8  ;;  %v10613_v61 = vcombine.low %v5395_v38, %v5399_v35 }
 0x555   :  { %8418 = vmatpush1.bf16.msra.mxu0 %v10515_v17  ;;  %v5363_v17 = vld [vmem:[#allocation8 + $0xed8] sm:$0xff] }
 0x556   :  { %8582 = vmatpush1.bf16.msra.mxu1 %v10517_v16  ;;  %8419 = vmatprep.subr.bf16.mxu0 %v10524_v20  ;;  %v5367_v16 = vld [vmem:[#allocation8 + $0xef8] sm:$0xff]  ;;  %v10571_v20 = vcombine.low %v5354_v10, %v5358_v7  ;;  %v11000_v10 = vld [vmem:[#allocation10] sm:$0xff]  }
 0x557   :  { %8583 = vmatprep.subr.bf16.mxu1 %v10526_v21  ;;  %v10573_v21 = vcombine.low %v5355_v32, %v5359_v8  ;;  %v10582_v23 = vcombine.high %v5363_v17, %v5367_v16  ;;  %v11001_v7 = vld [vmem:[#allocation10 + $0x80] sm:$0xff]   ;;  %v11002_v32 = vld [vmem:[#allocation10 + $0x48] sm:$0xff]  }
 0x559   :  { %8420 = vmatpush1.bf16.msra.mxu0 %v10523_v0  ;;  %v5371_v0 = vld [vmem:[#allocation8 + $0xf18] sm:$0xff] }
 0x55a   :  { %8584 = vmatpush1.bf16.msra.mxu1 %v10525_v4  ;;  %8421 = vmatprep.subr.bf16.mxu0 %v10532_v30  ;;  %v5375_v4 = vld [vmem:[#allocation8 + $0xf38] sm:$0xff]  ;;  %v10579_v30 = vcombine.low %v5362_v3, %v5366_v26  ;;  %v11008_v3 = vld [vmem:[#allocation10 + $0x10] sm:$0xff]  }
 0x55b   :  { %v11825_v44 = vpop.f32.mrb[16].mxu0  ;;  %v11827_v11 = vpop.f32.mrb[16].mxu1  ;;  %8585 = vmatprep.subr.bf16.mxu1 %v10534_v31  ;;  %v10581_v31 = vcombine.low %v5363_v17, %v5367_v16  ;;  %v10590_v39 = vcombine.high %v5371_v0, %v5375_v4  ;;  %v11009_v26 = vld [vmem:[#allocation10 + $0x90] sm:$0xff]   ;;  %v11010_v17 = vld [vmem:[#allocation10 + $0x58] sm:$0xff]  }
 0x55c   :  { %v11829_v2 = vpop.f32.mrb[17].mxu0  ;;  %v11831_v48 = vpop.f32.mrb[17].mxu1  ;;  %v11013_v16 = vld [vmem:[#allocation10 + $0x98] sm:$0xff]   ;;  %vm8628_vm4 = vcmp.gt.f32.partialorder %v11825_v44, 0.0  ;;  %vm8630_vm5 = vcmp.gt.f32.partialorder %v11827_v11, 0.0 }
 0x55d   :  { %v8121_v14 = vpop.f32.mrb[18].mxu0  ;;  %v8285_v37 = vpop.f32.mrb[18].mxu1  ;;  %8422 = vmatpush1.bf16.msra.mxu0 %v10531_v12  ;;  %v5379_v12 = vld [vmem:[#allocation8 + $0xf58] sm:$0xff]  ;;  %vm8629_vm0 = vcmp.gt.f32.partialorder %v11829_v2, 0.0  ;;  %vm8631_vm1 = vcmp.gt.f32.partialorder %v11831_v48, 0.0  ;;  %vm10778_vm6 = vmpackc.low %vm8628_vm4, %vm8628_vm4 }
 0x55e   :  { %8586 = vmatpush1.bf16.msra.mxu1 %v10533_v62  ;;  %v8122_v13 = vpop.f32.mrb[19].mxu0  ;;  %v8286_v51 = vpop.f32.mrb[19].mxu1  ;;  %8423 = vmatprep.subr.bf16.mxu0 %v10540_v43  ;;  %v5383_v62 = vld [vmem:[#allocation8 + $0xf78] sm:$0xff]  ;;  %v10587_v43 = vcombine.low %v5370_v29, %v5374_v50  ;;  %vm10775_vm2 = vmpackc.low %vm8629_vm0, %vm8629_vm0  ;;  %v11018_v29 = vld [vmem:[#allocation10 + $0x68] sm:$0xff]  }
 0x55f   :  { %8587 = vmatprep.subr.bf16.mxu1 %v10542_v9  ;;  %v10589_v9 = vcombine.low %v5371_v0, %v5375_v4  ;;  %v10598_v47 = vcombine.high %v5379_v12, %v5383_v62  ;;  %v5387_v14 = vld [vmem:[#allocation8 + $0xf98] sm:$0xff]  ;;  %v10597_v13 = vcombine.low %v5379_v12, %v5383_v62  ;;  %v10604_v51 = vcombine.high %v5386_v49, %v5390_v24  ;;  %vm10781_vm3 = vmpackc.low %vm8631_vm1, %vm8631_vm1  ;;  %v11019_v50 = vld [vmem:[#allocation10 + $0xe8] sm:$0xff]  }
 0x560   :  { %v5391_v37 = vld [vmem:[#allocation8 + $0xfb8] sm:$0xff]  ;;  %v11020_v0 = vld [vmem:[#allocation10 + $0x28] sm:$0xff]   ;;  %v11031_v24 = vld [vmem:[#allocation10 + $0x1c0] sm:$0xff]  }
 0x561   :  { %8424 = vmatpush1.bf16.msra.mxu0 %v10539_v15  ;;  %v10595_v15 = vcombine.low %v5378_v42, %v5382_v41  ;;  %v11021_v4 = vld [vmem:[#allocation10 + $0xa8] sm:$0xff]   ;;  %v11025_v42 = vld [vmem:[#allocation10 + $0xb0] sm:$0xff]   ;;  %v11026_v41 = vld [vmem:[#allocation10 + $0x78] sm:$0xff]  }
 0x562   :  { %8588 = vmatpush1.bf16.msra.mxu1 %v10541_v52  ;;  %8425 = vmatprep.subr.bf16.mxu0 %v10548_v60  ;;  %v10606_v52 = vcombine.high %v5387_v14, %v5391_v37  ;;  %v5394_v60 = vld [vmem:[#allocation8 + $0xfd0] sm:$0xff]  ;;  %v11027_v62 = vld [vmem:[#allocation10 + $0xf8] sm:$0xff]   ;;  %vm10784_vm7 = vmpackc.low %vm8630_vm5, %vm8630_vm5 }
 0x563   :  { %8589 = vmatprep.subr.bf16.mxu1 %v10550_v1  ;;  %v5398_v1 = vld [vmem:[#allocation8 + $0xff0] sm:$0xff] }
 0x564   :  { %v10611_v57 = vcombine.low %v5394_v60, %v5398_v1 }
 0x565   :  { %8426 = vmatpush1.bf16.msra.mxu0 %v10547_v40  ;;  %v11835_v40 = vld [vmem:[#allocation14 + $0x8] sm:$0xff] }
 0x566   :  { %8590 = vmatpush1.bf16.msra.mxu1 %v10549_v36  ;;  %8427 = vmatprep.subr.bf16.mxu0 %v10556_v59  ;;  %v10605_v36 = vcombine.low %v5387_v14, %v5391_v37  ;;  %v10612_v59 = vcombine.high %v5394_v60, %v5398_v1  ;;  %v8623_v22 = vunpack.c.h.bf16 %v11835_v40  ;;  %v8622_v12 = vunpack.c.l.bf16 %v11835_v40  ;;  %v11032_v14 = vld [vmem:[#allocation10 + $0x100] sm:$0xff]   ;;  %v11036_v60 = vld [vmem:[#allocation10 + $0x108] sm:$0xff]   ;;  %v11039_v1 = vld [vmem:[#allocation10 + $0x1d0] sm:$0xff]  }
 0x567   :  { %8591 = vmatprep.subr.bf16.mxu1 %v10558_v54  ;;  %v10614_v54 = vcombine.high %v5395_v38, %v5399_v35  ;;  %v11040_v38 = vld [vmem:[#allocation10 + $0x110] sm:$0xff]   ;;  %v11044_v40 = vld [vmem:[#allocation10 + $0x118] sm:$0xff]  }
 0x568   :  { %v8638_v49 = vmul.f32 %v8622_v12, %v11827_v11  ;;  %v11038_v11 = vld [vmem:[#allocation10 + $0x150] sm:$0xff]  }
 0x569   :  { %8428 = vmatpush1.bf16.msra.mxu0 %v10555_v5  ;;  %v10998_v5 = vld [vmem:[#allocation10 + $0x40] sm:$0xff]   ;;  %v11041_v35 = vld [vmem:[#allocation10 + $0x190] sm:$0xff]  }
 0x56a   :  { %8592 = vmatpush1.bf16.msra.mxu1 %v10557_v34  ;;  %8429 = vmatprep.subr.bf16.mxu0 %v10564_v25  ;;  %v10999_v34 = vld [vmem:[#allocation10 + $0xc0] sm:$0xff]   ;;  %v8637_v25 = vmul.f32 %v8621_v55, %v11829_v2  ;;  %v11004_v2 = vld [vmem:[#allocation10 + $0x8] sm:$0xff]  }
 0x56b   :  { %8593 = vmatprep.subr.bf16.mxu1 %v10566_v6  ;;  %v8639_v6 = vmul.f32 %v8623_v22, %v11831_v48  ;;  %v11005_v48 = vld [vmem:[#allocation10 + $0x88] sm:$0xff]   ;;  %v11048_v55 = vld [vmem:[#allocation10 + $0x120] sm:$0xff]  }
 0x56c   :  { %v10776_v8 = vpack.c.bf16 %v8637_v25, %v8637_v25  ;;  %v11049_v22 = vld [vmem:[#allocation10 + $0x1a0] sm:$0xff]   ;;  %v11054_v25 = vld [vmem:[#allocation10 + $0x170] sm:$0xff]  }
 0x56d   :  { %8430 = vmatpush1.bf16.msra.mxu0 %v10563_v18  ;;  %v11003_v18 = vld [vmem:[#allocation10 + $0xc8] sm:$0xff]  }
 0x56e   :  { %8594 = vmatpush1.bf16.msra.mxu1 %v10565_v19  ;;  %8431 = vmatprep.subr.bf16.mxu0 %v10572_v53  ;;  %v10782_v19 = vpack.c.bf16 %v8639_v6, %v8639_v6  ;;  %v11006_v53 = vld [vmem:[#allocation10 + $0x50] sm:$0xff]  }
 0x56f   :  { %8595 = vmatprep.subr.bf16.mxu1 %v10574_v56  ;;  %v11007_v56 = vld [vmem:[#allocation10 + $0xd0] sm:$0xff]  }
 0x570   :  { %v11055_v6 = vld [vmem:[#allocation10 + $0x1f0] sm:$0xff]  }
 0x571   :  { %8432 = vmatpush1.bf16.msra.mxu0 %v10571_v20  ;;  %v11014_v20 = vld [vmem:[#allocation10 + $0x60] sm:$0xff]  }
 0x572   :  { %8596 = vmatpush1.bf16.msra.mxu1 %v10573_v21  ;;  %8433 = vmatprep.subr.bf16.mxu0 %v10580_v27  ;;  %v11015_v21 = vld [vmem:[#allocation10 + $0xe0] sm:$0xff]  }
 0x573   :  { %8597 = vmatprep.subr.bf16.mxu1 %v10582_v23  ;;  %v11016_v27 = vld [vmem:[#allocation10 + $0x20] sm:$0xff]  }
 0x574   :  { %v11017_v23 = vld [vmem:[#allocation10 + $0xa0] sm:$0xff]  }
 0x575   :  { %8434 = vmatpush1.bf16.msra.mxu0 %v10579_v30  ;;  %v11022_v30 = vld [vmem:[#allocation10 + $0x70] sm:$0xff]  }
 0x576   :  { %8598 = vmatpush1.bf16.msra.mxu1 %v10581_v31  ;;  %8435 = vmatprep.subr.bf16.mxu0 %v10588_v33  ;;  %v11023_v31 = vld [vmem:[#allocation10 + $0xf0] sm:$0xff]  }
 0x577   :  { %8599 = vmatprep.subr.bf16.mxu1 %v10590_v39  ;;  %v11024_v33 = vld [vmem:[#allocation10 + $0x30] sm:$0xff]   ;;  %v8620_v39 = vunpack.c.l.bf16 %v11833_v45  ;;  %v11042_v45 = vld [vmem:[#allocation10 + $0x158] sm:$0xff]  }
 0x579   :  { %8436 = vmatpush1.bf16.msra.mxu0 %v10587_v43  ;;  %v11028_v43 = vld [vmem:[#allocation10 + $0x38] sm:$0xff]  }
 0x57a   :  { %8600 = vmatpush1.bf16.msra.mxu1 %v10589_v9  ;;  %8437 = vmatprep.subr.bf16.mxu0 %v10596_v46  ;;  %v8636_v9 = vmul.f32 %v8620_v39, %v11825_v44  ;;  %v11029_v46 = vld [vmem:[#allocation10 + $0xb8] sm:$0xff]   ;;  %v11037_v44 = vld [vmem:[#allocation10 + $0x188] sm:$0xff]  }
 0x57b   :  { %8601 = vmatprep.subr.bf16.mxu1 %v10598_v47  ;;  %v11030_v47 = vld [vmem:[#allocation10 + $0x140] sm:$0xff]  }
 0x57c   :  { %v10779_v37 = vpack.c.bf16 %v8636_v9, %v8636_v9 }
 0x57d   :  { %8438 = vmatpush1.bf16.msra.mxu0 %v10595_v15  ;;  %v11033_v15 = vld [vmem:[#allocation10 + $0x180] sm:$0xff]  }
 0x57e   :  { %8602 = vmatpush1.bf16.msra.mxu1 %v10597_v13  ;;  %8439 = vmatprep.subr.bf16.mxu0 %v10604_v51  ;;  %v11034_v13 = vld [vmem:[#allocation10 + $0x148] sm:$0xff]   ;;  %v10785_v51 = vpack.c.bf16 %v8638_v49, %v8638_v49 }
 0x57f   :  { %8603 = vmatprep.subr.bf16.mxu1 %v10606_v52  ;;  %v11035_v52 = vld [vmem:[#allocation10 + $0x1c8] sm:$0xff]  }
 0x581   :  { %8440 = vmatpush1.bf16.msra.mxu0 %v10603_v28  ;;  %v11043_v28 = vld [vmem:[#allocation10 + $0x1d8] sm:$0xff]  }
 0x582   :  { %8604 = vmatpush1.bf16.msra.mxu1 %v10605_v36  ;;  %8441 = vmatprep.subr.bf16.mxu0 %v10612_v59  ;;  %v11045_v36 = vld [vmem:[#allocation10 + $0x198] sm:$0xff]   ;;  %v11046_v59 = vld [vmem:[#allocation10 + $0x160] sm:$0xff]  }
 0x583   :  { %8605 = vmatprep.subr.bf16.mxu1 %v10614_v54  ;;  %v11047_v54 = vld [vmem:[#allocation10 + $0x1e0] sm:$0xff]  }
 0x585   :  { %8442 = vmatpush1.bf16.msra.mxu0 %v10611_v57  ;;  %v11050_v57 = vld [vmem:[#allocation10 + $0x168] sm:$0xff]  }
 0x586   :  { %8606 = vmatpush1.bf16.msra.mxu1 %v10613_v61  ;;  %10799 = vmatprep.subr.bf16.mxu0 %v10998_v5  ;;  %v11051_v61 = vld [vmem:[#allocation10 + $0x1e8] sm:$0xff]  }
 0x587   :  { %10821 = vmatprep.subr.bf16.mxu1 %v10999_v34  ;;  %v11052_v5 = vld [vmem:[#allocation10 + $0x128] sm:$0xff]  }
 0x588   :  { %10686 = vmatmul.mubr.msk.bf16.vlgmr.msra.gmra.mrb[20].mxu0 %vm11773_vm15, %v11771_v63  ;;  %v11053_v34 = vld [vmem:[#allocation10 + $0x1a8] sm:$0xff]  }
 0x589   :  { %10710 = vmatmul.mubr.msk.bf16.vlgmr.msra.gmra.mrb[20].mxu1 %vm11773_vm15, %v11771_v63  ;;  %10800 = vmatpush3.bf16.msra.mxu0 %v11000_v10  ;;  %v11012_v63 = vld [vmem:[#allocation10 + $0x18] sm:$0xff]   ;;  %v11056_v10 = vld [vmem:[#allocation10 + $0x130] sm:$0xff]  }
 0x58a   :  { %10777 = vmatprep.mubr.msk.bf16.mxu0 %vm10775_vm2, %v10776_v8  ;;  %10822 = vmatpush3.bf16.msra.mxu1 %v11001_v7  ;;  %v11057_v7 = vld [vmem:[#allocation10 + $0x1b0] sm:$0xff]   ;;  %v11059_v8 = vld [vmem:[#allocation10 + $0x1f8] sm:$0xff]  }
 0x58b   :  { %10783 = vmatprep.mubr.msk.bf16.mxu1 %vm10781_vm3, %v10782_v19  ;;  %10801 = vmatprep.subr.bf16.mxu0 %v11002_v32  ;;  %v11058_v32 = vld [vmem:[#allocation10 + $0x178] sm:$0xff]  }
 0x58c   :  { %10823 = vmatprep.subr.bf16.mxu1 %v11003_v18  ;;  %v11060_v18 = vld [vmem:[#allocation10 + $0x138] sm:$0xff]  }
 0x58d   :  { %10802 = vmatpush3.bf16.msra.mxu0 %v11004_v2  ;;  %v11061_v19 = vld [vmem:[#allocation10 + $0x1b8] sm:$0xff]   ;;  %v8618_v2 = vld [vmem:[#allocation14 + $0x10] sm:$0xff] }
 0x58e   :  { %10824 = vmatpush3.bf16.msra.mxu1 %v11005_v48  ;;  %10803 = vmatprep.subr.bf16.mxu0 %v11006_v53  ;;  %v8619_v48 = vld [vmem:[#allocation14 + $0x18] sm:$0xff]  ;;  %v8624_v53 = vunpack.c.l.bf16 %v8618_v2 }
 0x58f   :  { %10825 = vmatprep.subr.bf16.mxu1 %v11007_v56  ;;  %v8626_v56 = vunpack.c.l.bf16 %v8619_v48 }
 0x591   :  { %10804 = vmatpush3.bf16.msra.mxu0 %v11008_v3  ;;  %v8625_v3 = vunpack.c.h.bf16 %v8618_v2 }
 0x592   :  { %10826 = vmatpush3.bf16.msra.mxu1 %v11009_v26  ;;  %10805 = vmatprep.subr.bf16.mxu0 %v11010_v17  ;;  %v8627_v26 = vunpack.c.h.bf16 %v8619_v48 }
 0x593   :  { %10827 = vmatprep.subr.bf16.mxu1 %v11011_v58 }
 0x595   :  { %10806 = vmatpush3.bf16.msra.mxu0 %v11012_v63 }
 0x596   :  { %10828 = vmatpush3.bf16.msra.mxu1 %v11013_v16  ;;  %10807 = vmatprep.subr.bf16.mxu0 %v11014_v20 }
 0x597   :  { %10829 = vmatprep.subr.bf16.mxu1 %v11015_v21 }
 0x599   :  { %10808 = vmatpush3.bf16.msra.mxu0 %v11016_v27 }
 0x59a   :  { %10830 = vmatpush3.bf16.msra.mxu1 %v11017_v23  ;;  %10809 = vmatprep.subr.bf16.mxu0 %v11018_v29 }
 0x59b   :  { %10831 = vmatprep.subr.bf16.mxu1 %v11019_v50 }
 0x59d   :  { %10810 = vmatpush3.bf16.msra.mxu0 %v11020_v0 }
 0x59e   :  { %10832 = vmatpush3.bf16.msra.mxu1 %v11021_v4  ;;  %10811 = vmatprep.subr.bf16.mxu0 %v11022_v30 }
 0x59f   :  { %10833 = vmatprep.subr.bf16.mxu1 %v11023_v31 }
 0x5a1   :  { %10812 = vmatpush3.bf16.msra.mxu0 %v11024_v33 }
 0x5a2   :  { %10834 = vmatpush3.bf16.msra.mxu1 %v11025_v42  ;;  %10813 = vmatprep.subr.bf16.mxu0 %v11026_v41 }
 0x5a3   :  { %10835 = vmatprep.subr.bf16.mxu1 %v11027_v62 }
 0x5a5   :  { %10814 = vmatpush3.bf16.msra.mxu0 %v11028_v43 }
 0x5a6   :  { %10836 = vmatpush3.bf16.msra.mxu1 %v11029_v46  ;;  %10843 = vmatprep.subr.bf16.mxu0 %v11030_v47 }
 0x5a7   :  { %10865 = vmatprep.subr.bf16.mxu1 %v11031_v24 }
 0x5a8   :  { %10780 = vmatmul.mubr.msk.bf16.vlgmr.msra.gmra.mrb[24].mxu0 %vm10778_vm6, %v10779_v37  ;;  %v9332_v37 = vlaneseq }
 0x5a9   :  { %10786 = vmatmul.mubr.msk.bf16.vlgmr.msra.gmra.mrb[24].mxu1 %vm10784_vm7, %v10785_v51  ;;  %10844 = vmatpush3.bf16.msra.mxu0 %v11032_v14 }
 0x5aa   :  { %10866 = vmatpush3.bf16.msra.mxu1 %v11033_v15  ;;  %10845 = vmatprep.subr.bf16.mxu0 %v11034_v13 }
 0x5ab   :  { %10867 = vmatprep.subr.bf16.mxu1 %v11035_v52  ;;  %v9333_v52 = vand.u32 127, %v9332_v37 }
 0x5ad   :  { %10846 = vmatpush3.bf16.msra.mxu0 %v11036_v60  ;;  %vm9334_vm0 = vcmp.lt.s32.totalorder %v9333_v52, 5 }
 0x5ae   :  { %10868 = vmatpush3.bf16.msra.mxu1 %v11037_v44  ;;  %10847 = vmatprep.subr.bf16.mxu0 %v11038_v11 }
 0x5af   :  { %10869 = vmatprep.subr.bf16.mxu1 %v11039_v1 }
 0x5b1   :  { %10848 = vmatpush3.bf16.msra.mxu0 %v11040_v38 }
 0x5b2   :  { %10870 = vmatpush3.bf16.msra.mxu1 %v11041_v35  ;;  %10849 = vmatprep.subr.bf16.mxu0 %v11042_v45 }
 0x5b3   :  { %10871 = vmatprep.subr.bf16.mxu1 %v11043_v28 }
 0x5b5   :  { %10850 = vmatpush3.bf16.msra.mxu0 %v11044_v40 }
 0x5b6   :  { %10872 = vmatpush3.bf16.msra.mxu1 %v11045_v36  ;;  %10851 = vmatprep.subr.bf16.mxu0 %v11046_v59 }
 0x5b7   :  { %10873 = vmatprep.subr.bf16.mxu1 %v11047_v54 }
 0x5b9   :  { %10852 = vmatpush3.bf16.msra.mxu0 %v11048_v55 }
 0x5ba   :  { %10874 = vmatpush3.bf16.msra.mxu1 %v11049_v22  ;;  %10853 = vmatprep.subr.bf16.mxu0 %v11050_v57 }
 0x5bb   :  { %10875 = vmatprep.subr.bf16.mxu1 %v11051_v61 }
 0x5bd   :  { %10854 = vmatpush3.bf16.msra.mxu0 %v11052_v5 }
 0x5be   :  { %10876 = vmatpush3.bf16.msra.mxu1 %v11053_v34  ;;  %10855 = vmatprep.subr.bf16.mxu0 %v11054_v25 }
 0x5bf   :  { %10877 = vmatprep.subr.bf16.mxu1 %v11055_v6 }
 0x5c1   :  { %10856 = vmatpush3.bf16.msra.mxu0 %v11056_v10 }
 0x5c2   :  { %10878 = vmatpush3.bf16.msra.mxu1 %v11057_v7  ;;  %10857 = vmatprep.subr.bf16.mxu0 %v11058_v32 }
 0x5c3   :  { %10879 = vmatprep.subr.bf16.mxu1 %v11059_v8 }
 0x5c5   :  { %10858 = vmatpush3.bf16.msra.mxu0 %v11060_v18 }
 0x5c6   :  { %10880 = vmatpush3.bf16.msra.mxu1 %v11061_v19 }
 0x65b   :  { %v8445_v17 = vpop.f32.mrb[20].mxu0 }
 0x65c   :  { %vm8632_vm8 = vcmp.gt.f32.partialorder %v8445_v17, 0.0  ;;  %v8640_v58 = vmul.f32 %v8624_v53, %v8445_v17  ;;  %v8609_v63 = vpop.f32.mrb[20].mxu1  ;;  %v8447_v16 = vpop.f32.mrb[21].mxu0 }
 0x65d   :  { %v8642_v20 = vmul.f32 %v8626_v56, %v8609_v63  ;;  %vm8633_vm9 = vcmp.gt.f32.partialorder %v8447_v16, 0.0  ;;  %v8641_v21 = vmul.f32 %v8625_v3, %v8447_v16  ;;  %v8611_v27 = vpop.f32.mrb[21].mxu1  ;;  %v8449_v23 = vpop.f32.mrb[22].mxu0  ;;  %vm10790_vm11 = vmpackc.low %vm8632_vm8, %vm8632_vm8  ;;  %vm8634_vm12 = vcmp.gt.f32.partialorder %v8609_v63, 0.0 }
 0x65e   :  { %vm8635_vm10 = vcmp.gt.f32.partialorder %v8611_v27, 0.0  ;;  %v8643_v29 = vmul.f32 %v8627_v26, %v8611_v27  ;;  %v8613_v50 = vpop.f32.mrb[22].mxu1  ;;  %v8450_v0 = vpop.f32.mrb[23].mxu0  ;;  %v10791_v31 = vpack.c.bf16 %v8640_v58, %v8640_v58  ;;  %vm10787_vm13 = vmpackc.low %vm8633_vm9, %vm8633_vm9 }
 0x65f   :  { %v10788_v4 = vpack.c.bf16 %v8641_v21, %v8641_v21  ;;  %v8614_v30 = vpop.f32.mrb[23].mxu1  ;;  %v10797_v39 = vpack.c.bf16 %v8642_v20, %v8642_v20  ;;  %vm10793_vm14 = vmpackc.low %vm8635_vm10, %vm8635_vm10 }
 0x660   :  { %v10794_v33 = vpack.c.bf16 %v8643_v29, %v8643_v29  ;;  %vm10796_vm15 = vmpackc.low %vm8634_vm12, %vm8634_vm12 }
 0x661   :  { %10789 = vmatprep.mubr.msk.bf16.mxu0 %vm10787_vm13, %v10788_v4 }
 0x662   :  { %10795 = vmatprep.mubr.msk.bf16.mxu1 %vm10793_vm14, %v10794_v33  ;;  %10792 = vmatmul.mubr.msk.bf16.vlgmr.msra.gmra.mrb[28].mxu0 %vm10790_vm11, %v10791_v31 }
 0x663   :  { %10798 = vmatmul.mubr.msk.bf16.vlgmr.msra.gmra.mrb[28].mxu1 %vm10796_vm15, %v10797_v39 }
 0x67b   :  { %v10815_v42 = vpop.f32.mrb[24].mxu0 }
 0x67c   :  { %v10837_v41 = vpop.f32.mrb[24].mxu1  ;;  %v10816_v12 = vpop.f32.mrb[25].mxu0 }
 0x67d   :  { %v10817_v62 = vadd.f32 %v10816_v12, %v10815_v42  ;;  %v10838_v43 = vpop.f32.mrb[25].mxu1  ;;  %v10818_v9 = vpop.f32.mrb[26].mxu0 }
 0x67e   :  { %v10839_v46 = vadd.f32 %v10838_v43, %v10837_v41  ;;  %v10840_v47 = vpop.f32.mrb[26].mxu1  ;;  %v10819_v49 = vpop.f32.mrb[27].mxu0 }
 0x67f   :  { %v10841_v24 = vpop.f32.mrb[27].mxu1 }
 0x680   :  { %v9247_v14 = vadd.f32 %v10839_v46, %v10817_v62 }
 0x735   :  { %v10859_v15 = vpop.f32.mrb[28].mxu0 }
 0x736   :  { %v10881_v13 = vpop.f32.mrb[28].mxu1  ;;  %v10860_v51 = vpop.f32.mrb[29].mxu0 }
 0x737   :  { %v10861_v60 = vadd.f32 %v10860_v51, %v10859_v15  ;;  %v10882_v44 = vpop.f32.mrb[29].mxu1  ;;  %v10862_v11 = vpop.f32.mrb[30].mxu0 }
 0x738   :  { %v10883_v1 = vadd.f32 %v10882_v44, %v10881_v13  ;;  %v10884_v38 = vpop.f32.mrb[30].mxu1  ;;  %v10863_v35 = vpop.f32.mrb[31].mxu0 }
 0x739   :  { %v9287_v45 = vadd.f32 %v10861_v60, %v9247_v14  ;;  %v10885_v28 = vpop.f32.mrb[31].mxu1 }
 0x73b   :  { %v9327_v40 = vadd.f32 %v10883_v1, %v9287_v45 }
 0x73d   :  { %v9335_v36 = vsel %vm9334_vm0, %v9327_v40, -1e+30 }
 0x73e   :  { %9336 = vmax.xlane.f32.xlu0 %v9335_v36 }
 0x7cb   :  { %v9337_v59 = vpop.xlane.xlu0 %9336 }
 0x7cc   :  { %v9338_v54 = vsub.f32 %v9335_v36, %v9337_v59 }
 0x7ce   :  { %v9339_v55 = vmul.f32 1.442695, %v9338_v54 }
 0x7d0   :  { %11062 = vpow2.f32 %v9339_v55 }
 0x7da   :  { %v11063_v22 = vpop.eup %11062 }
 0x7db   :  { %9341 = vadd.xlane.f32.xlu0 %v11063_v22 }
 0x868   :  { %v9342_v57 = vpop.xlane.xlu0 %9341 }
 0x869   :  { %11064 = vrcp.f32 %v9342_v57 }
 0x873   :  { %v11065_v61 = vpop.eup %11064 }
 0x874   :  { %v9344_v5 = vmul.f32 %v11065_v61, %v11063_v22 }
 0x876   :  { %9345 = vst [vmem:[#allocation16] sm:$0xff] %v9344_v5 }
 0x877   :  { %11253 = shalt.err (!%p11250_p12)
}
 0x878   :  { %s11254_s25 = scalar_lea.hbm %s11875_s8, 128 }
 0x879   :  { %p11255_p13 = scmp.ne.s32.totalorder %s11875_s8, %s11254_s25  ;;  %p11258_p0 = scmp.lt.u32.totalorder %s11254_s25, %s11875_s8 }
 0x87b   :  { %p11260_p1 = pnand %p11258_p0, %p11255_p13 }
 0x87d   :  { %11263 = shalt.err (!%p11260_p1)
}
 0x87e   :  { %9355 = dma.vmem_to_hbm [thread:$0]  %s9353_s9, 128, %s11875_s8, [#allocation4]  }
 0x87f   :  { %11274 = dma.done.wait [#allocation4], 128  }
 0x880   :  { %11275 = vsyncadd [#allocation4], 4294967168 }
 0x881   :  { %9359 = vsyncpa [#allocation3], 1 }
 0x882   :  { %9360 = vsyncpa [#allocation6], 1 }
 0x883   :  { %9361 = vsyncpa [#allocation9], 1 }
 0x884   :  { %9362 = vsyncpa [#allocation12], 1 }
 0x885   :  { %9363 = vsyncpa [#allocation15], 1 }
 0x886   :  { %9364 = vsyncpa [#allocation4], 1 }

</bundles_post_ra>
